<compile_context>
chip_gen: v5e
topology: v5e:2x2
jax: 0.10.0
libtpu: 0.0.40
codegen_flags: <defaults>
</compile_context>

<pallas_src>
import functools
import math

import jax
import jax.numpy as jnp
from jax.experimental import pallas as pl
from jax.experimental.pallas import tpu as pltpu


# ----------------------------------------------------------------------------
# Pallas kernels
# ----------------------------------------------------------------------------
def _matmul_kernel(a_ref, b_ref, bias_ref, o_ref, acc_ref, *, activation):
    @pl.when(pl.program_id(2) == 0)
    def _():
        acc_ref[...] = jnp.zeros_like(acc_ref)

    acc_ref[...] += jnp.dot(a_ref[...], b_ref[...],
                            preferred_element_type=jnp.float32)

    @pl.when(pl.program_id(2) == pl.num_programs(2) - 1)
    def _():
        r = acc_ref[...] + bias_ref[...]
        if activation == "relu":
            r = jnp.maximum(r, 0.0)
        elif activation == "tanh":
            r = jnp.tanh(r)
        o_ref[...] = r.astype(o_ref.dtype)


def _in_kernel(x_ref, g_ref, b_ref, o_ref, *, relu, eps):
    # x_ref: (H*W, C) for one instance; InstanceNorm uses biased variance (PyTorch).
    x = x_ref[...].astype(jnp.float32)
    mean = jnp.mean(x, axis=0, keepdims=True)
    var = jnp.mean(jnp.square(x - mean), axis=0, keepdims=True)
    y = (x - mean) * jax.lax.rsqrt(var + eps)
    y = y * g_ref[...] + b_ref[...]
    if relu:
        y = jnp.maximum(y, 0.0)
    o_ref[...] = y.astype(o_ref.dtype)


def _in_res_kernel(x_ref, g_ref, b_ref, r_ref, o_ref, *, eps):
    # InstanceNorm (no ReLU) with fused residual add: out = residual + IN(x).
    x = x_ref[...].astype(jnp.float32)
    mean = jnp.mean(x, axis=0, keepdims=True)
    var = jnp.mean(jnp.square(x - mean), axis=0, keepdims=True)
    y = (x - mean) * jax.lax.rsqrt(var + eps)
    y = y * g_ref[...] + b_ref[...]
    o_ref[...] = (y + r_ref[...].astype(jnp.float32)).astype(o_ref.dtype)


# ----------------------------------------------------------------------------
# Pallas wrappers
# ----------------------------------------------------------------------------
def _round_up(x, m):
    return (x + m - 1) // m * m


def matmul_bias(a, b, bias=None, activation=None):
    """a: (M, K), b: (K, N) -> (M, N) float32.  bf16 MXU inputs, f32 accumulation."""
    M, K = a.shape
    K2, N = b.shape
    assert K == K2
    a = a.astype(jnp.bfloat16)
    b = b.astype(jnp.bfloat16)
    if bias is None:
        bias = jnp.zeros((N,), jnp.float32)

    cap_k = 2048 if M <= 8 else 1024          # small-M (FC) layers: fewer grid steps
    tm = min(_round_up(M, 8), 256)
    tn = min(_round_up(N, 128), 512)
    tk = min(_round_up(K, 128), cap_k)
    Mp, Np, Kp = _round_up(M, tm), _round_up(N, tn), _round_up(K, tk)

    a_p = a if (Mp, Kp) == (M, K) else jnp.pad(a, ((0, Mp - M), (0, Kp - K)))
    b_p = b if (Kp, Np) == (K, N) else jnp.pad(b, ((0, Kp - K), (0, Np - N)))
    bias_p = jnp.pad(bias.astype(jnp.float32).reshape(1, N), ((0, 0), (0, Np - N)))

    out = pl.pallas_call(
        functools.partial(_matmul_kernel, activation=activation),
        out_shape=jax.ShapeDtypeStruct((Mp, Np), jnp.float32),
        grid_spec=pltpu.PrefetchScalarGridSpec(
            num_scalar_prefetch=0,
            grid=(Mp // tm, Np // tn, Kp // tk),
            in_specs=[
                pl.BlockSpec((tm, tk), lambda i, j, k: (i, k)),
                pl.BlockSpec((tk, tn), lambda i, j, k: (k, j)),
                pl.BlockSpec((1, tn), lambda i, j, k: (0, j)),
            ],
            out_specs=pl.BlockSpec((tm, tn), lambda i, j, k: (i, j)),
            scratch_shapes=[pltpu.VMEM((tm, tn), jnp.float32)],
        ),
        compiler_params=pltpu.CompilerParams(
            dimension_semantics=("parallel", "parallel", "arbitrary")),
    )(a_p, b_p, bias_p)
    if (Mp, Np) != (M, N):
        out = out[:M, :N]
    return out


def instance_norm_nhwc(x, gamma, beta, relu=True, residual=None, eps=1e-5):
    """InstanceNorm2d(affine=True), per-instance statistics, NHWC layout.
    Optionally fuses `residual + IN(x)` (used for the residual blocks)."""
    B, H, W, C = x.shape
    hw = H * W
    x2 = x.reshape(B, hw, C)
    g2 = gamma.astype(jnp.float32).reshape(1, C)
    b2 = beta.astype(jnp.float32).reshape(1, C)

    in_specs = [
        pl.BlockSpec((None, hw, C), lambda i: (i, 0, 0)),
        pl.BlockSpec((1, C), lambda i: (0, 0)),
        pl.BlockSpec((1, C), lambda i: (0, 0)),
    ]
    args = [x2, g2, b2]
    if residual is None:
        kernel = functools.partial(_in_kernel, relu=relu, eps=eps)
    else:
        kernel = functools.partial(_in_res_kernel, eps=eps)
        in_specs.append(pl.BlockSpec((None, hw, C), lambda i: (i, 0, 0)))
        args.append(residual.reshape(B, hw, C))

    out = pl.pallas_call(
        kernel,
        out_shape=jax.ShapeDtypeStruct((B, hw, C), jnp.float32),
        grid_spec=pltpu.PrefetchScalarGridSpec(
            num_scalar_prefetch=0,
            grid=(B,),
            in_specs=in_specs,
            out_specs=pl.BlockSpec((None, hw, C), lambda i: (i, 0, 0)),
        ),
        compiler_params=pltpu.CompilerParams(dimension_semantics=("parallel",)),
    )(*args)
    return out.reshape(B, H, W, C)


# ----------------------------------------------------------------------------
# Conv lowering (NHWC im2col glue + Pallas matmul)
# ----------------------------------------------------------------------------
def _im2col_nhwc(xpad, kh, kw, stride):
    B, H, W, C = xpad.shape
    Ho = (H - kh) // stride + 1
    Wo = (W - kw) // stride + 1
    taps = []
    for di in range(kh):
        for dj in range(kw):
            taps.append(xpad[:, di:di + (Ho - 1) * stride + 1:stride,
                             dj:dj + (Wo - 1) * stride + 1:stride, :])
    p = jnp.stack(taps, axis=3)                        # (B, Ho, Wo, kh*kw, C)
    return p.reshape(B * Ho * Wo, kh * kw * C), Ho, Wo


def conv2d_nhwc(x, w_mat, k, stride, padding, activation=None):
    """x: (B,H,W,Cin) f32, w_mat: (k*k*Cin, Cout) bf16, bias=False."""
    B = x.shape[0]
    Cout = w_mat.shape[1]
    xb = x.astype(jnp.bfloat16)
    xpad = jnp.pad(xb, ((0, 0), (padding, padding), (padding, padding), (0, 0)))
    patches, Ho, Wo = _im2col_nhwc(xpad, k, k, stride)
    out = matmul_bias(patches, w_mat, activation=activation)   # (B*Ho*Wo, Cout) f32
    return out.reshape(B, Ho, Wo, Cout)


def conv_transpose2d_nhwc(x, w_subs):
    """ConvTranspose2d(k=4, stride=2, padding=1, bias=False) via 4 parity sub-convs.
    x: (B,H,W,Cin) f32, w_subs: list of 4 matrices (4*Cin, Cout) bf16 (parity order
    py*2+px), each already flipped / sliced / reordered at init time."""
    B, H, W, Cin = x.shape
    Cout = w_subs[0].shape[1]
    xb = x.astype(jnp.bfloat16)
    outs = []
    for py in range(2):
        for px in range(2):
            pad_h = (1, 0) if py == 0 else (0, 1)
            pad_w = (1, 0) if px == 0 else (0, 1)
            xp = jnp.pad(xb, ((0, 0), pad_h, pad_w, (0, 0)))
            patches, Ho, Wo = _im2col_nhwc(xp, 2, 2, 1)          # Ho=H, Wo=W
            o = matmul_bias(patches, w_subs[py * 2 + px])        # (B*H*W, Cout)
            outs.append(o.reshape(B, H, W, Cout))
    y = jnp.stack(outs, axis=3)                  # (B, H, W, 4, Cout); dim3 = py*2+px
    y = y.reshape(B, H, W, 2, 2, Cout)           # (B, H, W, py, px, Cout)
    y = y.transpose(0, 1, 3, 2, 4, 5)            # (B, H, py, W, px, Cout)
    return y.reshape(B, 2 * H, 2 * W, Cout)


# ----------------------------------------------------------------------------
# Parameters (deterministic synthetic init; matmul-ready bf16 weight layouts)
# ----------------------------------------------------------------------------
def init_params(key, nc=3, conv_dim=8, repeat_num=2, z_dim=32,
                image_size=32, fc_hidden=64):
    keys = iter(jax.random.split(key, 256))

    def conv_mat(cout, cin, k):
        w = jax.random.normal(next(keys), (cout, cin, k, k), jnp.float32) \
            * (1.0 / math.sqrt(cin * k * k))
        # row order (di, dj, cin) matches the im2col patch column order
        return w.transpose(2, 3, 1, 0).reshape(k * k * cin, cout).astype(jnp.bfloat16)

    def convT_mats(cin, cout, k=4):
        w = jax.random.normal(next(keys), (cin, cout, k, k), jnp.float32) \
            * (1.0 / math.sqrt(cin * k * k))
        wf = jnp.flip(w, axis=(2, 3))             # correlation with flipped kernel
        mats = []
        for py in range(2):
            for px in range(2):
                sub = wf[:, :, py::2, px::2]      # (cin, cout, 2, 2) -> [cin,cout,a,b]
                mats.append(sub.transpose(2, 3, 0, 1)
                            .reshape(4 * cin, cout).astype(jnp.bfloat16))
        return mats

    def linear(out_f, in_f):
        w = jax.random.normal(next(keys), (out_f, in_f), jnp.float32) \
            * (1.0 / math.sqrt(in_f))
        b = jax.random.normal(next(keys), (out_f,), jnp.float32) * 0.01
        return w.T.astype(jnp.bfloat16), b        # pre-transposed (in, out) bf16

    def in_affine(c):                              # PyTorch default: weight=1, bias=0
        return jnp.ones((c,), jnp.float32), jnp.zeros((c,), jnp.float32)

    p = {}
    # encoder: start + 4 downs
    p['start_w'] = conv_mat(conv_dim, nc, 7)
    p['start_g'], p['start_b'] = in_affine(conv_dim)
    curr = conv_dim
    for i in range(4):
        cout = curr * 2 if i <= 1 else curr
        p[f'down_w{i}'] = conv_mat(cout, curr, 4)
        p[f'down_g{i}'], p[f'down_b{i}'] = in_affine(cout)
        curr = cout
    # residual blocks (encoder + decoder)
    names = [f'enc_res{i}' for i in range(repeat_num)] \
        + [f'dec_res{i}' for i in range(repeat_num)]
    for name in names:
        blk = {'w1': conv_mat(curr, curr, 3), 'w2': conv_mat(curr, curr, 3)}
        blk['g1'], blk['b1'] = in_affine(curr)
        blk['g2'], blk['b2'] = in_affine(curr)
        p[name] = blk
    # fc encoder / decoder (bottleneck flat size derived from image_size / conv_dim)
    flat = curr * (image_size // 16) ** 2
    p['fce_w1'], p['fce_b1'] = linear(fc_hidden, flat)
    p['fce_w2'], p['fce_b2'] = linear(z_dim, fc_hidden)
    p['fcd_w1'], p['fcd_b1'] = linear(fc_hidden, z_dim)
    p['fcd_w2'], p['fcd_b2'] = linear(flat, fc_hidden)
    # up part
    for i in range(4):
        cout = curr if i <= 1 else curr // 2
        p[f'up_w{i}'] = convT_mats(curr, cout, 4)
        p[f'up_g{i}'], p[f'up_b{i}'] = in_affine(cout)
        curr = cout
    p['final_w'] = conv_mat(3, curr, 7)
    return p


# ----------------------------------------------------------------------------
# Forward pass (mirrors Generator_fc.forward; NHWC internally, NCHW at the API)
# ----------------------------------------------------------------------------
def resblock(x, rp):
    h = conv2d_nhwc(x, rp['w1'], 3, 1, 1)
    h = instance_norm_nhwc(h, rp['g1'], rp['b1'], relu=True)
    h = conv2d_nhwc(h, rp['w2'], 3, 1, 1)
    # second IN has no ReLU; residual add fused into the IN kernel's epilogue
    return instance_norm_nhwc(h, rp['g2'], rp['b2'], relu=False, residual=x)


def generator_fc_forward(params, x):
    B = x.shape[0]
    h = jnp.transpose(x, (0, 2, 3, 1))                       # NCHW -> NHWC
    # encoder
    h = conv2d_nhwc(h, params['start_w'], 7, 1, 3)
    h = instance_norm_nhwc(h, params['start_g'], params['start_b'], relu=True)
    for i in range(4):
        h = conv2d_nhwc(h, params[f'down_w{i}'], 4, 2, 1)
        h = instance_norm_nhwc(h, params[f'down_g{i}'], params[f'down_b{i}'], relu=True)
    for i in range(2):
        h = resblock(h, params[f'enc_res{i}'])
    # flatten in (C, H, W) order exactly like PyTorch's .view()
    Bc, Hc, Wc, Cc = h.shape
    x1 = jnp.transpose(h, (0, 3, 1, 2)).reshape(B, -1)
    # fc encoder (weights pre-transposed at init)
    h1 = matmul_bias(x1, params['fce_w1'], params['fce_b1'], activation="relu")
    z = matmul_bias(h1, params['fce_w2'], params['fce_b2'])
    # fc decoder
    h2 = matmul_bias(z, params['fcd_w1'], params['fcd_b1'], activation="relu")
    x2 = matmul_bias(h2, params['fcd_w2'], params['fcd_b2'])
    h = x2.reshape(B, Cc, Hc, Wc).transpose(0, 2, 3, 1)      # back to NHWC
    # decoder
    for i in range(2):
        h = resblock(h, params[f'dec_res{i}'])
    for i in range(4):
        h = conv_transpose2d_nhwc(h, params[f'up_w{i}'])
        h = instance_norm_nhwc(h, params[f'up_g{i}'], params[f'up_b{i}'], relu=True)
    # final 7x7 conv with tanh fused into the matmul epilogue
    h = conv2d_nhwc(h, params['final_w'], 7, 1, 3, activation="tanh")
    x3 = jnp.transpose(h, (0, 3, 1, 2))                      # NHWC -> NCHW
    return x3, z
    # TODO(synk): InstanceNorm2d running-stats buffer updates (track_running_stats
    # train-mode side effect) are not replicated; they do not affect forward outputs.


if __name__ == "__main__":
    key = jax.random.PRNGKey(0)
    pkey, xkey = jax.random.split(key)

    # Scaled-down configuration (keeps the module structure; fast enough for the
    # sandbox/interpret check).  Original config would be nc=3, conv_dim=64,
    # z_dim=500, fc_hidden=4096, image_size=128.
    NC, CONV_DIM, Z_DIM, IMG, FC_HIDDEN, BATCH = 3, 8, 32, 32, 64, 2
    params = init_params(pkey, nc=NC, conv_dim=CONV_DIM, repeat_num=2,
                         z_dim=Z_DIM, image_size=IMG, fc_hidden=FC_HIDDEN)
    x = jax.random.normal(xkey, (BATCH, NC, IMG, IMG), jnp.float32)

    fwd = jax.jit(generator_fc_forward)
    x3, z = fwd(params, x)
    jax.block_until_ready((x3, z))

    assert x3.shape == (BATCH, NC, IMG, IMG) and x3.dtype == jnp.float32
    assert z.shape == (BATCH, Z_DIM) and z.dtype == jnp.float32
    assert bool(jnp.all(jnp.isfinite(x3))) and bool(jnp.all(jnp.isfinite(z)))
    assert bool(jnp.all(jnp.abs(x3) <= 1.0))    # tanh output range
    print("KERNEL_OK")
</pallas_src>

<mosaic_0001>
module attributes {stable_mosaic.version = 11 : i64} {
  func.func @_matmul_kernel(%arg0: i32, %arg1: i32, %arg2: i32, %arg3: memref<256x256xbf16, #tpu.memory_space<vmem>>, %arg4: memref<256x128xbf16, #tpu.memory_space<vmem>>, %arg5: memref<1x128xf32, #tpu.memory_space<vmem>>, %arg6: memref<256x128xf32, #tpu.memory_space<vmem>>, %arg7: memref<256x128xf32, #tpu.memory_space<vmem>>) attributes {dimension_semantics = [#tpu.dimension_semantics<parallel>, #tpu.dimension_semantics<parallel>, #tpu.dimension_semantics<arbitrary>], iteration_bounds = array<i64: 8, 1, 1>, scalar_prefetch = 0 : i64, scratch_operands = 1 : i64, tpu.core_type = #tpu.core_type<tc>, window_params = [{transform_indices = @transform_0, window_bounds = array<i64: 256, 256>}, {transform_indices = @transform_1, window_bounds = array<i64: 256, 128>}, {transform_indices = @transform_2, window_bounds = array<i64: 1, 128>}, {transform_indices = @transform_3, window_bounds = array<i64: 256, 128>}]} {
    %c0_i32 = arith.constant 0 : i32
    %0 = arith.cmpi eq, %arg2, %c0_i32 : i32
    %1 = arith.extui %0 : i1 to i32
    %c0_i32_0 = arith.constant 0 : i32
    %2 = arith.cmpi ne, %1, %c0_i32_0 : i32
    scf.if %2 {
      %cst_10 = arith.constant 0.000000e+00 : f32
      %12 = vector.broadcast %cst_10 : f32 to vector<256x128xf32>
      %c0_11 = arith.constant 0 : index
      %c0_12 = arith.constant 0 : index
      %13 = vector.load %arg7[%c0_11, %c0_12] : memref<256x128xf32, #tpu.memory_space<vmem>>, vector<256x128xf32>
      tpu.vector_store %arg7[%c0_11, %c0_12], %12 {strides = array<i32>} : memref<256x128xf32, #tpu.memory_space<vmem>>, vector<256x128xf32>,
    } else {
    }
    %c0 = arith.constant 0 : index
    %c0_1 = arith.constant 0 : index
    %3 = vector.load %arg7[%c0, %c0_1] : memref<256x128xf32, #tpu.memory_space<vmem>>, vector<256x128xf32>
    %c0_2 = arith.constant 0 : index
    %c0_3 = arith.constant 0 : index
    %4 = vector.load %arg3[%c0_2, %c0_3] : memref<256x256xbf16, #tpu.memory_space<vmem>>, vector<256x256xbf16>
    %c0_4 = arith.constant 0 : index
    %c0_5 = arith.constant 0 : index
    %5 = vector.load %arg4[%c0_4, %c0_5] : memref<256x128xbf16, #tpu.memory_space<vmem>>, vector<256x128xbf16>
    %cst = arith.constant dense<0.000000e+00> : vector<256x128xf32>
    %6 = tpu.matmul %4, %5, %cst {dimension_numbers = #tpu.dot_dimension_numbers<[1], [0], [0], [1], [0, 0, 1, 1], [], []>} : vector<256x256xbf16>, vector<256x128xbf16>, vector<256x128xf32> -> vector<256x128xf32>
    %7 = arith.addf %3, %6 : vector<256x128xf32>
    %c0_6 = arith.constant 0 : index
    %c0_7 = arith.constant 0 : index
    %8 = vector.load %arg7[%c0_6, %c0_7] : memref<256x128xf32, #tpu.memory_space<vmem>>, vector<256x128xf32>
    tpu.vector_store %arg7[%c0_6, %c0_7], %7 {strides = array<i32>} : memref<256x128xf32, #tpu.memory_space<vmem>>, vector<256x128xf32>,
    %c0_i32_8 = arith.constant 0 : i32
    %9 = arith.cmpi eq, %arg2, %c0_i32_8 : i32
    %10 = arith.extui %9 : i1 to i32
    %c0_i32_9 = arith.constant 0 : i32
    %11 = arith.cmpi ne, %10, %c0_i32_9 : i32
    scf.if %11 {
      %c0_10 = arith.constant 0 : index
      %c0_11 = arith.constant 0 : index
      %12 = vector.load %arg7[%c0_10, %c0_11] : memref<256x128xf32, #tpu.memory_space<vmem>>, vector<256x128xf32>
      %c0_12 = arith.constant 0 : index
      %c0_13 = arith.constant 0 : index
      %13 = vector.load %arg5[%c0_12, %c0_13] : memref<1x128xf32, #tpu.memory_space<vmem>>, vector<1x128xf32>
      %14 = vector.broadcast %13 : vector<1x128xf32> to vector<256x128xf32>
      %15 = arith.addf %12, %14 : vector<256x128xf32>
      %c0_14 = arith.constant 0 : index
      %c0_15 = arith.constant 0 : index
      %16 = vector.load %arg6[%c0_14, %c0_15] : memref<256x128xf32, #tpu.memory_space<vmem>>, vector<256x128xf32>
      tpu.vector_store %arg6[%c0_14, %c0_15], %15 {strides = array<i32>} : memref<256x128xf32, #tpu.memory_space<vmem>>, vector<256x128xf32>,
    } else {
    }
    return
  }
  func.func @transform_0(%arg0: i32, %arg1: i32, %arg2: i32) -> (i32, i32) {
    %c0_i32 = arith.constant 0 : i32
    return %arg0, %arg2 : i32, i32
  }
  func.func @transform_1(%arg0: i32, %arg1: i32, %arg2: i32) -> (i32, i32) {
    %c0_i32 = arith.constant 0 : i32
    return %arg2, %arg1 : i32, i32
  }
  func.func @transform_2(%arg0: i32, %arg1: i32, %arg2: i32) -> (i32, i32) {
    %c0_i32 = arith.constant 0 : i32
    %c0_i32_0 = arith.constant 0 : i32
    return %c0_i32, %arg1 : i32, i32
  }
  func.func @transform_3(%arg0: i32, %arg1: i32, %arg2: i32) -> (i32, i32) {
    %c0_i32 = arith.constant 0 : i32
    return %arg0, %arg1 : i32, i32
  }
}

module attributes {stable_mosaic.version = 11 : i64} {
  func.func @_in_kernel(%arg0: i32, %arg1: memref<1x1024x8xf32, #tpu.memory_space<vmem>>, %arg2: memref<1x8xf32, #tpu.memory_space<vmem>>, %arg3: memref<1x8xf32, #tpu.memory_space<vmem>>, %arg4: memref<1x1024x8xf32, #tpu.memory_space<vmem>>) attributes {dimension_semantics = [#tpu.dimension_semantics<parallel>], iteration_bounds = array<i64: 2>, scalar_prefetch = 0 : i64, scratch_operands = 0 : i64, tpu.core_type = #tpu.core_type<tc>, window_params = [{transform_indices = @transform_0, window_bounds = array<i64: 1, 1024, 8>}, {pipeline_mode = #tpu.pipeline_mode<synchronous>, transform_indices = @transform_1, window_bounds = array<i64: 1, 8>}, {pipeline_mode = #tpu.pipeline_mode<synchronous>, transform_indices = @transform_2, window_bounds = array<i64: 1, 8>}, {transform_indices = @transform_3, window_bounds = array<i64: 1, 1024, 8>}]} {
    %c0 = arith.constant 0 : index
    %c0_0 = arith.constant 0 : index
    %c0_1 = arith.constant 0 : index
    %0 = vector.load %arg1[%c0, %c0_0, %c0_1] : memref<1x1024x8xf32, #tpu.memory_space<vmem>>, vector<1x1024x8xf32>
    %1 = vector.shape_cast %0 : vector<1x1024x8xf32> to vector<1024x8xf32>
    %cst = arith.constant dense<0.000000e+00> : vector<8xf32>
    %2 = vector.multi_reduction <add>, %1, %cst [0] : vector<1024x8xf32> to vector<8xf32>
    %3 = vector.shape_cast %2 : vector<8xf32> to vector<1x8xf32>
    %cst_2 = arith.constant 1.024000e+03 : f32
    %4 = vector.broadcast %cst_2 : f32 to vector<1x8xf32>
    %5 = arith.divf %3, %4 : vector<1x8xf32>
    %6 = vector.broadcast %5 : vector<1x8xf32> to vector<1024x8xf32>
    %7 = arith.subf %1, %6 : vector<1024x8xf32>
    %8 = arith.mulf %7, %7 : vector<1024x8xf32>
    %cst_3 = arith.constant dense<0.000000e+00> : vector<8xf32>
    %9 = vector.multi_reduction <add>, %8, %cst_3 [0] : vector<1024x8xf32> to vector<8xf32>
    %10 = vector.shape_cast %9 : vector<8xf32> to vector<1x8xf32>
    %cst_4 = arith.constant 1.024000e+03 : f32
    %11 = vector.broadcast %cst_4 : f32 to vector<1x8xf32>
    %12 = arith.divf %10, %11 : vector<1x8xf32>
    %13 = vector.broadcast %5 : vector<1x8xf32> to vector<1024x8xf32>
    %14 = arith.subf %1, %13 : vector<1024x8xf32>
    %cst_5 = arith.constant 9.99999974E-6 : f32
    %15 = vector.broadcast %cst_5 : f32 to vector<1x8xf32>
    %16 = arith.addf %12, %15 : vector<1x8xf32>
    %17 = math.rsqrt %16 : vector<1x8xf32>
    %18 = vector.broadcast %17 : vector<1x8xf32> to vector<1024x8xf32>
    %19 = arith.mulf %14, %18 : vector<1024x8xf32>
    %c0_6 = arith.constant 0 : index
    %c0_7 = arith.constant 0 : index
    %20 = vector.load %arg2[%c0_6, %c0_7] : memref<1x8xf32, #tpu.memory_space<vmem>>, vector<1x8xf32>
    %21 = vector.broadcast %20 : vector<1x8xf32> to vector<1024x8xf32>
    %22 = arith.mulf %19, %21 : vector<1024x8xf32>
    %c0_8 = arith.constant 0 : index
    %c0_9 = arith.constant 0 : index
    %23 = vector.load %arg3[%c0_8, %c0_9] : memref<1x8xf32, #tpu.memory_space<vmem>>, vector<1x8xf32>
    %24 = vector.broadcast %23 : vector<1x8xf32> to vector<1024x8xf32>
    %25 = arith.addf %22, %24 : vector<1024x8xf32>
    %cst_10 = arith.constant 0.000000e+00 : f32
    %26 = vector.broadcast %cst_10 : f32 to vector<1024x8xf32>
    %27 = arith.maximumf %25, %26 : vector<1024x8xf32>
    %c0_11 = arith.constant 0 : index
    %c0_12 = arith.constant 0 : index
    %c0_13 = arith.constant 0 : index
    %28 = vector.load %arg4[%c0_11, %c0_12, %c0_13] : memref<1x1024x8xf32, #tpu.memory_space<vmem>>, vector<1x1024x8xf32>
    %29 = vector.shape_cast %28 : vector<1x1024x8xf32> to vector<1024x8xf32>
    %30 = vector.shape_cast %27 : vector<1024x8xf32> to vector<1x1024x8xf32>
    tpu.vector_store %arg4[%c0_11, %c0_12, %c0_13], %30 {strides = array<i32>} : memref<1x1024x8xf32, #tpu.memory_space<vmem>>, vector<1x1024x8xf32>,
    return
  }
  func.func @transform_0(%arg0: i32) -> (i32, i32, i32) {
    %c0_i32 = arith.constant 0 : i32
    %c0_i32_0 = arith.constant 0 : i32
    %c0_i32_1 = arith.constant 0 : i32
    return %arg0, %c0_i32, %c0_i32_0 : i32, i32, i32
  }
  func.func @transform_1(%arg0: i32) -> (i32, i32) {
    %c0_i32 = arith.constant 0 : i32
    %c0_i32_0 = arith.constant 0 : i32
    %c0_i32_1 = arith.constant 0 : i32
    return %c0_i32, %c0_i32_0 : i32, i32
  }
  func.func @transform_2(%arg0: i32) -> (i32, i32) {
    %c0_i32 = arith.constant 0 : i32
    %c0_i32_0 = arith.constant 0 : i32
    %c0_i32_1 = arith.constant 0 : i32
    return %c0_i32, %c0_i32_0 : i32, i32
  }
  func.func @transform_3(%arg0: i32) -> (i32, i32, i32) {
    %c0_i32 = arith.constant 0 : i32
    %c0_i32_0 = arith.constant 0 : i32
    %c0_i32_1 = arith.constant 0 : i32
    return %arg0, %c0_i32, %c0_i32_0 : i32, i32, i32
  }
}

module attributes {stable_mosaic.version = 11 : i64} {
  func.func @_matmul_kernel(%arg0: i32, %arg1: i32, %arg2: i32, %arg3: memref<256x128xbf16, #tpu.memory_space<vmem>>, %arg4: memref<128x128xbf16, #tpu.memory_space<vmem>>, %arg5: memref<1x128xf32, #tpu.memory_space<vmem>>, %arg6: memref<256x128xf32, #tpu.memory_space<vmem>>, %arg7: memref<256x128xf32, #tpu.memory_space<vmem>>) attributes {dimension_semantics = [#tpu.dimension_semantics<parallel>, #tpu.dimension_semantics<parallel>, #tpu.dimension_semantics<arbitrary>], iteration_bounds = array<i64: 2, 1, 1>, scalar_prefetch = 0 : i64, scratch_operands = 1 : i64, tpu.core_type = #tpu.core_type<tc>, window_params = [{transform_indices = @transform_0, window_bounds = array<i64: 256, 128>}, {transform_indices = @transform_1, window_bounds = array<i64: 128, 128>}, {transform_indices = @transform_2, window_bounds = array<i64: 1, 128>}, {transform_indices = @transform_3, window_bounds = array<i64: 256, 128>}]} {
    %c0_i32 = arith.constant 0 : i32
    %0 = arith.cmpi eq, %arg2, %c0_i32 : i32
    %1 = arith.extui %0 : i1 to i32
    %c0_i32_0 = arith.constant 0 : i32
    %2 = arith.cmpi ne, %1, %c0_i32_0 : i32
    scf.if %2 {
      %cst_10 = arith.constant 0.000000e+00 : f32
      %12 = vector.broadcast %cst_10 : f32 to vector<256x128xf32>
      %c0_11 = arith.constant 0 : index
      %c0_12 = arith.constant 0 : index
      %13 = vector.load %arg7[%c0_11, %c0_12] : memref<256x128xf32, #tpu.memory_space<vmem>>, vector<256x128xf32>
      tpu.vector_store %arg7[%c0_11, %c0_12], %12 {strides = array<i32>} : memref<256x128xf32, #tpu.memory_space<vmem>>, vector<256x128xf32>,
    } else {
    }
    %c0 = arith.constant 0 : index
    %c0_1 = arith.constant 0 : index
    %3 = vector.load %arg7[%c0, %c0_1] : memref<256x128xf32, #tpu.memory_space<vmem>>, vector<256x128xf32>
    %c0_2 = arith.constant 0 : index
    %c0_3 = arith.constant 0 : index
    %4 = vector.load %arg3[%c0_2, %c0_3] : memref<256x128xbf16, #tpu.memory_space<vmem>>, vector<256x128xbf16>
    %c0_4 = arith.constant 0 : index
    %c0_5 = arith.constant 0 : index
    %5 = vector.load %arg4[%c0_4, %c0_5] : memref<128x128xbf16, #tpu.memory_space<vmem>>, vector<128x128xbf16>
    %cst = arith.constant dense<0.000000e+00> : vector<256x128xf32>
    %6 = tpu.matmul %4, %5, %cst {dimension_numbers = #tpu.dot_dimension_numbers<[1], [0], [0], [1], [0, 0, 1, 1], [], []>} : vector<256x128xbf16>, vector<128x128xbf16>, vector<256x128xf32> -> vector<256x128xf32>
    %7 = arith.addf %3, %6 : vector<256x128xf32>
    %c0_6 = arith.constant 0 : index
    %c0_7 = arith.constant 0 : index
    %8 = vector.load %arg7[%c0_6, %c0_7] : memref<256x128xf32, #tpu.memory_space<vmem>>, vector<256x128xf32>
    tpu.vector_store %arg7[%c0_6, %c0_7], %7 {strides = array<i32>} : memref<256x128xf32, #tpu.memory_space<vmem>>, vector<256x128xf32>,
    %c0_i32_8 = arith.constant 0 : i32
    %9 = arith.cmpi eq, %arg2, %c0_i32_8 : i32
    %10 = arith.extui %9 : i1 to i32
    %c0_i32_9 = arith.constant 0 : i32
    %11 = arith.cmpi ne, %10, %c0_i32_9 : i32
    scf.if %11 {
      %c0_10 = arith.constant 0 : index
      %c0_11 = arith.constant 0 : index
      %12 = vector.load %arg7[%c0_10, %c0_11] : memref<256x128xf32, #tpu.memory_space<vmem>>, vector<256x128xf32>
      %c0_12 = arith.constant 0 : index
      %c0_13 = arith.constant 0 : index
      %13 = vector.load %arg5[%c0_12, %c0_13] : memref<1x128xf32, #tpu.memory_space<vmem>>, vector<1x128xf32>
      %14 = vector.broadcast %13 : vector<1x128xf32> to vector<256x128xf32>
      %15 = arith.addf %12, %14 : vector<256x128xf32>
      %c0_14 = arith.constant 0 : index
      %c0_15 = arith.constant 0 : index
      %16 = vector.load %arg6[%c0_14, %c0_15] : memref<256x128xf32, #tpu.memory_space<vmem>>, vector<256x128xf32>
      tpu.vector_store %arg6[%c0_14, %c0_15], %15 {strides = array<i32>} : memref<256x128xf32, #tpu.memory_space<vmem>>, vector<256x128xf32>,
    } else {
    }
    return
  }
  func.func @transform_0(%arg0: i32, %arg1: i32, %arg2: i32) -> (i32, i32) {
    %c0_i32 = arith.constant 0 : i32
    return %arg0, %arg2 : i32, i32
  }
  func.func @transform_1(%arg0: i32, %arg1: i32, %arg2: i32) -> (i32, i32) {
    %c0_i32 = arith.constant 0 : i32
    return %arg2, %arg1 : i32, i32
  }
  func.func @transform_2(%arg0: i32, %arg1: i32, %arg2: i32) -> (i32, i32) {
    %c0_i32 = arith.constant 0 : i32
    %c0_i32_0 = arith.constant 0 : i32
    return %c0_i32, %arg1 : i32, i32
  }
  func.func @transform_3(%arg0: i32, %arg1: i32, %arg2: i32) -> (i32, i32) {
    %c0_i32 = arith.constant 0 : i32
    return %arg0, %arg1 : i32, i32
  }
}

module attributes {stable_mosaic.version = 11 : i64} {
  func.func @_in_kernel(%arg0: i32, %arg1: memref<1x256x16xf32, #tpu.memory_space<vmem>>, %arg2: memref<1x16xf32, #tpu.memory_space<vmem>>, %arg3: memref<1x16xf32, #tpu.memory_space<vmem>>, %arg4: memref<1x256x16xf32, #tpu.memory_space<vmem>>) attributes {dimension_semantics = [#tpu.dimension_semantics<parallel>], iteration_bounds = array<i64: 2>, scalar_prefetch = 0 : i64, scratch_operands = 0 : i64, tpu.core_type = #tpu.core_type<tc>, window_params = [{transform_indices = @transform_0, window_bounds = array<i64: 1, 256, 16>}, {pipeline_mode = #tpu.pipeline_mode<synchronous>, transform_indices = @transform_1, window_bounds = array<i64: 1, 16>}, {pipeline_mode = #tpu.pipeline_mode<synchronous>, transform_indices = @transform_2, window_bounds = array<i64: 1, 16>}, {transform_indices = @transform_3, window_bounds = array<i64: 1, 256, 16>}]} {
    %c0 = arith.constant 0 : index
    %c0_0 = arith.constant 0 : index
    %c0_1 = arith.constant 0 : index
    %0 = vector.load %arg1[%c0, %c0_0, %c0_1] : memref<1x256x16xf32, #tpu.memory_space<vmem>>, vector<1x256x16xf32>
    %1 = vector.shape_cast %0 : vector<1x256x16xf32> to vector<256x16xf32>
    %cst = arith.constant dense<0.000000e+00> : vector<16xf32>
    %2 = vector.multi_reduction <add>, %1, %cst [0] : vector<256x16xf32> to vector<16xf32>
    %3 = vector.shape_cast %2 : vector<16xf32> to vector<1x16xf32>
    %cst_2 = arith.constant 2.560000e+02 : f32
    %4 = vector.broadcast %cst_2 : f32 to vector<1x16xf32>
    %5 = arith.divf %3, %4 : vector<1x16xf32>
    %6 = vector.broadcast %5 : vector<1x16xf32> to vector<256x16xf32>
    %7 = arith.subf %1, %6 : vector<256x16xf32>
    %8 = arith.mulf %7, %7 : vector<256x16xf32>
    %cst_3 = arith.constant dense<0.000000e+00> : vector<16xf32>
    %9 = vector.multi_reduction <add>, %8, %cst_3 [0] : vector<256x16xf32> to vector<16xf32>
    %10 = vector.shape_cast %9 : vector<16xf32> to vector<1x16xf32>
    %cst_4 = arith.constant 2.560000e+02 : f32
    %11 = vector.broadcast %cst_4 : f32 to vector<1x16xf32>
    %12 = arith.divf %10, %11 : vector<1x16xf32>
    %13 = vector.broadcast %5 : vector<1x16xf32> to vector<256x16xf32>
    %14 = arith.subf %1, %13 : vector<256x16xf32>
    %cst_5 = arith.constant 9.99999974E-6 : f32
    %15 = vector.broadcast %cst_5 : f32 to vector<1x16xf32>
    %16 = arith.addf %12, %15 : vector<1x16xf32>
    %17 = math.rsqrt %16 : vector<1x16xf32>
    %18 = vector.broadcast %17 : vector<1x16xf32> to vector<256x16xf32>
    %19 = arith.mulf %14, %18 : vector<256x16xf32>
    %c0_6 = arith.constant 0 : index
    %c0_7 = arith.constant 0 : index
    %20 = vector.load %arg2[%c0_6, %c0_7] : memref<1x16xf32, #tpu.memory_space<vmem>>, vector<1x16xf32>
    %21 = vector.broadcast %20 : vector<1x16xf32> to vector<256x16xf32>
    %22 = arith.mulf %19, %21 : vector<256x16xf32>
    %c0_8 = arith.constant 0 : index
    %c0_9 = arith.constant 0 : index
    %23 = vector.load %arg3[%c0_8, %c0_9] : memref<1x16xf32, #tpu.memory_space<vmem>>, vector<1x16xf32>
    %24 = vector.broadcast %23 : vector<1x16xf32> to vector<256x16xf32>
    %25 = arith.addf %22, %24 : vector<256x16xf32>
    %cst_10 = arith.constant 0.000000e+00 : f32
    %26 = vector.broadcast %cst_10 : f32 to vector<256x16xf32>
    %27 = arith.maximumf %25, %26 : vector<256x16xf32>
    %c0_11 = arith.constant 0 : index
    %c0_12 = arith.constant 0 : index
    %c0_13 = arith.constant 0 : index
    %28 = vector.load %arg4[%c0_11, %c0_12, %c0_13] : memref<1x256x16xf32, #tpu.memory_space<vmem>>, vector<1x256x16xf32>
    %29 = vector.shape_cast %28 : vector<1x256x16xf32> to vector<256x16xf32>
    %30 = vector.shape_cast %27 : vector<256x16xf32> to vector<1x256x16xf32>
    tpu.vector_store %arg4[%c0_11, %c0_12, %c0_13], %30 {strides = array<i32>} : memref<1x256x16xf32, #tpu.memory_space<vmem>>, vector<1x256x16xf32>,
    return
  }
  func.func @transform_0(%arg0: i32) -> (i32, i32, i32) {
    %c0_i32 = arith.constant 0 : i32
    %c0_i32_0 = arith.constant 0 : i32
    %c0_i32_1 = arith.constant 0 : i32
    return %arg0, %c0_i32, %c0_i32_0 : i32, i32, i32
  }
  func.func @transform_1(%arg0: i32) -> (i32, i32) {
    %c0_i32 = arith.constant 0 : i32
    %c0_i32_0 = arith.constant 0 : i32
    %c0_i32_1 = arith.constant 0 : i32
    return %c0_i32, %c0_i32_0 : i32, i32
  }
  func.func @transform_2(%arg0: i32) -> (i32, i32) {
    %c0_i32 = arith.constant 0 : i32
    %c0_i32_0 = arith.constant 0 : i32
    %c0_i32_1 = arith.constant 0 : i32
    return %c0_i32, %c0_i32_0 : i32, i32
  }
  func.func @transform_3(%arg0: i32) -> (i32, i32, i32) {
    %c0_i32 = arith.constant 0 : i32
    %c0_i32_0 = arith.constant 0 : i32
    %c0_i32_1 = arith.constant 0 : i32
    return %arg0, %c0_i32, %c0_i32_0 : i32, i32, i32
  }
}

module attributes {stable_mosaic.version = 11 : i64} {
  func.func @_matmul_kernel(%arg0: i32, %arg1: i32, %arg2: i32, %arg3: memref<128x256xbf16, #tpu.memory_space<vmem>>, %arg4: memref<256x128xbf16, #tpu.memory_space<vmem>>, %arg5: memref<1x128xf32, #tpu.memory_space<vmem>>, %arg6: memref<128x128xf32, #tpu.memory_space<vmem>>, %arg7: memref<128x128xf32, #tpu.memory_space<vmem>>) attributes {dimension_semantics = [#tpu.dimension_semantics<parallel>, #tpu.dimension_semantics<parallel>, #tpu.dimension_semantics<arbitrary>], iteration_bounds = array<i64: 1, 1, 1>, scalar_prefetch = 0 : i64, scratch_operands = 1 : i64, tpu.core_type = #tpu.core_type<tc>, window_params = [{transform_indices = @transform_0, window_bounds = array<i64: 128, 256>}, {transform_indices = @transform_1, window_bounds = array<i64: 256, 128>}, {transform_indices = @transform_2, window_bounds = array<i64: 1, 128>}, {transform_indices = @transform_3, window_bounds = array<i64: 128, 128>}]} {
    %c0_i32 = arith.constant 0 : i32
    %0 = arith.cmpi eq, %arg2, %c0_i32 : i32
    %1 = arith.extui %0 : i1 to i32
    %c0_i32_0 = arith.constant 0 : i32
    %2 = arith.cmpi ne, %1, %c0_i32_0 : i32
    scf.if %2 {
      %cst_10 = arith.constant 0.000000e+00 : f32
      %12 = vector.broadcast %cst_10 : f32 to vector<128x128xf32>
      %c0_11 = arith.constant 0 : index
      %c0_12 = arith.constant 0 : index
      %13 = vector.load %arg7[%c0_11, %c0_12] : memref<128x128xf32, #tpu.memory_space<vmem>>, vector<128x128xf32>
      tpu.vector_store %arg7[%c0_11, %c0_12], %12 {strides = array<i32>} : memref<128x128xf32, #tpu.memory_space<vmem>>, vector<128x128xf32>,
    } else {
    }
    %c0 = arith.constant 0 : index
    %c0_1 = arith.constant 0 : index
    %3 = vector.load %arg7[%c0, %c0_1] : memref<128x128xf32, #tpu.memory_space<vmem>>, vector<128x128xf32>
    %c0_2 = arith.constant 0 : index
    %c0_3 = arith.constant 0 : index
    %4 = vector.load %arg3[%c0_2, %c0_3] : memref<128x256xbf16, #tpu.memory_space<vmem>>, vector<128x256xbf16>
    %c0_4 = arith.constant 0 : index
    %c0_5 = arith.constant 0 : index
    %5 = vector.load %arg4[%c0_4, %c0_5] : memref<256x128xbf16, #tpu.memory_space<vmem>>, vector<256x128xbf16>
    %cst = arith.constant dense<0.000000e+00> : vector<128x128xf32>
    %6 = tpu.matmul %4, %5, %cst {dimension_numbers = #tpu.dot_dimension_numbers<[1], [0], [0], [1], [0, 0, 1, 1], [], []>} : vector<128x256xbf16>, vector<256x128xbf16>, vector<128x128xf32> -> vector<128x128xf32>
    %7 = arith.addf %3, %6 : vector<128x128xf32>
    %c0_6 = arith.constant 0 : index
    %c0_7 = arith.constant 0 : index
    %8 = vector.load %arg7[%c0_6, %c0_7] : memref<128x128xf32, #tpu.memory_space<vmem>>, vector<128x128xf32>
    tpu.vector_store %arg7[%c0_6, %c0_7], %7 {strides = array<i32>} : memref<128x128xf32, #tpu.memory_space<vmem>>, vector<128x128xf32>,
    %c0_i32_8 = arith.constant 0 : i32
    %9 = arith.cmpi eq, %arg2, %c0_i32_8 : i32
    %10 = arith.extui %9 : i1 to i32
    %c0_i32_9 = arith.constant 0 : i32
    %11 = arith.cmpi ne, %10, %c0_i32_9 : i32
    scf.if %11 {
      %c0_10 = arith.constant 0 : index
      %c0_11 = arith.constant 0 : index
      %12 = vector.load %arg7[%c0_10, %c0_11] : memref<128x128xf32, #tpu.memory_space<vmem>>, vector<128x128xf32>
      %c0_12 = arith.constant 0 : index
      %c0_13 = arith.constant 0 : index
      %13 = vector.load %arg5[%c0_12, %c0_13] : memref<1x128xf32, #tpu.memory_space<vmem>>, vector<1x128xf32>
      %14 = vector.broadcast %13 : vector<1x128xf32> to vector<128x128xf32>
      %15 = arith.addf %12, %14 : vector<128x128xf32>
      %c0_14 = arith.constant 0 : index
      %c0_15 = arith.constant 0 : index
      %16 = vector.load %arg6[%c0_14, %c0_15] : memref<128x128xf32, #tpu.memory_space<vmem>>, vector<128x128xf32>
      tpu.vector_store %arg6[%c0_14, %c0_15], %15 {strides = array<i32>} : memref<128x128xf32, #tpu.memory_space<vmem>>, vector<128x128xf32>,
    } else {
    }
    return
  }
  func.func @transform_0(%arg0: i32, %arg1: i32, %arg2: i32) -> (i32, i32) {
    %c0_i32 = arith.constant 0 : i32
    return %arg0, %arg2 : i32, i32
  }
  func.func @transform_1(%arg0: i32, %arg1: i32, %arg2: i32) -> (i32, i32) {
    %c0_i32 = arith.constant 0 : i32
    return %arg2, %arg1 : i32, i32
  }
  func.func @transform_2(%arg0: i32, %arg1: i32, %arg2: i32) -> (i32, i32) {
    %c0_i32 = arith.constant 0 : i32
    %c0_i32_0 = arith.constant 0 : i32
    return %c0_i32, %arg1 : i32, i32
  }
  func.func @transform_3(%arg0: i32, %arg1: i32, %arg2: i32) -> (i32, i32) {
    %c0_i32 = arith.constant 0 : i32
    return %arg0, %arg1 : i32, i32
  }
}

module attributes {stable_mosaic.version = 11 : i64} {
  func.func @_in_kernel(%arg0: i32, %arg1: memref<1x64x32xf32, #tpu.memory_space<vmem>>, %arg2: memref<1x32xf32, #tpu.memory_space<vmem>>, %arg3: memref<1x32xf32, #tpu.memory_space<vmem>>, %arg4: memref<1x64x32xf32, #tpu.memory_space<vmem>>) attributes {dimension_semantics = [#tpu.dimension_semantics<parallel>], iteration_bounds = array<i64: 2>, scalar_prefetch = 0 : i64, scratch_operands = 0 : i64, tpu.core_type = #tpu.core_type<tc>, window_params = [{transform_indices = @transform_0, window_bounds = array<i64: 1, 64, 32>}, {pipeline_mode = #tpu.pipeline_mode<synchronous>, transform_indices = @transform_1, window_bounds = array<i64: 1, 32>}, {pipeline_mode = #tpu.pipeline_mode<synchronous>, transform_indices = @transform_2, window_bounds = array<i64: 1, 32>}, {transform_indices = @transform_3, window_bounds = array<i64: 1, 64, 32>}]} {
    %c0 = arith.constant 0 : index
    %c0_0 = arith.constant 0 : index
    %c0_1 = arith.constant 0 : index
    %0 = vector.load %arg1[%c0, %c0_0, %c0_1] : memref<1x64x32xf32, #tpu.memory_space<vmem>>, vector<1x64x32xf32>
    %1 = vector.shape_cast %0 : vector<1x64x32xf32> to vector<64x32xf32>
    %cst = arith.constant dense<0.000000e+00> : vector<32xf32>
    %2 = vector.multi_reduction <add>, %1, %cst [0] : vector<64x32xf32> to vector<32xf32>
    %3 = vector.shape_cast %2 : vector<32xf32> to vector<1x32xf32>
    %cst_2 = arith.constant 6.400000e+01 : f32
    %4 = vector.broadcast %cst_2 : f32 to vector<1x32xf32>
    %5 = arith.divf %3, %4 : vector<1x32xf32>
    %6 = vector.broadcast %5 : vector<1x32xf32> to vector<64x32xf32>
    %7 = arith.subf %1, %6 : vector<64x32xf32>
    %8 = arith.mulf %7, %7 : vector<64x32xf32>
    %cst_3 = arith.constant dense<0.000000e+00> : vector<32xf32>
    %9 = vector.multi_reduction <add>, %8, %cst_3 [0] : vector<64x32xf32> to vector<32xf32>
    %10 = vector.shape_cast %9 : vector<32xf32> to vector<1x32xf32>
    %cst_4 = arith.constant 6.400000e+01 : f32
    %11 = vector.broadcast %cst_4 : f32 to vector<1x32xf32>
    %12 = arith.divf %10, %11 : vector<1x32xf32>
    %13 = vector.broadcast %5 : vector<1x32xf32> to vector<64x32xf32>
    %14 = arith.subf %1, %13 : vector<64x32xf32>
    %cst_5 = arith.constant 9.99999974E-6 : f32
    %15 = vector.broadcast %cst_5 : f32 to vector<1x32xf32>
    %16 = arith.addf %12, %15 : vector<1x32xf32>
    %17 = math.rsqrt %16 : vector<1x32xf32>
    %18 = vector.broadcast %17 : vector<1x32xf32> to vector<64x32xf32>
    %19 = arith.mulf %14, %18 : vector<64x32xf32>
    %c0_6 = arith.constant 0 : index
    %c0_7 = arith.constant 0 : index
    %20 = vector.load %arg2[%c0_6, %c0_7] : memref<1x32xf32, #tpu.memory_space<vmem>>, vector<1x32xf32>
    %21 = vector.broadcast %20 : vector<1x32xf32> to vector<64x32xf32>
    %22 = arith.mulf %19, %21 : vector<64x32xf32>
    %c0_8 = arith.constant 0 : index
    %c0_9 = arith.constant 0 : index
    %23 = vector.load %arg3[%c0_8, %c0_9] : memref<1x32xf32, #tpu.memory_space<vmem>>, vector<1x32xf32>
    %24 = vector.broadcast %23 : vector<1x32xf32> to vector<64x32xf32>
    %25 = arith.addf %22, %24 : vector<64x32xf32>
    %cst_10 = arith.constant 0.000000e+00 : f32
    %26 = vector.broadcast %cst_10 : f32 to vector<64x32xf32>
    %27 = arith.maximumf %25, %26 : vector<64x32xf32>
    %c0_11 = arith.constant 0 : index
    %c0_12 = arith.constant 0 : index
    %c0_13 = arith.constant 0 : index
    %28 = vector.load %arg4[%c0_11, %c0_12, %c0_13] : memref<1x64x32xf32, #tpu.memory_space<vmem>>, vector<1x64x32xf32>
    %29 = vector.shape_cast %28 : vector<1x64x32xf32> to vector<64x32xf32>
    %30 = vector.shape_cast %27 : vector<64x32xf32> to vector<1x64x32xf32>
    tpu.vector_store %arg4[%c0_11, %c0_12, %c0_13], %30 {strides = array<i32>} : memref<1x64x32xf32, #tpu.memory_space<vmem>>, vector<1x64x32xf32>,
    return
  }
  func.func @transform_0(%arg0: i32) -> (i32, i32, i32) {
    %c0_i32 = arith.constant 0 : i32
    %c0_i32_0 = arith.constant 0 : i32
    %c0_i32_1 = arith.constant 0 : i32
    return %arg0, %c0_i32, %c0_i32_0 : i32, i32, i32
  }
  func.func @transform_1(%arg0: i32) -> (i32, i32) {
    %c0_i32 = arith.constant 0 : i32
    %c0_i32_0 = arith.constant 0 : i32
    %c0_i32_1 = arith.constant 0 : i32
    return %c0_i32, %c0_i32_0 : i32, i32
  }
  func.func @transform_2(%arg0: i32) -> (i32, i32) {
    %c0_i32 = arith.constant 0 : i32
    %c0_i32_0 = arith.constant 0 : i32
    %c0_i32_1 = arith.constant 0 : i32
    return %c0_i32, %c0_i32_0 : i32, i32
  }
  func.func @transform_3(%arg0: i32) -> (i32, i32, i32) {
    %c0_i32 = arith.constant 0 : i32
    %c0_i32_0 = arith.constant 0 : i32
    %c0_i32_1 = arith.constant 0 : i32
    return %arg0, %c0_i32, %c0_i32_0 : i32, i32, i32
  }
}

module attributes {stable_mosaic.version = 11 : i64} {
  func.func @_matmul_kernel(%arg0: i32, %arg1: i32, %arg2: i32, %arg3: memref<32x512xbf16, #tpu.memory_space<vmem>>, %arg4: memref<512x128xbf16, #tpu.memory_space<vmem>>, %arg5: memref<1x128xf32, #tpu.memory_space<vmem>>, %arg6: memref<32x128xf32, #tpu.memory_space<vmem>>, %arg7: memref<32x128xf32, #tpu.memory_space<vmem>>) attributes {dimension_semantics = [#tpu.dimension_semantics<parallel>, #tpu.dimension_semantics<parallel>, #tpu.dimension_semantics<arbitrary>], iteration_bounds = array<i64: 1, 1, 1>, scalar_prefetch = 0 : i64, scratch_operands = 1 : i64, tpu.core_type = #tpu.core_type<tc>, window_params = [{transform_indices = @transform_0, window_bounds = array<i64: 32, 512>}, {transform_indices = @transform_1, window_bounds = array<i64: 512, 128>}, {transform_indices = @transform_2, window_bounds = array<i64: 1, 128>}, {transform_indices = @transform_3, window_bounds = array<i64: 32, 128>}]} {
    %c0_i32 = arith.constant 0 : i32
    %0 = arith.cmpi eq, %arg2, %c0_i32 : i32
    %1 = arith.extui %0 : i1 to i32
    %c0_i32_0 = arith.constant 0 : i32
    %2 = arith.cmpi ne, %1, %c0_i32_0 : i32
    scf.if %2 {
      %cst_10 = arith.constant 0.000000e+00 : f32
      %12 = vector.broadcast %cst_10 : f32 to vector<32x128xf32>
      %c0_11 = arith.constant 0 : index
      %c0_12 = arith.constant 0 : index
      %13 = vector.load %arg7[%c0_11, %c0_12] : memref<32x128xf32, #tpu.memory_space<vmem>>, vector<32x128xf32>
      tpu.vector_store %arg7[%c0_11, %c0_12], %12 {strides = array<i32>} : memref<32x128xf32, #tpu.memory_space<vmem>>, vector<32x128xf32>,
    } else {
    }
    %c0 = arith.constant 0 : index
    %c0_1 = arith.constant 0 : index
    %3 = vector.load %arg7[%c0, %c0_1] : memref<32x128xf32, #tpu.memory_space<vmem>>, vector<32x128xf32>
    %c0_2 = arith.constant 0 : index
    %c0_3 = arith.constant 0 : index
    %4 = vector.load %arg3[%c0_2, %c0_3] : memref<32x512xbf16, #tpu.memory_space<vmem>>, vector<32x512xbf16>
    %c0_4 = arith.constant 0 : index
    %c0_5 = arith.constant 0 : index
    %5 = vector.load %arg4[%c0_4, %c0_5] : memref<512x128xbf16, #tpu.memory_space<vmem>>, vector<512x128xbf16>
    %cst = arith.constant dense<0.000000e+00> : vector<32x128xf32>
    %6 = tpu.matmul %4, %5, %cst {dimension_numbers = #tpu.dot_dimension_numbers<[1], [0], [0], [1], [0, 0, 1, 1], [], []>} : vector<32x512xbf16>, vector<512x128xbf16>, vector<32x128xf32> -> vector<32x128xf32>
    %7 = arith.addf %3, %6 : vector<32x128xf32>
    %c0_6 = arith.constant 0 : index
    %c0_7 = arith.constant 0 : index
    %8 = vector.load %arg7[%c0_6, %c0_7] : memref<32x128xf32, #tpu.memory_space<vmem>>, vector<32x128xf32>
    tpu.vector_store %arg7[%c0_6, %c0_7], %7 {strides = array<i32>} : memref<32x128xf32, #tpu.memory_space<vmem>>, vector<32x128xf32>,
    %c0_i32_8 = arith.constant 0 : i32
    %9 = arith.cmpi eq, %arg2, %c0_i32_8 : i32
    %10 = arith.extui %9 : i1 to i32
    %c0_i32_9 = arith.constant 0 : i32
    %11 = arith.cmpi ne, %10, %c0_i32_9 : i32
    scf.if %11 {
      %c0_10 = arith.constant 0 : index
      %c0_11 = arith.constant 0 : index
      %12 = vector.load %arg7[%c0_10, %c0_11] : memref<32x128xf32, #tpu.memory_space<vmem>>, vector<32x128xf32>
      %c0_12 = arith.constant 0 : index
      %c0_13 = arith.constant 0 : index
      %13 = vector.load %arg5[%c0_12, %c0_13] : memref<1x128xf32, #tpu.memory_space<vmem>>, vector<1x128xf32>
      %14 = vector.broadcast %13 : vector<1x128xf32> to vector<32x128xf32>
      %15 = arith.addf %12, %14 : vector<32x128xf32>
      %c0_14 = arith.constant 0 : index
      %c0_15 = arith.constant 0 : index
      %16 = vector.load %arg6[%c0_14, %c0_15] : memref<32x128xf32, #tpu.memory_space<vmem>>, vector<32x128xf32>
      tpu.vector_store %arg6[%c0_14, %c0_15], %15 {strides = array<i32>} : memref<32x128xf32, #tpu.memory_space<vmem>>, vector<32x128xf32>,
    } else {
    }
    return
  }
  func.func @transform_0(%arg0: i32, %arg1: i32, %arg2: i32) -> (i32, i32) {
    %c0_i32 = arith.constant 0 : i32
    return %arg0, %arg2 : i32, i32
  }
  func.func @transform_1(%arg0: i32, %arg1: i32, %arg2: i32) -> (i32, i32) {
    %c0_i32 = arith.constant 0 : i32
    return %arg2, %arg1 : i32, i32
  }
  func.func @transform_2(%arg0: i32, %arg1: i32, %arg2: i32) -> (i32, i32) {
    %c0_i32 = arith.constant 0 : i32
    %c0_i32_0 = arith.constant 0 : i32
    return %c0_i32, %arg1 : i32, i32
  }
  func.func @transform_3(%arg0: i32, %arg1: i32, %arg2: i32) -> (i32, i32) {
    %c0_i32 = arith.constant 0 : i32
    return %arg0, %arg1 : i32, i32
  }
}

module attributes {stable_mosaic.version = 11 : i64} {
  func.func @_in_kernel(%arg0: i32, %arg1: memref<1x16x32xf32, #tpu.memory_space<vmem>>, %arg2: memref<1x32xf32, #tpu.memory_space<vmem>>, %arg3: memref<1x32xf32, #tpu.memory_space<vmem>>, %arg4: memref<1x16x32xf32, #tpu.memory_space<vmem>>) attributes {dimension_semantics = [#tpu.dimension_semantics<parallel>], iteration_bounds = array<i64: 2>, scalar_prefetch = 0 : i64, scratch_operands = 0 : i64, tpu.core_type = #tpu.core_type<tc>, window_params = [{transform_indices = @transform_0, window_bounds = array<i64: 1, 16, 32>}, {pipeline_mode = #tpu.pipeline_mode<synchronous>, transform_indices = @transform_1, window_bounds = array<i64: 1, 32>}, {pipeline_mode = #tpu.pipeline_mode<synchronous>, transform_indices = @transform_2, window_bounds = array<i64: 1, 32>}, {transform_indices = @transform_3, window_bounds = array<i64: 1, 16, 32>}]} {
    %c0 = arith.constant 0 : index
    %c0_0 = arith.constant 0 : index
    %c0_1 = arith.constant 0 : index
    %0 = vector.load %arg1[%c0, %c0_0, %c0_1] : memref<1x16x32xf32, #tpu.memory_space<vmem>>, vector<1x16x32xf32>
    %1 = vector.shape_cast %0 : vector<1x16x32xf32> to vector<16x32xf32>
    %cst = arith.constant dense<0.000000e+00> : vector<32xf32>
    %2 = vector.multi_reduction <add>, %1, %cst [0] : vector<16x32xf32> to vector<32xf32>
    %3 = vector.shape_cast %2 : vector<32xf32> to vector<1x32xf32>
    %cst_2 = arith.constant 1.600000e+01 : f32
    %4 = vector.broadcast %cst_2 : f32 to vector<1x32xf32>
    %5 = arith.divf %3, %4 : vector<1x32xf32>
    %6 = vector.broadcast %5 : vector<1x32xf32> to vector<16x32xf32>
    %7 = arith.subf %1, %6 : vector<16x32xf32>
    %8 = arith.mulf %7, %7 : vector<16x32xf32>
    %cst_3 = arith.constant dense<0.000000e+00> : vector<32xf32>
    %9 = vector.multi_reduction <add>, %8, %cst_3 [0] : vector<16x32xf32> to vector<32xf32>
    %10 = vector.shape_cast %9 : vector<32xf32> to vector<1x32xf32>
    %cst_4 = arith.constant 1.600000e+01 : f32
    %11 = vector.broadcast %cst_4 : f32 to vector<1x32xf32>
    %12 = arith.divf %10, %11 : vector<1x32xf32>
    %13 = vector.broadcast %5 : vector<1x32xf32> to vector<16x32xf32>
    %14 = arith.subf %1, %13 : vector<16x32xf32>
    %cst_5 = arith.constant 9.99999974E-6 : f32
    %15 = vector.broadcast %cst_5 : f32 to vector<1x32xf32>
    %16 = arith.addf %12, %15 : vector<1x32xf32>
    %17 = math.rsqrt %16 : vector<1x32xf32>
    %18 = vector.broadcast %17 : vector<1x32xf32> to vector<16x32xf32>
    %19 = arith.mulf %14, %18 : vector<16x32xf32>
    %c0_6 = arith.constant 0 : index
    %c0_7 = arith.constant 0 : index
    %20 = vector.load %arg2[%c0_6, %c0_7] : memref<1x32xf32, #tpu.memory_space<vmem>>, vector<1x32xf32>
    %21 = vector.broadcast %20 : vector<1x32xf32> to vector<16x32xf32>
    %22 = arith.mulf %19, %21 : vector<16x32xf32>
    %c0_8 = arith.constant 0 : index
    %c0_9 = arith.constant 0 : index
    %23 = vector.load %arg3[%c0_8, %c0_9] : memref<1x32xf32, #tpu.memory_space<vmem>>, vector<1x32xf32>
    %24 = vector.broadcast %23 : vector<1x32xf32> to vector<16x32xf32>
    %25 = arith.addf %22, %24 : vector<16x32xf32>
    %cst_10 = arith.constant 0.000000e+00 : f32
    %26 = vector.broadcast %cst_10 : f32 to vector<16x32xf32>
    %27 = arith.maximumf %25, %26 : vector<16x32xf32>
    %c0_11 = arith.constant 0 : index
    %c0_12 = arith.constant 0 : index
    %c0_13 = arith.constant 0 : index
    %28 = vector.load %arg4[%c0_11, %c0_12, %c0_13] : memref<1x16x32xf32, #tpu.memory_space<vmem>>, vector<1x16x32xf32>
    %29 = vector.shape_cast %28 : vector<1x16x32xf32> to vector<16x32xf32>
    %30 = vector.shape_cast %27 : vector<16x32xf32> to vector<1x16x32xf32>
    tpu.vector_store %arg4[%c0_11, %c0_12, %c0_13], %30 {strides = array<i32>} : memref<1x16x32xf32, #tpu.memory_space<vmem>>, vector<1x16x32xf32>,
    return
  }
  func.func @transform_0(%arg0: i32) -> (i32, i32, i32) {
    %c0_i32 = arith.constant 0 : i32
    %c0_i32_0 = arith.constant 0 : i32
    %c0_i32_1 = arith.constant 0 : i32
    return %arg0, %c0_i32, %c0_i32_0 : i32, i32, i32
  }
  func.func @transform_1(%arg0: i32) -> (i32, i32) {
    %c0_i32 = arith.constant 0 : i32
    %c0_i32_0 = arith.constant 0 : i32
    %c0_i32_1 = arith.constant 0 : i32
    return %c0_i32, %c0_i32_0 : i32, i32
  }
  func.func @transform_2(%arg0: i32) -> (i32, i32) {
    %c0_i32 = arith.constant 0 : i32
    %c0_i32_0 = arith.constant 0 : i32
    %c0_i32_1 = arith.constant 0 : i32
    return %c0_i32, %c0_i32_0 : i32, i32
  }
  func.func @transform_3(%arg0: i32) -> (i32, i32, i32) {
    %c0_i32 = arith.constant 0 : i32
    %c0_i32_0 = arith.constant 0 : i32
    %c0_i32_1 = arith.constant 0 : i32
    return %arg0, %c0_i32, %c0_i32_0 : i32, i32, i32
  }
}

module attributes {stable_mosaic.version = 11 : i64} {
  func.func @_matmul_kernel(%arg0: i32, %arg1: i32, %arg2: i32, %arg3: memref<8x512xbf16, #tpu.memory_space<vmem>>, %arg4: memref<512x128xbf16, #tpu.memory_space<vmem>>, %arg5: memref<1x128xf32, #tpu.memory_space<vmem>>, %arg6: memref<8x128xf32, #tpu.memory_space<vmem>>, %arg7: memref<8x128xf32, #tpu.memory_space<vmem>>) attributes {dimension_semantics = [#tpu.dimension_semantics<parallel>, #tpu.dimension_semantics<parallel>, #tpu.dimension_semantics<arbitrary>], iteration_bounds = array<i64: 1, 1, 1>, scalar_prefetch = 0 : i64, scratch_operands = 1 : i64, tpu.core_type = #tpu.core_type<tc>, window_params = [{transform_indices = @transform_0, window_bounds = array<i64: 8, 512>}, {transform_indices = @transform_1, window_bounds = array<i64: 512, 128>}, {transform_indices = @transform_2, window_bounds = array<i64: 1, 128>}, {transform_indices = @transform_3, window_bounds = array<i64: 8, 128>}]} {
    %c0_i32 = arith.constant 0 : i32
    %0 = arith.cmpi eq, %arg2, %c0_i32 : i32
    %1 = arith.extui %0 : i1 to i32
    %c0_i32_0 = arith.constant 0 : i32
    %2 = arith.cmpi ne, %1, %c0_i32_0 : i32
    scf.if %2 {
      %cst_10 = arith.constant 0.000000e+00 : f32
      %12 = vector.broadcast %cst_10 : f32 to vector<8x128xf32>
      %c0_11 = arith.constant 0 : index
      %c0_12 = arith.constant 0 : index
      %13 = vector.load %arg7[%c0_11, %c0_12] : memref<8x128xf32, #tpu.memory_space<vmem>>, vector<8x128xf32>
      tpu.vector_store %arg7[%c0_11, %c0_12], %12 {strides = array<i32>} : memref<8x128xf32, #tpu.memory_space<vmem>>, vector<8x128xf32>,
    } else {
    }
    %c0 = arith.constant 0 : index
    %c0_1 = arith.constant 0 : index
    %3 = vector.load %arg7[%c0, %c0_1] : memref<8x128xf32, #tpu.memory_space<vmem>>, vector<8x128xf32>
    %c0_2 = arith.constant 0 : index
    %c0_3 = arith.constant 0 : index
    %4 = vector.load %arg3[%c0_2, %c0_3] : memref<8x512xbf16, #tpu.memory_space<vmem>>, vector<8x512xbf16>
    %c0_4 = arith.constant 0 : index
    %c0_5 = arith.constant 0 : index
    %5 = vector.load %arg4[%c0_4, %c0_5] : memref<512x128xbf16, #tpu.memory_space<vmem>>, vector<512x128xbf16>
    %cst = arith.constant dense<0.000000e+00> : vector<8x128xf32>
    %6 = tpu.matmul %4, %5, %cst {dimension_numbers = #tpu.dot_dimension_numbers<[1], [0], [0], [1], [0, 0, 1, 1], [], []>} : vector<8x512xbf16>, vector<512x128xbf16>, vector<8x128xf32> -> vector<8x128xf32>
    %7 = arith.addf %3, %6 : vector<8x128xf32>
    %c0_6 = arith.constant 0 : index
    %c0_7 = arith.constant 0 : index
    %8 = vector.load %arg7[%c0_6, %c0_7] : memref<8x128xf32, #tpu.memory_space<vmem>>, vector<8x128xf32>
    tpu.vector_store %arg7[%c0_6, %c0_7], %7 {strides = array<i32>} : memref<8x128xf32, #tpu.memory_space<vmem>>, vector<8x128xf32>,
    %c0_i32_8 = arith.constant 0 : i32
    %9 = arith.cmpi eq, %arg2, %c0_i32_8 : i32
    %10 = arith.extui %9 : i1 to i32
    %c0_i32_9 = arith.constant 0 : i32
    %11 = arith.cmpi ne, %10, %c0_i32_9 : i32
    scf.if %11 {
      %c0_10 = arith.constant 0 : index
      %c0_11 = arith.constant 0 : index
      %12 = vector.load %arg7[%c0_10, %c0_11] : memref<8x128xf32, #tpu.memory_space<vmem>>, vector<8x128xf32>
      %c0_12 = arith.constant 0 : index
      %c0_13 = arith.constant 0 : index
      %13 = vector.load %arg5[%c0_12, %c0_13] : memref<1x128xf32, #tpu.memory_space<vmem>>, vector<1x128xf32>
      %14 = vector.broadcast %13 : vector<1x128xf32> to vector<8x128xf32>
      %15 = arith.addf %12, %14 : vector<8x128xf32>
      %c0_14 = arith.constant 0 : index
      %c0_15 = arith.constant 0 : index
      %16 = vector.load %arg6[%c0_14, %c0_15] : memref<8x128xf32, #tpu.memory_space<vmem>>, vector<8x128xf32>
      tpu.vector_store %arg6[%c0_14, %c0_15], %15 {strides = array<i32>} : memref<8x128xf32, #tpu.memory_space<vmem>>, vector<8x128xf32>,
    } else {
    }
    return
  }
  func.func @transform_0(%arg0: i32, %arg1: i32, %arg2: i32) -> (i32, i32) {
    %c0_i32 = arith.constant 0 : i32
    return %arg0, %arg2 : i32, i32
  }
  func.func @transform_1(%arg0: i32, %arg1: i32, %arg2: i32) -> (i32, i32) {
    %c0_i32 = arith.constant 0 : i32
    return %arg2, %arg1 : i32, i32
  }
  func.func @transform_2(%arg0: i32, %arg1: i32, %arg2: i32) -> (i32, i32) {
    %c0_i32 = arith.constant 0 : i32
    %c0_i32_0 = arith.constant 0 : i32
    return %c0_i32, %arg1 : i32, i32
  }
  func.func @transform_3(%arg0: i32, %arg1: i32, %arg2: i32) -> (i32, i32) {
    %c0_i32 = arith.constant 0 : i32
    return %arg0, %arg1 : i32, i32
  }
}

module attributes {stable_mosaic.version = 11 : i64} {
  func.func @_in_kernel(%arg0: i32, %arg1: memref<1x4x32xf32, #tpu.memory_space<vmem>>, %arg2: memref<1x32xf32, #tpu.memory_space<vmem>>, %arg3: memref<1x32xf32, #tpu.memory_space<vmem>>, %arg4: memref<1x4x32xf32, #tpu.memory_space<vmem>>) attributes {dimension_semantics = [#tpu.dimension_semantics<parallel>], iteration_bounds = array<i64: 2>, scalar_prefetch = 0 : i64, scratch_operands = 0 : i64, tpu.core_type = #tpu.core_type<tc>, window_params = [{transform_indices = @transform_0, window_bounds = array<i64: 1, 4, 32>}, {pipeline_mode = #tpu.pipeline_mode<synchronous>, transform_indices = @transform_1, window_bounds = array<i64: 1, 32>}, {pipeline_mode = #tpu.pipeline_mode<synchronous>, transform_indices = @transform_2, window_bounds = array<i64: 1, 32>}, {transform_indices = @transform_3, window_bounds = array<i64: 1, 4, 32>}]} {
    %c0 = arith.constant 0 : index
    %c0_0 = arith.constant 0 : index
    %c0_1 = arith.constant 0 : index
    %0 = vector.load %arg1[%c0, %c0_0, %c0_1] : memref<1x4x32xf32, #tpu.memory_space<vmem>>, vector<1x4x32xf32>
    %1 = vector.shape_cast %0 : vector<1x4x32xf32> to vector<4x32xf32>
    %cst = arith.constant dense<0.000000e+00> : vector<32xf32>
    %2 = vector.multi_reduction <add>, %1, %cst [0] : vector<4x32xf32> to vector<32xf32>
    %3 = vector.shape_cast %2 : vector<32xf32> to vector<1x32xf32>
    %cst_2 = arith.constant 4.000000e+00 : f32
    %4 = vector.broadcast %cst_2 : f32 to vector<1x32xf32>
    %5 = arith.divf %3, %4 : vector<1x32xf32>
    %6 = vector.broadcast %5 : vector<1x32xf32> to vector<4x32xf32>
    %7 = arith.subf %1, %6 : vector<4x32xf32>
    %8 = arith.mulf %7, %7 : vector<4x32xf32>
    %cst_3 = arith.constant dense<0.000000e+00> : vector<32xf32>
    %9 = vector.multi_reduction <add>, %8, %cst_3 [0] : vector<4x32xf32> to vector<32xf32>
    %10 = vector.shape_cast %9 : vector<32xf32> to vector<1x32xf32>
    %cst_4 = arith.constant 4.000000e+00 : f32
    %11 = vector.broadcast %cst_4 : f32 to vector<1x32xf32>
    %12 = arith.divf %10, %11 : vector<1x32xf32>
    %13 = vector.broadcast %5 : vector<1x32xf32> to vector<4x32xf32>
    %14 = arith.subf %1, %13 : vector<4x32xf32>
    %cst_5 = arith.constant 9.99999974E-6 : f32
    %15 = vector.broadcast %cst_5 : f32 to vector<1x32xf32>
    %16 = arith.addf %12, %15 : vector<1x32xf32>
    %17 = math.rsqrt %16 : vector<1x32xf32>
    %18 = vector.broadcast %17 : vector<1x32xf32> to vector<4x32xf32>
    %19 = arith.mulf %14, %18 : vector<4x32xf32>
    %c0_6 = arith.constant 0 : index
    %c0_7 = arith.constant 0 : index
    %20 = vector.load %arg2[%c0_6, %c0_7] : memref<1x32xf32, #tpu.memory_space<vmem>>, vector<1x32xf32>
    %21 = vector.broadcast %20 : vector<1x32xf32> to vector<4x32xf32>
    %22 = arith.mulf %19, %21 : vector<4x32xf32>
    %c0_8 = arith.constant 0 : index
    %c0_9 = arith.constant 0 : index
    %23 = vector.load %arg3[%c0_8, %c0_9] : memref<1x32xf32, #tpu.memory_space<vmem>>, vector<1x32xf32>
    %24 = vector.broadcast %23 : vector<1x32xf32> to vector<4x32xf32>
    %25 = arith.addf %22, %24 : vector<4x32xf32>
    %cst_10 = arith.constant 0.000000e+00 : f32
    %26 = vector.broadcast %cst_10 : f32 to vector<4x32xf32>
    %27 = arith.maximumf %25, %26 : vector<4x32xf32>
    %c0_11 = arith.constant 0 : index
    %c0_12 = arith.constant 0 : index
    %c0_13 = arith.constant 0 : index
    %28 = vector.load %arg4[%c0_11, %c0_12, %c0_13] : memref<1x4x32xf32, #tpu.memory_space<vmem>>, vector<1x4x32xf32>
    %29 = vector.shape_cast %28 : vector<1x4x32xf32> to vector<4x32xf32>
    %30 = vector.shape_cast %27 : vector<4x32xf32> to vector<1x4x32xf32>
    tpu.vector_store %arg4[%c0_11, %c0_12, %c0_13], %30 {strides = array<i32>} : memref<1x4x32xf32, #tpu.memory_space<vmem>>, vector<1x4x32xf32>,
    return
  }
  func.func @transform_0(%arg0: i32) -> (i32, i32, i32) {
    %c0_i32 = arith.constant 0 : i32
    %c0_i32_0 = arith.constant 0 : i32
    %c0_i32_1 = arith.constant 0 : i32
    return %arg0, %c0_i32, %c0_i32_0 : i32, i32, i32
  }
  func.func @transform_1(%arg0: i32) -> (i32, i32) {
    %c0_i32 = arith.constant 0 : i32
    %c0_i32_0 = arith.constant 0 : i32
    %c0_i32_1 = arith.constant 0 : i32
    return %c0_i32, %c0_i32_0 : i32, i32
  }
  func.func @transform_2(%arg0: i32) -> (i32, i32) {
    %c0_i32 = arith.constant 0 : i32
    %c0_i32_0 = arith.constant 0 : i32
    %c0_i32_1 = arith.constant 0 : i32
    return %c0_i32, %c0_i32_0 : i32, i32
  }
  func.func @transform_3(%arg0: i32) -> (i32, i32, i32) {
    %c0_i32 = arith.constant 0 : i32
    %c0_i32_0 = arith.constant 0 : i32
    %c0_i32_1 = arith.constant 0 : i32
    return %arg0, %c0_i32, %c0_i32_0 : i32, i32, i32
  }
}

module attributes {stable_mosaic.version = 11 : i64} {
  func.func @_matmul_kernel(%arg0: i32, %arg1: i32, %arg2: i32, %arg3: memref<8x384xbf16, #tpu.memory_space<vmem>>, %arg4: memref<384x128xbf16, #tpu.memory_space<vmem>>, %arg5: memref<1x128xf32, #tpu.memory_space<vmem>>, %arg6: memref<8x128xf32, #tpu.memory_space<vmem>>, %arg7: memref<8x128xf32, #tpu.memory_space<vmem>>) attributes {dimension_semantics = [#tpu.dimension_semantics<parallel>, #tpu.dimension_semantics<parallel>, #tpu.dimension_semantics<arbitrary>], iteration_bounds = array<i64: 1, 1, 1>, scalar_prefetch = 0 : i64, scratch_operands = 1 : i64, tpu.core_type = #tpu.core_type<tc>, window_params = [{transform_indices = @transform_0, window_bounds = array<i64: 8, 384>}, {transform_indices = @transform_1, window_bounds = array<i64: 384, 128>}, {transform_indices = @transform_2, window_bounds = array<i64: 1, 128>}, {transform_indices = @transform_3, window_bounds = array<i64: 8, 128>}]} {
    %c0_i32 = arith.constant 0 : i32
    %0 = arith.cmpi eq, %arg2, %c0_i32 : i32
    %1 = arith.extui %0 : i1 to i32
    %c0_i32_0 = arith.constant 0 : i32
    %2 = arith.cmpi ne, %1, %c0_i32_0 : i32
    scf.if %2 {
      %cst_10 = arith.constant 0.000000e+00 : f32
      %12 = vector.broadcast %cst_10 : f32 to vector<8x128xf32>
      %c0_11 = arith.constant 0 : index
      %c0_12 = arith.constant 0 : index
      %13 = vector.load %arg7[%c0_11, %c0_12] : memref<8x128xf32, #tpu.memory_space<vmem>>, vector<8x128xf32>
      tpu.vector_store %arg7[%c0_11, %c0_12], %12 {strides = array<i32>} : memref<8x128xf32, #tpu.memory_space<vmem>>, vector<8x128xf32>,
    } else {
    }
    %c0 = arith.constant 0 : index
    %c0_1 = arith.constant 0 : index
    %3 = vector.load %arg7[%c0, %c0_1] : memref<8x128xf32, #tpu.memory_space<vmem>>, vector<8x128xf32>
    %c0_2 = arith.constant 0 : index
    %c0_3 = arith.constant 0 : index
    %4 = vector.load %arg3[%c0_2, %c0_3] : memref<8x384xbf16, #tpu.memory_space<vmem>>, vector<8x384xbf16>
    %c0_4 = arith.constant 0 : index
    %c0_5 = arith.constant 0 : index
    %5 = vector.load %arg4[%c0_4, %c0_5] : memref<384x128xbf16, #tpu.memory_space<vmem>>, vector<384x128xbf16>
    %cst = arith.constant dense<0.000000e+00> : vector<8x128xf32>
    %6 = tpu.matmul %4, %5, %cst {dimension_numbers = #tpu.dot_dimension_numbers<[1], [0], [0], [1], [0, 0, 1, 1], [], []>} : vector<8x384xbf16>, vector<384x128xbf16>, vector<8x128xf32> -> vector<8x128xf32>
    %7 = arith.addf %3, %6 : vector<8x128xf32>
    %c0_6 = arith.constant 0 : index
    %c0_7 = arith.constant 0 : index
    %8 = vector.load %arg7[%c0_6, %c0_7] : memref<8x128xf32, #tpu.memory_space<vmem>>, vector<8x128xf32>
    tpu.vector_store %arg7[%c0_6, %c0_7], %7 {strides = array<i32>} : memref<8x128xf32, #tpu.memory_space<vmem>>, vector<8x128xf32>,
    %c0_i32_8 = arith.constant 0 : i32
    %9 = arith.cmpi eq, %arg2, %c0_i32_8 : i32
    %10 = arith.extui %9 : i1 to i32
    %c0_i32_9 = arith.constant 0 : i32
    %11 = arith.cmpi ne, %10, %c0_i32_9 : i32
    scf.if %11 {
      %c0_10 = arith.constant 0 : index
      %c0_11 = arith.constant 0 : index
      %12 = vector.load %arg7[%c0_10, %c0_11] : memref<8x128xf32, #tpu.memory_space<vmem>>, vector<8x128xf32>
      %c0_12 = arith.constant 0 : index
      %c0_13 = arith.constant 0 : index
      %13 = vector.load %arg5[%c0_12, %c0_13] : memref<1x128xf32, #tpu.memory_space<vmem>>, vector<1x128xf32>
      %14 = vector.broadcast %13 : vector<1x128xf32> to vector<8x128xf32>
      %15 = arith.addf %12, %14 : vector<8x128xf32>
      %c0_14 = arith.constant 0 : index
      %c0_15 = arith.constant 0 : index
      %16 = vector.load %arg6[%c0_14, %c0_15] : memref<8x128xf32, #tpu.memory_space<vmem>>, vector<8x128xf32>
      tpu.vector_store %arg6[%c0_14, %c0_15], %15 {strides = array<i32>} : memref<8x128xf32, #tpu.memory_space<vmem>>, vector<8x128xf32>,
    } else {
    }
    return
  }
  func.func @transform_0(%arg0: i32, %arg1: i32, %arg2: i32) -> (i32, i32) {
    %c0_i32 = arith.constant 0 : i32
    return %arg0, %arg2 : i32, i32
  }
  func.func @transform_1(%arg0: i32, %arg1: i32, %arg2: i32) -> (i32, i32) {
    %c0_i32 = arith.constant 0 : i32
    return %arg2, %arg1 : i32, i32
  }
  func.func @transform_2(%arg0: i32, %arg1: i32, %arg2: i32) -> (i32, i32) {
    %c0_i32 = arith.constant 0 : i32
    %c0_i32_0 = arith.constant 0 : i32
    return %c0_i32, %arg1 : i32, i32
  }
  func.func @transform_3(%arg0: i32, %arg1: i32, %arg2: i32) -> (i32, i32) {
    %c0_i32 = arith.constant 0 : i32
    return %arg0, %arg1 : i32, i32
  }
}

module attributes {stable_mosaic.version = 11 : i64} {
  func.func @_in_res_kernel(%arg0: i32, %arg1: memref<1x4x32xf32, #tpu.memory_space<vmem>>, %arg2: memref<1x32xf32, #tpu.memory_space<vmem>>, %arg3: memref<1x32xf32, #tpu.memory_space<vmem>>, %arg4: memref<1x4x32xf32, #tpu.memory_space<vmem>>, %arg5: memref<1x4x32xf32, #tpu.memory_space<vmem>>) attributes {dimension_semantics = [#tpu.dimension_semantics<parallel>], iteration_bounds = array<i64: 2>, scalar_prefetch = 0 : i64, scratch_operands = 0 : i64, tpu.core_type = #tpu.core_type<tc>, window_params = [{transform_indices = @transform_0, window_bounds = array<i64: 1, 4, 32>}, {pipeline_mode = #tpu.pipeline_mode<synchronous>, transform_indices = @transform_1, window_bounds = array<i64: 1, 32>}, {pipeline_mode = #tpu.pipeline_mode<synchronous>, transform_indices = @transform_2, window_bounds = array<i64: 1, 32>}, {transform_indices = @transform_3, window_bounds = array<i64: 1, 4, 32>}, {transform_indices = @transform_4, window_bounds = array<i64: 1, 4, 32>}]} {
    %c0 = arith.constant 0 : index
    %c0_0 = arith.constant 0 : index
    %c0_1 = arith.constant 0 : index
    %0 = vector.load %arg1[%c0, %c0_0, %c0_1] : memref<1x4x32xf32, #tpu.memory_space<vmem>>, vector<1x4x32xf32>
    %1 = vector.shape_cast %0 : vector<1x4x32xf32> to vector<4x32xf32>
    %cst = arith.constant dense<0.000000e+00> : vector<32xf32>
    %2 = vector.multi_reduction <add>, %1, %cst [0] : vector<4x32xf32> to vector<32xf32>
    %3 = vector.shape_cast %2 : vector<32xf32> to vector<1x32xf32>
    %cst_2 = arith.constant 4.000000e+00 : f32
    %4 = vector.broadcast %cst_2 : f32 to vector<1x32xf32>
    %5 = arith.divf %3, %4 : vector<1x32xf32>
    %6 = vector.broadcast %5 : vector<1x32xf32> to vector<4x32xf32>
    %7 = arith.subf %1, %6 : vector<4x32xf32>
    %8 = arith.mulf %7, %7 : vector<4x32xf32>
    %cst_3 = arith.constant dense<0.000000e+00> : vector<32xf32>
    %9 = vector.multi_reduction <add>, %8, %cst_3 [0] : vector<4x32xf32> to vector<32xf32>
    %10 = vector.shape_cast %9 : vector<32xf32> to vector<1x32xf32>
    %cst_4 = arith.constant 4.000000e+00 : f32
    %11 = vector.broadcast %cst_4 : f32 to vector<1x32xf32>
    %12 = arith.divf %10, %11 : vector<1x32xf32>
    %13 = vector.broadcast %5 : vector<1x32xf32> to vector<4x32xf32>
    %14 = arith.subf %1, %13 : vector<4x32xf32>
    %cst_5 = arith.constant 9.99999974E-6 : f32
    %15 = vector.broadcast %cst_5 : f32 to vector<1x32xf32>
    %16 = arith.addf %12, %15 : vector<1x32xf32>
    %17 = math.rsqrt %16 : vector<1x32xf32>
    %18 = vector.broadcast %17 : vector<1x32xf32> to vector<4x32xf32>
    %19 = arith.mulf %14, %18 : vector<4x32xf32>
    %c0_6 = arith.constant 0 : index
    %c0_7 = arith.constant 0 : index
    %20 = vector.load %arg2[%c0_6, %c0_7] : memref<1x32xf32, #tpu.memory_space<vmem>>, vector<1x32xf32>
    %21 = vector.broadcast %20 : vector<1x32xf32> to vector<4x32xf32>
    %22 = arith.mulf %19, %21 : vector<4x32xf32>
    %c0_8 = arith.constant 0 : index
    %c0_9 = arith.constant 0 : index
    %23 = vector.load %arg3[%c0_8, %c0_9] : memref<1x32xf32, #tpu.memory_space<vmem>>, vector<1x32xf32>
    %24 = vector.broadcast %23 : vector<1x32xf32> to vector<4x32xf32>
    %25 = arith.addf %22, %24 : vector<4x32xf32>
    %c0_10 = arith.constant 0 : index
    %c0_11 = arith.constant 0 : index
    %c0_12 = arith.constant 0 : index
    %26 = vector.load %arg4[%c0_10, %c0_11, %c0_12] : memref<1x4x32xf32, #tpu.memory_space<vmem>>, vector<1x4x32xf32>
    %27 = vector.shape_cast %26 : vector<1x4x32xf32> to vector<4x32xf32>
    %28 = arith.addf %25, %27 : vector<4x32xf32>
    %c0_13 = arith.constant 0 : index
    %c0_14 = arith.constant 0 : index
    %c0_15 = arith.constant 0 : index
    %29 = vector.load %arg5[%c0_13, %c0_14, %c0_15] : memref<1x4x32xf32, #tpu.memory_space<vmem>>, vector<1x4x32xf32>
    %30 = vector.shape_cast %29 : vector<1x4x32xf32> to vector<4x32xf32>
    %31 = vector.shape_cast %28 : vector<4x32xf32> to vector<1x4x32xf32>
    tpu.vector_store %arg5[%c0_13, %c0_14, %c0_15], %31 {strides = array<i32>} : memref<1x4x32xf32, #tpu.memory_space<vmem>>, vector<1x4x32xf32>,
    return
  }
  func.func @transform_0(%arg0: i32) -> (i32, i32, i32) {
    %c0_i32 = arith.constant 0 : i32
    %c0_i32_0 = arith.constant 0 : i32
    %c0_i32_1 = arith.constant 0 : i32
    return %arg0, %c0_i32, %c0_i32_0 : i32, i32, i32
  }
  func.func @transform_1(%arg0: i32) -> (i32, i32) {
    %c0_i32 = arith.constant 0 : i32
    %c0_i32_0 = arith.constant 0 : i32
    %c0_i32_1 = arith.constant 0 : i32
    return %c0_i32, %c0_i32_0 : i32, i32
  }
  func.func @transform_2(%arg0: i32) -> (i32, i32) {
    %c0_i32 = arith.constant 0 : i32
    %c0_i32_0 = arith.constant 0 : i32
    %c0_i32_1 = arith.constant 0 : i32
    return %c0_i32, %c0_i32_0 : i32, i32
  }
  func.func @transform_3(%arg0: i32) -> (i32, i32, i32) {
    %c0_i32 = arith.constant 0 : i32
    %c0_i32_0 = arith.constant 0 : i32
    %c0_i32_1 = arith.constant 0 : i32
    return %arg0, %c0_i32, %c0_i32_0 : i32, i32, i32
  }
  func.func @transform_4(%arg0: i32) -> (i32, i32, i32) {
    %c0_i32 = arith.constant 0 : i32
    %c0_i32_0 = arith.constant 0 : i32
    %c0_i32_1 = arith.constant 0 : i32
    return %arg0, %c0_i32, %c0_i32_0 : i32, i32, i32
  }
}

module attributes {stable_mosaic.version = 11 : i64} {
  func.func @_matmul_kernel(%arg0: i32, %arg1: i32, %arg2: i32, %arg3: memref<8x128xbf16, #tpu.memory_space<vmem>>, %arg4: memref<128x128xbf16, #tpu.memory_space<vmem>>, %arg5: memref<1x128xf32, #tpu.memory_space<vmem>>, %arg6: memref<8x128xf32, #tpu.memory_space<vmem>>, %arg7: memref<8x128xf32, #tpu.memory_space<vmem>>) attributes {dimension_semantics = [#tpu.dimension_semantics<parallel>, #tpu.dimension_semantics<parallel>, #tpu.dimension_semantics<arbitrary>], iteration_bounds = array<i64: 1, 1, 1>, scalar_prefetch = 0 : i64, scratch_operands = 1 : i64, tpu.core_type = #tpu.core_type<tc>, window_params = [{transform_indices = @transform_0, window_bounds = array<i64: 8, 128>}, {transform_indices = @transform_1, window_bounds = array<i64: 128, 128>}, {transform_indices = @transform_2, window_bounds = array<i64: 1, 128>}, {transform_indices = @transform_3, window_bounds = array<i64: 8, 128>}]} {
    %c0_i32 = arith.constant 0 : i32
    %0 = arith.cmpi eq, %arg2, %c0_i32 : i32
    %1 = arith.extui %0 : i1 to i32
    %c0_i32_0 = arith.constant 0 : i32
    %2 = arith.cmpi ne, %1, %c0_i32_0 : i32
    scf.if %2 {
      %cst_10 = arith.constant 0.000000e+00 : f32
      %12 = vector.broadcast %cst_10 : f32 to vector<8x128xf32>
      %c0_11 = arith.constant 0 : index
      %c0_12 = arith.constant 0 : index
      %13 = vector.load %arg7[%c0_11, %c0_12] : memref<8x128xf32, #tpu.memory_space<vmem>>, vector<8x128xf32>
      tpu.vector_store %arg7[%c0_11, %c0_12], %12 {strides = array<i32>} : memref<8x128xf32, #tpu.memory_space<vmem>>, vector<8x128xf32>,
    } else {
    }
    %c0 = arith.constant 0 : index
    %c0_1 = arith.constant 0 : index
    %3 = vector.load %arg7[%c0, %c0_1] : memref<8x128xf32, #tpu.memory_space<vmem>>, vector<8x128xf32>
    %c0_2 = arith.constant 0 : index
    %c0_3 = arith.constant 0 : index
    %4 = vector.load %arg3[%c0_2, %c0_3] : memref<8x128xbf16, #tpu.memory_space<vmem>>, vector<8x128xbf16>
    %c0_4 = arith.constant 0 : index
    %c0_5 = arith.constant 0 : index
    %5 = vector.load %arg4[%c0_4, %c0_5] : memref<128x128xbf16, #tpu.memory_space<vmem>>, vector<128x128xbf16>
    %cst = arith.constant dense<0.000000e+00> : vector<8x128xf32>
    %6 = tpu.matmul %4, %5, %cst {dimension_numbers = #tpu.dot_dimension_numbers<[1], [0], [0], [1], [0, 0, 1, 1], [], []>} : vector<8x128xbf16>, vector<128x128xbf16>, vector<8x128xf32> -> vector<8x128xf32>
    %7 = arith.addf %3, %6 : vector<8x128xf32>
    %c0_6 = arith.constant 0 : index
    %c0_7 = arith.constant 0 : index
    %8 = vector.load %arg7[%c0_6, %c0_7] : memref<8x128xf32, #tpu.memory_space<vmem>>, vector<8x128xf32>
    tpu.vector_store %arg7[%c0_6, %c0_7], %7 {strides = array<i32>} : memref<8x128xf32, #tpu.memory_space<vmem>>, vector<8x128xf32>,
    %c0_i32_8 = arith.constant 0 : i32
    %9 = arith.cmpi eq, %arg2, %c0_i32_8 : i32
    %10 = arith.extui %9 : i1 to i32
    %c0_i32_9 = arith.constant 0 : i32
    %11 = arith.cmpi ne, %10, %c0_i32_9 : i32
    scf.if %11 {
      %c0_10 = arith.constant 0 : index
      %c0_11 = arith.constant 0 : index
      %12 = vector.load %arg7[%c0_10, %c0_11] : memref<8x128xf32, #tpu.memory_space<vmem>>, vector<8x128xf32>
      %c0_12 = arith.constant 0 : index
      %c0_13 = arith.constant 0 : index
      %13 = vector.load %arg5[%c0_12, %c0_13] : memref<1x128xf32, #tpu.memory_space<vmem>>, vector<1x128xf32>
      %14 = vector.broadcast %13 : vector<1x128xf32> to vector<8x128xf32>
      %15 = arith.addf %12, %14 : vector<8x128xf32>
      %cst_14 = arith.constant 0.000000e+00 : f32
      %16 = vector.broadcast %cst_14 : f32 to vector<8x128xf32>
      %17 = arith.maximumf %15, %16 : vector<8x128xf32>
      %c0_15 = arith.constant 0 : index
      %c0_16 = arith.constant 0 : index
      %18 = vector.load %arg6[%c0_15, %c0_16] : memref<8x128xf32, #tpu.memory_space<vmem>>, vector<8x128xf32>
      tpu.vector_store %arg6[%c0_15, %c0_16], %17 {strides = array<i32>} : memref<8x128xf32, #tpu.memory_space<vmem>>, vector<8x128xf32>,
    } else {
    }
    return
  }
  func.func @transform_0(%arg0: i32, %arg1: i32, %arg2: i32) -> (i32, i32) {
    %c0_i32 = arith.constant 0 : i32
    return %arg0, %arg2 : i32, i32
  }
  func.func @transform_1(%arg0: i32, %arg1: i32, %arg2: i32) -> (i32, i32) {
    %c0_i32 = arith.constant 0 : i32
    return %arg2, %arg1 : i32, i32
  }
  func.func @transform_2(%arg0: i32, %arg1: i32, %arg2: i32) -> (i32, i32) {
    %c0_i32 = arith.constant 0 : i32
    %c0_i32_0 = arith.constant 0 : i32
    return %c0_i32, %arg1 : i32, i32
  }
  func.func @transform_3(%arg0: i32, %arg1: i32, %arg2: i32) -> (i32, i32) {
    %c0_i32 = arith.constant 0 : i32
    return %arg0, %arg1 : i32, i32
  }
}

module attributes {stable_mosaic.version = 11 : i64} {
  func.func @_matmul_kernel(%arg0: i32, %arg1: i32, %arg2: i32, %arg3: memref<8x128xbf16, #tpu.memory_space<vmem>>, %arg4: memref<128x128xbf16, #tpu.memory_space<vmem>>, %arg5: memref<1x128xf32, #tpu.memory_space<vmem>>, %arg6: memref<8x128xf32, #tpu.memory_space<vmem>>, %arg7: memref<8x128xf32, #tpu.memory_space<vmem>>) attributes {dimension_semantics = [#tpu.dimension_semantics<parallel>, #tpu.dimension_semantics<parallel>, #tpu.dimension_semantics<arbitrary>], iteration_bounds = array<i64: 1, 1, 1>, scalar_prefetch = 0 : i64, scratch_operands = 1 : i64, tpu.core_type = #tpu.core_type<tc>, window_params = [{transform_indices = @transform_0, window_bounds = array<i64: 8, 128>}, {transform_indices = @transform_1, window_bounds = array<i64: 128, 128>}, {transform_indices = @transform_2, window_bounds = array<i64: 1, 128>}, {transform_indices = @transform_3, window_bounds = array<i64: 8, 128>}]} {
    %c0_i32 = arith.constant 0 : i32
    %0 = arith.cmpi eq, %arg2, %c0_i32 : i32
    %1 = arith.extui %0 : i1 to i32
    %c0_i32_0 = arith.constant 0 : i32
    %2 = arith.cmpi ne, %1, %c0_i32_0 : i32
    scf.if %2 {
      %cst_10 = arith.constant 0.000000e+00 : f32
      %12 = vector.broadcast %cst_10 : f32 to vector<8x128xf32>
      %c0_11 = arith.constant 0 : index
      %c0_12 = arith.constant 0 : index
      %13 = vector.load %arg7[%c0_11, %c0_12] : memref<8x128xf32, #tpu.memory_space<vmem>>, vector<8x128xf32>
      tpu.vector_store %arg7[%c0_11, %c0_12], %12 {strides = array<i32>} : memref<8x128xf32, #tpu.memory_space<vmem>>, vector<8x128xf32>,
    } else {
    }
    %c0 = arith.constant 0 : index
    %c0_1 = arith.constant 0 : index
    %3 = vector.load %arg7[%c0, %c0_1] : memref<8x128xf32, #tpu.memory_space<vmem>>, vector<8x128xf32>
    %c0_2 = arith.constant 0 : index
    %c0_3 = arith.constant 0 : index
    %4 = vector.load %arg3[%c0_2, %c0_3] : memref<8x128xbf16, #tpu.memory_space<vmem>>, vector<8x128xbf16>
    %c0_4 = arith.constant 0 : index
    %c0_5 = arith.constant 0 : index
    %5 = vector.load %arg4[%c0_4, %c0_5] : memref<128x128xbf16, #tpu.memory_space<vmem>>, vector<128x128xbf16>
    %cst = arith.constant dense<0.000000e+00> : vector<8x128xf32>
    %6 = tpu.matmul %4, %5, %cst {dimension_numbers = #tpu.dot_dimension_numbers<[1], [0], [0], [1], [0, 0, 1, 1], [], []>} : vector<8x128xbf16>, vector<128x128xbf16>, vector<8x128xf32> -> vector<8x128xf32>
    %7 = arith.addf %3, %6 : vector<8x128xf32>
    %c0_6 = arith.constant 0 : index
    %c0_7 = arith.constant 0 : index
    %8 = vector.load %arg7[%c0_6, %c0_7] : memref<8x128xf32, #tpu.memory_space<vmem>>, vector<8x128xf32>
    tpu.vector_store %arg7[%c0_6, %c0_7], %7 {strides = array<i32>} : memref<8x128xf32, #tpu.memory_space<vmem>>, vector<8x128xf32>,
    %c0_i32_8 = arith.constant 0 : i32
    %9 = arith.cmpi eq, %arg2, %c0_i32_8 : i32
    %10 = arith.extui %9 : i1 to i32
    %c0_i32_9 = arith.constant 0 : i32
    %11 = arith.cmpi ne, %10, %c0_i32_9 : i32
    scf.if %11 {
      %c0_10 = arith.constant 0 : index
      %c0_11 = arith.constant 0 : index
      %12 = vector.load %arg7[%c0_10, %c0_11] : memref<8x128xf32, #tpu.memory_space<vmem>>, vector<8x128xf32>
      %c0_12 = arith.constant 0 : index
      %c0_13 = arith.constant 0 : index
      %13 = vector.load %arg5[%c0_12, %c0_13] : memref<1x128xf32, #tpu.memory_space<vmem>>, vector<1x128xf32>
      %14 = vector.broadcast %13 : vector<1x128xf32> to vector<8x128xf32>
      %15 = arith.addf %12, %14 : vector<8x128xf32>
      %c0_14 = arith.constant 0 : index
      %c0_15 = arith.constant 0 : index
      %16 = vector.load %arg6[%c0_14, %c0_15] : memref<8x128xf32, #tpu.memory_space<vmem>>, vector<8x128xf32>
      tpu.vector_store %arg6[%c0_14, %c0_15], %15 {strides = array<i32>} : memref<8x128xf32, #tpu.memory_space<vmem>>, vector<8x128xf32>,
    } else {
    }
    return
  }
  func.func @transform_0(%arg0: i32, %arg1: i32, %arg2: i32) -> (i32, i32) {
    %c0_i32 = arith.constant 0 : i32
    return %arg0, %arg2 : i32, i32
  }
  func.func @transform_1(%arg0: i32, %arg1: i32, %arg2: i32) -> (i32, i32) {
    %c0_i32 = arith.constant 0 : i32
    return %arg2, %arg1 : i32, i32
  }
  func.func @transform_2(%arg0: i32, %arg1: i32, %arg2: i32) -> (i32, i32) {
    %c0_i32 = arith.constant 0 : i32
    %c0_i32_0 = arith.constant 0 : i32
    return %c0_i32, %arg1 : i32, i32
  }
  func.func @transform_3(%arg0: i32, %arg1: i32, %arg2: i32) -> (i32, i32) {
    %c0_i32 = arith.constant 0 : i32
    return %arg0, %arg1 : i32, i32
  }
}

module attributes {stable_mosaic.version = 11 : i64} {
  func.func @_matmul_kernel(%arg0: i32, %arg1: i32, %arg2: i32, %arg3: memref<32x128xbf16, #tpu.memory_space<vmem>>, %arg4: memref<128x128xbf16, #tpu.memory_space<vmem>>, %arg5: memref<1x128xf32, #tpu.memory_space<vmem>>, %arg6: memref<32x128xf32, #tpu.memory_space<vmem>>, %arg7: memref<32x128xf32, #tpu.memory_space<vmem>>) attributes {dimension_semantics = [#tpu.dimension_semantics<parallel>, #tpu.dimension_semantics<parallel>, #tpu.dimension_semantics<arbitrary>], iteration_bounds = array<i64: 1, 1, 1>, scalar_prefetch = 0 : i64, scratch_operands = 1 : i64, tpu.core_type = #tpu.core_type<tc>, window_params = [{transform_indices = @transform_0, window_bounds = array<i64: 32, 128>}, {transform_indices = @transform_1, window_bounds = array<i64: 128, 128>}, {transform_indices = @transform_2, window_bounds = array<i64: 1, 128>}, {transform_indices = @transform_3, window_bounds = array<i64: 32, 128>}]} {
    %c0_i32 = arith.constant 0 : i32
    %0 = arith.cmpi eq, %arg2, %c0_i32 : i32
    %1 = arith.extui %0 : i1 to i32
    %c0_i32_0 = arith.constant 0 : i32
    %2 = arith.cmpi ne, %1, %c0_i32_0 : i32
    scf.if %2 {
      %cst_10 = arith.constant 0.000000e+00 : f32
      %12 = vector.broadcast %cst_10 : f32 to vector<32x128xf32>
      %c0_11 = arith.constant 0 : index
      %c0_12 = arith.constant 0 : index
      %13 = vector.load %arg7[%c0_11, %c0_12] : memref<32x128xf32, #tpu.memory_space<vmem>>, vector<32x128xf32>
      tpu.vector_store %arg7[%c0_11, %c0_12], %12 {strides = array<i32>} : memref<32x128xf32, #tpu.memory_space<vmem>>, vector<32x128xf32>,
    } else {
    }
    %c0 = arith.constant 0 : index
    %c0_1 = arith.constant 0 : index
    %3 = vector.load %arg7[%c0, %c0_1] : memref<32x128xf32, #tpu.memory_space<vmem>>, vector<32x128xf32>
    %c0_2 = arith.constant 0 : index
    %c0_3 = arith.constant 0 : index
    %4 = vector.load %arg3[%c0_2, %c0_3] : memref<32x128xbf16, #tpu.memory_space<vmem>>, vector<32x128xbf16>
    %c0_4 = arith.constant 0 : index
    %c0_5 = arith.constant 0 : index
    %5 = vector.load %arg4[%c0_4, %c0_5] : memref<128x128xbf16, #tpu.memory_space<vmem>>, vector<128x128xbf16>
    %cst = arith.constant dense<0.000000e+00> : vector<32x128xf32>
    %6 = tpu.matmul %4, %5, %cst {dimension_numbers = #tpu.dot_dimension_numbers<[1], [0], [0], [1], [0, 0, 1, 1], [], []>} : vector<32x128xbf16>, vector<128x128xbf16>, vector<32x128xf32> -> vector<32x128xf32>
    %7 = arith.addf %3, %6 : vector<32x128xf32>
    %c0_6 = arith.constant 0 : index
    %c0_7 = arith.constant 0 : index
    %8 = vector.load %arg7[%c0_6, %c0_7] : memref<32x128xf32, #tpu.memory_space<vmem>>, vector<32x128xf32>
    tpu.vector_store %arg7[%c0_6, %c0_7], %7 {strides = array<i32>} : memref<32x128xf32, #tpu.memory_space<vmem>>, vector<32x128xf32>,
    %c0_i32_8 = arith.constant 0 : i32
    %9 = arith.cmpi eq, %arg2, %c0_i32_8 : i32
    %10 = arith.extui %9 : i1 to i32
    %c0_i32_9 = arith.constant 0 : i32
    %11 = arith.cmpi ne, %10, %c0_i32_9 : i32
    scf.if %11 {
      %c0_10 = arith.constant 0 : index
      %c0_11 = arith.constant 0 : index
      %12 = vector.load %arg7[%c0_10, %c0_11] : memref<32x128xf32, #tpu.memory_space<vmem>>, vector<32x128xf32>
      %c0_12 = arith.constant 0 : index
      %c0_13 = arith.constant 0 : index
      %13 = vector.load %arg5[%c0_12, %c0_13] : memref<1x128xf32, #tpu.memory_space<vmem>>, vector<1x128xf32>
      %14 = vector.broadcast %13 : vector<1x128xf32> to vector<32x128xf32>
      %15 = arith.addf %12, %14 : vector<32x128xf32>
      %c0_14 = arith.constant 0 : index
      %c0_15 = arith.constant 0 : index
      %16 = vector.load %arg6[%c0_14, %c0_15] : memref<32x128xf32, #tpu.memory_space<vmem>>, vector<32x128xf32>
      tpu.vector_store %arg6[%c0_14, %c0_15], %15 {strides = array<i32>} : memref<32x128xf32, #tpu.memory_space<vmem>>, vector<32x128xf32>,
    } else {
    }
    return
  }
  func.func @transform_0(%arg0: i32, %arg1: i32, %arg2: i32) -> (i32, i32) {
    %c0_i32 = arith.constant 0 : i32
    return %arg0, %arg2 : i32, i32
  }
  func.func @transform_1(%arg0: i32, %arg1: i32, %arg2: i32) -> (i32, i32) {
    %c0_i32 = arith.constant 0 : i32
    return %arg2, %arg1 : i32, i32
  }
  func.func @transform_2(%arg0: i32, %arg1: i32, %arg2: i32) -> (i32, i32) {
    %c0_i32 = arith.constant 0 : i32
    %c0_i32_0 = arith.constant 0 : i32
    return %c0_i32, %arg1 : i32, i32
  }
  func.func @transform_3(%arg0: i32, %arg1: i32, %arg2: i32) -> (i32, i32) {
    %c0_i32 = arith.constant 0 : i32
    return %arg0, %arg1 : i32, i32
  }
}

module attributes {stable_mosaic.version = 11 : i64} {
  func.func @_matmul_kernel(%arg0: i32, %arg1: i32, %arg2: i32, %arg3: memref<128x128xbf16, #tpu.memory_space<vmem>>, %arg4: memref<128x128xbf16, #tpu.memory_space<vmem>>, %arg5: memref<1x128xf32, #tpu.memory_space<vmem>>, %arg6: memref<128x128xf32, #tpu.memory_space<vmem>>, %arg7: memref<128x128xf32, #tpu.memory_space<vmem>>) attributes {dimension_semantics = [#tpu.dimension_semantics<parallel>, #tpu.dimension_semantics<parallel>, #tpu.dimension_semantics<arbitrary>], iteration_bounds = array<i64: 1, 1, 1>, scalar_prefetch = 0 : i64, scratch_operands = 1 : i64, tpu.core_type = #tpu.core_type<tc>, window_params = [{transform_indices = @transform_0, window_bounds = array<i64: 128, 128>}, {transform_indices = @transform_1, window_bounds = array<i64: 128, 128>}, {transform_indices = @transform_2, window_bounds = array<i64: 1, 128>}, {transform_indices = @transform_3, window_bounds = array<i64: 128, 128>}]} {
    %c0_i32 = arith.constant 0 : i32
    %0 = arith.cmpi eq, %arg2, %c0_i32 : i32
    %1 = arith.extui %0 : i1 to i32
    %c0_i32_0 = arith.constant 0 : i32
    %2 = arith.cmpi ne, %1, %c0_i32_0 : i32
    scf.if %2 {
      %cst_10 = arith.constant 0.000000e+00 : f32
      %12 = vector.broadcast %cst_10 : f32 to vector<128x128xf32>
      %c0_11 = arith.constant 0 : index
      %c0_12 = arith.constant 0 : index
      %13 = vector.load %arg7[%c0_11, %c0_12] : memref<128x128xf32, #tpu.memory_space<vmem>>, vector<128x128xf32>
      tpu.vector_store %arg7[%c0_11, %c0_12], %12 {strides = array<i32>} : memref<128x128xf32, #tpu.memory_space<vmem>>, vector<128x128xf32>,
    } else {
    }
    %c0 = arith.constant 0 : index
    %c0_1 = arith.constant 0 : index
    %3 = vector.load %arg7[%c0, %c0_1] : memref<128x128xf32, #tpu.memory_space<vmem>>, vector<128x128xf32>
    %c0_2 = arith.constant 0 : index
    %c0_3 = arith.constant 0 : index
    %4 = vector.load %arg3[%c0_2, %c0_3] : memref<128x128xbf16, #tpu.memory_space<vmem>>, vector<128x128xbf16>
    %c0_4 = arith.constant 0 : index
    %c0_5 = arith.constant 0 : index
    %5 = vector.load %arg4[%c0_4, %c0_5] : memref<128x128xbf16, #tpu.memory_space<vmem>>, vector<128x128xbf16>
    %cst = arith.constant dense<0.000000e+00> : vector<128x128xf32>
    %6 = tpu.matmul %4, %5, %cst {dimension_numbers = #tpu.dot_dimension_numbers<[1], [0], [0], [1], [0, 0, 1, 1], [], []>} : vector<128x128xbf16>, vector<128x128xbf16>, vector<128x128xf32> -> vector<128x128xf32>
    %7 = arith.addf %3, %6 : vector<128x128xf32>
    %c0_6 = arith.constant 0 : index
    %c0_7 = arith.constant 0 : index
    %8 = vector.load %arg7[%c0_6, %c0_7] : memref<128x128xf32, #tpu.memory_space<vmem>>, vector<128x128xf32>
    tpu.vector_store %arg7[%c0_6, %c0_7], %7 {strides = array<i32>} : memref<128x128xf32, #tpu.memory_space<vmem>>, vector<128x128xf32>,
    %c0_i32_8 = arith.constant 0 : i32
    %9 = arith.cmpi eq, %arg2, %c0_i32_8 : i32
    %10 = arith.extui %9 : i1 to i32
    %c0_i32_9 = arith.constant 0 : i32
    %11 = arith.cmpi ne, %10, %c0_i32_9 : i32
    scf.if %11 {
      %c0_10 = arith.constant 0 : index
      %c0_11 = arith.constant 0 : index
      %12 = vector.load %arg7[%c0_10, %c0_11] : memref<128x128xf32, #tpu.memory_space<vmem>>, vector<128x128xf32>
      %c0_12 = arith.constant 0 : index
      %c0_13 = arith.constant 0 : index
      %13 = vector.load %arg5[%c0_12, %c0_13] : memref<1x128xf32, #tpu.memory_space<vmem>>, vector<1x128xf32>
      %14 = vector.broadcast %13 : vector<1x128xf32> to vector<128x128xf32>
      %15 = arith.addf %12, %14 : vector<128x128xf32>
      %c0_14 = arith.constant 0 : index
      %c0_15 = arith.constant 0 : index
      %16 = vector.load %arg6[%c0_14, %c0_15] : memref<128x128xf32, #tpu.memory_space<vmem>>, vector<128x128xf32>
      tpu.vector_store %arg6[%c0_14, %c0_15], %15 {strides = array<i32>} : memref<128x128xf32, #tpu.memory_space<vmem>>, vector<128x128xf32>,
    } else {
    }
    return
  }
  func.func @transform_0(%arg0: i32, %arg1: i32, %arg2: i32) -> (i32, i32) {
    %c0_i32 = arith.constant 0 : i32
    return %arg0, %arg2 : i32, i32
  }
  func.func @transform_1(%arg0: i32, %arg1: i32, %arg2: i32) -> (i32, i32) {
    %c0_i32 = arith.constant 0 : i32
    return %arg2, %arg1 : i32, i32
  }
  func.func @transform_2(%arg0: i32, %arg1: i32, %arg2: i32) -> (i32, i32) {
    %c0_i32 = arith.constant 0 : i32
    %c0_i32_0 = arith.constant 0 : i32
    return %c0_i32, %arg1 : i32, i32
  }
  func.func @transform_3(%arg0: i32, %arg1: i32, %arg2: i32) -> (i32, i32) {
    %c0_i32 = arith.constant 0 : i32
    return %arg0, %arg1 : i32, i32
  }
}

module attributes {stable_mosaic.version = 11 : i64} {
  func.func @_matmul_kernel(%arg0: i32, %arg1: i32, %arg2: i32, %arg3: memref<256x512xbf16, #tpu.memory_space<vmem>>, %arg4: memref<512x128xbf16, #tpu.memory_space<vmem>>, %arg5: memref<1x128xf32, #tpu.memory_space<vmem>>, %arg6: memref<256x128xf32, #tpu.memory_space<vmem>>, %arg7: memref<256x128xf32, #tpu.memory_space<vmem>>) attributes {dimension_semantics = [#tpu.dimension_semantics<parallel>, #tpu.dimension_semantics<parallel>, #tpu.dimension_semantics<arbitrary>], iteration_bounds = array<i64: 8, 1, 1>, scalar_prefetch = 0 : i64, scratch_operands = 1 : i64, tpu.core_type = #tpu.core_type<tc>, window_params = [{transform_indices = @transform_0, window_bounds = array<i64: 256, 512>}, {transform_indices = @transform_1, window_bounds = array<i64: 512, 128>}, {transform_indices = @transform_2, window_bounds = array<i64: 1, 128>}, {transform_indices = @transform_3, window_bounds = array<i64: 256, 128>}]} {
    %c0_i32 = arith.constant 0 : i32
    %0 = arith.cmpi eq, %arg2, %c0_i32 : i32
    %1 = arith.extui %0 : i1 to i32
    %c0_i32_0 = arith.constant 0 : i32
    %2 = arith.cmpi ne, %1, %c0_i32_0 : i32
    scf.if %2 {
      %cst_10 = arith.constant 0.000000e+00 : f32
      %12 = vector.broadcast %cst_10 : f32 to vector<256x128xf32>
      %c0_11 = arith.constant 0 : index
      %c0_12 = arith.constant 0 : index
      %13 = vector.load %arg7[%c0_11, %c0_12] : memref<256x128xf32, #tpu.memory_space<vmem>>, vector<256x128xf32>
      tpu.vector_store %arg7[%c0_11, %c0_12], %12 {strides = array<i32>} : memref<256x128xf32, #tpu.memory_space<vmem>>, vector<256x128xf32>,
    } else {
    }
    %c0 = arith.constant 0 : index
    %c0_1 = arith.constant 0 : index
    %3 = vector.load %arg7[%c0, %c0_1] : memref<256x128xf32, #tpu.memory_space<vmem>>, vector<256x128xf32>
    %c0_2 = arith.constant 0 : index
    %c0_3 = arith.constant 0 : index
    %4 = vector.load %arg3[%c0_2, %c0_3] : memref<256x512xbf16, #tpu.memory_space<vmem>>, vector<256x512xbf16>
    %c0_4 = arith.constant 0 : index
    %c0_5 = arith.constant 0 : index
    %5 = vector.load %arg4[%c0_4, %c0_5] : memref<512x128xbf16, #tpu.memory_space<vmem>>, vector<512x128xbf16>
    %cst = arith.constant dense<0.000000e+00> : vector<256x128xf32>
    %6 = tpu.matmul %4, %5, %cst {dimension_numbers = #tpu.dot_dimension_numbers<[1], [0], [0], [1], [0, 0, 1, 1], [], []>} : vector<256x512xbf16>, vector<512x128xbf16>, vector<256x128xf32> -> vector<256x128xf32>
    %7 = arith.addf %3, %6 : vector<256x128xf32>
    %c0_6 = arith.constant 0 : index
    %c0_7 = arith.constant 0 : index
    %8 = vector.load %arg7[%c0_6, %c0_7] : memref<256x128xf32, #tpu.memory_space<vmem>>, vector<256x128xf32>
    tpu.vector_store %arg7[%c0_6, %c0_7], %7 {strides = array<i32>} : memref<256x128xf32, #tpu.memory_space<vmem>>, vector<256x128xf32>,
    %c0_i32_8 = arith.constant 0 : i32
    %9 = arith.cmpi eq, %arg2, %c0_i32_8 : i32
    %10 = arith.extui %9 : i1 to i32
    %c0_i32_9 = arith.constant 0 : i32
    %11 = arith.cmpi ne, %10, %c0_i32_9 : i32
    scf.if %11 {
      %c0_10 = arith.constant 0 : index
      %c0_11 = arith.constant 0 : index
      %12 = vector.load %arg7[%c0_10, %c0_11] : memref<256x128xf32, #tpu.memory_space<vmem>>, vector<256x128xf32>
      %c0_12 = arith.constant 0 : index
      %c0_13 = arith.constant 0 : index
      %13 = vector.load %arg5[%c0_12, %c0_13] : memref<1x128xf32, #tpu.memory_space<vmem>>, vector<1x128xf32>
      %14 = vector.broadcast %13 : vector<1x128xf32> to vector<256x128xf32>
      %15 = arith.addf %12, %14 : vector<256x128xf32>
      %16 = math.tanh %15 : vector<256x128xf32>
      %c0_14 = arith.constant 0 : index
      %c0_15 = arith.constant 0 : index
      %17 = vector.load %arg6[%c0_14, %c0_15] : memref<256x128xf32, #tpu.memory_space<vmem>>, vector<256x128xf32>
      tpu.vector_store %arg6[%c0_14, %c0_15], %16 {strides = array<i32>} : memref<256x128xf32, #tpu.memory_space<vmem>>, vector<256x128xf32>,
    } else {
    }
    return
  }
  func.func @transform_0(%arg0: i32, %arg1: i32, %arg2: i32) -> (i32, i32) {
    %c0_i32 = arith.constant 0 : i32
    return %arg0, %arg2 : i32, i32
  }
  func.func @transform_1(%arg0: i32, %arg1: i32, %arg2: i32) -> (i32, i32) {
    %c0_i32 = arith.constant 0 : i32
    return %arg2, %arg1 : i32, i32
  }
  func.func @transform_2(%arg0: i32, %arg1: i32, %arg2: i32) -> (i32, i32) {
    %c0_i32 = arith.constant 0 : i32
    %c0_i32_0 = arith.constant 0 : i32
    return %c0_i32, %arg1 : i32, i32
  }
  func.func @transform_3(%arg0: i32, %arg1: i32, %arg2: i32) -> (i32, i32) {
    %c0_i32 = arith.constant 0 : i32
    return %arg0, %arg1 : i32, i32
  }
}

</mosaic_0001>

<bundles_post_ra>
// kernel: generator_fc_forward.51
= control target key start
LH: loop header
LB: loop body
LE: loop exit
PB: predicated region body
PF: predicated region fallthrough
CT: control target
= control target key end

     0   :  { %s1454_s12 = smov 0   ;;  %s1456_s13 = smov 0   ;;  %s1682_s0 = inlined_call_operand.vmem [shape: bf16[2048,256], index: 0, kind: input, shape index: {}]   ;;  %s1683_s1 = inlined_call_operand.vmem [shape: bf16[256,128], index: 1, kind: input, shape index: {}]   ;;  %s1684_s2 = inlined_call_operand.vmem [shape: f32[1,128], index: 2, kind: input, shape index: {}]   ;;  %s1685_s3 = inlined_call_operand.vmem [shape: f32[2048,128], index: 3, kind: output, shape index: {}]  }
   0x1   :  { %s1458_s14 = smov 0  }
   0x2 LB: > { %s32_s15 = sadd.s32 1, %s1428_s13  ;;  %p1120_p0 = scmp.ge.s32.totalorder %s1432_s14, 1  ;;  %s1432_s14 = sphi %s1458_s14, %s13_s14   ;;  %s1428_s13 = sphi %s1456_s13, %s1687_s13   ;;  %s1424_s12 = sphi %s1454_s12, %s1686_s12  }
   0x3   : > { %p34_p1 = scmp.ge.s32.totalorder %s32_s15, 8  ;;  %p191_p2 = scmp.lt.s32.totalorder %s1432_s14, 9 }
   0x5   : > { %s1689_s15 = smov (%p34_p1, %s32_s15), 0  ;;  %p192_p3 = pnand %p1120_p0, %p191_p2 }
   0x6   : > { %s1121_s28 = sshll.u32 (!%p192_p3), %s1424_s12, 5 }
   0x7   : > { %195 = sbr.rel (%p192_p3) target bundleno = 302 (0x12e), region = 32  ;;  %p236_p4 = scmp.lt.s32.totalorder (!%p192_p3), %s1121_s28, 255 }
   0xc   : > { %v1360_v0 = vld [vmem:[%s1683_s1 + $0x38] sm:$0xff]  ;;  %v1359_v2 = vld [vmem:[%s1683_s1 + $0x30] sm:$0xff]  ;;  %v1358_v4 = vld [vmem:[%s1683_s1 + $0x28] sm:$0xff]  ;;  %s1691_s28 = smov (!%p236_p4, %s1121_s28), 255 }
   0xd   : > { %v1368_v1 = vld [vmem:[%s1683_s1 + $0x78] sm:$0xff]  ;;  %655 = vmatpush.bf16.msra.mxu0 %v1360_v0  ;;  %1369 = vmatpush.bf16.msra.mxu2 %v1360_v0  ;;  %v1367_v3 = vld [vmem:[%s1683_s1 + $0x70] sm:$0xff]  ;;  %v1366_v5 = vld [vmem:[%s1683_s1 + $0x68] sm:$0xff]  ;;  %s1320_s17 = sshll.u32 %s1691_s28, 3 }
   0xe   : > { %744 = vmatpush.bf16.msra.mxu1 %v1368_v1  ;;  %1377 = vmatpush.bf16.msra.mxu3 %v1368_v1  ;;  %v1357_v6 = vld [vmem:[%s1683_s1 + $0x20] sm:$0xff]  ;;  %v1356_v8 = vld [vmem:[%s1683_s1 + $0x18] sm:$0xff]  ;;  %v1355_v10 = vld [vmem:[%s1683_s1 + $0x10] sm:$0xff]  ;;  %s1522_s22 = scalar_lea.vmem %s1682_s0, %s1320_s17  ;;  %s1607_s7 = scalar_lea.vmem %s1685_s3, %s1320_s17 }
   0xf   : > { %v1365_v7 = vld [vmem:[%s1683_s1 + $0x60] sm:$0xff]  ;;  %v1364_v9 = vld [vmem:[%s1683_s1 + $0x58] sm:$0xff]  ;;  %v1363_v11 = vld [vmem:[%s1683_s1 + $0x50] sm:$0xff] }
  0x10   : > { %v1354_v12 = vld [vmem:[%s1683_s1 + $0x8] sm:$0xff]  ;;  %v1353_v14 = vld [vmem:[%s1683_s1] sm:$0xff]  ;;  %v1136_v28 = vld [vmem:[%s1522_s22 + $0x10] sm:$0xf] }
  0x11   : > { %656 = vmatpush.bf16.msra.mxu0 %v1359_v2  ;;  %1370 = vmatpush.bf16.msra.mxu2 %v1359_v2  ;;  %v1362_v13 = vld [vmem:[%s1683_s1 + $0x48] sm:$0xff]  ;;  %v1361_v15 = vld [vmem:[%s1683_s1 + $0x40] sm:$0xff]  ;;  %v1324_v29 = vld [vmem:[%s1522_s22 + $0x14] sm:$0xf0] }
  0x12   : > { %745 = vmatpush.bf16.msra.mxu1 %v1367_v3  ;;  %1378 = vmatpush.bf16.msra.mxu3 %v1367_v3  ;;  %v1128_v16 = vld [vmem:[%s1522_s22] sm:$0xf]  ;;  %v1322_v17 = vld [vmem:[%s1522_s22 + $0x4] sm:$0xf0]  ;;  %v1321_v20 = vld [vmem:[%s1522_s22 + $0x4] sm:$0xf]  ;;  %v1137_v36 = vor.u32 %v1324_v29, %v1136_v28 }
  0x13   : > { %v1192_v18 = vld [vmem:[%s1522_s22 + $0x80] sm:$0xf]  ;;  %v1338_v19 = vld [vmem:[%s1522_s22 + $0x84] sm:$0xf0]  ;;  %v1130_v21 = vld [vmem:[%s1522_s22 + $0x8] sm:$0xf0]  ;;  %v1129_v24 = vor.u32 %v1322_v17, %v1128_v16 }
  0x14   : > { %v1337_v22 = vld [vmem:[%s1522_s22 + $0x84] sm:$0xf]  ;;  %v1194_v23 = vld [vmem:[%s1522_s22 + $0x88] sm:$0xf0]  ;;  %v1193_v25 = vor.u32 %v1338_v19, %v1192_v18  ;;  %v1133_v26 = vor.u32 %v1321_v20, %v1130_v21  ;;  %v1200_v30 = vld [vmem:[%s1522_s22 + $0x90] sm:$0xf] }
  0x15   : > { %657 = vmatpush.bf16.msra.mxu0 %v1358_v4  ;;  %1371 = vmatpush.bf16.msra.mxu2 %v1358_v4  ;;  %v1197_v27 = vor.u32 %v1337_v22, %v1194_v23  ;;  %v1340_v31 = vld [vmem:[%s1522_s22 + $0x94] sm:$0xf0]  ;;  %v1323_v32 = vld [vmem:[%s1522_s22 + $0x14] sm:$0xf]  ;;  %v1138_v33 = vld [vmem:[%s1522_s22 + $0x18] sm:$0xf0] }
  0x16   : > { %746 = vmatpush.bf16.msra.mxu1 %v1366_v5  ;;  %1379 = vmatpush.bf16.msra.mxu3 %v1366_v5  ;;  %v1339_v34 = vld [vmem:[%s1522_s22 + $0x94] sm:$0xf]  ;;  %v1202_v35 = vld [vmem:[%s1522_s22 + $0x98] sm:$0xf0]  ;;  %v1201_v37 = vor.u32 %v1340_v31, %v1200_v30  ;;  %v1141_v38 = vor.u32 %v1323_v32, %v1138_v33  ;;  %v1144_v40 = vld [vmem:[%s1522_s22 + $0x20] sm:$0xf] }
  0x17   : > { %v1205_v39 = vor.u32 %v1339_v34, %v1202_v35  ;;  %v1326_v41 = vld [vmem:[%s1522_s22 + $0x24] sm:$0xf0]  ;;  %v1208_v42 = vld [vmem:[%s1522_s22 + $0xa0] sm:$0xf]  ;;  %v1325_v44 = vld [vmem:[%s1522_s22 + $0x24] sm:$0xf] }
  0x18   : > { %v1342_v43 = vld [vmem:[%s1522_s22 + $0xa4] sm:$0xf0]  ;;  %v1146_v45 = vld [vmem:[%s1522_s22 + $0x28] sm:$0xf0]  ;;  %v1341_v46 = vld [vmem:[%s1522_s22 + $0xa4] sm:$0xf]  ;;  %v1145_v48 = vor.u32 %v1326_v41, %v1144_v40 }
  0x19   : > { %658 = vmatpush.bf16.msra.mxu0 %v1357_v6  ;;  %1372 = vmatpush.bf16.msra.mxu2 %v1357_v6  ;;  %v1210_v47 = vld [vmem:[%s1522_s22 + $0xa8] sm:$0xf0]  ;;  %v1209_v49 = vor.u32 %v1342_v43, %v1208_v42  ;;  %v1149_v50 = vor.u32 %v1325_v44, %v1146_v45  ;;  %v1152_v52 = vld [vmem:[%s1522_s22 + $0x30] sm:$0xf]  ;;  %v1328_v53 = vld [vmem:[%s1522_s22 + $0x34] sm:$0xf0] }
  0x1a   : > { %747 = vmatpush.bf16.msra.mxu1 %v1365_v7  ;;  %1380 = vmatpush.bf16.msra.mxu3 %v1365_v7  ;;  %v1213_v51 = vor.u32 %v1341_v46, %v1210_v47  ;;  %v1216_v54 = vld [vmem:[%s1522_s22 + $0xb0] sm:$0xf]  ;;  %v1344_v55 = vld [vmem:[%s1522_s22 + $0xb4] sm:$0xf0]  ;;  %v1327_v56 = vld [vmem:[%s1522_s22 + $0x34] sm:$0xf]  ;;  %v1153_v60 = vor.u32 %v1328_v53, %v1152_v52 }
  0x1b   : > { %v1154_v57 = vld [vmem:[%s1522_s22 + $0x38] sm:$0xf0]  ;;  %v1343_v58 = vld [vmem:[%s1522_s22 + $0xb4] sm:$0xf]  ;;  %v1217_v61 = vor.u32 %v1344_v55, %v1216_v54  ;;  %v1160_v0 = vld [vmem:[%s1522_s22 + $0x40] sm:$0xf] }
  0x1c   : > { %v1218_v59 = vld [vmem:[%s1522_s22 + $0xb8] sm:$0xf0]  ;;  %v1157_v62 = vor.u32 %v1327_v56, %v1154_v57  ;;  %v1330_v1 = vld [vmem:[%s1522_s22 + $0x44] sm:$0xf0]  ;;  %v1224_v2 = vld [vmem:[%s1522_s22 + $0xc0] sm:$0xf] }
  0x1d   : > { %659 = vmatpush.bf16.msra.mxu0 %v1356_v8  ;;  %1373 = vmatpush.bf16.msra.mxu2 %v1356_v8  ;;  %v1221_v63 = vor.u32 %v1343_v58, %v1218_v59  ;;  %v1346_v3 = vld [vmem:[%s1522_s22 + $0xc4] sm:$0xf0]  ;;  %v1329_v4 = vld [vmem:[%s1522_s22 + $0x44] sm:$0xf]  ;;  %v1162_v5 = vld [vmem:[%s1522_s22 + $0x48] sm:$0xf0]  ;;  %v1161_v8 = vor.u32 %v1330_v1, %v1160_v0 }
  0x1e   : > { %748 = vmatpush.bf16.msra.mxu1 %v1364_v9  ;;  %1381 = vmatpush.bf16.msra.mxu3 %v1364_v9  ;;  %v1345_v6 = vld [vmem:[%s1522_s22 + $0xc4] sm:$0xf]  ;;  %v1226_v7 = vld [vmem:[%s1522_s22 + $0xc8] sm:$0xf0]  ;;  %v1225_v9 = vor.u32 %v1346_v3, %v1224_v2  ;;  %v1331_v16 = vld [vmem:[%s1522_s22 + $0x54] sm:$0xf] }
  0x1f   : > { %v1170_v17 = vld [vmem:[%s1522_s22 + $0x58] sm:$0xf0]  ;;  %v1347_v18 = vld [vmem:[%s1522_s22 + $0xd4] sm:$0xf]  ;;  %v1333_v28 = vld [vmem:[%s1522_s22 + $0x64] sm:$0xf] }
  0x20   : > { %v1234_v19 = vld [vmem:[%s1522_s22 + $0xd8] sm:$0xf0]  ;;  %v1173_v22 = vor.u32 %v1331_v16, %v1170_v17  ;;  %v1178_v29 = vld [vmem:[%s1522_s22 + $0x68] sm:$0xf0]  ;;  %v1349_v30 = vld [vmem:[%s1522_s22 + $0xe4] sm:$0xf] }
  0x21   : > { %660 = vmatpush.bf16.msra.mxu0 %v1355_v10  ;;  %1374 = vmatpush.bf16.msra.mxu2 %v1355_v10  ;;  %v1165_v10 = vor.u32 %v1329_v4, %v1162_v5  ;;  %v1237_v23 = vor.u32 %v1347_v18, %v1234_v19  ;;  %v1242_v31 = vld [vmem:[%s1522_s22 + $0xe8] sm:$0xf0]  ;;  %v1181_v34 = vor.u32 %v1333_v28, %v1178_v29  ;;  %v1335_v40 = vld [vmem:[%s1522_s22 + $0x74] sm:$0xf]  ;;  %v1186_v41 = vld [vmem:[%s1522_s22 + $0x78] sm:$0xf0] }
  0x22   : > { %749 = vmatpush.bf16.msra.mxu1 %v1363_v11  ;;  %1382 = vmatpush.bf16.msra.mxu3 %v1363_v11  ;;  %v1229_v11 = vor.u32 %v1345_v6, %v1226_v7  ;;  %v1245_v35 = vor.u32 %v1349_v30, %v1242_v31  ;;  %v1351_v42 = vld [vmem:[%s1522_s22 + $0xf4] sm:$0xf]  ;;  %v1250_v43 = vld [vmem:[%s1522_s22 + $0xf8] sm:$0xf0]  ;;  %v1189_v46 = vor.u32 %v1335_v40, %v1186_v41 }
  0x23   : > { %v1253_v47 = vor.u32 %v1351_v42, %v1250_v43 }
  0x25   : > { %661 = vmatpush.bf16.msra.mxu0 %v1354_v12  ;;  %1375 = vmatpush.bf16.msra.mxu2 %v1354_v12  ;;  %v1168_v12 = vld [vmem:[%s1522_s22 + $0x50] sm:$0xf] }
  0x26   : > { %750 = vmatpush.bf16.msra.mxu1 %v1362_v13  ;;  %1383 = vmatpush.bf16.msra.mxu3 %v1362_v13  ;;  %v1332_v13 = vld [vmem:[%s1522_s22 + $0x54] sm:$0xf0] }
  0x27   : > { %v1169_v20 = vor.u32 %v1332_v13, %v1168_v12 }
  0x29   : > { %662 = vmatpush.bf16.msra.mxu0 %v1353_v14  ;;  %1376 = vmatpush.bf16.msra.mxu2 %v1353_v14  ;;  %v1232_v14 = vld [vmem:[%s1522_s22 + $0xd0] sm:$0xf] }
  0x2a   : > { %751 = vmatpush.bf16.msra.mxu1 %v1361_v15  ;;  %1384 = vmatpush.bf16.msra.mxu3 %v1361_v15  ;;  %v1348_v15 = vld [vmem:[%s1522_s22 + $0xd4] sm:$0xf0] }
  0x2b   : > { %v1233_v21 = vor.u32 %v1348_v15, %v1232_v14 }
  0x2c   : > { %663 = vmatmul.bf16.vlgmr.msra.gmra.mxu0 %v1129_v24  ;;  %703 = vmatmul.bf16.vlgmr.msra.gmra.mxu2 %v1193_v25  ;;  %v1176_v24 = vld [vmem:[%s1522_s22 + $0x60] sm:$0xf]  ;;  %v1334_v25 = vld [vmem:[%s1522_s22 + $0x64] sm:$0xf0] }
  0x2d   : > { %752 = vmatmul.bf16.vlgmr.msra.gmra.mxu1 %v1133_v26  ;;  %792 = vmatmul.bf16.vlgmr.msra.gmra.mxu3 %v1197_v27  ;;  %v1240_v26 = vld [vmem:[%s1522_s22 + $0xe0] sm:$0xf]  ;;  %v1350_v27 = vld [vmem:[%s1522_s22 + $0xe4] sm:$0xf0]  ;;  %v1177_v32 = vor.u32 %v1334_v25, %v1176_v24 }
  0x2e   : > { %v1241_v33 = vor.u32 %v1350_v27, %v1240_v26 }
  0x3c   : > { %668 = vmatmul.bf16.gmra.mxu0 %v1137_v36  ;;  %708 = vmatmul.bf16.gmra.mxu2 %v1201_v37  ;;  %v1184_v36 = vld [vmem:[%s1522_s22 + $0x70] sm:$0xf]  ;;  %v1336_v37 = vld [vmem:[%s1522_s22 + $0x74] sm:$0xf0] }
  0x3d   : > { %757 = vmatmul.bf16.gmra.mxu1 %v1141_v38  ;;  %797 = vmatmul.bf16.gmra.mxu3 %v1205_v39  ;;  %v1248_v38 = vld [vmem:[%s1522_s22 + $0xf0] sm:$0xf]  ;;  %v1352_v39 = vld [vmem:[%s1522_s22 + $0xf4] sm:$0xf0]  ;;  %v1185_v44 = vor.u32 %v1336_v37, %v1184_v36 }
  0x3e   : > { %v1249_v45 = vor.u32 %v1352_v39, %v1248_v38 }
  0x4c   : > { %673 = vmatmul.bf16.gmra.mxu0 %v1145_v48  ;;  %713 = vmatmul.bf16.gmra.mxu2 %v1209_v49  ;;  %v1600_v49 = vld [vmem:[%s1684_s2] ss:$0 sm:$0xff] }
  0x4d   : > { %762 = vmatmul.bf16.gmra.mxu1 %v1149_v50  ;;  %802 = vmatmul.bf16.gmra.mxu3 %v1213_v51 }
  0x5c   : > { %678 = vmatmul.bf16.gmra.mxu0 %v1153_v60  ;;  %718 = vmatmul.bf16.gmra.mxu2 %v1217_v61 }
  0x5d   : > { %767 = vmatmul.bf16.gmra.mxu1 %v1157_v62  ;;  %807 = vmatmul.bf16.gmra.mxu3 %v1221_v63 }
  0x6c   : > { %683 = vmatmul.bf16.gmra.mxu0 %v1161_v8  ;;  %723 = vmatmul.bf16.gmra.mxu2 %v1225_v9 }
  0x6d   : > { %772 = vmatmul.bf16.gmra.mxu1 %v1165_v10  ;;  %812 = vmatmul.bf16.gmra.mxu3 %v1229_v11 }
  0x7c   : > { %688 = vmatmul.bf16.gmra.mxu0 %v1169_v20  ;;  %728 = vmatmul.bf16.gmra.mxu2 %v1233_v21 }
  0x7d   : > { %777 = vmatmul.bf16.gmra.mxu1 %v1173_v22  ;;  %817 = vmatmul.bf16.gmra.mxu3 %v1237_v23 }
  0x8c   : > { %693 = vmatmul.bf16.gmra.mxu0 %v1177_v32  ;;  %733 = vmatmul.bf16.gmra.mxu2 %v1241_v33 }
  0x8d   : > { %782 = vmatmul.bf16.gmra.mxu1 %v1181_v34  ;;  %822 = vmatmul.bf16.gmra.mxu3 %v1245_v35 }
  0x9c   : > { %698 = vmatmul.bf16.gmra.mxu0 %v1185_v44  ;;  %738 = vmatmul.bf16.gmra.mxu2 %v1249_v45 }
  0x9d   : > { %787 = vmatmul.bf16.gmra.mxu1 %v1189_v46  ;;  %827 = vmatmul.bf16.gmra.mxu3 %v1253_v47 }
  0xa9   : > { %v664_v48 = vpop.f32.mrf.mxu0 }
  0xaa   : > { %v753_v50 = vpop.f32.mrf.mxu1 }
  0xab   : > { %v754_v51 = vadd.f32 %v753_v50, %v664_v48 }
  0xad   : > { %v936_v52 = vadd.f32 %v1600_v49, %v754_v51 }
  0xaf   : > { %968 = vst [vmem:[%s1607_s7] sm:$0xff] %v936_v52  ;;  %v704_v53 = vpop.f32.mrf.mxu2 }
  0xb0   : > { %v793_v54 = vpop.f32.mrf.mxu3 }
  0xb1   : > { %v794_v55 = vadd.f32 %v793_v54, %v704_v53  ;;  %v666_v56 = vpop.f32.mrf.mxu0 }
  0xb2   : > { %v755_v57 = vpop.f32.mrf.mxu1 }
  0xb3   : > { %v952_v58 = vadd.f32 %v1600_v49, %v794_v55  ;;  %v756_v59 = vadd.f32 %v755_v57, %v666_v56 }
  0xb5   : > { %984 = vst [vmem:[%s1607_s7 + $0x80] sm:$0xff] %v952_v58  ;;  %v937_v60 = vadd.f32 %v1600_v49, %v756_v59 }
  0xb7   : > { %969 = vst [vmem:[%s1607_s7 + $0x8] sm:$0xff] %v937_v60  ;;  %v706_v61 = vpop.f32.mrf.mxu2 }
  0xb8   : > { %v795_v62 = vpop.f32.mrf.mxu3 }
  0xb9   : > { %v796_v63 = vadd.f32 %v795_v62, %v706_v61  ;;  %v669_v0 = vpop.f32.mrf.mxu0 }
  0xba   : > { %v758_v1 = vpop.f32.mrf.mxu1 }
  0xbb   : > { %v953_v2 = vadd.f32 %v1600_v49, %v796_v63  ;;  %v759_v3 = vadd.f32 %v758_v1, %v669_v0 }
  0xbd   : > { %985 = vst [vmem:[%s1607_s7 + $0x88] sm:$0xff] %v953_v2  ;;  %v938_v4 = vadd.f32 %v1600_v49, %v759_v3 }
  0xbf   : > { %970 = vst [vmem:[%s1607_s7 + $0x10] sm:$0xff] %v938_v4  ;;  %v709_v5 = vpop.f32.mrf.mxu2 }
  0xc0   : > { %v798_v6 = vpop.f32.mrf.mxu3 }
  0xc1   : > { %v799_v7 = vadd.f32 %v798_v6, %v709_v5  ;;  %v671_v8 = vpop.f32.mrf.mxu0 }
  0xc2   : > { %v760_v9 = vpop.f32.mrf.mxu1 }
  0xc3   : > { %v954_v10 = vadd.f32 %v1600_v49, %v799_v7  ;;  %v761_v11 = vadd.f32 %v760_v9, %v671_v8 }
  0xc5   : > { %986 = vst [vmem:[%s1607_s7 + $0x90] sm:$0xff] %v954_v10  ;;  %v939_v12 = vadd.f32 %v1600_v49, %v761_v11 }
  0xc7   : > { %971 = vst [vmem:[%s1607_s7 + $0x18] sm:$0xff] %v939_v12  ;;  %v711_v13 = vpop.f32.mrf.mxu2 }
  0xc8   : > { %v800_v14 = vpop.f32.mrf.mxu3 }
  0xc9   : > { %v801_v15 = vadd.f32 %v800_v14, %v711_v13  ;;  %v674_v16 = vpop.f32.mrf.mxu0 }
  0xca   : > { %v763_v17 = vpop.f32.mrf.mxu1 }
  0xcb   : > { %v955_v18 = vadd.f32 %v1600_v49, %v801_v15  ;;  %v764_v19 = vadd.f32 %v763_v17, %v674_v16 }
  0xcd   : > { %987 = vst [vmem:[%s1607_s7 + $0x98] sm:$0xff] %v955_v18  ;;  %v940_v20 = vadd.f32 %v1600_v49, %v764_v19 }
  0xcf   : > { %972 = vst [vmem:[%s1607_s7 + $0x20] sm:$0xff] %v940_v20  ;;  %v714_v21 = vpop.f32.mrf.mxu2 }
  0xd0   : > { %v803_v22 = vpop.f32.mrf.mxu3 }
  0xd1   : > { %v804_v23 = vadd.f32 %v803_v22, %v714_v21  ;;  %v676_v24 = vpop.f32.mrf.mxu0 }
  0xd2   : > { %v765_v25 = vpop.f32.mrf.mxu1 }
  0xd3   : > { %v956_v26 = vadd.f32 %v1600_v49, %v804_v23  ;;  %v766_v27 = vadd.f32 %v765_v25, %v676_v24 }
  0xd5   : > { %988 = vst [vmem:[%s1607_s7 + $0xa0] sm:$0xff] %v956_v26  ;;  %v941_v28 = vadd.f32 %v1600_v49, %v766_v27 }
  0xd7   : > { %973 = vst [vmem:[%s1607_s7 + $0x28] sm:$0xff] %v941_v28  ;;  %v716_v29 = vpop.f32.mrf.mxu2 }
  0xd8   : > { %v805_v30 = vpop.f32.mrf.mxu3 }
  0xd9   : > { %v806_v31 = vadd.f32 %v805_v30, %v716_v29  ;;  %v679_v32 = vpop.f32.mrf.mxu0 }
  0xda   : > { %v768_v33 = vpop.f32.mrf.mxu1 }
  0xdb   : > { %v957_v34 = vadd.f32 %v1600_v49, %v806_v31  ;;  %v769_v35 = vadd.f32 %v768_v33, %v679_v32 }
  0xdd   : > { %989 = vst [vmem:[%s1607_s7 + $0xa8] sm:$0xff] %v957_v34  ;;  %v942_v36 = vadd.f32 %v1600_v49, %v769_v35 }
  0xdf   : > { %974 = vst [vmem:[%s1607_s7 + $0x30] sm:$0xff] %v942_v36  ;;  %v719_v37 = vpop.f32.mrf.mxu2 }
  0xe0   : > { %v808_v38 = vpop.f32.mrf.mxu3 }
  0xe1   : > { %v809_v39 = vadd.f32 %v808_v38, %v719_v37  ;;  %v681_v40 = vpop.f32.mrf.mxu0 }
  0xe2   : > { %v770_v41 = vpop.f32.mrf.mxu1 }
  0xe3   : > { %v958_v42 = vadd.f32 %v1600_v49, %v809_v39  ;;  %v771_v43 = vadd.f32 %v770_v41, %v681_v40 }
  0xe5   : > { %990 = vst [vmem:[%s1607_s7 + $0xb0] sm:$0xff] %v958_v42  ;;  %v943_v44 = vadd.f32 %v1600_v49, %v771_v43 }
  0xe7   : > { %975 = vst [vmem:[%s1607_s7 + $0x38] sm:$0xff] %v943_v44  ;;  %v721_v45 = vpop.f32.mrf.mxu2 }
  0xe8   : > { %v810_v46 = vpop.f32.mrf.mxu3 }
  0xe9   : > { %v811_v47 = vadd.f32 %v810_v46, %v721_v45  ;;  %v684_v48 = vpop.f32.mrf.mxu0 }
  0xea   : > { %v773_v50 = vpop.f32.mrf.mxu1 }
  0xeb   : > { %v959_v51 = vadd.f32 %v1600_v49, %v811_v47  ;;  %v774_v52 = vadd.f32 %v773_v50, %v684_v48 }
  0xed   : > { %991 = vst [vmem:[%s1607_s7 + $0xb8] sm:$0xff] %v959_v51  ;;  %v944_v53 = vadd.f32 %v1600_v49, %v774_v52 }
  0xef   : > { %976 = vst [vmem:[%s1607_s7 + $0x40] sm:$0xff] %v944_v53  ;;  %v724_v54 = vpop.f32.mrf.mxu2 }
  0xf0   : > { %v813_v55 = vpop.f32.mrf.mxu3 }
  0xf1   : > { %v814_v56 = vadd.f32 %v813_v55, %v724_v54  ;;  %v686_v57 = vpop.f32.mrf.mxu0 }
  0xf2   : > { %v775_v58 = vpop.f32.mrf.mxu1 }
  0xf3   : > { %v960_v59 = vadd.f32 %v1600_v49, %v814_v56  ;;  %v776_v60 = vadd.f32 %v775_v58, %v686_v57 }
  0xf5   : > { %992 = vst [vmem:[%s1607_s7 + $0xc0] sm:$0xff] %v960_v59  ;;  %v945_v61 = vadd.f32 %v1600_v49, %v776_v60 }
  0xf7   : > { %977 = vst [vmem:[%s1607_s7 + $0x48] sm:$0xff] %v945_v61  ;;  %v726_v62 = vpop.f32.mrf.mxu2 }
  0xf8   : > { %v815_v63 = vpop.f32.mrf.mxu3 }
  0xf9   : > { %v816_v0 = vadd.f32 %v815_v63, %v726_v62  ;;  %v689_v1 = vpop.f32.mrf.mxu0 }
  0xfa   : > { %v778_v2 = vpop.f32.mrf.mxu1 }
  0xfb   : > { %v961_v3 = vadd.f32 %v1600_v49, %v816_v0  ;;  %v779_v4 = vadd.f32 %v778_v2, %v689_v1 }
  0xfd   : > { %993 = vst [vmem:[%s1607_s7 + $0xc8] sm:$0xff] %v961_v3  ;;  %v946_v5 = vadd.f32 %v1600_v49, %v779_v4 }
  0xff   : > { %978 = vst [vmem:[%s1607_s7 + $0x50] sm:$0xff] %v946_v5  ;;  %v729_v6 = vpop.f32.mrf.mxu2 }
 0x100   : > { %v818_v7 = vpop.f32.mrf.mxu3 }
 0x101   : > { %v819_v8 = vadd.f32 %v818_v7, %v729_v6  ;;  %v691_v9 = vpop.f32.mrf.mxu0 }
 0x102   : > { %v780_v10 = vpop.f32.mrf.mxu1 }
 0x103   : > { %v962_v11 = vadd.f32 %v1600_v49, %v819_v8  ;;  %v781_v12 = vadd.f32 %v780_v10, %v691_v9 }
 0x105   : > { %994 = vst [vmem:[%s1607_s7 + $0xd0] sm:$0xff] %v962_v11  ;;  %v947_v13 = vadd.f32 %v1600_v49, %v781_v12 }
 0x107   : > { %979 = vst [vmem:[%s1607_s7 + $0x58] sm:$0xff] %v947_v13  ;;  %v731_v14 = vpop.f32.mrf.mxu2 }
 0x108   : > { %v820_v15 = vpop.f32.mrf.mxu3 }
 0x109   : > { %v821_v16 = vadd.f32 %v820_v15, %v731_v14  ;;  %v694_v17 = vpop.f32.mrf.mxu0 }
 0x10a   : > { %v783_v18 = vpop.f32.mrf.mxu1 }
 0x10b   : > { %v963_v19 = vadd.f32 %v1600_v49, %v821_v16  ;;  %v784_v20 = vadd.f32 %v783_v18, %v694_v17 }
 0x10d   : > { %995 = vst [vmem:[%s1607_s7 + $0xd8] sm:$0xff] %v963_v19  ;;  %v948_v21 = vadd.f32 %v1600_v49, %v784_v20 }
 0x10f   : > { %980 = vst [vmem:[%s1607_s7 + $0x60] sm:$0xff] %v948_v21  ;;  %v734_v22 = vpop.f32.mrf.mxu2 }
 0x110   : > { %v823_v23 = vpop.f32.mrf.mxu3 }
 0x111   : > { %v824_v24 = vadd.f32 %v823_v23, %v734_v22  ;;  %v696_v25 = vpop.f32.mrf.mxu0 }
 0x112   : > { %v785_v26 = vpop.f32.mrf.mxu1 }
 0x113   : > { %v964_v27 = vadd.f32 %v1600_v49, %v824_v24  ;;  %v786_v28 = vadd.f32 %v785_v26, %v696_v25 }
 0x115   : > { %996 = vst [vmem:[%s1607_s7 + $0xe0] sm:$0xff] %v964_v27  ;;  %v949_v29 = vadd.f32 %v1600_v49, %v786_v28 }
 0x117   : > { %981 = vst [vmem:[%s1607_s7 + $0x68] sm:$0xff] %v949_v29  ;;  %v736_v30 = vpop.f32.mrf.mxu2 }
 0x118   : > { %v825_v31 = vpop.f32.mrf.mxu3 }
 0x119   : > { %v826_v32 = vadd.f32 %v825_v31, %v736_v30  ;;  %v699_v33 = vpop.f32.mrf.mxu0 }
 0x11a   : > { %v788_v34 = vpop.f32.mrf.mxu1 }
 0x11b   : > { %v965_v35 = vadd.f32 %v1600_v49, %v826_v32  ;;  %v789_v36 = vadd.f32 %v788_v34, %v699_v33 }
 0x11d   : > { %997 = vst [vmem:[%s1607_s7 + $0xe8] sm:$0xff] %v965_v35  ;;  %v950_v37 = vadd.f32 %v1600_v49, %v789_v36 }
 0x11f   : > { %982 = vst [vmem:[%s1607_s7 + $0x70] sm:$0xff] %v950_v37  ;;  %v739_v38 = vpop.f32.mrf.mxu2 }
 0x120   : > { %v828_v39 = vpop.f32.mrf.mxu3 }
 0x121   : > { %v829_v40 = vadd.f32 %v828_v39, %v739_v38  ;;  %v701_v41 = vpop.f32.mrf.mxu0 }
 0x122   : > { %v790_v42 = vpop.f32.mrf.mxu1 }
 0x123   : > { %v966_v43 = vadd.f32 %v1600_v49, %v829_v40  ;;  %v791_v44 = vadd.f32 %v790_v42, %v701_v41 }
 0x125   : > { %998 = vst [vmem:[%s1607_s7 + $0xf0] sm:$0xff] %v966_v43  ;;  %v951_v45 = vadd.f32 %v1600_v49, %v791_v44 }
 0x127   : > { %983 = vst [vmem:[%s1607_s7 + $0x78] sm:$0xff] %v951_v45  ;;  %v741_v46 = vpop.f32.mrf.mxu2 }
 0x128   : > { %v830_v47 = vpop.f32.mrf.mxu3 }
 0x129   : > { %v831_v48 = vadd.f32 %v830_v47, %v741_v46 }
 0x12b   : > { %v967_v50 = vadd.f32 %v1600_v49, %v831_v48 }
 0x12d   : > { %999 = vst [vmem:[%s1607_s7 + $0xf8] sm:$0xff] %v967_v50 }
 0x12e PF: > { %s13_s14 = sadd.s32 1, %s1432_s14   ;;  %s1686_s12 = smov %s1428_s13 }
 0x12f   : > { %p10_p5 = scmp.ge.s32.totalorder %s13_s14, 10   ;;  %s1687_s13 = smov %s1689_s15 }
 0x131   :  { %12 = sbr.rel (!%p10_p5) target bundleno = 2 (0x2), region = 76 }

// kernel: generator_fc_forward.52
= control target key start
LH: loop header
LB: loop body
LE: loop exit
PB: predicated region body
PF: predicated region fallthrough
CT: control target
= control target key end

     0   :  { %s1865_s12 = smov 0   ;;  %s4210_s0 = inlined_call_operand.vmem [shape: f32[2,1024,8], index: 0, kind: input, shape index: {}]   ;;  %s4211_s1 = inlined_call_operand.vmem [shape: f32[1,8], index: 1, kind: input, shape index: {}]   ;;  %s4212_s2 = inlined_call_operand.vmem [shape: f32[1,8], index: 2, kind: input, shape index: {}]   ;;  %s4213_s3 = inlined_call_operand.vmem [shape: f32[2,1024,8], index: 3, kind: output, shape index: {}]  }
   0x1 LB: > { %s1801_s13 = sadd.s32 4294967295, %s1842_s12   ;;  %p1805_p0 = scmp.ge.s32.totalorder %s1842_s12, 1  ;;  %s1842_s12 = sphi %s1865_s12, %s13_s12  }
   0x2   : > { %p137_p1 = scmp.lt.s32.totalorder %s1842_s12, 3 }
   0x4   : > { %p138_p2 = pnand %p1805_p0, %p137_p1 }
   0x6   : > { %141 = sbr.rel (%p138_p2) target bundleno = 715 (0x2cb), region = 32 }
   0xb   : > { %p161_p3 = scmp.lt.s32.totalorder %s1801_s13, 1  ;;  %vm299_vm0 = vcmask 64512  }
   0xd   : > { %s4710_s13 = smov (!%p161_p3, %s1801_s13), 1 }
   0xe   : > { %s1812_s14 = sshll.u32 %s4710_s13, 10 }
   0xf   : > { %s1881_s17 = scalar_lea.vmem %s4210_s0, %s1812_s14  ;;  %s3455_s24 = scalar_lea.vmem %s4213_s3, %s1812_s14 }
  0x10   : > { %v1884_v0 = vld [vmem:[%s1881_s17] sm:$0xff]  ;;  %v1887_v1 = vld [vmem:[%s1881_s17 + $0x8] sm:$0xff]  ;;  %v1890_v2 = vld [vmem:[%s1881_s17 + $0x10] sm:$0xff] }
  0x11   : > { %v1893_v3 = vld [vmem:[%s1881_s17 + $0x18] sm:$0xff]  ;;  %v300_v4 = vsel %vm299_vm0, %v1884_v0, 0.0  ;;  %v301_v5 = vsel %vm299_vm0, %v1887_v1, 0.0  ;;  %v303_v6 = vsel %vm299_vm0, %v1890_v2, 0.0  ;;  %v1902_v7 = vld [vmem:[%s1881_s17 + $0x20] sm:$0xff]  ;;  %v1907_v10 = vld [vmem:[%s1881_s17 + $0x28] sm:$0xff] }
  0x12   : > { %v302_v8 = vadd.f32 %v301_v5, %v300_v4  ;;  %v305_v9 = vsel %vm299_vm0, %v1893_v3, 0.0  ;;  %v307_v12 = vsel %vm299_vm0, %v1902_v7, 0.0  ;;  %v1912_v13 = vld [vmem:[%s1881_s17 + $0x30] sm:$0xff]  ;;  %v309_v15 = vsel %vm299_vm0, %v1907_v10, 0.0  ;;  %v1917_v16 = vld [vmem:[%s1881_s17 + $0x38] sm:$0xff]  ;;  %v1922_v19 = vld [vmem:[%s1881_s17 + $0x40] sm:$0xff] }
  0x13   : > { %v311_v18 = vsel %vm299_vm0, %v1912_v13, 0.0  ;;  %v313_v21 = vsel %vm299_vm0, %v1917_v16, 0.0  ;;  %v1927_v22 = vld [vmem:[%s1881_s17 + $0x48] sm:$0xff]  ;;  %v315_v24 = vsel %vm299_vm0, %v1922_v19, 0.0  ;;  %v1932_v25 = vld [vmem:[%s1881_s17 + $0x50] sm:$0xff]  ;;  %v1937_v28 = vld [vmem:[%s1881_s17 + $0x58] sm:$0xff] }
  0x14   : > { %v304_v11 = vadd.f32 %v303_v6, %v302_v8  ;;  %v317_v27 = vsel %vm299_vm0, %v1927_v22, 0.0  ;;  %v319_v30 = vsel %vm299_vm0, %v1932_v25, 0.0  ;;  %v1942_v31 = vld [vmem:[%s1881_s17 + $0x60] sm:$0xff]  ;;  %v321_v33 = vsel %vm299_vm0, %v1937_v28, 0.0  ;;  %v1947_v34 = vld [vmem:[%s1881_s17 + $0x68] sm:$0xff]  ;;  %v1952_v37 = vld [vmem:[%s1881_s17 + $0x70] sm:$0xff] }
  0x15   : > { %v323_v36 = vsel %vm299_vm0, %v1942_v31, 0.0  ;;  %v325_v39 = vsel %vm299_vm0, %v1947_v34, 0.0  ;;  %v1957_v40 = vld [vmem:[%s1881_s17 + $0x78] sm:$0xff]  ;;  %v327_v42 = vsel %vm299_vm0, %v1952_v37, 0.0  ;;  %v1962_v43 = vld [vmem:[%s1881_s17 + $0x80] sm:$0xff]  ;;  %v1967_v46 = vld [vmem:[%s1881_s17 + $0x88] sm:$0xff] }
  0x16   : > { %v306_v14 = vadd.f32 %v305_v9, %v304_v11  ;;  %v329_v45 = vsel %vm299_vm0, %v1957_v40, 0.0  ;;  %v331_v48 = vsel %vm299_vm0, %v1962_v43, 0.0  ;;  %v1972_v49 = vld [vmem:[%s1881_s17 + $0x90] sm:$0xff]  ;;  %v333_v51 = vsel %vm299_vm0, %v1967_v46, 0.0  ;;  %v1977_v52 = vld [vmem:[%s1881_s17 + $0x98] sm:$0xff]  ;;  %v1982_v55 = vld [vmem:[%s1881_s17 + $0xa0] sm:$0xff] }
  0x17   : > { %v335_v54 = vsel %vm299_vm0, %v1972_v49, 0.0  ;;  %v337_v57 = vsel %vm299_vm0, %v1977_v52, 0.0  ;;  %v1987_v58 = vld [vmem:[%s1881_s17 + $0xa8] sm:$0xff]  ;;  %v339_v60 = vsel %vm299_vm0, %v1982_v55, 0.0  ;;  %v1992_v61 = vld [vmem:[%s1881_s17 + $0xb0] sm:$0xff]  ;;  %v1997_v4 = vld [vmem:[%s1881_s17 + $0xb8] sm:$0xff] }
  0x18   : > { %v308_v17 = vadd.f32 %v307_v12, %v306_v14  ;;  %v341_v63 = vsel %vm299_vm0, %v1987_v58, 0.0  ;;  %v343_v6 = vsel %vm299_vm0, %v1992_v61, 0.0  ;;  %v2002_v8 = vld [vmem:[%s1881_s17 + $0xc0] sm:$0xff]  ;;  %v345_v11 = vsel %vm299_vm0, %v1997_v4, 0.0  ;;  %v2007_v12 = vld [vmem:[%s1881_s17 + $0xc8] sm:$0xff] }
  0x1a   : > { %v310_v20 = vadd.f32 %v309_v15, %v308_v17  ;;  %v347_v15 = vsel %vm299_vm0, %v2002_v8, 0.0  ;;  %v2012_v17 = vld [vmem:[%s1881_s17 + $0xd0] sm:$0xff] }
  0x1c   : > { %v312_v23 = vadd.f32 %v311_v18, %v310_v20  ;;  %v349_v20 = vsel %vm299_vm0, %v2007_v12, 0.0 }
  0x1e   : > { %v314_v26 = vadd.f32 %v313_v21, %v312_v23  ;;  %v2017_v21 = vld [vmem:[%s1881_s17 + $0xd8] sm:$0xff] }
  0x20   : > { %v316_v29 = vadd.f32 %v315_v24, %v314_v26  ;;  %v351_v24 = vsel %vm299_vm0, %v2012_v17, 0.0  ;;  %v2022_v26 = vld [vmem:[%s1881_s17 + $0xe0] sm:$0xff] }
  0x22   : > { %v318_v32 = vadd.f32 %v317_v27, %v316_v29  ;;  %v353_v29 = vsel %vm299_vm0, %v2017_v21, 0.0 }
  0x24   : > { %v320_v35 = vadd.f32 %v319_v30, %v318_v32  ;;  %v2027_v30 = vld [vmem:[%s1881_s17 + $0xe8] sm:$0xff] }
  0x26   : > { %v322_v38 = vadd.f32 %v321_v33, %v320_v35  ;;  %v355_v33 = vsel %vm299_vm0, %v2022_v26, 0.0  ;;  %v2032_v35 = vld [vmem:[%s1881_s17 + $0xf0] sm:$0xff] }
  0x28   : > { %v324_v41 = vadd.f32 %v323_v36, %v322_v38  ;;  %v357_v38 = vsel %vm299_vm0, %v2027_v30, 0.0 }
  0x2a   : > { %v326_v44 = vadd.f32 %v325_v39, %v324_v41  ;;  %v2037_v39 = vld [vmem:[%s1881_s17 + $0xf8] sm:$0xff] }
  0x2c   : > { %v328_v47 = vadd.f32 %v327_v42, %v326_v44  ;;  %v359_v42 = vsel %vm299_vm0, %v2032_v35, 0.0  ;;  %v2042_v44 = vld [vmem:[%s1881_s17 + $0x100] sm:$0xff] }
  0x2e   : > { %v330_v50 = vadd.f32 %v329_v45, %v328_v47  ;;  %v361_v47 = vsel %vm299_vm0, %v2037_v39, 0.0 }
  0x30   : > { %v332_v53 = vadd.f32 %v331_v48, %v330_v50  ;;  %v2047_v48 = vld [vmem:[%s1881_s17 + $0x108] sm:$0xff] }
  0x32   : > { %v334_v56 = vadd.f32 %v333_v51, %v332_v53  ;;  %v363_v51 = vsel %vm299_vm0, %v2042_v44, 0.0  ;;  %v2052_v53 = vld [vmem:[%s1881_s17 + $0x110] sm:$0xff] }
  0x34   : > { %v336_v59 = vadd.f32 %v335_v54, %v334_v56  ;;  %v365_v56 = vsel %vm299_vm0, %v2047_v48, 0.0 }
  0x36   : > { %v338_v62 = vadd.f32 %v337_v57, %v336_v59  ;;  %v2057_v57 = vld [vmem:[%s1881_s17 + $0x118] sm:$0xff] }
  0x38   : > { %v340_v5 = vadd.f32 %v339_v60, %v338_v62  ;;  %v367_v60 = vsel %vm299_vm0, %v2052_v53, 0.0  ;;  %v2062_v62 = vld [vmem:[%s1881_s17 + $0x120] sm:$0xff] }
  0x3a   : > { %v342_v9 = vadd.f32 %v341_v63, %v340_v5  ;;  %v369_v5 = vsel %vm299_vm0, %v2057_v57, 0.0 }
  0x3c   : > { %v344_v14 = vadd.f32 %v343_v6, %v342_v9  ;;  %v2067_v6 = vld [vmem:[%s1881_s17 + $0x128] sm:$0xff] }
  0x3e   : > { %v346_v18 = vadd.f32 %v345_v11, %v344_v14  ;;  %v371_v11 = vsel %vm299_vm0, %v2062_v62, 0.0  ;;  %v2072_v14 = vld [vmem:[%s1881_s17 + $0x130] sm:$0xff] }
  0x40   : > { %v348_v23 = vadd.f32 %v347_v15, %v346_v18  ;;  %v373_v18 = vsel %vm299_vm0, %v2067_v6, 0.0 }
  0x42   : > { %v350_v27 = vadd.f32 %v349_v20, %v348_v23  ;;  %v2077_v20 = vld [vmem:[%s1881_s17 + $0x138] sm:$0xff] }
  0x44   : > { %v352_v32 = vadd.f32 %v351_v24, %v350_v27  ;;  %v375_v24 = vsel %vm299_vm0, %v2072_v14, 0.0  ;;  %v2082_v27 = vld [vmem:[%s1881_s17 + $0x140] sm:$0xff] }
  0x46   : > { %v354_v36 = vadd.f32 %v353_v29, %v352_v32  ;;  %v377_v32 = vsel %vm299_vm0, %v2077_v20, 0.0 }
  0x48   : > { %v356_v41 = vadd.f32 %v355_v33, %v354_v36  ;;  %v2087_v33 = vld [vmem:[%s1881_s17 + $0x148] sm:$0xff] }
  0x4a   : > { %v358_v45 = vadd.f32 %v357_v38, %v356_v41  ;;  %v379_v38 = vsel %vm299_vm0, %v2082_v27, 0.0  ;;  %v2092_v41 = vld [vmem:[%s1881_s17 + $0x150] sm:$0xff] }
  0x4c   : > { %v360_v50 = vadd.f32 %v359_v42, %v358_v45  ;;  %v381_v45 = vsel %vm299_vm0, %v2087_v33, 0.0 }
  0x4e   : > { %v362_v54 = vadd.f32 %v361_v47, %v360_v50  ;;  %v2097_v47 = vld [vmem:[%s1881_s17 + $0x158] sm:$0xff] }
  0x50   : > { %v364_v59 = vadd.f32 %v363_v51, %v362_v54  ;;  %v383_v51 = vsel %vm299_vm0, %v2092_v41, 0.0  ;;  %v2102_v54 = vld [vmem:[%s1881_s17 + $0x160] sm:$0xff] }
  0x51   : > { %4379 = vst [vmem:[#allocation2_spill] sm:$0xff] %v2102_v54 }
  0x52   : > { %v366_v63 = vadd.f32 %v365_v56, %v364_v59  ;;  %v385_v59 = vsel %vm299_vm0, %v2097_v47, 0.0 }
  0x54   : > { %v368_v9 = vadd.f32 %v367_v60, %v366_v63  ;;  %v2107_v60 = vld [vmem:[%s1881_s17 + $0x168] sm:$0xff] }
  0x55   : > { %4380 = vst [vmem:[#allocation3_spill] sm:$0xff] %v2107_v60 }
  0x56   : > { %v370_v15 = vadd.f32 %v369_v5, %v368_v9  ;;  %v387_v5 = vsel %vm299_vm0, %v2102_v54, 0.0  ;;  %v2112_v9 = vld [vmem:[%s1881_s17 + $0x170] sm:$0xff] }
  0x57   : > { %4381 = vst [vmem:[#allocation4_spill] sm:$0xff] %v2112_v9 }
  0x58   : > { %v372_v23 = vadd.f32 %v371_v11, %v370_v15  ;;  %v389_v15 = vsel %vm299_vm0, %v2107_v60, 0.0 }
  0x5a   : > { %v374_v29 = vadd.f32 %v373_v18, %v372_v23  ;;  %v2117_v18 = vld [vmem:[%s1881_s17 + $0x178] sm:$0xff] }
  0x5b   : > { %4382 = vst [vmem:[#allocation5_spill] sm:$0xff] %v2117_v18 }
  0x5c   : > { %v376_v36 = vadd.f32 %v375_v24, %v374_v29  ;;  %v391_v24 = vsel %vm299_vm0, %v2112_v9, 0.0  ;;  %v2122_v29 = vld [vmem:[%s1881_s17 + $0x180] sm:$0xff] }
  0x5d   : > { %4383 = vst [vmem:[#allocation6_spill] sm:$0xff] %v2122_v29 }
  0x5e   : > { %v378_v42 = vadd.f32 %v377_v32, %v376_v36  ;;  %v393_v36 = vsel %vm299_vm0, %v2117_v18, 0.0 }
  0x60   : > { %v380_v50 = vadd.f32 %v379_v38, %v378_v42  ;;  %v2127_v38 = vld [vmem:[%s1881_s17 + $0x188] sm:$0xff] }
  0x61   : > { %4384 = vst [vmem:[#allocation7_spill] sm:$0xff] %v2127_v38 }
  0x62   : > { %v382_v56 = vadd.f32 %v381_v45, %v380_v50  ;;  %v395_v45 = vsel %vm299_vm0, %v2122_v29, 0.0  ;;  %v2132_v50 = vld [vmem:[%s1881_s17 + $0x190] sm:$0xff] }
  0x63   : > { %4385 = vst [vmem:[#allocation8_spill] sm:$0xff] %v2132_v50 }
  0x64   : > { %v384_v63 = vadd.f32 %v383_v51, %v382_v56  ;;  %v397_v56 = vsel %vm299_vm0, %v2127_v38, 0.0  ;;  %v296_v38 = vld [vmem:[%s1881_s17 + $0x3e8] sm:$0xff] }
  0x66   : > { %v386_v11 = vadd.f32 %v385_v59, %v384_v63  ;;  %v2137_v59 = vld [vmem:[%s1881_s17 + $0x198] sm:$0xff] }
  0x67   : > { %4386 = vst [vmem:[#allocation9_spill] sm:$0xff] %v2137_v59 }
  0x68   : > { %v388_v23 = vadd.f32 %v387_v5, %v386_v11  ;;  %v399_v5 = vsel %vm299_vm0, %v2132_v50, 0.0  ;;  %v2142_v11 = vld [vmem:[%s1881_s17 + $0x1a0] sm:$0xff]  ;;  %v2157_v50 = vld [vmem:[%s1881_s17 + $0x1b8] sm:$0xff] }
  0x69   : > { %4387 = vst [vmem:[#allocation10_spill] sm:$0xff] %v2142_v11 }
  0x6a   : > { %v390_v32 = vadd.f32 %v389_v15, %v388_v23  ;;  %v401_v23 = vsel %vm299_vm0, %v2137_v59, 0.0  ;;  %4390 = vst [vmem:[#allocation13_spill] sm:$0xff] %v2157_v50  ;;  %v2162_v59 = vld [vmem:[%s1881_s17 + $0x1c0] sm:$0xff] }
  0x6b   : > { %4391 = vst [vmem:[#allocation14_spill] sm:$0xff] %v2162_v59 }
  0x6c   : > { %v392_v42 = vadd.f32 %v391_v24, %v390_v32  ;;  %v2147_v24 = vld [vmem:[%s1881_s17 + $0x1a8] sm:$0xff] }
  0x6d   : > { %4388 = vst [vmem:[#allocation11_spill] sm:$0xff] %v2147_v24 }
  0x6e   : > { %v394_v51 = vadd.f32 %v393_v36, %v392_v42  ;;  %v403_v36 = vsel %vm299_vm0, %v2142_v11, 0.0  ;;  %v2152_v42 = vld [vmem:[%s1881_s17 + $0x1b0] sm:$0xff]  ;;  %v2167_v11 = vld [vmem:[%s1881_s17 + $0x1c8] sm:$0xff] }
  0x6f   : > { %4389 = vst [vmem:[#allocation12_spill] sm:$0xff] %v2152_v42 }
  0x70   : > { %v396_v63 = vadd.f32 %v395_v45, %v394_v51  ;;  %v405_v51 = vsel %vm299_vm0, %v2147_v24, 0.0  ;;  %4392 = vst [vmem:[#allocation15_spill] sm:$0xff] %v2167_v11  ;;  %v2172_v24 = vld [vmem:[%s1881_s17 + $0x1d0] sm:$0xff] }
  0x71   : > { %4393 = vst [vmem:[#allocation16_spill] sm:$0xff] %v2172_v24 }
  0x72   : > { %v398_v15 = vadd.f32 %v397_v56, %v396_v63  ;;  %v407_v63 = vsel %vm299_vm0, %v2152_v42, 0.0  ;;  %v2177_v42 = vld [vmem:[%s1881_s17 + $0x1d8] sm:$0xff] }
  0x73   : > { %4394 = vst [vmem:[#allocation17_spill] sm:$0xff] %v2177_v42 }
  0x74   : > { %v400_v32 = vadd.f32 %v399_v5, %v398_v15  ;;  %v409_v15 = vsel %vm299_vm0, %v2157_v50, 0.0  ;;  %v2182_v50 = vld [vmem:[%s1881_s17 + $0x1e0] sm:$0xff] }
  0x75   : > { %4395 = vst [vmem:[#allocation18_spill] sm:$0xff] %v2182_v50 }
  0x76   : > { %v402_v45 = vadd.f32 %v401_v23, %v400_v32  ;;  %v411_v32 = vsel %vm299_vm0, %v2162_v59, 0.0  ;;  %v2187_v59 = vld [vmem:[%s1881_s17 + $0x1e8] sm:$0xff] }
  0x77   : > { %4396 = vst [vmem:[#allocation19_spill] sm:$0xff] %v2187_v59 }
  0x78   : > { %v404_v56 = vadd.f32 %v403_v36, %v402_v45  ;;  %v413_v45 = vsel %vm299_vm0, %v2167_v11, 0.0  ;;  %v2192_v11 = vld [vmem:[%s1881_s17 + $0x1f0] sm:$0xff] }
  0x79   : > { %4397 = vst [vmem:[#allocation20_spill] sm:$0xff] %v2192_v11 }
  0x7a   : > { %v406_v5 = vadd.f32 %v405_v51, %v404_v56  ;;  %v415_v56 = vsel %vm299_vm0, %v2172_v24, 0.0  ;;  %v2197_v24 = vld [vmem:[%s1881_s17 + $0x1f8] sm:$0xff] }
  0x7b   : > { %4398 = vst [vmem:[#allocation21_spill] sm:$0xff] %v2197_v24 }
  0x7c   : > { %v408_v23 = vadd.f32 %v407_v63, %v406_v5  ;;  %v417_v5 = vsel %vm299_vm0, %v2177_v42, 0.0  ;;  %v2202_v42 = vld [vmem:[%s1881_s17 + $0x200] sm:$0xff] }
  0x7d   : > { %4399 = vst [vmem:[#allocation22_spill] sm:$0xff] %v2202_v42 }
  0x7e   : > { %v410_v36 = vadd.f32 %v409_v15, %v408_v23  ;;  %v419_v23 = vsel %vm299_vm0, %v2182_v50, 0.0  ;;  %v2207_v50 = vld [vmem:[%s1881_s17 + $0x208] sm:$0xff] }
  0x7f   : > { %4400 = vst [vmem:[#allocation23_spill] sm:$0xff] %v2207_v50 }
  0x80   : > { %v412_v51 = vadd.f32 %v411_v32, %v410_v36  ;;  %v421_v36 = vsel %vm299_vm0, %v2187_v59, 0.0  ;;  %v2212_v59 = vld [vmem:[%s1881_s17 + $0x210] sm:$0xff] }
  0x81   : > { %4401 = vst [vmem:[#allocation24_spill] sm:$0xff] %v2212_v59 }
  0x82   : > { %v414_v63 = vadd.f32 %v413_v45, %v412_v51  ;;  %v423_v51 = vsel %vm299_vm0, %v2192_v11, 0.0  ;;  %v2217_v11 = vld [vmem:[%s1881_s17 + $0x218] sm:$0xff] }
  0x83   : > { %4402 = vst [vmem:[#allocation25_spill] sm:$0xff] %v2217_v11 }
  0x84   : > { %v416_v15 = vadd.f32 %v415_v56, %v414_v63  ;;  %v425_v63 = vsel %vm299_vm0, %v2197_v24, 0.0  ;;  %v2222_v24 = vld [vmem:[%s1881_s17 + $0x220] sm:$0xff] }
  0x85   : > { %4403 = vst [vmem:[#allocation26_spill] sm:$0xff] %v2222_v24 }
  0x86   : > { %v418_v32 = vadd.f32 %v417_v5, %v416_v15  ;;  %v427_v15 = vsel %vm299_vm0, %v2202_v42, 0.0  ;;  %v2227_v42 = vld [vmem:[%s1881_s17 + $0x228] sm:$0xff] }
  0x87   : > { %4404 = vst [vmem:[#allocation27_spill] sm:$0xff] %v2227_v42 }
  0x88   : > { %v420_v45 = vadd.f32 %v419_v23, %v418_v32  ;;  %v429_v32 = vsel %vm299_vm0, %v2207_v50, 0.0  ;;  %v2232_v50 = vld [vmem:[%s1881_s17 + $0x230] sm:$0xff] }
  0x89   : > { %4405 = vst [vmem:[#allocation28_spill] sm:$0xff] %v2232_v50 }
  0x8a   : > { %v422_v56 = vadd.f32 %v421_v36, %v420_v45  ;;  %v431_v45 = vsel %vm299_vm0, %v2212_v59, 0.0  ;;  %v2237_v59 = vld [vmem:[%s1881_s17 + $0x238] sm:$0xff] }
  0x8b   : > { %4406 = vst [vmem:[#allocation29_spill] sm:$0xff] %v2237_v59 }
  0x8c   : > { %v424_v5 = vadd.f32 %v423_v51, %v422_v56  ;;  %v433_v56 = vsel %vm299_vm0, %v2217_v11, 0.0  ;;  %v2242_v11 = vld [vmem:[%s1881_s17 + $0x240] sm:$0xff] }
  0x8d   : > { %4407 = vst [vmem:[#allocation30_spill] sm:$0xff] %v2242_v11 }
  0x8e   : > { %v426_v23 = vadd.f32 %v425_v63, %v424_v5  ;;  %v435_v5 = vsel %vm299_vm0, %v2222_v24, 0.0  ;;  %v2247_v24 = vld [vmem:[%s1881_s17 + $0x248] sm:$0xff] }
  0x8f   : > { %4408 = vst [vmem:[#allocation31_spill] sm:$0xff] %v2247_v24 }
  0x90   : > { %v428_v36 = vadd.f32 %v427_v15, %v426_v23  ;;  %v437_v23 = vsel %vm299_vm0, %v2227_v42, 0.0  ;;  %v2252_v42 = vld [vmem:[%s1881_s17 + $0x250] sm:$0xff] }
  0x91   : > { %4409 = vst [vmem:[#allocation32_spill] sm:$0xff] %v2252_v42 }
  0x92   : > { %v430_v51 = vadd.f32 %v429_v32, %v428_v36  ;;  %v439_v36 = vsel %vm299_vm0, %v2232_v50, 0.0  ;;  %v2257_v50 = vld [vmem:[%s1881_s17 + $0x258] sm:$0xff] }
  0x93   : > { %4410 = vst [vmem:[#allocation33_spill] sm:$0xff] %v2257_v50 }
  0x94   : > { %v432_v63 = vadd.f32 %v431_v45, %v430_v51  ;;  %v441_v51 = vsel %vm299_vm0, %v2237_v59, 0.0  ;;  %v2262_v59 = vld [vmem:[%s1881_s17 + $0x260] sm:$0xff] }
  0x95   : > { %4411 = vst [vmem:[#allocation34_spill] sm:$0xff] %v2262_v59 }
  0x96   : > { %v434_v15 = vadd.f32 %v433_v56, %v432_v63  ;;  %v443_v63 = vsel %vm299_vm0, %v2242_v11, 0.0  ;;  %v2267_v11 = vld [vmem:[%s1881_s17 + $0x268] sm:$0xff] }
  0x97   : > { %4412 = vst [vmem:[#allocation35_spill] sm:$0xff] %v2267_v11 }
  0x98   : > { %v436_v32 = vadd.f32 %v435_v5, %v434_v15  ;;  %v445_v15 = vsel %vm299_vm0, %v2247_v24, 0.0  ;;  %v2272_v24 = vld [vmem:[%s1881_s17 + $0x270] sm:$0xff] }
  0x99   : > { %4413 = vst [vmem:[#allocation36_spill] sm:$0xff] %v2272_v24 }
  0x9a   : > { %v438_v45 = vadd.f32 %v437_v23, %v436_v32  ;;  %v447_v32 = vsel %vm299_vm0, %v2252_v42, 0.0  ;;  %v2277_v42 = vld [vmem:[%s1881_s17 + $0x278] sm:$0xff] }
  0x9b   : > { %4414 = vst [vmem:[#allocation37_spill] sm:$0xff] %v2277_v42 }
  0x9c   : > { %v440_v56 = vadd.f32 %v439_v36, %v438_v45  ;;  %v449_v45 = vsel %vm299_vm0, %v2257_v50, 0.0  ;;  %v2282_v50 = vld [vmem:[%s1881_s17 + $0x280] sm:$0xff] }
  0x9d   : > { %4415 = vst [vmem:[#allocation38_spill] sm:$0xff] %v2282_v50 }
  0x9e   : > { %v442_v5 = vadd.f32 %v441_v51, %v440_v56  ;;  %v451_v56 = vsel %vm299_vm0, %v2262_v59, 0.0  ;;  %v2287_v59 = vld [vmem:[%s1881_s17 + $0x288] sm:$0xff] }
  0x9f   : > { %4416 = vst [vmem:[#allocation39_spill] sm:$0xff] %v2287_v59 }
  0xa0   : > { %v444_v23 = vadd.f32 %v443_v63, %v442_v5  ;;  %v453_v5 = vsel %vm299_vm0, %v2267_v11, 0.0  ;;  %v2292_v11 = vld [vmem:[%s1881_s17 + $0x290] sm:$0xff] }
  0xa1   : > { %4417 = vst [vmem:[#allocation40_spill] sm:$0xff] %v2292_v11 }
  0xa2   : > { %v446_v36 = vadd.f32 %v445_v15, %v444_v23  ;;  %v455_v23 = vsel %vm299_vm0, %v2272_v24, 0.0  ;;  %v2297_v24 = vld [vmem:[%s1881_s17 + $0x298] sm:$0xff] }
  0xa3   : > { %4418 = vst [vmem:[#allocation41_spill] sm:$0xff] %v2297_v24 }
  0xa4   : > { %v448_v51 = vadd.f32 %v447_v32, %v446_v36  ;;  %v457_v36 = vsel %vm299_vm0, %v2277_v42, 0.0  ;;  %v2302_v42 = vld [vmem:[%s1881_s17 + $0x2a0] sm:$0xff] }
  0xa5   : > { %4419 = vst [vmem:[#allocation42_spill] sm:$0xff] %v2302_v42 }
  0xa6   : > { %v450_v63 = vadd.f32 %v449_v45, %v448_v51  ;;  %v459_v51 = vsel %vm299_vm0, %v2282_v50, 0.0  ;;  %v2307_v50 = vld [vmem:[%s1881_s17 + $0x2a8] sm:$0xff] }
  0xa7   : > { %4420 = vst [vmem:[#allocation43_spill] sm:$0xff] %v2307_v50 }
  0xa8   : > { %v452_v15 = vadd.f32 %v451_v56, %v450_v63  ;;  %v461_v63 = vsel %vm299_vm0, %v2287_v59, 0.0  ;;  %v2312_v59 = vld [vmem:[%s1881_s17 + $0x2b0] sm:$0xff] }
  0xa9   : > { %4421 = vst [vmem:[#allocation44_spill] sm:$0xff] %v2312_v59 }
  0xaa   : > { %v454_v32 = vadd.f32 %v453_v5, %v452_v15  ;;  %v463_v15 = vsel %vm299_vm0, %v2292_v11, 0.0  ;;  %v2317_v11 = vld [vmem:[%s1881_s17 + $0x2b8] sm:$0xff] }
  0xab   : > { %4422 = vst [vmem:[#allocation45_spill] sm:$0xff] %v2317_v11 }
  0xac   : > { %v456_v45 = vadd.f32 %v455_v23, %v454_v32  ;;  %v465_v32 = vsel %vm299_vm0, %v2297_v24, 0.0  ;;  %v2322_v24 = vld [vmem:[%s1881_s17 + $0x2c0] sm:$0xff] }
  0xad   : > { %4423 = vst [vmem:[#allocation46_spill] sm:$0xff] %v2322_v24 }
  0xae   : > { %v458_v56 = vadd.f32 %v457_v36, %v456_v45  ;;  %v467_v45 = vsel %vm299_vm0, %v2302_v42, 0.0  ;;  %v2327_v42 = vld [vmem:[%s1881_s17 + $0x2c8] sm:$0xff] }
  0xaf   : > { %4424 = vst [vmem:[#allocation47_spill] sm:$0xff] %v2327_v42 }
  0xb0   : > { %v460_v5 = vadd.f32 %v459_v51, %v458_v56  ;;  %v469_v56 = vsel %vm299_vm0, %v2307_v50, 0.0  ;;  %v2332_v50 = vld [vmem:[%s1881_s17 + $0x2d0] sm:$0xff] }
  0xb1   : > { %4425 = vst [vmem:[#allocation48_spill] sm:$0xff] %v2332_v50 }
  0xb2   : > { %v462_v23 = vadd.f32 %v461_v63, %v460_v5  ;;  %v471_v5 = vsel %vm299_vm0, %v2312_v59, 0.0  ;;  %v2337_v59 = vld [vmem:[%s1881_s17 + $0x2d8] sm:$0xff] }
  0xb3   : > { %4426 = vst [vmem:[#allocation49_spill] sm:$0xff] %v2337_v59 }
  0xb4   : > { %v464_v36 = vadd.f32 %v463_v15, %v462_v23  ;;  %v473_v23 = vsel %vm299_vm0, %v2317_v11, 0.0  ;;  %v2342_v11 = vld [vmem:[%s1881_s17 + $0x2e0] sm:$0xff] }
  0xb5   : > { %4427 = vst [vmem:[#allocation50_spill] sm:$0xff] %v2342_v11 }
  0xb6   : > { %v466_v51 = vadd.f32 %v465_v32, %v464_v36  ;;  %v475_v36 = vsel %vm299_vm0, %v2322_v24, 0.0  ;;  %v2347_v24 = vld [vmem:[%s1881_s17 + $0x2e8] sm:$0xff] }
  0xb7   : > { %4428 = vst [vmem:[#allocation51_spill] sm:$0xff] %v2347_v24 }
  0xb8   : > { %v468_v63 = vadd.f32 %v467_v45, %v466_v51  ;;  %v477_v51 = vsel %vm299_vm0, %v2327_v42, 0.0  ;;  %v2352_v42 = vld [vmem:[%s1881_s17 + $0x2f0] sm:$0xff] }
  0xb9   : > { %4429 = vst [vmem:[#allocation52_spill] sm:$0xff] %v2352_v42 }
  0xba   : > { %v470_v15 = vadd.f32 %v469_v56, %v468_v63  ;;  %v479_v63 = vsel %vm299_vm0, %v2332_v50, 0.0  ;;  %v2357_v50 = vld [vmem:[%s1881_s17 + $0x2f8] sm:$0xff] }
  0xbb   : > { %4430 = vst [vmem:[#allocation53_spill] sm:$0xff] %v2357_v50 }
  0xbc   : > { %v472_v32 = vadd.f32 %v471_v5, %v470_v15  ;;  %v481_v15 = vsel %vm299_vm0, %v2337_v59, 0.0  ;;  %v2362_v59 = vld [vmem:[%s1881_s17 + $0x300] sm:$0xff] }
  0xbd   : > { %4431 = vst [vmem:[#allocation54_spill] sm:$0xff] %v2362_v59 }
  0xbe   : > { %v474_v45 = vadd.f32 %v473_v23, %v472_v32  ;;  %v483_v32 = vsel %vm299_vm0, %v2342_v11, 0.0  ;;  %v2367_v11 = vld [vmem:[%s1881_s17 + $0x308] sm:$0xff] }
  0xbf   : > { %4432 = vst [vmem:[#allocation55_spill] sm:$0xff] %v2367_v11 }
  0xc0   : > { %v476_v56 = vadd.f32 %v475_v36, %v474_v45  ;;  %v485_v45 = vsel %vm299_vm0, %v2347_v24, 0.0  ;;  %v2372_v24 = vld [vmem:[%s1881_s17 + $0x310] sm:$0xff] }
  0xc1   : > { %4433 = vst [vmem:[#allocation56_spill] sm:$0xff] %v2372_v24 }
  0xc2   : > { %v478_v5 = vadd.f32 %v477_v51, %v476_v56  ;;  %v487_v56 = vsel %vm299_vm0, %v2352_v42, 0.0  ;;  %v2377_v42 = vld [vmem:[%s1881_s17 + $0x318] sm:$0xff] }
  0xc3   : > { %4434 = vst [vmem:[#allocation57_spill] sm:$0xff] %v2377_v42 }
  0xc4   : > { %v480_v23 = vadd.f32 %v479_v63, %v478_v5  ;;  %v489_v5 = vsel %vm299_vm0, %v2357_v50, 0.0  ;;  %v2382_v50 = vld [vmem:[%s1881_s17 + $0x320] sm:$0xff] }
  0xc5   : > { %4435 = vst [vmem:[#allocation58_spill] sm:$0xff] %v2382_v50 }
  0xc6   : > { %v482_v36 = vadd.f32 %v481_v15, %v480_v23  ;;  %v491_v23 = vsel %vm299_vm0, %v2362_v59, 0.0  ;;  %v2387_v59 = vld [vmem:[%s1881_s17 + $0x328] sm:$0xff] }
  0xc7   : > { %4436 = vst [vmem:[#allocation59_spill] sm:$0xff] %v2387_v59 }
  0xc8   : > { %v484_v51 = vadd.f32 %v483_v32, %v482_v36  ;;  %v493_v36 = vsel %vm299_vm0, %v2367_v11, 0.0  ;;  %v2392_v11 = vld [vmem:[%s1881_s17 + $0x330] sm:$0xff] }
  0xc9   : > { %4437 = vst [vmem:[#allocation60_spill] sm:$0xff] %v2392_v11 }
  0xca   : > { %v486_v63 = vadd.f32 %v485_v45, %v484_v51  ;;  %v495_v51 = vsel %vm299_vm0, %v2372_v24, 0.0  ;;  %v2397_v24 = vld [vmem:[%s1881_s17 + $0x338] sm:$0xff] }
  0xcb   : > { %4438 = vst [vmem:[#allocation61_spill] sm:$0xff] %v2397_v24 }
  0xcc   : > { %v488_v15 = vadd.f32 %v487_v56, %v486_v63  ;;  %v497_v63 = vsel %vm299_vm0, %v2377_v42, 0.0  ;;  %v2402_v42 = vld [vmem:[%s1881_s17 + $0x340] sm:$0xff] }
  0xcd   : > { %4439 = vst [vmem:[#allocation62_spill] sm:$0xff] %v2402_v42 }
  0xce   : > { %v490_v32 = vadd.f32 %v489_v5, %v488_v15  ;;  %v499_v15 = vsel %vm299_vm0, %v2382_v50, 0.0  ;;  %v2407_v50 = vld [vmem:[%s1881_s17 + $0x348] sm:$0xff] }
  0xcf   : > { %4440 = vst [vmem:[#allocation63_spill] sm:$0xff] %v2407_v50 }
  0xd0   : > { %v492_v45 = vadd.f32 %v491_v23, %v490_v32  ;;  %v501_v32 = vsel %vm299_vm0, %v2387_v59, 0.0  ;;  %v2412_v59 = vld [vmem:[%s1881_s17 + $0x350] sm:$0xff] }
  0xd1   : > { %4441 = vst [vmem:[#allocation64_spill] sm:$0xff] %v2412_v59 }
  0xd2   : > { %v494_v56 = vadd.f32 %v493_v36, %v492_v45  ;;  %v503_v45 = vsel %vm299_vm0, %v2392_v11, 0.0  ;;  %v2417_v11 = vld [vmem:[%s1881_s17 + $0x358] sm:$0xff] }
  0xd3   : > { %4442 = vst [vmem:[#allocation65_spill] sm:$0xff] %v2417_v11 }
  0xd4   : > { %v496_v5 = vadd.f32 %v495_v51, %v494_v56  ;;  %v505_v56 = vsel %vm299_vm0, %v2397_v24, 0.0 }
  0xd6   : > { %v498_v23 = vadd.f32 %v497_v63, %v496_v5  ;;  %v507_v5 = vsel %vm299_vm0, %v2402_v42, 0.0 }
  0xd8   : > { %v500_v36 = vadd.f32 %v499_v15, %v498_v23  ;;  %v509_v23 = vsel %vm299_vm0, %v2407_v50, 0.0  ;;  %v2429_v50 = vld [vmem:[%s1881_s17 + $0x368] sm:$0xff] }
  0xd9   : > { %4444 = vst [vmem:[#allocation67_spill] sm:$0xff] %v2429_v50 }
  0xda   : > { %v502_v51 = vadd.f32 %v501_v32, %v500_v36  ;;  %v511_v36 = vsel %vm299_vm0, %v2412_v59, 0.0 }
  0xdc   : > { %v504_v63 = vadd.f32 %v503_v45, %v502_v51  ;;  %v513_v45 = vsel %vm299_vm0, %v2417_v11, 0.0  ;;  %v2424_v51 = vld [vmem:[%s1881_s17 + $0x360] sm:$0xff] }
  0xdd   : > { %4443 = vst [vmem:[#allocation66_spill] sm:$0xff] %v2424_v51 }
  0xde   : > { %v506_v15 = vadd.f32 %v505_v56, %v504_v63  ;;  %v515_v63 = vsel %vm299_vm0, %v2424_v51, 0.0 }
  0xe0   : > { %v508_v32 = vadd.f32 %v507_v5, %v506_v15  ;;  %v517_v15 = vsel %vm299_vm0, %v2429_v50, 0.0  ;;  %v2449_v50 = vld [vmem:[%s1881_s17 + $0x388] sm:$0xff] }
  0xe1   : > { %4448 = vst [vmem:[#allocation71_spill] sm:$0xff] %v2449_v50 }
  0xe2   : > { %v510_v24 = vadd.f32 %v509_v23, %v508_v32  ;;  %v2434_v23 = vld [vmem:[%s1881_s17 + $0x370] sm:$0xff] }
  0xe3   : > { %4445 = vst [vmem:[#allocation68_spill] sm:$0xff] %v2434_v23  ;;  %v519_v11 = vsel %vm299_vm0, %v2434_v23, 0.0  ;;  %v2454_v23 = vld [vmem:[%s1881_s17 + $0x390] sm:$0xff] }
  0xe4   : > { %v512_v42 = vadd.f32 %v511_v36, %v510_v24  ;;  %v2439_v24 = vld [vmem:[%s1881_s17 + $0x378] sm:$0xff]  ;;  %4449 = vst [vmem:[#allocation72_spill] sm:$0xff] %v2454_v23 }
  0xe5   : > { %4446 = vst [vmem:[#allocation69_spill] sm:$0xff] %v2439_v24  ;;  %v521_v36 = vsel %vm299_vm0, %v2439_v24, 0.0  ;;  %v2459_v24 = vld [vmem:[%s1881_s17 + $0x398] sm:$0xff] }
  0xe6   : > { %v514_v56 = vadd.f32 %v513_v45, %v512_v42  ;;  %v2444_v45 = vld [vmem:[%s1881_s17 + $0x380] sm:$0xff]  ;;  %4450 = vst [vmem:[#allocation73_spill] sm:$0xff] %v2459_v24 }
  0xe7   : > { %4447 = vst [vmem:[#allocation70_spill] sm:$0xff] %v2444_v45 }
  0xe8   : > { %v516_v5 = vadd.f32 %v515_v63, %v514_v56  ;;  %v523_v63 = vsel %vm299_vm0, %v2444_v45, 0.0  ;;  %v2464_v45 = vld [vmem:[%s1881_s17 + $0x3a0] sm:$0xff] }
  0xe9   : > { %4451 = vst [vmem:[#allocation74_spill] sm:$0xff] %v2464_v45 }
  0xea   : > { %v518_v32 = vadd.f32 %v517_v15, %v516_v5  ;;  %v525_v15 = vsel %vm299_vm0, %v2449_v50, 0.0  ;;  %v2469_v50 = vld [vmem:[%s1881_s17 + $0x3a8] sm:$0xff] }
  0xeb   : > { %4452 = vst [vmem:[#allocation75_spill] sm:$0xff] %v2469_v50 }
  0xec   : > { %v520_v42 = vadd.f32 %v519_v11, %v518_v32  ;;  %v527_v32 = vsel %vm299_vm0, %v2454_v23, 0.0  ;;  %v2474_v23 = vld [vmem:[%s1881_s17 + $0x3b0] sm:$0xff] }
  0xed   : > { %4453 = vst [vmem:[#allocation76_spill] sm:$0xff] %v2474_v23 }
  0xee   : > { %v522_v56 = vadd.f32 %v521_v36, %v520_v42  ;;  %v529_v36 = vsel %vm299_vm0, %v2459_v24, 0.0  ;;  %v2479_v24 = vld [vmem:[%s1881_s17 + $0x3b8] sm:$0xff] }
  0xef   : > { %4454 = vst [vmem:[#allocation77_spill] sm:$0xff] %v2479_v24 }
  0xf0   : > { %v524_v5 = vadd.f32 %v523_v63, %v522_v56  ;;  %v531_v63 = vsel %vm299_vm0, %v2464_v45, 0.0  ;;  %v2484_v45 = vld [vmem:[%s1881_s17 + $0x3c0] sm:$0xff] }
  0xf1   : > { %4455 = vst [vmem:[#allocation78_spill] sm:$0xff] %v2484_v45 }
  0xf2   : > { %v526_v11 = vadd.f32 %v525_v15, %v524_v5  ;;  %v533_v15 = vsel %vm299_vm0, %v2469_v50, 0.0  ;;  %v2489_v50 = vld [vmem:[%s1881_s17 + $0x3c8] sm:$0xff] }
  0xf3   : > { %4456 = vst [vmem:[#allocation79_spill] sm:$0xff] %v2489_v50 }
  0xf4   : > { %v528_v42 = vadd.f32 %v527_v32, %v526_v11  ;;  %v535_v32 = vsel %vm299_vm0, %v2474_v23, 0.0  ;;  %v2494_v23 = vld [vmem:[%s1881_s17 + $0x3d0] sm:$0xff] }
  0xf5   : > { %4457 = vst [vmem:[#allocation80_spill] sm:$0xff] %v2494_v23 }
  0xf6   : > { %v530_v56 = vadd.f32 %v529_v36, %v528_v42  ;;  %v537_v36 = vsel %vm299_vm0, %v2479_v24, 0.0  ;;  %v294_v24 = vld [vmem:[%s1881_s17 + $0x3d8] sm:$0xff] }
  0xf8   : > { %v532_v5 = vadd.f32 %v531_v63, %v530_v56  ;;  %v539_v63 = vsel %vm299_vm0, %v2484_v45, 0.0 }
  0xfa   : > { %v534_v11 = vadd.f32 %v533_v15, %v532_v5  ;;  %v541_v15 = vsel %vm299_vm0, %v2489_v50, 0.0  ;;  %v297_v50 = vld [vmem:[%s1881_s17 + $0x3f0] sm:$0xff] }
  0xfb   : > { %v551_v18 = vsel %vm299_vm0, %v297_v50, 0.0 }
  0xfc   : > { %v536_v42 = vadd.f32 %v535_v32, %v534_v11  ;;  %v543_v32 = vsel %vm299_vm0, %v2494_v23, 0.0 }
  0xfe   : > { %v538_v56 = vadd.f32 %v537_v36, %v536_v42  ;;  %v545_v42 = vsel %vm299_vm0, %v294_v24, 0.0  ;;  %v295_v36 = vld [vmem:[%s1881_s17 + $0x3e0] sm:$0xff] }
  0xff   : > { %v547_v59 = vsel %vm299_vm0, %v295_v36, 0.0 }
 0x100   : > { %v540_v5 = vadd.f32 %v539_v63, %v538_v56  ;;  %v549_v63 = vsel %vm299_vm0, %v296_v38, 0.0 }
 0x102   : > { %v542_v11 = vadd.f32 %v541_v15, %v540_v5  ;;  %v298_v5 = vld [vmem:[%s1881_s17 + $0x3f8] sm:$0xff] }
 0x103   : > { %v553_v23 = vsel %vm299_vm0, %v298_v5, 0.0 }
 0x104   : > { %v544_v51 = vadd.f32 %v543_v32, %v542_v11  ;;  %v1844_v11 = vmov 1024.0  }
 0x105   : > { %1825 = vrcp.f32 %v1844_v11 }
 0x106   : > { %v546_v45 = vadd.f32 %v545_v42, %v544_v51 }
 0x108   : > { %v548_v56 = vadd.f32 %v547_v59, %v546_v45 }
 0x10a   : > { %v550_v29 = vadd.f32 %v549_v63, %v548_v56 }
 0x10b   : > { %v1826_v32 = vpop.eup %1825 }
 0x10c   : > { %v552_v15 = vadd.f32 %v551_v18, %v550_v29  ;;  %v562_v42 = vmul.f32 1024.0, %v1826_v32  ;;  %vm566_vm1 = vweird.f32 %v1826_v32 }
 0x10e   : > { %v554_v9 = vadd.f32 %v553_v23, %v552_v15  ;;  %v563_v60 = vsub.f32 1.0, %v562_v42 }
 0x110   : > { %v555_v24 = vrot.slane %v554_v9, 4  ;;  %v564_v45 = vmul.f32 %v1826_v32, %v563_v60 }
 0x112   : > { %v556_v51 = vadd.f32 %v555_v24, %v554_v9  ;;  %v565_v54 = vadd.f32 %v1826_v32, %v564_v45 }
 0x114   : > { %v557_v36 = vrot.slane %v556_v51, 2  ;;  %v2508_v50 = vsel %vm566_vm1, %v1826_v32, %v565_v54 }
 0x116   : > { %v558_v59 = vadd.f32 %v557_v36, %v556_v51 }
 0x118   : > { %v559_v38 = vrot.slane %v558_v59, 1 }
 0x11a   : > { %v560_v56 = vadd.f32 %v559_v38, %v558_v59 }
 0x11c   : > { %v2511_v18 = vmul.f32 %v2508_v50, %v560_v56 }
 0x11e   : > { %v2515_v29 = vsub.f32 %v1884_v0, %v2511_v18  ;;  %v2519_v9 = vsub.f32 %v1887_v1, %v2511_v18  ;;  %v2523_v60 = vsub.f32 %v1890_v2, %v2511_v18  ;;  %v2527_v23 = vsub.f32 %v1893_v3, %v2511_v18 }
 0x11f   : > { %v2531_v54 = vsub.f32 %v1902_v7, %v2511_v18  ;;  %v2541_v2 = vsub.f32 %v1907_v10, %v2511_v18  ;;  %v2547_v7 = vsub.f32 %v1912_v13, %v2511_v18  ;;  %v2556_v10 = vsub.f32 %v1917_v16, %v2511_v18 }
 0x120   : > { %v697_v0 = vmul.f32 %v2515_v29, %v2515_v29  ;;  %v698_v63 = vmul.f32 %v2519_v9, %v2519_v9  ;;  %v699_v1 = vmul.f32 %v2523_v60, %v2523_v60  ;;  %v700_v3 = vmul.f32 %v2527_v23, %v2527_v23 }
 0x121   : > { %v701_v5 = vmul.f32 %v2531_v54, %v2531_v54  ;;  %v702_v51 = vmul.f32 %v2541_v2, %v2541_v2  ;;  %v2563_v36 = vsub.f32 %v1922_v19, %v2511_v18  ;;  %v703_v59 = vmul.f32 %v2547_v7, %v2547_v7 }
 0x122   : > { %v825_v15 = vsel %vm299_vm0, %v697_v0, 0.0  ;;  %v826_v11 = vsel %vm299_vm0, %v698_v63, 0.0  ;;  %v828_v24 = vsel %vm299_vm0, %v699_v1, 0.0  ;;  %v830_v13 = vsel %vm299_vm0, %v700_v3, 0.0 }
 0x123   : > { %v827_v32 = vadd.f32 %v826_v11, %v825_v15  ;;  %v832_v45 = vsel %vm299_vm0, %v701_v5, 0.0  ;;  %v2570_v16 = vsub.f32 %v1927_v22, %v2511_v18  ;;  %v704_v56 = vmul.f32 %v2556_v10, %v2556_v10 }
 0x124   : > { %v834_v0 = vsel %vm299_vm0, %v702_v51, 0.0  ;;  %v2577_v19 = vsub.f32 %v1932_v25, %v2511_v18  ;;  %v705_v1 = vmul.f32 %v2563_v36, %v2563_v36  ;;  %v836_v3 = vsel %vm299_vm0, %v703_v59, 0.0 }
 0x125   : > { %v829_v42 = vadd.f32 %v828_v24, %v827_v32  ;;  %v2584_v22 = vsub.f32 %v1937_v28, %v2511_v18  ;;  %v706_v15 = vmul.f32 %v2570_v16, %v2570_v16  ;;  %v838_v11 = vsel %vm299_vm0, %v704_v56, 0.0 }
 0x126   : > { %v2591_v25 = vsub.f32 %v1942_v31, %v2511_v18  ;;  %v707_v32 = vmul.f32 %v2577_v19, %v2577_v19  ;;  %v840_v51 = vsel %vm299_vm0, %v705_v1, 0.0  ;;  %v2598_v28 = vsub.f32 %v1947_v34, %v2511_v18 }
 0x127   : > { %v831_v38 = vadd.f32 %v830_v13, %v829_v42  ;;  %v708_v42 = vmul.f32 %v2584_v22, %v2584_v22  ;;  %v842_v59 = vsel %vm299_vm0, %v706_v15, 0.0  ;;  %v2605_v31 = vsub.f32 %v1952_v37, %v2511_v18 }
 0x128   : > { %v844_v56 = vsel %vm299_vm0, %v707_v32, 0.0  ;;  %v2612_v34 = vsub.f32 %v1957_v40, %v2511_v18  ;;  %v2619_v37 = vsub.f32 %v1962_v43, %v2511_v18  ;;  %v2626_v40 = vsub.f32 %v1967_v46, %v2511_v18 }
 0x129   : > { %v833_v63 = vadd.f32 %v832_v45, %v831_v38  ;;  %v709_v38 = vmul.f32 %v2591_v25, %v2591_v25  ;;  %v846_v1 = vsel %vm299_vm0, %v708_v42, 0.0  ;;  %v2633_v43 = vsub.f32 %v1972_v49, %v2511_v18 }
 0x12a   : > { %v2640_v46 = vsub.f32 %v1977_v52, %v2511_v18  ;;  %v2647_v49 = vsub.f32 %v1982_v55, %v2511_v18  ;;  %v2654_v52 = vsub.f32 %v1987_v58, %v2511_v18  ;;  %v2661_v55 = vsub.f32 %v1992_v61, %v2511_v18 }
 0x12b   : > { %v835_v5 = vadd.f32 %v834_v0, %v833_v63  ;;  %v710_v63 = vmul.f32 %v2598_v28, %v2598_v28  ;;  %v848_v15 = vsel %vm299_vm0, %v709_v38, 0.0  ;;  %v2668_v58 = vsub.f32 %v1997_v4, %v2511_v18 }
 0x12c   : > { %v2675_v61 = vsub.f32 %v2002_v8, %v2511_v18  ;;  %v2682_v4 = vsub.f32 %v2007_v12, %v2511_v18  ;;  %v2689_v8 = vsub.f32 %v2012_v17, %v2511_v18  ;;  %v2696_v12 = vsub.f32 %v2017_v21, %v2511_v18 }
 0x12d   : > { %v837_v24 = vadd.f32 %v836_v3, %v835_v5  ;;  %v711_v5 = vmul.f32 %v2605_v31, %v2605_v31  ;;  %v850_v32 = vsel %vm299_vm0, %v710_v63, 0.0  ;;  %v2703_v17 = vsub.f32 %v2022_v26, %v2511_v18 }
 0x12e   : > { %v2710_v21 = vsub.f32 %v2027_v30, %v2511_v18  ;;  %v2717_v26 = vsub.f32 %v2032_v35, %v2511_v18  ;;  %v2724_v30 = vsub.f32 %v2037_v39, %v2511_v18  ;;  %v2731_v35 = vsub.f32 %v2042_v44, %v2511_v18 }
 0x12f   : > { %v839_v13 = vadd.f32 %v838_v11, %v837_v24  ;;  %v712_v24 = vmul.f32 %v2612_v34, %v2612_v34  ;;  %v852_v42 = vsel %vm299_vm0, %v711_v5, 0.0  ;;  %v2738_v39 = vsub.f32 %v2047_v48, %v2511_v18 }
 0x130   : > { %v2745_v44 = vsub.f32 %v2052_v53, %v2511_v18  ;;  %v2752_v48 = vsub.f32 %v2057_v57, %v2511_v18  ;;  %v2759_v53 = vsub.f32 %v2062_v62, %v2511_v18  ;;  %v2766_v57 = vsub.f32 %v2067_v6, %v2511_v18 }
 0x131   : > { %v841_v45 = vadd.f32 %v840_v51, %v839_v13  ;;  %v713_v13 = vmul.f32 %v2619_v37, %v2619_v37  ;;  %v854_v38 = vsel %vm299_vm0, %v712_v24, 0.0  ;;  %v2773_v62 = vsub.f32 %v2072_v14, %v2511_v18 }
 0x132   : > { %v2780_v6 = vsub.f32 %v2077_v20, %v2511_v18  ;;  %v2787_v14 = vsub.f32 %v2082_v27, %v2511_v18  ;;  %v2794_v20 = vsub.f32 %v2087_v33, %v2511_v18  ;;  %v2801_v27 = vsub.f32 %v2092_v41, %v2511_v18 }
 0x133   : > { %v843_v0 = vadd.f32 %v842_v59, %v841_v45  ;;  %v714_v45 = vmul.f32 %v2626_v40, %v2626_v40  ;;  %v856_v63 = vsel %vm299_vm0, %v713_v13, 0.0  ;;  %v2808_v33 = vsub.f32 %v2097_v47, %v2511_v18 }
 0x134   : > { %4458 = vst [vmem:[#allocation81_spill] sm:$0xff] %v2801_v27 }
 0x135   : > { %v845_v3 = vadd.f32 %v844_v56, %v843_v0  ;;  %v715_v0 = vmul.f32 %v2633_v43, %v2633_v43  ;;  %v858_v5 = vsel %vm299_vm0, %v714_v45, 0.0  ;;  %4459 = vst [vmem:[#allocation82_spill] sm:$0xff] %v2808_v33 }
 0x137   : > { %v847_v11 = vadd.f32 %v846_v1, %v845_v3  ;;  %v716_v3 = vmul.f32 %v2640_v46, %v2640_v46  ;;  %v860_v24 = vsel %vm299_vm0, %v715_v0, 0.0 }
 0x139   : > { %v849_v51 = vadd.f32 %v848_v15, %v847_v11  ;;  %v717_v11 = vmul.f32 %v2647_v49, %v2647_v49  ;;  %v862_v13 = vsel %vm299_vm0, %v716_v3, 0.0 }
 0x13b   : > { %v851_v59 = vadd.f32 %v850_v32, %v849_v51  ;;  %v718_v51 = vmul.f32 %v2654_v52, %v2654_v52  ;;  %v864_v45 = vsel %vm299_vm0, %v717_v11, 0.0 }
 0x13d   : > { %v853_v56 = vadd.f32 %v852_v42, %v851_v59  ;;  %v719_v59 = vmul.f32 %v2661_v55, %v2661_v55  ;;  %v866_v0 = vsel %vm299_vm0, %v718_v51, 0.0 }
 0x13f   : > { %v855_v1 = vadd.f32 %v854_v38, %v853_v56  ;;  %v720_v56 = vmul.f32 %v2668_v58, %v2668_v58  ;;  %v868_v3 = vsel %vm299_vm0, %v719_v59, 0.0 }
 0x141   : > { %v857_v15 = vadd.f32 %v856_v63, %v855_v1  ;;  %v721_v1 = vmul.f32 %v2675_v61, %v2675_v61  ;;  %v870_v11 = vsel %vm299_vm0, %v720_v56, 0.0 }
 0x143   : > { %v859_v32 = vadd.f32 %v858_v5, %v857_v15  ;;  %v722_v15 = vmul.f32 %v2682_v4, %v2682_v4  ;;  %v872_v51 = vsel %vm299_vm0, %v721_v1, 0.0 }
 0x145   : > { %v861_v42 = vadd.f32 %v860_v24, %v859_v32  ;;  %v723_v32 = vmul.f32 %v2689_v8, %v2689_v8  ;;  %v874_v59 = vsel %vm299_vm0, %v722_v15, 0.0 }
 0x147   : > { %v863_v38 = vadd.f32 %v862_v13, %v861_v42  ;;  %v724_v42 = vmul.f32 %v2696_v12, %v2696_v12  ;;  %v876_v56 = vsel %vm299_vm0, %v723_v32, 0.0 }
 0x149   : > { %v865_v63 = vadd.f32 %v864_v45, %v863_v38  ;;  %v725_v38 = vmul.f32 %v2703_v17, %v2703_v17  ;;  %v878_v1 = vsel %vm299_vm0, %v724_v42, 0.0 }
 0x14b   : > { %v867_v5 = vadd.f32 %v866_v0, %v865_v63  ;;  %v726_v63 = vmul.f32 %v2710_v21, %v2710_v21  ;;  %v880_v15 = vsel %vm299_vm0, %v725_v38, 0.0 }
 0x14d   : > { %v869_v24 = vadd.f32 %v868_v3, %v867_v5  ;;  %v727_v5 = vmul.f32 %v2717_v26, %v2717_v26  ;;  %v882_v32 = vsel %vm299_vm0, %v726_v63, 0.0 }
 0x14f   : > { %v871_v13 = vadd.f32 %v870_v11, %v869_v24  ;;  %v728_v24 = vmul.f32 %v2724_v30, %v2724_v30  ;;  %v884_v42 = vsel %vm299_vm0, %v727_v5, 0.0 }
 0x151   : > { %v873_v45 = vadd.f32 %v872_v51, %v871_v13  ;;  %v729_v13 = vmul.f32 %v2731_v35, %v2731_v35  ;;  %v886_v38 = vsel %vm299_vm0, %v728_v24, 0.0 }
 0x153   : > { %v875_v0 = vadd.f32 %v874_v59, %v873_v45  ;;  %v730_v45 = vmul.f32 %v2738_v39, %v2738_v39  ;;  %v888_v63 = vsel %vm299_vm0, %v729_v13, 0.0 }
 0x155   : > { %v877_v3 = vadd.f32 %v876_v56, %v875_v0  ;;  %v731_v0 = vmul.f32 %v2745_v44, %v2745_v44  ;;  %v890_v5 = vsel %vm299_vm0, %v730_v45, 0.0 }
 0x157   : > { %v879_v11 = vadd.f32 %v878_v1, %v877_v3  ;;  %v732_v3 = vmul.f32 %v2752_v48, %v2752_v48  ;;  %v892_v24 = vsel %vm299_vm0, %v731_v0, 0.0 }
 0x159   : > { %v881_v51 = vadd.f32 %v880_v15, %v879_v11  ;;  %v733_v11 = vmul.f32 %v2759_v53, %v2759_v53  ;;  %v894_v13 = vsel %vm299_vm0, %v732_v3, 0.0 }
 0x15b   : > { %v883_v59 = vadd.f32 %v882_v32, %v881_v51  ;;  %v734_v51 = vmul.f32 %v2766_v57, %v2766_v57  ;;  %v896_v45 = vsel %vm299_vm0, %v733_v11, 0.0 }
 0x15d   : > { %v885_v56 = vadd.f32 %v884_v42, %v883_v59  ;;  %v735_v59 = vmul.f32 %v2773_v62, %v2773_v62  ;;  %v898_v0 = vsel %vm299_vm0, %v734_v51, 0.0  ;;  %v739_v51 = vmul.f32 %v2801_v27, %v2801_v27 }
 0x15f   : > { %v887_v1 = vadd.f32 %v886_v38, %v885_v56  ;;  %v736_v56 = vmul.f32 %v2780_v6, %v2780_v6  ;;  %v900_v3 = vsel %vm299_vm0, %v735_v59, 0.0  ;;  %v4462_v59 = vld [vmem:[#allocation3_spill] sm:$0xff] }
 0x160   : > { %v2822_v47 = vsub.f32 %v4462_v59, %v2511_v18 }
 0x161   : > { %v889_v15 = vadd.f32 %v888_v63, %v887_v1  ;;  %v737_v1 = vmul.f32 %v2787_v14, %v2787_v14  ;;  %v902_v11 = vsel %vm299_vm0, %v736_v56, 0.0 }
 0x162   : > { %4463 = vst [vmem:[#allocation3_spill] sm:$0xff] %v2822_v47 }
 0x163   : > { %v891_v32 = vadd.f32 %v890_v5, %v889_v15  ;;  %v738_v15 = vmul.f32 %v2794_v20, %v2794_v20 }
 0x165   : > { %v893_v42 = vadd.f32 %v892_v24, %v891_v32  ;;  %v4460_v32 = vld [vmem:[#allocation2_spill] sm:$0xff] }
 0x166   : > { %v2815_v41 = vsub.f32 %v4460_v32, %v2511_v18  ;;  %v742_v32 = vmul.f32 %v2822_v47, %v2822_v47 }
 0x167   : > { %v895_v38 = vadd.f32 %v894_v13, %v893_v42  ;;  %v904_v13 = vsel %vm299_vm0, %v737_v1, 0.0  ;;  %v908_v1 = vsel %vm299_vm0, %v739_v51, 0.0 }
 0x168   : > { %4461 = vst [vmem:[#allocation2_spill] sm:$0xff] %v2815_v41 }
 0x169   : > { %v897_v63 = vadd.f32 %v896_v45, %v895_v38  ;;  %v740_v45 = vmul.f32 %v2808_v33, %v2808_v33  ;;  %v906_v38 = vsel %vm299_vm0, %v738_v15, 0.0 }
 0x16b   : > { %v899_v5 = vadd.f32 %v898_v0, %v897_v63  ;;  %v4464_v0 = vld [vmem:[#allocation4_spill] sm:$0xff]  ;;  %v910_v15 = vsel %vm299_vm0, %v740_v45, 0.0  ;;  %v914_v45 = vsel %vm299_vm0, %v742_v32, 0.0 }
 0x16c   : > { %v2829_v63 = vsub.f32 %v4464_v0, %v2511_v18 }
 0x16d   : > { %v901_v24 = vadd.f32 %v900_v3, %v899_v5  ;;  %v741_v3 = vmul.f32 %v2815_v41, %v2815_v41 }
 0x16e   : > { %4465 = vst [vmem:[#allocation4_spill] sm:$0xff] %v2829_v63  ;;  %v743_v0 = vmul.f32 %v2829_v63, %v2829_v63 }
 0x16f   : > { %v903_v42 = vadd.f32 %v902_v11, %v901_v24  ;;  %v4466_v11 = vld [vmem:[#allocation5_spill] sm:$0xff]  ;;  %v912_v51 = vsel %vm299_vm0, %v741_v3, 0.0 }
 0x170   : > { %v2836_v24 = vsub.f32 %v4466_v11, %v2511_v18  ;;  %v916_v3 = vsel %vm299_vm0, %v743_v0, 0.0 }
 0x171   : > { %v905_v56 = vadd.f32 %v904_v13, %v903_v42  ;;  %v4468_v42 = vld [vmem:[#allocation6_spill] sm:$0xff] }
 0x172   : > { %4467 = vst [vmem:[#allocation5_spill] sm:$0xff] %v2836_v24  ;;  %v2843_v59 = vsub.f32 %v4468_v42, %v2511_v18  ;;  %v744_v47 = vmul.f32 %v2836_v24, %v2836_v24 }
 0x173   : > { %v907_v5 = vadd.f32 %v906_v38, %v905_v56  ;;  %v4470_v56 = vld [vmem:[#allocation7_spill] sm:$0xff] }
 0x174   : > { %4469 = vst [vmem:[#allocation6_spill] sm:$0xff] %v2843_v59  ;;  %v2850_v11 = vsub.f32 %v4470_v56, %v2511_v18  ;;  %v745_v63 = vmul.f32 %v2843_v59, %v2843_v59  ;;  %v918_v32 = vsel %vm299_vm0, %v744_v47, 0.0 }
 0x175   : > { %v909_v13 = vadd.f32 %v908_v1, %v907_v5  ;;  %v4472_v5 = vld [vmem:[#allocation8_spill] sm:$0xff] }
 0x176   : > { %4471 = vst [vmem:[#allocation7_spill] sm:$0xff] %v2850_v11  ;;  %v2857_v42 = vsub.f32 %v4472_v5, %v2511_v18  ;;  %v746_v24 = vmul.f32 %v2850_v11, %v2850_v11  ;;  %v920_v0 = vsel %vm299_vm0, %v745_v63, 0.0 }
 0x177   : > { %v911_v38 = vadd.f32 %v910_v15, %v909_v13  ;;  %v4474_v13 = vld [vmem:[#allocation9_spill] sm:$0xff] }
 0x178   : > { %4473 = vst [vmem:[#allocation8_spill] sm:$0xff] %v2857_v42  ;;  %v2864_v56 = vsub.f32 %v4474_v13, %v2511_v18  ;;  %v747_v59 = vmul.f32 %v2857_v42, %v2857_v42  ;;  %v922_v47 = vsel %vm299_vm0, %v746_v24, 0.0 }
 0x179   : > { %v913_v1 = vadd.f32 %v912_v51, %v911_v38  ;;  %v4476_v38 = vld [vmem:[#allocation10_spill] sm:$0xff] }
 0x17a   : > { %4475 = vst [vmem:[#allocation9_spill] sm:$0xff] %v2864_v56  ;;  %v2871_v5 = vsub.f32 %v4476_v38, %v2511_v18  ;;  %v748_v11 = vmul.f32 %v2864_v56, %v2864_v56  ;;  %v924_v63 = vsel %vm299_vm0, %v747_v59, 0.0 }
 0x17b   : > { %v915_v15 = vadd.f32 %v914_v45, %v913_v1  ;;  %v4478_v1 = vld [vmem:[#allocation11_spill] sm:$0xff] }
 0x17c   : > { %4477 = vst [vmem:[#allocation10_spill] sm:$0xff] %v2871_v5  ;;  %v2878_v13 = vsub.f32 %v4478_v1, %v2511_v18  ;;  %v749_v42 = vmul.f32 %v2871_v5, %v2871_v5  ;;  %v926_v24 = vsel %vm299_vm0, %v748_v11, 0.0 }
 0x17d   : > { %v917_v51 = vadd.f32 %v916_v3, %v915_v15  ;;  %v4480_v15 = vld [vmem:[#allocation12_spill] sm:$0xff] }
 0x17e   : > { %4479 = vst [vmem:[#allocation11_spill] sm:$0xff] %v2878_v13  ;;  %v2885_v38 = vsub.f32 %v4480_v15, %v2511_v18  ;;  %v750_v56 = vmul.f32 %v2878_v13, %v2878_v13  ;;  %v928_v59 = vsel %vm299_vm0, %v749_v42, 0.0 }
 0x17f   : > { %v919_v45 = vadd.f32 %v918_v32, %v917_v51  ;;  %v4482_v51 = vld [vmem:[#allocation13_spill] sm:$0xff] }
 0x180   : > { %4481 = vst [vmem:[#allocation12_spill] sm:$0xff] %v2885_v38  ;;  %v2892_v1 = vsub.f32 %v4482_v51, %v2511_v18  ;;  %v751_v5 = vmul.f32 %v2885_v38, %v2885_v38  ;;  %v930_v11 = vsel %vm299_vm0, %v750_v56, 0.0 }
 0x181   : > { %v921_v3 = vadd.f32 %v920_v0, %v919_v45  ;;  %v4484_v45 = vld [vmem:[#allocation14_spill] sm:$0xff] }
 0x182   : > { %4483 = vst [vmem:[#allocation13_spill] sm:$0xff] %v2892_v1  ;;  %v2899_v15 = vsub.f32 %v4484_v45, %v2511_v18  ;;  %v752_v13 = vmul.f32 %v2892_v1, %v2892_v1  ;;  %v932_v42 = vsel %vm299_vm0, %v751_v5, 0.0 }
 0x183   : > { %v923_v32 = vadd.f32 %v922_v47, %v921_v3  ;;  %v4486_v3 = vld [vmem:[#allocation15_spill] sm:$0xff] }
 0x184   : > { %4485 = vst [vmem:[#allocation14_spill] sm:$0xff] %v2899_v15  ;;  %v2906_v51 = vsub.f32 %v4486_v3, %v2511_v18  ;;  %v753_v38 = vmul.f32 %v2899_v15, %v2899_v15  ;;  %v934_v56 = vsel %vm299_vm0, %v752_v13, 0.0 }
 0x185   : > { %v925_v0 = vadd.f32 %v924_v63, %v923_v32  ;;  %v4488_v32 = vld [vmem:[#allocation16_spill] sm:$0xff] }
 0x186   : > { %4487 = vst [vmem:[#allocation15_spill] sm:$0xff] %v2906_v51  ;;  %v2913_v45 = vsub.f32 %v4488_v32, %v2511_v18  ;;  %v754_v1 = vmul.f32 %v2906_v51, %v2906_v51  ;;  %v936_v5 = vsel %vm299_vm0, %v753_v38, 0.0 }
 0x187   : > { %v927_v47 = vadd.f32 %v926_v24, %v925_v0  ;;  %v4490_v0 = vld [vmem:[#allocation17_spill] sm:$0xff] }
 0x188   : > { %4489 = vst [vmem:[#allocation16_spill] sm:$0xff] %v2913_v45  ;;  %v2920_v3 = vsub.f32 %v4490_v0, %v2511_v18  ;;  %v755_v15 = vmul.f32 %v2913_v45, %v2913_v45  ;;  %v938_v13 = vsel %vm299_vm0, %v754_v1, 0.0 }
 0x189   : > { %v929_v63 = vadd.f32 %v928_v59, %v927_v47  ;;  %v4492_v47 = vld [vmem:[#allocation18_spill] sm:$0xff] }
 0x18a   : > { %4491 = vst [vmem:[#allocation17_spill] sm:$0xff] %v2920_v3  ;;  %v2927_v32 = vsub.f32 %v4492_v47, %v2511_v18  ;;  %v756_v51 = vmul.f32 %v2920_v3, %v2920_v3  ;;  %v940_v38 = vsel %vm299_vm0, %v755_v15, 0.0 }
 0x18b   : > { %v931_v24 = vadd.f32 %v930_v11, %v929_v63  ;;  %v4494_v63 = vld [vmem:[#allocation19_spill] sm:$0xff] }
 0x18c   : > { %4493 = vst [vmem:[#allocation18_spill] sm:$0xff] %v2927_v32  ;;  %v2934_v0 = vsub.f32 %v4494_v63, %v2511_v18  ;;  %v757_v45 = vmul.f32 %v2927_v32, %v2927_v32  ;;  %v942_v1 = vsel %vm299_vm0, %v756_v51, 0.0 }
 0x18d   : > { %v933_v59 = vadd.f32 %v932_v42, %v931_v24  ;;  %v4496_v24 = vld [vmem:[#allocation20_spill] sm:$0xff] }
 0x18e   : > { %4495 = vst [vmem:[#allocation19_spill] sm:$0xff] %v2934_v0  ;;  %v2941_v47 = vsub.f32 %v4496_v24, %v2511_v18  ;;  %v758_v3 = vmul.f32 %v2934_v0, %v2934_v0  ;;  %v944_v15 = vsel %vm299_vm0, %v757_v45, 0.0 }
 0x18f   : > { %v935_v11 = vadd.f32 %v934_v56, %v933_v59  ;;  %v4498_v59 = vld [vmem:[#allocation21_spill] sm:$0xff] }
 0x190   : > { %4497 = vst [vmem:[#allocation20_spill] sm:$0xff] %v2941_v47  ;;  %v2948_v63 = vsub.f32 %v4498_v59, %v2511_v18  ;;  %v759_v32 = vmul.f32 %v2941_v47, %v2941_v47  ;;  %v946_v51 = vsel %vm299_vm0, %v758_v3, 0.0 }
 0x191   : > { %v937_v42 = vadd.f32 %v936_v5, %v935_v11  ;;  %v4500_v11 = vld [vmem:[#allocation22_spill] sm:$0xff] }
 0x192   : > { %4499 = vst [vmem:[#allocation21_spill] sm:$0xff] %v2948_v63  ;;  %v2955_v24 = vsub.f32 %v4500_v11, %v2511_v18  ;;  %v760_v0 = vmul.f32 %v2948_v63, %v2948_v63  ;;  %v948_v45 = vsel %vm299_vm0, %v759_v32, 0.0 }
 0x193   : > { %v939_v56 = vadd.f32 %v938_v13, %v937_v42  ;;  %v4502_v42 = vld [vmem:[#allocation23_spill] sm:$0xff] }
 0x194   : > { %4501 = vst [vmem:[#allocation22_spill] sm:$0xff] %v2955_v24  ;;  %v2962_v59 = vsub.f32 %v4502_v42, %v2511_v18  ;;  %v761_v47 = vmul.f32 %v2955_v24, %v2955_v24  ;;  %v950_v3 = vsel %vm299_vm0, %v760_v0, 0.0 }
 0x195   : > { %v941_v5 = vadd.f32 %v940_v38, %v939_v56  ;;  %v4504_v56 = vld [vmem:[#allocation24_spill] sm:$0xff] }
 0x196   : > { %4503 = vst [vmem:[#allocation23_spill] sm:$0xff] %v2962_v59  ;;  %v2969_v11 = vsub.f32 %v4504_v56, %v2511_v18  ;;  %v762_v63 = vmul.f32 %v2962_v59, %v2962_v59  ;;  %v952_v32 = vsel %vm299_vm0, %v761_v47, 0.0 }
 0x197   : > { %v943_v13 = vadd.f32 %v942_v1, %v941_v5  ;;  %v4506_v5 = vld [vmem:[#allocation25_spill] sm:$0xff] }
 0x198   : > { %4505 = vst [vmem:[#allocation24_spill] sm:$0xff] %v2969_v11  ;;  %v2976_v42 = vsub.f32 %v4506_v5, %v2511_v18  ;;  %v763_v24 = vmul.f32 %v2969_v11, %v2969_v11  ;;  %v954_v0 = vsel %vm299_vm0, %v762_v63, 0.0 }
 0x199   : > { %v945_v38 = vadd.f32 %v944_v15, %v943_v13  ;;  %v4508_v13 = vld [vmem:[#allocation26_spill] sm:$0xff] }
 0x19a   : > { %4507 = vst [vmem:[#allocation25_spill] sm:$0xff] %v2976_v42  ;;  %v2983_v56 = vsub.f32 %v4508_v13, %v2511_v18  ;;  %v764_v59 = vmul.f32 %v2976_v42, %v2976_v42  ;;  %v956_v47 = vsel %vm299_vm0, %v763_v24, 0.0 }
 0x19b   : > { %v947_v1 = vadd.f32 %v946_v51, %v945_v38  ;;  %v4510_v38 = vld [vmem:[#allocation27_spill] sm:$0xff] }
 0x19c   : > { %4509 = vst [vmem:[#allocation26_spill] sm:$0xff] %v2983_v56  ;;  %v2990_v5 = vsub.f32 %v4510_v38, %v2511_v18  ;;  %v765_v11 = vmul.f32 %v2983_v56, %v2983_v56  ;;  %v958_v63 = vsel %vm299_vm0, %v764_v59, 0.0 }
 0x19d   : > { %v949_v15 = vadd.f32 %v948_v45, %v947_v1  ;;  %v4512_v1 = vld [vmem:[#allocation28_spill] sm:$0xff] }
 0x19e   : > { %4511 = vst [vmem:[#allocation27_spill] sm:$0xff] %v2990_v5  ;;  %v2997_v13 = vsub.f32 %v4512_v1, %v2511_v18  ;;  %v766_v42 = vmul.f32 %v2990_v5, %v2990_v5  ;;  %v960_v24 = vsel %vm299_vm0, %v765_v11, 0.0 }
 0x19f   : > { %v951_v51 = vadd.f32 %v950_v3, %v949_v15  ;;  %v4514_v15 = vld [vmem:[#allocation29_spill] sm:$0xff] }
 0x1a0   : > { %4513 = vst [vmem:[#allocation28_spill] sm:$0xff] %v2997_v13  ;;  %v3004_v38 = vsub.f32 %v4514_v15, %v2511_v18  ;;  %v767_v56 = vmul.f32 %v2997_v13, %v2997_v13  ;;  %v962_v59 = vsel %vm299_vm0, %v766_v42, 0.0 }
 0x1a1   : > { %v953_v45 = vadd.f32 %v952_v32, %v951_v51  ;;  %v4516_v51 = vld [vmem:[#allocation30_spill] sm:$0xff] }
 0x1a2   : > { %4515 = vst [vmem:[#allocation29_spill] sm:$0xff] %v3004_v38  ;;  %v3011_v1 = vsub.f32 %v4516_v51, %v2511_v18  ;;  %v768_v5 = vmul.f32 %v3004_v38, %v3004_v38  ;;  %v964_v11 = vsel %vm299_vm0, %v767_v56, 0.0 }
 0x1a3   : > { %v955_v3 = vadd.f32 %v954_v0, %v953_v45  ;;  %v4518_v45 = vld [vmem:[#allocation31_spill] sm:$0xff] }
 0x1a4   : > { %4517 = vst [vmem:[#allocation30_spill] sm:$0xff] %v3011_v1  ;;  %v3018_v15 = vsub.f32 %v4518_v45, %v2511_v18  ;;  %v769_v13 = vmul.f32 %v3011_v1, %v3011_v1  ;;  %v966_v42 = vsel %vm299_vm0, %v768_v5, 0.0 }
 0x1a5   : > { %v957_v32 = vadd.f32 %v956_v47, %v955_v3  ;;  %v4520_v3 = vld [vmem:[#allocation32_spill] sm:$0xff] }
 0x1a6   : > { %4519 = vst [vmem:[#allocation31_spill] sm:$0xff] %v3018_v15  ;;  %v3025_v51 = vsub.f32 %v4520_v3, %v2511_v18  ;;  %v770_v38 = vmul.f32 %v3018_v15, %v3018_v15  ;;  %v968_v56 = vsel %vm299_vm0, %v769_v13, 0.0 }
 0x1a7   : > { %v959_v0 = vadd.f32 %v958_v63, %v957_v32  ;;  %v4522_v32 = vld [vmem:[#allocation33_spill] sm:$0xff] }
 0x1a8   : > { %4521 = vst [vmem:[#allocation32_spill] sm:$0xff] %v3025_v51  ;;  %v3032_v45 = vsub.f32 %v4522_v32, %v2511_v18  ;;  %v771_v1 = vmul.f32 %v3025_v51, %v3025_v51  ;;  %v970_v5 = vsel %vm299_vm0, %v770_v38, 0.0 }
 0x1a9   : > { %v961_v47 = vadd.f32 %v960_v24, %v959_v0  ;;  %v4524_v0 = vld [vmem:[#allocation34_spill] sm:$0xff] }
 0x1aa   : > { %4523 = vst [vmem:[#allocation33_spill] sm:$0xff] %v3032_v45  ;;  %v3039_v3 = vsub.f32 %v4524_v0, %v2511_v18  ;;  %v772_v15 = vmul.f32 %v3032_v45, %v3032_v45  ;;  %v972_v13 = vsel %vm299_vm0, %v771_v1, 0.0 }
 0x1ab   : > { %v963_v63 = vadd.f32 %v962_v59, %v961_v47  ;;  %v4526_v47 = vld [vmem:[#allocation35_spill] sm:$0xff] }
 0x1ac   : > { %4525 = vst [vmem:[#allocation34_spill] sm:$0xff] %v3039_v3  ;;  %v3046_v32 = vsub.f32 %v4526_v47, %v2511_v18  ;;  %v773_v51 = vmul.f32 %v3039_v3, %v3039_v3  ;;  %v974_v38 = vsel %vm299_vm0, %v772_v15, 0.0 }
 0x1ad   : > { %v965_v24 = vadd.f32 %v964_v11, %v963_v63  ;;  %v4528_v63 = vld [vmem:[#allocation36_spill] sm:$0xff] }
 0x1ae   : > { %4527 = vst [vmem:[#allocation35_spill] sm:$0xff] %v3046_v32  ;;  %v3053_v0 = vsub.f32 %v4528_v63, %v2511_v18  ;;  %v774_v45 = vmul.f32 %v3046_v32, %v3046_v32  ;;  %v976_v1 = vsel %vm299_vm0, %v773_v51, 0.0 }
 0x1af   : > { %v967_v59 = vadd.f32 %v966_v42, %v965_v24  ;;  %v4530_v24 = vld [vmem:[#allocation37_spill] sm:$0xff] }
 0x1b0   : > { %4529 = vst [vmem:[#allocation36_spill] sm:$0xff] %v3053_v0  ;;  %v3060_v47 = vsub.f32 %v4530_v24, %v2511_v18  ;;  %v775_v3 = vmul.f32 %v3053_v0, %v3053_v0  ;;  %v978_v15 = vsel %vm299_vm0, %v774_v45, 0.0 }
 0x1b1   : > { %v969_v11 = vadd.f32 %v968_v56, %v967_v59  ;;  %v4532_v59 = vld [vmem:[#allocation38_spill] sm:$0xff] }
 0x1b2   : > { %4531 = vst [vmem:[#allocation37_spill] sm:$0xff] %v3060_v47  ;;  %v3067_v63 = vsub.f32 %v4532_v59, %v2511_v18  ;;  %v776_v32 = vmul.f32 %v3060_v47, %v3060_v47  ;;  %v980_v51 = vsel %vm299_vm0, %v775_v3, 0.0 }
 0x1b3   : > { %v971_v42 = vadd.f32 %v970_v5, %v969_v11  ;;  %v4534_v11 = vld [vmem:[#allocation39_spill] sm:$0xff] }
 0x1b4   : > { %4533 = vst [vmem:[#allocation38_spill] sm:$0xff] %v3067_v63  ;;  %v3074_v24 = vsub.f32 %v4534_v11, %v2511_v18  ;;  %v777_v0 = vmul.f32 %v3067_v63, %v3067_v63  ;;  %v982_v45 = vsel %vm299_vm0, %v776_v32, 0.0 }
 0x1b5   : > { %v973_v56 = vadd.f32 %v972_v13, %v971_v42  ;;  %v4536_v42 = vld [vmem:[#allocation40_spill] sm:$0xff] }
 0x1b6   : > { %4535 = vst [vmem:[#allocation39_spill] sm:$0xff] %v3074_v24  ;;  %v3081_v59 = vsub.f32 %v4536_v42, %v2511_v18  ;;  %v778_v47 = vmul.f32 %v3074_v24, %v3074_v24  ;;  %v984_v3 = vsel %vm299_vm0, %v777_v0, 0.0 }
 0x1b7   : > { %v975_v5 = vadd.f32 %v974_v38, %v973_v56  ;;  %v4538_v56 = vld [vmem:[#allocation41_spill] sm:$0xff] }
 0x1b8   : > { %4537 = vst [vmem:[#allocation40_spill] sm:$0xff] %v3081_v59  ;;  %v3088_v11 = vsub.f32 %v4538_v56, %v2511_v18  ;;  %v779_v63 = vmul.f32 %v3081_v59, %v3081_v59  ;;  %v986_v32 = vsel %vm299_vm0, %v778_v47, 0.0 }
 0x1b9   : > { %v977_v13 = vadd.f32 %v976_v1, %v975_v5  ;;  %v4540_v5 = vld [vmem:[#allocation42_spill] sm:$0xff] }
 0x1ba   : > { %4539 = vst [vmem:[#allocation41_spill] sm:$0xff] %v3088_v11  ;;  %v3095_v42 = vsub.f32 %v4540_v5, %v2511_v18  ;;  %v780_v24 = vmul.f32 %v3088_v11, %v3088_v11  ;;  %v988_v0 = vsel %vm299_vm0, %v779_v63, 0.0 }
 0x1bb   : > { %v979_v38 = vadd.f32 %v978_v15, %v977_v13  ;;  %v4542_v13 = vld [vmem:[#allocation43_spill] sm:$0xff] }
 0x1bc   : > { %4541 = vst [vmem:[#allocation42_spill] sm:$0xff] %v3095_v42  ;;  %v3102_v56 = vsub.f32 %v4542_v13, %v2511_v18  ;;  %v781_v59 = vmul.f32 %v3095_v42, %v3095_v42  ;;  %v990_v47 = vsel %vm299_vm0, %v780_v24, 0.0 }
 0x1bd   : > { %v981_v1 = vadd.f32 %v980_v51, %v979_v38  ;;  %v4544_v38 = vld [vmem:[#allocation44_spill] sm:$0xff] }
 0x1be   : > { %4543 = vst [vmem:[#allocation43_spill] sm:$0xff] %v3102_v56  ;;  %v3109_v5 = vsub.f32 %v4544_v38, %v2511_v18  ;;  %v782_v11 = vmul.f32 %v3102_v56, %v3102_v56  ;;  %v992_v63 = vsel %vm299_vm0, %v781_v59, 0.0 }
 0x1bf   : > { %v983_v15 = vadd.f32 %v982_v45, %v981_v1  ;;  %v4546_v1 = vld [vmem:[#allocation45_spill] sm:$0xff] }
 0x1c0   : > { %4545 = vst [vmem:[#allocation44_spill] sm:$0xff] %v3109_v5  ;;  %v3116_v13 = vsub.f32 %v4546_v1, %v2511_v18  ;;  %v783_v42 = vmul.f32 %v3109_v5, %v3109_v5  ;;  %v994_v24 = vsel %vm299_vm0, %v782_v11, 0.0 }
 0x1c1   : > { %v985_v51 = vadd.f32 %v984_v3, %v983_v15  ;;  %v4548_v15 = vld [vmem:[#allocation46_spill] sm:$0xff] }
 0x1c2   : > { %4547 = vst [vmem:[#allocation45_spill] sm:$0xff] %v3116_v13  ;;  %v3123_v38 = vsub.f32 %v4548_v15, %v2511_v18  ;;  %v784_v56 = vmul.f32 %v3116_v13, %v3116_v13  ;;  %v996_v59 = vsel %vm299_vm0, %v783_v42, 0.0 }
 0x1c3   : > { %v987_v45 = vadd.f32 %v986_v32, %v985_v51  ;;  %v4550_v51 = vld [vmem:[#allocation47_spill] sm:$0xff] }
 0x1c4   : > { %4549 = vst [vmem:[#allocation46_spill] sm:$0xff] %v3123_v38  ;;  %v3130_v1 = vsub.f32 %v4550_v51, %v2511_v18  ;;  %v785_v5 = vmul.f32 %v3123_v38, %v3123_v38  ;;  %v998_v11 = vsel %vm299_vm0, %v784_v56, 0.0 }
 0x1c5   : > { %v989_v3 = vadd.f32 %v988_v0, %v987_v45  ;;  %v4552_v45 = vld [vmem:[#allocation48_spill] sm:$0xff] }
 0x1c6   : > { %4551 = vst [vmem:[#allocation47_spill] sm:$0xff] %v3130_v1  ;;  %v3137_v15 = vsub.f32 %v4552_v45, %v2511_v18  ;;  %v786_v13 = vmul.f32 %v3130_v1, %v3130_v1  ;;  %v1000_v42 = vsel %vm299_vm0, %v785_v5, 0.0 }
 0x1c7   : > { %v991_v32 = vadd.f32 %v990_v47, %v989_v3  ;;  %v4554_v3 = vld [vmem:[#allocation49_spill] sm:$0xff] }
 0x1c8   : > { %4553 = vst [vmem:[#allocation48_spill] sm:$0xff] %v3137_v15  ;;  %v3144_v51 = vsub.f32 %v4554_v3, %v2511_v18  ;;  %v787_v38 = vmul.f32 %v3137_v15, %v3137_v15  ;;  %v1002_v56 = vsel %vm299_vm0, %v786_v13, 0.0 }
 0x1c9   : > { %v993_v0 = vadd.f32 %v992_v63, %v991_v32  ;;  %v4556_v32 = vld [vmem:[#allocation50_spill] sm:$0xff] }
 0x1ca   : > { %4555 = vst [vmem:[#allocation49_spill] sm:$0xff] %v3144_v51  ;;  %v3151_v45 = vsub.f32 %v4556_v32, %v2511_v18  ;;  %v788_v1 = vmul.f32 %v3144_v51, %v3144_v51  ;;  %v1004_v5 = vsel %vm299_vm0, %v787_v38, 0.0 }
 0x1cb   : > { %v995_v47 = vadd.f32 %v994_v24, %v993_v0  ;;  %v4558_v0 = vld [vmem:[#allocation51_spill] sm:$0xff] }
 0x1cc   : > { %4557 = vst [vmem:[#allocation50_spill] sm:$0xff] %v3151_v45  ;;  %v3158_v3 = vsub.f32 %v4558_v0, %v2511_v18  ;;  %v789_v15 = vmul.f32 %v3151_v45, %v3151_v45  ;;  %v1006_v13 = vsel %vm299_vm0, %v788_v1, 0.0 }
 0x1cd   : > { %v997_v63 = vadd.f32 %v996_v59, %v995_v47  ;;  %v4560_v47 = vld [vmem:[#allocation52_spill] sm:$0xff] }
 0x1ce   : > { %4559 = vst [vmem:[#allocation51_spill] sm:$0xff] %v3158_v3  ;;  %v3165_v32 = vsub.f32 %v4560_v47, %v2511_v18  ;;  %v790_v51 = vmul.f32 %v3158_v3, %v3158_v3  ;;  %v1008_v38 = vsel %vm299_vm0, %v789_v15, 0.0 }
 0x1cf   : > { %v999_v24 = vadd.f32 %v998_v11, %v997_v63  ;;  %v4562_v63 = vld [vmem:[#allocation53_spill] sm:$0xff] }
 0x1d0   : > { %4561 = vst [vmem:[#allocation52_spill] sm:$0xff] %v3165_v32  ;;  %v3172_v0 = vsub.f32 %v4562_v63, %v2511_v18  ;;  %v791_v45 = vmul.f32 %v3165_v32, %v3165_v32  ;;  %v1010_v1 = vsel %vm299_vm0, %v790_v51, 0.0 }
 0x1d1   : > { %v1001_v59 = vadd.f32 %v1000_v42, %v999_v24  ;;  %v4564_v24 = vld [vmem:[#allocation54_spill] sm:$0xff] }
 0x1d2   : > { %4563 = vst [vmem:[#allocation53_spill] sm:$0xff] %v3172_v0  ;;  %v3179_v47 = vsub.f32 %v4564_v24, %v2511_v18  ;;  %v792_v3 = vmul.f32 %v3172_v0, %v3172_v0  ;;  %v1012_v15 = vsel %vm299_vm0, %v791_v45, 0.0 }
 0x1d3   : > { %v1003_v11 = vadd.f32 %v1002_v56, %v1001_v59  ;;  %v4566_v59 = vld [vmem:[#allocation55_spill] sm:$0xff] }
 0x1d4   : > { %4565 = vst [vmem:[#allocation54_spill] sm:$0xff] %v3179_v47  ;;  %v3186_v63 = vsub.f32 %v4566_v59, %v2511_v18  ;;  %v793_v32 = vmul.f32 %v3179_v47, %v3179_v47  ;;  %v1014_v51 = vsel %vm299_vm0, %v792_v3, 0.0 }
 0x1d5   : > { %v1005_v42 = vadd.f32 %v1004_v5, %v1003_v11  ;;  %v4568_v11 = vld [vmem:[#allocation56_spill] sm:$0xff] }
 0x1d6   : > { %4567 = vst [vmem:[#allocation55_spill] sm:$0xff] %v3186_v63  ;;  %v3193_v24 = vsub.f32 %v4568_v11, %v2511_v18  ;;  %v794_v0 = vmul.f32 %v3186_v63, %v3186_v63  ;;  %v1016_v45 = vsel %vm299_vm0, %v793_v32, 0.0 }
 0x1d7   : > { %v1007_v56 = vadd.f32 %v1006_v13, %v1005_v42  ;;  %v4570_v42 = vld [vmem:[#allocation57_spill] sm:$0xff] }
 0x1d8   : > { %4569 = vst [vmem:[#allocation56_spill] sm:$0xff] %v3193_v24  ;;  %v3200_v59 = vsub.f32 %v4570_v42, %v2511_v18  ;;  %v795_v47 = vmul.f32 %v3193_v24, %v3193_v24  ;;  %v1018_v3 = vsel %vm299_vm0, %v794_v0, 0.0 }
 0x1d9   : > { %v1009_v5 = vadd.f32 %v1008_v38, %v1007_v56  ;;  %v4572_v56 = vld [vmem:[#allocation58_spill] sm:$0xff] }
 0x1da   : > { %4571 = vst [vmem:[#allocation57_spill] sm:$0xff] %v3200_v59  ;;  %v3207_v11 = vsub.f32 %v4572_v56, %v2511_v18  ;;  %v796_v63 = vmul.f32 %v3200_v59, %v3200_v59  ;;  %v1020_v32 = vsel %vm299_vm0, %v795_v47, 0.0 }
 0x1db   : > { %v1011_v13 = vadd.f32 %v1010_v1, %v1009_v5  ;;  %v4574_v5 = vld [vmem:[#allocation59_spill] sm:$0xff] }
 0x1dc   : > { %4573 = vst [vmem:[#allocation58_spill] sm:$0xff] %v3207_v11  ;;  %v3214_v42 = vsub.f32 %v4574_v5, %v2511_v18  ;;  %v797_v24 = vmul.f32 %v3207_v11, %v3207_v11  ;;  %v1022_v0 = vsel %vm299_vm0, %v796_v63, 0.0 }
 0x1dd   : > { %v1013_v38 = vadd.f32 %v1012_v15, %v1011_v13  ;;  %v4576_v13 = vld [vmem:[#allocation60_spill] sm:$0xff] }
 0x1de   : > { %4575 = vst [vmem:[#allocation59_spill] sm:$0xff] %v3214_v42  ;;  %v3221_v56 = vsub.f32 %v4576_v13, %v2511_v18  ;;  %v798_v59 = vmul.f32 %v3214_v42, %v3214_v42  ;;  %v1024_v47 = vsel %vm299_vm0, %v797_v24, 0.0 }
 0x1df   : > { %v1015_v1 = vadd.f32 %v1014_v51, %v1013_v38  ;;  %v4578_v38 = vld [vmem:[#allocation61_spill] sm:$0xff] }
 0x1e0   : > { %4577 = vst [vmem:[#allocation60_spill] sm:$0xff] %v3221_v56  ;;  %v3228_v5 = vsub.f32 %v4578_v38, %v2511_v18  ;;  %v799_v11 = vmul.f32 %v3221_v56, %v3221_v56  ;;  %v1026_v63 = vsel %vm299_vm0, %v798_v59, 0.0 }
 0x1e1   : > { %v1017_v15 = vadd.f32 %v1016_v45, %v1015_v1  ;;  %v4580_v1 = vld [vmem:[#allocation62_spill] sm:$0xff] }
 0x1e2   : > { %4579 = vst [vmem:[#allocation61_spill] sm:$0xff] %v3228_v5  ;;  %v3235_v13 = vsub.f32 %v4580_v1, %v2511_v18  ;;  %v800_v42 = vmul.f32 %v3228_v5, %v3228_v5  ;;  %v1028_v24 = vsel %vm299_vm0, %v799_v11, 0.0 }
 0x1e3   : > { %v1019_v51 = vadd.f32 %v1018_v3, %v1017_v15  ;;  %v4582_v15 = vld [vmem:[#allocation63_spill] sm:$0xff] }
 0x1e4   : > { %4581 = vst [vmem:[#allocation62_spill] sm:$0xff] %v3235_v13  ;;  %v3242_v38 = vsub.f32 %v4582_v15, %v2511_v18  ;;  %v801_v56 = vmul.f32 %v3235_v13, %v3235_v13  ;;  %v1030_v59 = vsel %vm299_vm0, %v800_v42, 0.0 }
 0x1e5   : > { %v1021_v45 = vadd.f32 %v1020_v32, %v1019_v51  ;;  %v4584_v51 = vld [vmem:[#allocation64_spill] sm:$0xff] }
 0x1e6   : > { %4583 = vst [vmem:[#allocation63_spill] sm:$0xff] %v3242_v38  ;;  %v3249_v1 = vsub.f32 %v4584_v51, %v2511_v18  ;;  %v802_v5 = vmul.f32 %v3242_v38, %v3242_v38  ;;  %v1032_v11 = vsel %vm299_vm0, %v801_v56, 0.0 }
 0x1e7   : > { %v1023_v3 = vadd.f32 %v1022_v0, %v1021_v45  ;;  %v4586_v45 = vld [vmem:[#allocation65_spill] sm:$0xff] }
 0x1e8   : > { %4585 = vst [vmem:[#allocation64_spill] sm:$0xff] %v3249_v1  ;;  %v3256_v15 = vsub.f32 %v4586_v45, %v2511_v18  ;;  %v803_v13 = vmul.f32 %v3249_v1, %v3249_v1  ;;  %v1034_v42 = vsel %vm299_vm0, %v802_v5, 0.0 }
 0x1e9   : > { %v1025_v32 = vadd.f32 %v1024_v47, %v1023_v3  ;;  %v4588_v3 = vld [vmem:[#allocation66_spill] sm:$0xff] }
 0x1ea   : > { %4587 = vst [vmem:[#allocation65_spill] sm:$0xff] %v3256_v15  ;;  %v3263_v51 = vsub.f32 %v4588_v3, %v2511_v18  ;;  %v804_v38 = vmul.f32 %v3256_v15, %v3256_v15  ;;  %v1036_v56 = vsel %vm299_vm0, %v803_v13, 0.0 }
 0x1eb   : > { %v1027_v0 = vadd.f32 %v1026_v63, %v1025_v32  ;;  %v4590_v32 = vld [vmem:[#allocation67_spill] sm:$0xff] }
 0x1ec   : > { %4589 = vst [vmem:[#allocation66_spill] sm:$0xff] %v3263_v51  ;;  %v3270_v45 = vsub.f32 %v4590_v32, %v2511_v18  ;;  %v805_v1 = vmul.f32 %v3263_v51, %v3263_v51  ;;  %v1038_v5 = vsel %vm299_vm0, %v804_v38, 0.0 }
 0x1ed   : > { %v1029_v47 = vadd.f32 %v1028_v24, %v1027_v0  ;;  %v4592_v0 = vld [vmem:[#allocation68_spill] sm:$0xff] }
 0x1ee   : > { %4591 = vst [vmem:[#allocation67_spill] sm:$0xff] %v3270_v45  ;;  %v3277_v3 = vsub.f32 %v4592_v0, %v2511_v18  ;;  %v806_v15 = vmul.f32 %v3270_v45, %v3270_v45  ;;  %v1040_v13 = vsel %vm299_vm0, %v805_v1, 0.0 }
 0x1ef   : > { %v1031_v63 = vadd.f32 %v1030_v59, %v1029_v47  ;;  %v4594_v47 = vld [vmem:[#allocation69_spill] sm:$0xff] }
 0x1f0   : > { %4593 = vst [vmem:[#allocation68_spill] sm:$0xff] %v3277_v3  ;;  %v3284_v32 = vsub.f32 %v4594_v47, %v2511_v18  ;;  %v807_v51 = vmul.f32 %v3277_v3, %v3277_v3  ;;  %v1042_v38 = vsel %vm299_vm0, %v806_v15, 0.0 }
 0x1f1   : > { %v1033_v24 = vadd.f32 %v1032_v11, %v1031_v63  ;;  %v4596_v63 = vld [vmem:[#allocation70_spill] sm:$0xff] }
 0x1f2   : > { %4595 = vst [vmem:[#allocation69_spill] sm:$0xff] %v3284_v32  ;;  %v3291_v0 = vsub.f32 %v4596_v63, %v2511_v18  ;;  %v808_v45 = vmul.f32 %v3284_v32, %v3284_v32  ;;  %v1044_v1 = vsel %vm299_vm0, %v807_v51, 0.0 }
 0x1f3   : > { %v1035_v59 = vadd.f32 %v1034_v42, %v1033_v24  ;;  %v4598_v24 = vld [vmem:[#allocation71_spill] sm:$0xff] }
 0x1f4   : > { %4597 = vst [vmem:[#allocation70_spill] sm:$0xff] %v3291_v0  ;;  %v3298_v47 = vsub.f32 %v4598_v24, %v2511_v18  ;;  %v809_v3 = vmul.f32 %v3291_v0, %v3291_v0  ;;  %v1046_v15 = vsel %vm299_vm0, %v808_v45, 0.0 }
 0x1f5   : > { %v1037_v11 = vadd.f32 %v1036_v56, %v1035_v59  ;;  %v4600_v59 = vld [vmem:[#allocation72_spill] sm:$0xff] }
 0x1f6   : > { %4599 = vst [vmem:[#allocation71_spill] sm:$0xff] %v3298_v47  ;;  %v3305_v63 = vsub.f32 %v4600_v59, %v2511_v18  ;;  %v810_v32 = vmul.f32 %v3298_v47, %v3298_v47  ;;  %v1048_v51 = vsel %vm299_vm0, %v809_v3, 0.0 }
 0x1f7   : > { %v1039_v42 = vadd.f32 %v1038_v5, %v1037_v11  ;;  %v4602_v11 = vld [vmem:[#allocation73_spill] sm:$0xff] }
 0x1f8   : > { %4601 = vst [vmem:[#allocation72_spill] sm:$0xff] %v3305_v63  ;;  %v3312_v24 = vsub.f32 %v4602_v11, %v2511_v18  ;;  %v811_v0 = vmul.f32 %v3305_v63, %v3305_v63  ;;  %v1050_v45 = vsel %vm299_vm0, %v810_v32, 0.0 }
 0x1f9   : > { %v1041_v56 = vadd.f32 %v1040_v13, %v1039_v42  ;;  %v4604_v42 = vld [vmem:[#allocation74_spill] sm:$0xff] }
 0x1fa   : > { %4603 = vst [vmem:[#allocation73_spill] sm:$0xff] %v3312_v24  ;;  %v3319_v59 = vsub.f32 %v4604_v42, %v2511_v18  ;;  %v812_v47 = vmul.f32 %v3312_v24, %v3312_v24  ;;  %v1052_v3 = vsel %vm299_vm0, %v811_v0, 0.0 }
 0x1fb   : > { %v1043_v5 = vadd.f32 %v1042_v38, %v1041_v56  ;;  %v4606_v56 = vld [vmem:[#allocation75_spill] sm:$0xff] }
 0x1fc   : > { %4605 = vst [vmem:[#allocation74_spill] sm:$0xff] %v3319_v59  ;;  %v3326_v11 = vsub.f32 %v4606_v56, %v2511_v18  ;;  %v813_v63 = vmul.f32 %v3319_v59, %v3319_v59  ;;  %v1054_v32 = vsel %vm299_vm0, %v812_v47, 0.0 }
 0x1fd   : > { %v1045_v13 = vadd.f32 %v1044_v1, %v1043_v5  ;;  %v4608_v5 = vld [vmem:[#allocation76_spill] sm:$0xff] }
 0x1fe   : > { %4607 = vst [vmem:[#allocation75_spill] sm:$0xff] %v3326_v11  ;;  %v3333_v42 = vsub.f32 %v4608_v5, %v2511_v18  ;;  %v814_v24 = vmul.f32 %v3326_v11, %v3326_v11  ;;  %v1056_v0 = vsel %vm299_vm0, %v813_v63, 0.0 }
 0x1ff   : > { %v1047_v38 = vadd.f32 %v1046_v15, %v1045_v13  ;;  %v4610_v13 = vld [vmem:[#allocation77_spill] sm:$0xff] }
 0x200   : > { %4609 = vst [vmem:[#allocation76_spill] sm:$0xff] %v3333_v42  ;;  %v3340_v56 = vsub.f32 %v4610_v13, %v2511_v18  ;;  %v815_v59 = vmul.f32 %v3333_v42, %v3333_v42  ;;  %v1058_v47 = vsel %vm299_vm0, %v814_v24, 0.0 }
 0x201   : > { %v1049_v1 = vadd.f32 %v1048_v51, %v1047_v38  ;;  %v4612_v38 = vld [vmem:[#allocation78_spill] sm:$0xff] }
 0x202   : > { %4611 = vst [vmem:[#allocation77_spill] sm:$0xff] %v3340_v56  ;;  %v3347_v5 = vsub.f32 %v4612_v38, %v2511_v18  ;;  %v816_v11 = vmul.f32 %v3340_v56, %v3340_v56  ;;  %v1060_v63 = vsel %vm299_vm0, %v815_v59, 0.0 }
 0x203   : > { %v1051_v15 = vadd.f32 %v1050_v45, %v1049_v1  ;;  %v4614_v1 = vld [vmem:[#allocation79_spill] sm:$0xff] }
 0x204   : > { %4613 = vst [vmem:[#allocation78_spill] sm:$0xff] %v3347_v5  ;;  %v3354_v13 = vsub.f32 %v4614_v1, %v2511_v18  ;;  %v817_v42 = vmul.f32 %v3347_v5, %v3347_v5  ;;  %v1831_v5 = vld [vmem:[%s1881_s17 + $0x3e8] sm:$0xff] }
 0x205   : > { %v1053_v51 = vadd.f32 %v1052_v3, %v1051_v15  ;;  %v4616_v15 = vld [vmem:[#allocation80_spill] sm:$0xff] }
 0x206   : > { %4615 = vst [vmem:[#allocation79_spill] sm:$0xff] %v3354_v13  ;;  %v3361_v38 = vsub.f32 %v4616_v15, %v2511_v18  ;;  %v818_v24 = vmul.f32 %v3354_v13, %v3354_v13  ;;  %v1830_v15 = vld [vmem:[%s1881_s17 + $0x3e0] sm:$0xff] }
 0x207   : > { %v1055_v45 = vadd.f32 %v1054_v32, %v1053_v51  ;;  %v1829_v51 = vld [vmem:[%s1881_s17 + $0x3d8] sm:$0xff]  ;;  %v3375_v56 = vsub.f32 %v1830_v15, %v2511_v18 }
 0x208   : > { %4617 = vst [vmem:[#allocation80_spill] sm:$0xff] %v3361_v38  ;;  %v3368_v1 = vsub.f32 %v1829_v51, %v2511_v18  ;;  %v819_v59 = vmul.f32 %v3361_v38, %v3361_v38  ;;  %v3382_v51 = vsub.f32 %v1831_v5, %v2511_v18 }
 0x209   : > { %v1057_v3 = vadd.f32 %v1056_v0, %v1055_v45  ;;  %v1062_v0 = vsel %vm299_vm0, %v816_v11, 0.0  ;;  %4619 = vst [vmem:[#allocation84_spill] sm:$0xff] %v3375_v56  ;;  %v1066_v11 = vsel %vm299_vm0, %v818_v24, 0.0  ;;  %v821_v38 = vmul.f32 %v3375_v56, %v3375_v56 }
 0x20a   : > { %4618 = vst [vmem:[#allocation83_spill] sm:$0xff] %v3368_v1  ;;  %v820_v13 = vmul.f32 %v3368_v1, %v3368_v1  ;;  %v822_v1 = vmul.f32 %v3382_v51, %v3382_v51 }
 0x20b   : > { %v1059_v32 = vadd.f32 %v1058_v47, %v1057_v3  ;;  %v1064_v47 = vsel %vm299_vm0, %v817_v42, 0.0  ;;  %4620 = vst [vmem:[#allocation85_spill] sm:$0xff] %v3382_v51  ;;  %v1068_v42 = vsel %vm299_vm0, %v819_v59, 0.0 }
 0x20c   : > { %v1070_v24 = vsel %vm299_vm0, %v820_v13, 0.0 }
 0x20d   : > { %v1061_v45 = vadd.f32 %v1060_v63, %v1059_v32  ;;  %v1832_v32 = vld [vmem:[%s1881_s17 + $0x3f0] sm:$0xff] }
 0x20e   : > { %v3389_v15 = vsub.f32 %v1832_v32, %v2511_v18  ;;  %v1072_v32 = vsel %vm299_vm0, %v821_v38, 0.0 }
 0x20f   : > { %v1063_v3 = vadd.f32 %v1062_v0, %v1061_v45  ;;  %v1833_v45 = vld [vmem:[%s1881_s17 + $0x3f8] sm:$0xff] }
 0x210   : > { %4621 = vst [vmem:[#allocation86_spill] sm:$0xff] %v3389_v15  ;;  %v3396_v5 = vsub.f32 %v1833_v45, %v2511_v18 }
 0x211   : > { %v1065_v63 = vadd.f32 %v1064_v47, %v1063_v3  ;;  %v823_v3 = vmul.f32 %v3389_v15, %v3389_v15 }
 0x212   : > { %4622 = vst [vmem:[#allocation87_spill] sm:$0xff] %v3396_v5  ;;  %v824_v59 = vmul.f32 %v3396_v5, %v3396_v5 }
 0x213   : > { %v1067_v0 = vadd.f32 %v1066_v11, %v1065_v63  ;;  %v1074_v11 = vsel %vm299_vm0, %v822_v1, 0.0  ;;  %v1076_v18 = vsel %vm299_vm0, %v823_v3, 0.0 }
 0x214   : > { %v1078_v51 = vsel %vm299_vm0, %v824_v59, 0.0 }
 0x215   : > { %v1069_v47 = vadd.f32 %v1068_v42, %v1067_v0 }
 0x217   : > { %v1071_v41 = vadd.f32 %v1070_v24, %v1069_v47 }
 0x219   : > { %v1073_v63 = vadd.f32 %v1072_v32, %v1071_v41 }
 0x21b   : > { %v1075_v45 = vadd.f32 %v1074_v11, %v1073_v63 }
 0x21d   : > { %v1077_v56 = vadd.f32 %v1076_v18, %v1075_v45 }
 0x21f   : > { %v1079_v13 = vadd.f32 %v1078_v51, %v1077_v56  ;;  %v3413_v56 = vld [vmem:[%s4211_s1] ss:$0 sm:$0xff] }
 0x221   : > { %v1080_v42 = vrot.slane %v1079_v13, 4 }
 0x223   : > { %v1081_v0 = vadd.f32 %v1080_v42, %v1079_v13 }
 0x225   : > { %v1082_v33 = vrot.slane %v1081_v0, 2 }
 0x227   : > { %v1083_v15 = vadd.f32 %v1082_v33, %v1081_v0 }
 0x229   : > { %v1084_v27 = vrot.slane %v1083_v15, 1 }
 0x22b   : > { %v1085_v38 = vadd.f32 %v1084_v27, %v1083_v15  ;;  %v3422_v27 = vld [vmem:[%s4212_s2] ss:$0 sm:$0xff] }
 0x22d   : > { %v1086_v24 = vmul.f32 %v1085_v38, %v2508_v50 }
 0x22f   : > { %v1087_v47 = vadd.f32 1e-05, %v1086_v24 }
 0x231   : > { %1827 = vrsqrt.f32 %v1087_v47  ;;  %vm1094_vm2 = vweird.f32 %v1087_v47 }
 0x237   : > { %v1828_v5 = vpop.eup %1827 }
 0x238   : > { %v1089_v1 = vmul.f32 %v1828_v5, %v1087_v47  ;;  %vm1095_vm3 = vweird.f32 %v1828_v5 }
 0x239   : > { %vm1096_vm4 = vmor %vm1094_vm2, %vm1095_vm3 }
 0x23a   : > { %v1090_v41 = vmul.f32 %v1828_v5, %v1089_v1 }
 0x23c   : > { %v1091_v32 = vmul.f32 0.5, %v1090_v41 }
 0x23e   : > { %v1092_v3 = vsub.f32 1.5, %v1091_v32 }
 0x240   : > { %v1093_v59 = vmul.f32 %v1828_v5, %v1092_v3 }
 0x242   : > { %v3415_v33 = vsel %vm1096_vm4, %v1828_v5, %v1093_v59 }
 0x243   : > { %v1098_v50 = vmul.f32 %v3415_v33, %v2515_v29  ;;  %v1099_v51 = vmul.f32 %v3415_v33, %v2519_v9  ;;  %v1100_v15 = vmul.f32 %v3415_v33, %v2523_v60  ;;  %v1101_v11 = vmul.f32 %v3415_v33, %v2527_v23 }
 0x244   : > { %v1102_v5 = vmul.f32 %v3415_v33, %v2531_v54  ;;  %v1103_v29 = vmul.f32 %v3415_v33, %v2541_v2  ;;  %v1104_v63 = vmul.f32 %v3415_v33, %v2547_v7  ;;  %v1105_v18 = vmul.f32 %v3415_v33, %v2556_v10 }
 0x245   : > { %v1230_v9 = vmul.f32 %v3413_v56, %v1098_v50  ;;  %v1231_v60 = vmul.f32 %v3413_v56, %v1099_v51  ;;  %v1232_v45 = vmul.f32 %v3413_v56, %v1100_v15  ;;  %v1233_v23 = vmul.f32 %v3413_v56, %v1101_v11 }
 0x246   : > { %v1234_v54 = vmul.f32 %v3413_v56, %v1102_v5  ;;  %v1235_v13 = vmul.f32 %v3413_v56, %v1103_v29  ;;  %v1236_v2 = vmul.f32 %v3413_v56, %v1104_v63  ;;  %v1237_v42 = vmul.f32 %v3413_v56, %v1105_v18 }
 0x247   : > { %v1362_v7 = vadd.f32 %v3422_v27, %v1230_v9  ;;  %v1363_v10 = vadd.f32 %v3422_v27, %v1231_v60  ;;  %v1364_v0 = vadd.f32 %v3422_v27, %v1232_v45  ;;  %v1365_v38 = vadd.f32 %v3422_v27, %v1233_v23 }
 0x248   : > { %v1366_v24 = vadd.f32 %v3422_v27, %v1234_v54  ;;  %v1367_v47 = vadd.f32 %v3422_v27, %v1235_v13  ;;  %v1368_v1 = vadd.f32 %v3422_v27, %v1236_v2  ;;  %v1369_v41 = vadd.f32 %v3422_v27, %v1237_v42 }
 0x249   : > { %v1490_v32 = vmax.f32 %v1362_v7, 0.0  ;;  %v1491_v3 = vmax.f32 %v1363_v10, 0.0  ;;  %v1492_v59 = vmax.f32 %v1364_v0, 0.0  ;;  %v1493_v50 = vmax.f32 %v1365_v38, 0.0 }
 0x24a   : > { %v1494_v51 = vmax.f32 %v1366_v24, 0.0  ;;  %v1495_v15 = vmax.f32 %v1367_v47, 0.0  ;;  %v1496_v11 = vmax.f32 %v1368_v1, 0.0  ;;  %v1497_v5 = vmax.f32 %v1369_v41, 0.0 }
 0x24b   : > { %1618 = vst.msk [vmem:[%s3455_s24] sm:$0xff] %vm299_vm0, %v1490_v32  ;;  %v1106_v29 = vmul.f32 %v3415_v33, %v2563_v36  ;;  %v1107_v63 = vmul.f32 %v3415_v33, %v2570_v16  ;;  %v1108_v18 = vmul.f32 %v3415_v33, %v2577_v19  ;;  %v1109_v9 = vmul.f32 %v3415_v33, %v2584_v22 }
 0x24c   : > { %1619 = vst.msk [vmem:[%s3455_s24 + $0x8] sm:$0xff] %vm299_vm0, %v1491_v3  ;;  %v1110_v60 = vmul.f32 %v3415_v33, %v2591_v25  ;;  %v1111_v45 = vmul.f32 %v3415_v33, %v2598_v28  ;;  %v1112_v36 = vmul.f32 %v3415_v33, %v2605_v31  ;;  %v1113_v16 = vmul.f32 %v3415_v33, %v2612_v34 }
 0x24d   : > { %1620 = vst.msk [vmem:[%s3455_s24 + $0x10] sm:$0xff] %vm299_vm0, %v1492_v59  ;;  %v1238_v19 = vmul.f32 %v3413_v56, %v1106_v29  ;;  %v1239_v22 = vmul.f32 %v3413_v56, %v1107_v63  ;;  %v1240_v23 = vmul.f32 %v3413_v56, %v1108_v18  ;;  %v1241_v25 = vmul.f32 %v3413_v56, %v1109_v9 }
 0x24e   : > { %1621 = vst.msk [vmem:[%s3455_s24 + $0x18] sm:$0xff] %vm299_vm0, %v1493_v50  ;;  %v1242_v28 = vmul.f32 %v3413_v56, %v1110_v60  ;;  %v1243_v31 = vmul.f32 %v3413_v56, %v1111_v45  ;;  %v1244_v34 = vmul.f32 %v3413_v56, %v1112_v36  ;;  %v1245_v54 = vmul.f32 %v3413_v56, %v1113_v16 }
 0x24f   : > { %1622 = vst.msk [vmem:[%s3455_s24 + $0x20] sm:$0xff] %vm299_vm0, %v1494_v51  ;;  %v1370_v13 = vadd.f32 %v3422_v27, %v1238_v19  ;;  %v1371_v2 = vadd.f32 %v3422_v27, %v1239_v22  ;;  %v1372_v42 = vadd.f32 %v3422_v27, %v1240_v23  ;;  %v1373_v7 = vadd.f32 %v3422_v27, %v1241_v25 }
 0x250   : > { %1623 = vst.msk [vmem:[%s3455_s24 + $0x28] sm:$0xff] %vm299_vm0, %v1495_v15  ;;  %v1374_v10 = vadd.f32 %v3422_v27, %v1242_v28  ;;  %v1375_v0 = vadd.f32 %v3422_v27, %v1243_v31  ;;  %v1376_v38 = vadd.f32 %v3422_v27, %v1244_v34  ;;  %v1377_v24 = vadd.f32 %v3422_v27, %v1245_v54 }
 0x251   : > { %1624 = vst.msk [vmem:[%s3455_s24 + $0x30] sm:$0xff] %vm299_vm0, %v1496_v11  ;;  %v1498_v47 = vmax.f32 %v1370_v13, 0.0  ;;  %v1499_v1 = vmax.f32 %v1371_v2, 0.0  ;;  %v1500_v41 = vmax.f32 %v1372_v42, 0.0  ;;  %v1501_v32 = vmax.f32 %v1373_v7, 0.0 }
 0x252   : > { %1625 = vst.msk [vmem:[%s3455_s24 + $0x38] sm:$0xff] %vm299_vm0, %v1497_v5  ;;  %v1502_v3 = vmax.f32 %v1374_v10, 0.0  ;;  %v1503_v59 = vmax.f32 %v1375_v0, 0.0  ;;  %v1504_v50 = vmax.f32 %v1376_v38, 0.0  ;;  %v1505_v51 = vmax.f32 %v1377_v24, 0.0 }
 0x253   : > { %1626 = vst.msk [vmem:[%s3455_s24 + $0x40] sm:$0xff] %vm299_vm0, %v1498_v47  ;;  %v1114_v15 = vmul.f32 %v3415_v33, %v2619_v37  ;;  %v1115_v11 = vmul.f32 %v3415_v33, %v2626_v40  ;;  %v1116_v29 = vmul.f32 %v3415_v33, %v2633_v43  ;;  %v1117_v63 = vmul.f32 %v3415_v33, %v2640_v46 }
 0x254   : > { %1627 = vst.msk [vmem:[%s3455_s24 + $0x48] sm:$0xff] %vm299_vm0, %v1499_v1  ;;  %v1118_v5 = vmul.f32 %v3415_v33, %v2647_v49  ;;  %v1119_v18 = vmul.f32 %v3415_v33, %v2654_v52  ;;  %v1120_v37 = vmul.f32 %v3415_v33, %v2661_v55  ;;  %v1121_v40 = vmul.f32 %v3415_v33, %v2668_v58 }
 0x255   : > { %1628 = vst.msk [vmem:[%s3455_s24 + $0x50] sm:$0xff] %vm299_vm0, %v1500_v41  ;;  %v1246_v43 = vmul.f32 %v3413_v56, %v1114_v15  ;;  %v1247_v46 = vmul.f32 %v3413_v56, %v1115_v11  ;;  %v1248_v9 = vmul.f32 %v3413_v56, %v1116_v29  ;;  %v1249_v49 = vmul.f32 %v3413_v56, %v1117_v63 }
 0x256   : > { %1629 = vst.msk [vmem:[%s3455_s24 + $0x58] sm:$0xff] %vm299_vm0, %v1501_v32  ;;  %v1250_v52 = vmul.f32 %v3413_v56, %v1118_v5  ;;  %v1251_v55 = vmul.f32 %v3413_v56, %v1119_v18  ;;  %v1252_v58 = vmul.f32 %v3413_v56, %v1120_v37  ;;  %v1253_v60 = vmul.f32 %v3413_v56, %v1121_v40 }
 0x257   : > { %1630 = vst.msk [vmem:[%s3455_s24 + $0x60] sm:$0xff] %vm299_vm0, %v1502_v3  ;;  %v1378_v45 = vadd.f32 %v3422_v27, %v1246_v43  ;;  %v1379_v36 = vadd.f32 %v3422_v27, %v1247_v46  ;;  %v1380_v16 = vadd.f32 %v3422_v27, %v1248_v9  ;;  %v1381_v19 = vadd.f32 %v3422_v27, %v1249_v49 }
 0x258   : > { %1631 = vst.msk [vmem:[%s3455_s24 + $0x68] sm:$0xff] %vm299_vm0, %v1503_v59  ;;  %v1382_v22 = vadd.f32 %v3422_v27, %v1250_v52  ;;  %v1383_v23 = vadd.f32 %v3422_v27, %v1251_v55  ;;  %v1384_v25 = vadd.f32 %v3422_v27, %v1252_v58  ;;  %v1385_v28 = vadd.f32 %v3422_v27, %v1253_v60 }
 0x259   : > { %1632 = vst.msk [vmem:[%s3455_s24 + $0x70] sm:$0xff] %vm299_vm0, %v1504_v50  ;;  %v1506_v31 = vmax.f32 %v1378_v45, 0.0  ;;  %v1507_v34 = vmax.f32 %v1379_v36, 0.0  ;;  %v1508_v54 = vmax.f32 %v1380_v16, 0.0  ;;  %v1509_v13 = vmax.f32 %v1381_v19, 0.0 }
 0x25a   : > { %1633 = vst.msk [vmem:[%s3455_s24 + $0x78] sm:$0xff] %vm299_vm0, %v1505_v51  ;;  %v1510_v2 = vmax.f32 %v1382_v22, 0.0  ;;  %v1511_v42 = vmax.f32 %v1383_v23, 0.0  ;;  %v1512_v7 = vmax.f32 %v1384_v25, 0.0  ;;  %v1513_v10 = vmax.f32 %v1385_v28, 0.0 }
 0x25b   : > { %1634 = vst.msk [vmem:[%s3455_s24 + $0x80] sm:$0xff] %vm299_vm0, %v1506_v31  ;;  %v1122_v0 = vmul.f32 %v3415_v33, %v2675_v61  ;;  %v1123_v38 = vmul.f32 %v3415_v33, %v2682_v4  ;;  %v1124_v24 = vmul.f32 %v3415_v33, %v2689_v8  ;;  %v1125_v47 = vmul.f32 %v3415_v33, %v2696_v12 }
 0x25c   : > { %1635 = vst.msk [vmem:[%s3455_s24 + $0x88] sm:$0xff] %vm299_vm0, %v1507_v34  ;;  %v1126_v1 = vmul.f32 %v3415_v33, %v2703_v17  ;;  %v1127_v41 = vmul.f32 %v3415_v33, %v2710_v21  ;;  %v1128_v61 = vmul.f32 %v3415_v33, %v2717_v26  ;;  %v1129_v4 = vmul.f32 %v3415_v33, %v2724_v30 }
 0x25d   : > { %1636 = vst.msk [vmem:[%s3455_s24 + $0x90] sm:$0xff] %vm299_vm0, %v1508_v54  ;;  %v1254_v8 = vmul.f32 %v3413_v56, %v1122_v0  ;;  %v1255_v12 = vmul.f32 %v3413_v56, %v1123_v38  ;;  %v1256_v32 = vmul.f32 %v3413_v56, %v1124_v24  ;;  %v1257_v17 = vmul.f32 %v3413_v56, %v1125_v47 }
 0x25e   : > { %1637 = vst.msk [vmem:[%s3455_s24 + $0x98] sm:$0xff] %vm299_vm0, %v1509_v13  ;;  %v1258_v21 = vmul.f32 %v3413_v56, %v1126_v1  ;;  %v1259_v26 = vmul.f32 %v3413_v56, %v1127_v41  ;;  %v1260_v30 = vmul.f32 %v3413_v56, %v1128_v61  ;;  %v1261_v3 = vmul.f32 %v3413_v56, %v1129_v4  ;;  %v4623_v4 = vld [vmem:[#allocation81_spill] sm:$0xff] }
 0x25f   : > { %1638 = vst.msk [vmem:[%s3455_s24 + $0xa0] sm:$0xff] %vm299_vm0, %v1510_v2  ;;  %v1386_v59 = vadd.f32 %v3422_v27, %v1254_v8  ;;  %v1387_v50 = vadd.f32 %v3422_v27, %v1255_v12  ;;  %v1388_v51 = vadd.f32 %v3422_v27, %v1256_v32  ;;  %v1389_v15 = vadd.f32 %v3422_v27, %v1257_v17  ;;  %v4624_v12 = vld [vmem:[#allocation82_spill] sm:$0xff] }
 0x260   : > { %1639 = vst.msk [vmem:[%s3455_s24 + $0xa8] sm:$0xff] %vm299_vm0, %v1511_v42  ;;  %v1390_v11 = vadd.f32 %v3422_v27, %v1258_v21  ;;  %v1391_v29 = vadd.f32 %v3422_v27, %v1259_v26  ;;  %v1392_v63 = vadd.f32 %v3422_v27, %v1260_v30  ;;  %v1393_v5 = vadd.f32 %v3422_v27, %v1261_v3  ;;  %v4625_v17 = vld [vmem:[#allocation2_spill] sm:$0xff]  ;;  %v4626_v26 = vld [vmem:[#allocation3_spill] sm:$0xff]  ;;  %v4627_v3 = vld [vmem:[#allocation4_spill] sm:$0xff] }
 0x261   : > { %1640 = vst.msk [vmem:[%s3455_s24 + $0xb0] sm:$0xff] %vm299_vm0, %v1512_v7  ;;  %v1514_v18 = vmax.f32 %v1386_v59, 0.0  ;;  %v1515_v37 = vmax.f32 %v1387_v50, 0.0  ;;  %v1516_v40 = vmax.f32 %v1388_v51, 0.0  ;;  %v1517_v43 = vmax.f32 %v1389_v15, 0.0  ;;  %v4628_v59 = vld [vmem:[#allocation5_spill] sm:$0xff] }
 0x262   : > { %1641 = vst.msk [vmem:[%s3455_s24 + $0xb8] sm:$0xff] %vm299_vm0, %v1513_v10  ;;  %v1518_v46 = vmax.f32 %v1390_v11, 0.0  ;;  %v1519_v9 = vmax.f32 %v1391_v29, 0.0  ;;  %v1520_v49 = vmax.f32 %v1392_v63, 0.0  ;;  %v1521_v52 = vmax.f32 %v1393_v5, 0.0 }
 0x263   : > { %1642 = vst.msk [vmem:[%s3455_s24 + $0xc0] sm:$0xff] %vm299_vm0, %v1514_v18  ;;  %v1130_v55 = vmul.f32 %v3415_v33, %v2731_v35  ;;  %v1131_v58 = vmul.f32 %v3415_v33, %v2738_v39  ;;  %v1132_v60 = vmul.f32 %v3415_v33, %v2745_v44  ;;  %v1133_v45 = vmul.f32 %v3415_v33, %v2752_v48 }
 0x264   : > { %1643 = vst.msk [vmem:[%s3455_s24 + $0xc8] sm:$0xff] %vm299_vm0, %v1515_v37  ;;  %v1134_v36 = vmul.f32 %v3415_v33, %v2759_v53  ;;  %v1135_v16 = vmul.f32 %v3415_v33, %v2766_v57  ;;  %v1136_v35 = vmul.f32 %v3415_v33, %v2773_v62  ;;  %v1137_v39 = vmul.f32 %v3415_v33, %v2780_v6 }
 0x265   : > { %1644 = vst.msk [vmem:[%s3455_s24 + $0xd0] sm:$0xff] %vm299_vm0, %v1516_v40  ;;  %v1262_v44 = vmul.f32 %v3413_v56, %v1130_v55  ;;  %v1263_v48 = vmul.f32 %v3413_v56, %v1131_v58  ;;  %v1264_v19 = vmul.f32 %v3413_v56, %v1132_v60  ;;  %v1265_v53 = vmul.f32 %v3413_v56, %v1133_v45 }
 0x266   : > { %1645 = vst.msk [vmem:[%s3455_s24 + $0xd8] sm:$0xff] %vm299_vm0, %v1517_v43  ;;  %v1266_v57 = vmul.f32 %v3413_v56, %v1134_v36  ;;  %v1267_v62 = vmul.f32 %v3413_v56, %v1135_v16  ;;  %v1268_v6 = vmul.f32 %v3413_v56, %v1136_v35  ;;  %v1269_v22 = vmul.f32 %v3413_v56, %v1137_v39 }
 0x267   : > { %1646 = vst.msk [vmem:[%s3455_s24 + $0xe0] sm:$0xff] %vm299_vm0, %v1518_v46  ;;  %v1394_v23 = vadd.f32 %v3422_v27, %v1262_v44  ;;  %v1395_v25 = vadd.f32 %v3422_v27, %v1263_v48  ;;  %v1396_v28 = vadd.f32 %v3422_v27, %v1264_v19  ;;  %v1397_v31 = vadd.f32 %v3422_v27, %v1265_v53  ;;  %v4629_v48 = vld [vmem:[#allocation6_spill] sm:$0xff]  ;;  %v4630_v53 = vld [vmem:[#allocation7_spill] sm:$0xff] }
 0x268   : > { %1647 = vst.msk [vmem:[%s3455_s24 + $0xe8] sm:$0xff] %vm299_vm0, %v1519_v9  ;;  %v1398_v34 = vadd.f32 %v3422_v27, %v1266_v57  ;;  %v1399_v54 = vadd.f32 %v3422_v27, %v1267_v62  ;;  %v1400_v13 = vadd.f32 %v3422_v27, %v1268_v6  ;;  %v1401_v2 = vadd.f32 %v3422_v27, %v1269_v22  ;;  %v4631_v62 = vld [vmem:[#allocation8_spill] sm:$0xff]  ;;  %v4632_v22 = vld [vmem:[#allocation9_spill] sm:$0xff] }
 0x269   : > { %1648 = vst.msk [vmem:[%s3455_s24 + $0xf0] sm:$0xff] %vm299_vm0, %v1520_v49  ;;  %v1522_v42 = vmax.f32 %v1394_v23, 0.0  ;;  %v1523_v7 = vmax.f32 %v1395_v25, 0.0  ;;  %v1524_v10 = vmax.f32 %v1396_v28, 0.0  ;;  %v1525_v0 = vmax.f32 %v1397_v31, 0.0  ;;  %v4633_v25 = vld [vmem:[#allocation10_spill] sm:$0xff] }
 0x26a   : > { %1649 = vst.msk [vmem:[%s3455_s24 + $0xf8] sm:$0xff] %vm299_vm0, %v1521_v52  ;;  %v1526_v38 = vmax.f32 %v1398_v34, 0.0  ;;  %v1527_v24 = vmax.f32 %v1399_v54, 0.0  ;;  %v1528_v47 = vmax.f32 %v1400_v13, 0.0  ;;  %v1529_v1 = vmax.f32 %v1401_v2, 0.0  ;;  %v4634_v31 = vld [vmem:[#allocation11_spill] sm:$0xff] }
 0x26b   : > { %1650 = vst.msk [vmem:[%s3455_s24 + $0x100] sm:$0xff] %vm299_vm0, %v1522_v42  ;;  %v1138_v41 = vmul.f32 %v3415_v33, %v2787_v14  ;;  %v1139_v61 = vmul.f32 %v3415_v33, %v2794_v20  ;;  %v1140_v8 = vmul.f32 %v3415_v33, %v4623_v4  ;;  %v1141_v32 = vmul.f32 %v3415_v33, %v4624_v12  ;;  %v4635_v54 = vld [vmem:[#allocation12_spill] sm:$0xff]  ;;  %v4636_v2 = vld [vmem:[#allocation13_spill] sm:$0xff] }
 0x26c   : > { %1651 = vst.msk [vmem:[%s3455_s24 + $0x108] sm:$0xff] %vm299_vm0, %v1523_v7  ;;  %v1142_v21 = vmul.f32 %v3415_v33, %v4625_v17  ;;  %v1143_v30 = vmul.f32 %v3415_v33, %v4626_v26  ;;  %v1144_v14 = vmul.f32 %v3415_v33, %v4627_v3  ;;  %v1145_v20 = vmul.f32 %v3415_v33, %v4628_v59 }
 0x26d   : > { %1652 = vst.msk [vmem:[%s3455_s24 + $0x110] sm:$0xff] %vm299_vm0, %v1524_v10  ;;  %v1270_v50 = vmul.f32 %v3413_v56, %v1138_v41  ;;  %v1271_v51 = vmul.f32 %v3413_v56, %v1139_v61  ;;  %v1272_v15 = vmul.f32 %v3413_v56, %v1140_v8  ;;  %v1273_v11 = vmul.f32 %v3413_v56, %v1141_v32 }
 0x26e   : > { %1653 = vst.msk [vmem:[%s3455_s24 + $0x118] sm:$0xff] %vm299_vm0, %v1525_v0  ;;  %v1274_v29 = vmul.f32 %v3413_v56, %v1142_v21  ;;  %v1275_v63 = vmul.f32 %v3413_v56, %v1143_v30  ;;  %v1276_v5 = vmul.f32 %v3413_v56, %v1144_v14  ;;  %v1277_v18 = vmul.f32 %v3413_v56, %v1145_v20 }
 0x26f   : > { %1654 = vst.msk [vmem:[%s3455_s24 + $0x120] sm:$0xff] %vm299_vm0, %v1526_v38  ;;  %v1402_v37 = vadd.f32 %v3422_v27, %v1270_v50  ;;  %v1403_v40 = vadd.f32 %v3422_v27, %v1271_v51  ;;  %v1404_v43 = vadd.f32 %v3422_v27, %v1272_v15  ;;  %v1405_v46 = vadd.f32 %v3422_v27, %v1273_v11  ;;  %v4637_v11 = vld [vmem:[#allocation14_spill] sm:$0xff] }
 0x270   : > { %1655 = vst.msk [vmem:[%s3455_s24 + $0x128] sm:$0xff] %vm299_vm0, %v1527_v24  ;;  %v1406_v9 = vadd.f32 %v3422_v27, %v1274_v29  ;;  %v1407_v49 = vadd.f32 %v3422_v27, %v1275_v63  ;;  %v1408_v52 = vadd.f32 %v3422_v27, %v1276_v5  ;;  %v1409_v55 = vadd.f32 %v3422_v27, %v1277_v18  ;;  %v4638_v63 = vld [vmem:[#allocation15_spill] sm:$0xff]  ;;  %v4639_v18 = vld [vmem:[#allocation16_spill] sm:$0xff] }
 0x271   : > { %1656 = vst.msk [vmem:[%s3455_s24 + $0x130] sm:$0xff] %vm299_vm0, %v1528_v47  ;;  %v1530_v58 = vmax.f32 %v1402_v37, 0.0  ;;  %v1531_v60 = vmax.f32 %v1403_v40, 0.0  ;;  %v1532_v45 = vmax.f32 %v1404_v43, 0.0  ;;  %v1533_v36 = vmax.f32 %v1405_v46, 0.0  ;;  %v4640_v40 = vld [vmem:[#allocation17_spill] sm:$0xff] }
 0x272   : > { %1657 = vst.msk [vmem:[%s3455_s24 + $0x138] sm:$0xff] %vm299_vm0, %v1529_v1  ;;  %v1534_v16 = vmax.f32 %v1406_v9, 0.0  ;;  %v1535_v35 = vmax.f32 %v1407_v49, 0.0  ;;  %v1536_v39 = vmax.f32 %v1408_v52, 0.0  ;;  %v1537_v44 = vmax.f32 %v1409_v55, 0.0  ;;  %v4641_v46 = vld [vmem:[#allocation18_spill] sm:$0xff] }
 0x273   : > { %1658 = vst.msk [vmem:[%s3455_s24 + $0x140] sm:$0xff] %vm299_vm0, %v1530_v58  ;;  %v1146_v19 = vmul.f32 %v3415_v33, %v4629_v48  ;;  %v1147_v57 = vmul.f32 %v3415_v33, %v4630_v53  ;;  %v1148_v6 = vmul.f32 %v3415_v33, %v4631_v62  ;;  %v1149_v23 = vmul.f32 %v3415_v33, %v4632_v22  ;;  %v4642_v49 = vld [vmem:[#allocation19_spill] sm:$0xff]  ;;  %v4643_v55 = vld [vmem:[#allocation20_spill] sm:$0xff] }
 0x274   : > { %1659 = vst.msk [vmem:[%s3455_s24 + $0x148] sm:$0xff] %vm299_vm0, %v1531_v60  ;;  %v1150_v28 = vmul.f32 %v3415_v33, %v4633_v25  ;;  %v1151_v34 = vmul.f32 %v3415_v33, %v4634_v31  ;;  %v1152_v13 = vmul.f32 %v3415_v33, %v4635_v54  ;;  %v1153_v42 = vmul.f32 %v3415_v33, %v4636_v2  ;;  %v4644_v60 = vld [vmem:[#allocation21_spill] sm:$0xff] }
 0x275   : > { %1660 = vst.msk [vmem:[%s3455_s24 + $0x150] sm:$0xff] %vm299_vm0, %v1532_v45  ;;  %v1278_v7 = vmul.f32 %v3413_v56, %v1146_v19  ;;  %v1279_v10 = vmul.f32 %v3413_v56, %v1147_v57  ;;  %v1280_v0 = vmul.f32 %v3413_v56, %v1148_v6  ;;  %v1281_v38 = vmul.f32 %v3413_v56, %v1149_v23 }
 0x276   : > { %1661 = vst.msk [vmem:[%s3455_s24 + $0x158] sm:$0xff] %vm299_vm0, %v1533_v36  ;;  %v1282_v24 = vmul.f32 %v3413_v56, %v1150_v28  ;;  %v1283_v47 = vmul.f32 %v3413_v56, %v1151_v34  ;;  %v1284_v1 = vmul.f32 %v3413_v56, %v1152_v13  ;;  %v1285_v41 = vmul.f32 %v3413_v56, %v1153_v42 }
 0x277   : > { %1662 = vst.msk [vmem:[%s3455_s24 + $0x160] sm:$0xff] %vm299_vm0, %v1534_v16  ;;  %v1410_v61 = vadd.f32 %v3422_v27, %v1278_v7  ;;  %v1411_v4 = vadd.f32 %v3422_v27, %v1279_v10  ;;  %v1412_v8 = vadd.f32 %v3422_v27, %v1280_v0  ;;  %v1413_v12 = vadd.f32 %v3422_v27, %v1281_v38  ;;  %v4645_v38 = vld [vmem:[#allocation22_spill] sm:$0xff] }
 0x278   : > { %1663 = vst.msk [vmem:[%s3455_s24 + $0x168] sm:$0xff] %vm299_vm0, %v1535_v35  ;;  %v1414_v32 = vadd.f32 %v3422_v27, %v1282_v24  ;;  %v1415_v17 = vadd.f32 %v3422_v27, %v1283_v47  ;;  %v1416_v21 = vadd.f32 %v3422_v27, %v1284_v1  ;;  %v1417_v26 = vadd.f32 %v3422_v27, %v1285_v41  ;;  %v4646_v47 = vld [vmem:[#allocation23_spill] sm:$0xff]  ;;  %v4647_v41 = vld [vmem:[#allocation24_spill] sm:$0xff] }
 0x279   : > { %1664 = vst.msk [vmem:[%s3455_s24 + $0x170] sm:$0xff] %vm299_vm0, %v1536_v39  ;;  %v1538_v30 = vmax.f32 %v1410_v61, 0.0  ;;  %v1539_v3 = vmax.f32 %v1411_v4, 0.0  ;;  %v1540_v14 = vmax.f32 %v1412_v8, 0.0  ;;  %v1541_v59 = vmax.f32 %v1413_v12, 0.0  ;;  %v4648_v4 = vld [vmem:[#allocation25_spill] sm:$0xff] }
 0x27a   : > { %1665 = vst.msk [vmem:[%s3455_s24 + $0x178] sm:$0xff] %vm299_vm0, %v1537_v44  ;;  %v1542_v20 = vmax.f32 %v1414_v32, 0.0  ;;  %v1543_v50 = vmax.f32 %v1415_v17, 0.0  ;;  %v1544_v51 = vmax.f32 %v1416_v21, 0.0  ;;  %v1545_v15 = vmax.f32 %v1417_v26, 0.0  ;;  %v4649_v12 = vld [vmem:[#allocation26_spill] sm:$0xff] }
 0x27b   : > { %1666 = vst.msk [vmem:[%s3455_s24 + $0x180] sm:$0xff] %vm299_vm0, %v1538_v30  ;;  %v1154_v29 = vmul.f32 %v3415_v33, %v4637_v11  ;;  %v1155_v5 = vmul.f32 %v3415_v33, %v4638_v63  ;;  %v1156_v37 = vmul.f32 %v3415_v33, %v4639_v18  ;;  %v1157_v43 = vmul.f32 %v3415_v33, %v4640_v40  ;;  %v4650_v17 = vld [vmem:[#allocation27_spill] sm:$0xff]  ;;  %v4651_v26 = vld [vmem:[#allocation28_spill] sm:$0xff] }
 0x27c   : > { %1667 = vst.msk [vmem:[%s3455_s24 + $0x188] sm:$0xff] %vm299_vm0, %v1539_v3  ;;  %v1158_v9 = vmul.f32 %v3415_v33, %v4641_v46  ;;  %v1159_v52 = vmul.f32 %v3415_v33, %v4642_v49  ;;  %v1160_v58 = vmul.f32 %v3415_v33, %v4643_v55  ;;  %v1161_v45 = vmul.f32 %v3415_v33, %v4644_v60  ;;  %v4652_v3 = vld [vmem:[#allocation29_spill] sm:$0xff] }
 0x27d   : > { %1668 = vst.msk [vmem:[%s3455_s24 + $0x190] sm:$0xff] %vm299_vm0, %v1540_v14  ;;  %v1286_v36 = vmul.f32 %v3413_v56, %v1154_v29  ;;  %v1287_v16 = vmul.f32 %v3413_v56, %v1155_v5  ;;  %v1288_v35 = vmul.f32 %v3413_v56, %v1156_v37  ;;  %v1289_v39 = vmul.f32 %v3413_v56, %v1157_v43 }
 0x27e   : > { %1669 = vst.msk [vmem:[%s3455_s24 + $0x198] sm:$0xff] %vm299_vm0, %v1541_v59  ;;  %v1290_v44 = vmul.f32 %v3413_v56, %v1158_v9  ;;  %v1291_v48 = vmul.f32 %v3413_v56, %v1159_v52  ;;  %v1292_v19 = vmul.f32 %v3413_v56, %v1160_v58  ;;  %v1293_v53 = vmul.f32 %v3413_v56, %v1161_v45 }
 0x27f   : > { %1670 = vst.msk [vmem:[%s3455_s24 + $0x1a0] sm:$0xff] %vm299_vm0, %v1542_v20  ;;  %v1418_v57 = vadd.f32 %v3422_v27, %v1286_v36  ;;  %v1419_v62 = vadd.f32 %v3422_v27, %v1287_v16  ;;  %v1420_v6 = vadd.f32 %v3422_v27, %v1288_v35  ;;  %v1421_v22 = vadd.f32 %v3422_v27, %v1289_v39  ;;  %v4653_v39 = vld [vmem:[#allocation30_spill] sm:$0xff] }
 0x280   : > { %1671 = vst.msk [vmem:[%s3455_s24 + $0x1a8] sm:$0xff] %vm299_vm0, %v1543_v50  ;;  %v1422_v23 = vadd.f32 %v3422_v27, %v1290_v44  ;;  %v1423_v25 = vadd.f32 %v3422_v27, %v1291_v48  ;;  %v1424_v28 = vadd.f32 %v3422_v27, %v1292_v19  ;;  %v1425_v31 = vadd.f32 %v3422_v27, %v1293_v53  ;;  %v4654_v48 = vld [vmem:[#allocation31_spill] sm:$0xff]  ;;  %v4655_v53 = vld [vmem:[#allocation32_spill] sm:$0xff] }
 0x281   : > { %1672 = vst.msk [vmem:[%s3455_s24 + $0x1b0] sm:$0xff] %vm299_vm0, %v1544_v51  ;;  %v1546_v34 = vmax.f32 %v1418_v57, 0.0  ;;  %v1547_v54 = vmax.f32 %v1419_v62, 0.0  ;;  %v1548_v13 = vmax.f32 %v1420_v6, 0.0  ;;  %v1549_v2 = vmax.f32 %v1421_v22, 0.0  ;;  %v4656_v62 = vld [vmem:[#allocation33_spill] sm:$0xff] }
 0x282   : > { %1673 = vst.msk [vmem:[%s3455_s24 + $0x1b8] sm:$0xff] %vm299_vm0, %v1545_v15  ;;  %v1550_v42 = vmax.f32 %v1422_v23, 0.0  ;;  %v1551_v7 = vmax.f32 %v1423_v25, 0.0  ;;  %v1552_v10 = vmax.f32 %v1424_v28, 0.0  ;;  %v1553_v0 = vmax.f32 %v1425_v31, 0.0  ;;  %v4657_v22 = vld [vmem:[#allocation34_spill] sm:$0xff] }
 0x283   : > { %1674 = vst.msk [vmem:[%s3455_s24 + $0x1c0] sm:$0xff] %vm299_vm0, %v1546_v34  ;;  %v1162_v24 = vmul.f32 %v3415_v33, %v4645_v38  ;;  %v1163_v1 = vmul.f32 %v3415_v33, %v4646_v47  ;;  %v1164_v61 = vmul.f32 %v3415_v33, %v4647_v41  ;;  %v1165_v8 = vmul.f32 %v3415_v33, %v4648_v4  ;;  %v4658_v25 = vld [vmem:[#allocation35_spill] sm:$0xff]  ;;  %v4659_v31 = vld [vmem:[#allocation36_spill] sm:$0xff] }
 0x284   : > { %1675 = vst.msk [vmem:[%s3455_s24 + $0x1c8] sm:$0xff] %vm299_vm0, %v1547_v54  ;;  %v1166_v32 = vmul.f32 %v3415_v33, %v4649_v12  ;;  %v1167_v21 = vmul.f32 %v3415_v33, %v4650_v17  ;;  %v1168_v30 = vmul.f32 %v3415_v33, %v4651_v26  ;;  %v1169_v14 = vmul.f32 %v3415_v33, %v4652_v3  ;;  %v4660_v54 = vld [vmem:[#allocation37_spill] sm:$0xff] }
 0x285   : > { %1676 = vst.msk [vmem:[%s3455_s24 + $0x1d0] sm:$0xff] %vm299_vm0, %v1548_v13  ;;  %v1294_v59 = vmul.f32 %v3413_v56, %v1162_v24  ;;  %v1295_v20 = vmul.f32 %v3413_v56, %v1163_v1  ;;  %v1296_v50 = vmul.f32 %v3413_v56, %v1164_v61  ;;  %v1297_v51 = vmul.f32 %v3413_v56, %v1165_v8 }
 0x286   : > { %1677 = vst.msk [vmem:[%s3455_s24 + $0x1d8] sm:$0xff] %vm299_vm0, %v1549_v2  ;;  %v1298_v15 = vmul.f32 %v3413_v56, %v1166_v32  ;;  %v1299_v11 = vmul.f32 %v3413_v56, %v1167_v21  ;;  %v1300_v29 = vmul.f32 %v3413_v56, %v1168_v30  ;;  %v1301_v63 = vmul.f32 %v3413_v56, %v1169_v14 }
 0x287   : > { %1678 = vst.msk [vmem:[%s3455_s24 + $0x1e0] sm:$0xff] %vm299_vm0, %v1550_v42  ;;  %v1426_v5 = vadd.f32 %v3422_v27, %v1294_v59  ;;  %v1427_v18 = vadd.f32 %v3422_v27, %v1295_v20  ;;  %v1428_v37 = vadd.f32 %v3422_v27, %v1296_v50  ;;  %v1429_v40 = vadd.f32 %v3422_v27, %v1297_v51  ;;  %v4661_v51 = vld [vmem:[#allocation38_spill] sm:$0xff] }
 0x288   : > { %1679 = vst.msk [vmem:[%s3455_s24 + $0x1e8] sm:$0xff] %vm299_vm0, %v1551_v7  ;;  %v1430_v43 = vadd.f32 %v3422_v27, %v1298_v15  ;;  %v1431_v46 = vadd.f32 %v3422_v27, %v1299_v11  ;;  %v1432_v9 = vadd.f32 %v3422_v27, %v1300_v29  ;;  %v1433_v49 = vadd.f32 %v3422_v27, %v1301_v63  ;;  %v4662_v11 = vld [vmem:[#allocation39_spill] sm:$0xff]  ;;  %v4663_v63 = vld [vmem:[#allocation40_spill] sm:$0xff] }
 0x289   : > { %1680 = vst.msk [vmem:[%s3455_s24 + $0x1f0] sm:$0xff] %vm299_vm0, %v1552_v10  ;;  %v1554_v52 = vmax.f32 %v1426_v5, 0.0  ;;  %v1555_v55 = vmax.f32 %v1427_v18, 0.0  ;;  %v1556_v58 = vmax.f32 %v1428_v37, 0.0  ;;  %v1557_v60 = vmax.f32 %v1429_v40, 0.0  ;;  %v4664_v18 = vld [vmem:[#allocation41_spill] sm:$0xff] }
 0x28a   : > { %1681 = vst.msk [vmem:[%s3455_s24 + $0x1f8] sm:$0xff] %vm299_vm0, %v1553_v0  ;;  %v1558_v45 = vmax.f32 %v1430_v43, 0.0  ;;  %v1559_v36 = vmax.f32 %v1431_v46, 0.0  ;;  %v1560_v16 = vmax.f32 %v1432_v9, 0.0  ;;  %v1561_v35 = vmax.f32 %v1433_v49, 0.0  ;;  %v4665_v40 = vld [vmem:[#allocation42_spill] sm:$0xff] }
 0x28b   : > { %1682 = vst.msk [vmem:[%s3455_s24 + $0x200] sm:$0xff] %vm299_vm0, %v1554_v52  ;;  %v1170_v44 = vmul.f32 %v3415_v33, %v4653_v39  ;;  %v1171_v19 = vmul.f32 %v3415_v33, %v4654_v48  ;;  %v1172_v57 = vmul.f32 %v3415_v33, %v4655_v53  ;;  %v1173_v6 = vmul.f32 %v3415_v33, %v4656_v62  ;;  %v4666_v46 = vld [vmem:[#allocation43_spill] sm:$0xff]  ;;  %v4667_v49 = vld [vmem:[#allocation44_spill] sm:$0xff] }
 0x28c   : > { %1683 = vst.msk [vmem:[%s3455_s24 + $0x208] sm:$0xff] %vm299_vm0, %v1555_v55  ;;  %v1174_v23 = vmul.f32 %v3415_v33, %v4657_v22  ;;  %v1175_v28 = vmul.f32 %v3415_v33, %v4658_v25  ;;  %v1176_v34 = vmul.f32 %v3415_v33, %v4659_v31  ;;  %v1177_v13 = vmul.f32 %v3415_v33, %v4660_v54  ;;  %v4668_v55 = vld [vmem:[#allocation45_spill] sm:$0xff] }
 0x28d   : > { %1684 = vst.msk [vmem:[%s3455_s24 + $0x210] sm:$0xff] %vm299_vm0, %v1556_v58  ;;  %v1302_v2 = vmul.f32 %v3413_v56, %v1170_v44  ;;  %v1303_v42 = vmul.f32 %v3413_v56, %v1171_v19  ;;  %v1304_v7 = vmul.f32 %v3413_v56, %v1172_v57  ;;  %v1305_v10 = vmul.f32 %v3413_v56, %v1173_v6 }
 0x28e   : > { %1685 = vst.msk [vmem:[%s3455_s24 + $0x218] sm:$0xff] %vm299_vm0, %v1557_v60  ;;  %v1306_v0 = vmul.f32 %v3413_v56, %v1174_v23  ;;  %v1307_v38 = vmul.f32 %v3413_v56, %v1175_v28  ;;  %v1308_v24 = vmul.f32 %v3413_v56, %v1176_v34  ;;  %v1309_v47 = vmul.f32 %v3413_v56, %v1177_v13 }
 0x28f   : > { %1686 = vst.msk [vmem:[%s3455_s24 + $0x220] sm:$0xff] %vm299_vm0, %v1558_v45  ;;  %v1434_v1 = vadd.f32 %v3422_v27, %v1302_v2  ;;  %v1435_v41 = vadd.f32 %v3422_v27, %v1303_v42  ;;  %v1436_v61 = vadd.f32 %v3422_v27, %v1304_v7  ;;  %v1437_v4 = vadd.f32 %v3422_v27, %v1305_v10  ;;  %v4669_v10 = vld [vmem:[#allocation46_spill] sm:$0xff] }
 0x290   : > { %1687 = vst.msk [vmem:[%s3455_s24 + $0x228] sm:$0xff] %vm299_vm0, %v1559_v36  ;;  %v1438_v8 = vadd.f32 %v3422_v27, %v1306_v0  ;;  %v1439_v12 = vadd.f32 %v3422_v27, %v1307_v38  ;;  %v1440_v32 = vadd.f32 %v3422_v27, %v1308_v24  ;;  %v1441_v17 = vadd.f32 %v3422_v27, %v1309_v47  ;;  %v4670_v38 = vld [vmem:[#allocation47_spill] sm:$0xff]  ;;  %v4671_v47 = vld [vmem:[#allocation48_spill] sm:$0xff] }
 0x291   : > { %1688 = vst.msk [vmem:[%s3455_s24 + $0x230] sm:$0xff] %vm299_vm0, %v1560_v16  ;;  %v1562_v21 = vmax.f32 %v1434_v1, 0.0  ;;  %v1563_v26 = vmax.f32 %v1435_v41, 0.0  ;;  %v1564_v30 = vmax.f32 %v1436_v61, 0.0  ;;  %v1565_v3 = vmax.f32 %v1437_v4, 0.0  ;;  %v4672_v41 = vld [vmem:[#allocation49_spill] sm:$0xff] }
 0x292   : > { %1689 = vst.msk [vmem:[%s3455_s24 + $0x238] sm:$0xff] %vm299_vm0, %v1561_v35  ;;  %v1566_v14 = vmax.f32 %v1438_v8, 0.0  ;;  %v1567_v59 = vmax.f32 %v1439_v12, 0.0  ;;  %v1568_v20 = vmax.f32 %v1440_v32, 0.0  ;;  %v1569_v50 = vmax.f32 %v1441_v17, 0.0  ;;  %v4673_v4 = vld [vmem:[#allocation50_spill] sm:$0xff] }
 0x293   : > { %1690 = vst.msk [vmem:[%s3455_s24 + $0x240] sm:$0xff] %vm299_vm0, %v1562_v21  ;;  %v1178_v15 = vmul.f32 %v3415_v33, %v4661_v51  ;;  %v1179_v29 = vmul.f32 %v3415_v33, %v4662_v11  ;;  %v1180_v5 = vmul.f32 %v3415_v33, %v4663_v63  ;;  %v1181_v37 = vmul.f32 %v3415_v33, %v4664_v18  ;;  %v4674_v12 = vld [vmem:[#allocation51_spill] sm:$0xff]  ;;  %v4675_v17 = vld [vmem:[#allocation52_spill] sm:$0xff] }
 0x294   : > { %1691 = vst.msk [vmem:[%s3455_s24 + $0x248] sm:$0xff] %vm299_vm0, %v1563_v26  ;;  %v1182_v43 = vmul.f32 %v3415_v33, %v4665_v40  ;;  %v1183_v9 = vmul.f32 %v3415_v33, %v4666_v46  ;;  %v1184_v52 = vmul.f32 %v3415_v33, %v4667_v49  ;;  %v1185_v58 = vmul.f32 %v3415_v33, %v4668_v55  ;;  %v4676_v26 = vld [vmem:[#allocation53_spill] sm:$0xff] }
 0x295   : > { %1692 = vst.msk [vmem:[%s3455_s24 + $0x250] sm:$0xff] %vm299_vm0, %v1564_v30  ;;  %v1310_v60 = vmul.f32 %v3413_v56, %v1178_v15  ;;  %v1311_v45 = vmul.f32 %v3413_v56, %v1179_v29  ;;  %v1312_v36 = vmul.f32 %v3413_v56, %v1180_v5  ;;  %v1313_v16 = vmul.f32 %v3413_v56, %v1181_v37 }
 0x296   : > { %1693 = vst.msk [vmem:[%s3455_s24 + $0x258] sm:$0xff] %vm299_vm0, %v1565_v3  ;;  %v1314_v35 = vmul.f32 %v3413_v56, %v1182_v43  ;;  %v1315_v39 = vmul.f32 %v3413_v56, %v1183_v9  ;;  %v1316_v44 = vmul.f32 %v3413_v56, %v1184_v52  ;;  %v1317_v48 = vmul.f32 %v3413_v56, %v1185_v58 }
 0x297   : > { %1694 = vst.msk [vmem:[%s3455_s24 + $0x260] sm:$0xff] %vm299_vm0, %v1566_v14  ;;  %v1442_v19 = vadd.f32 %v3422_v27, %v1310_v60  ;;  %v1443_v53 = vadd.f32 %v3422_v27, %v1311_v45  ;;  %v1444_v57 = vadd.f32 %v3422_v27, %v1312_v36  ;;  %v1445_v62 = vadd.f32 %v3422_v27, %v1313_v16  ;;  %v4677_v16 = vld [vmem:[#allocation54_spill] sm:$0xff] }
 0x298   : > { %1695 = vst.msk [vmem:[%s3455_s24 + $0x268] sm:$0xff] %vm299_vm0, %v1567_v59  ;;  %v1446_v6 = vadd.f32 %v3422_v27, %v1314_v35  ;;  %v1447_v22 = vadd.f32 %v3422_v27, %v1315_v39  ;;  %v1448_v23 = vadd.f32 %v3422_v27, %v1316_v44  ;;  %v1449_v25 = vadd.f32 %v3422_v27, %v1317_v48  ;;  %v4678_v39 = vld [vmem:[#allocation55_spill] sm:$0xff]  ;;  %v4679_v48 = vld [vmem:[#allocation56_spill] sm:$0xff] }
 0x299   : > { %1696 = vst.msk [vmem:[%s3455_s24 + $0x270] sm:$0xff] %vm299_vm0, %v1568_v20  ;;  %v1570_v28 = vmax.f32 %v1442_v19, 0.0  ;;  %v1571_v31 = vmax.f32 %v1443_v53, 0.0  ;;  %v1572_v34 = vmax.f32 %v1444_v57, 0.0  ;;  %v1573_v54 = vmax.f32 %v1445_v62, 0.0  ;;  %v4680_v53 = vld [vmem:[#allocation57_spill] sm:$0xff] }
 0x29a   : > { %1697 = vst.msk [vmem:[%s3455_s24 + $0x278] sm:$0xff] %vm299_vm0, %v1569_v50  ;;  %v1574_v13 = vmax.f32 %v1446_v6, 0.0  ;;  %v1575_v2 = vmax.f32 %v1447_v22, 0.0  ;;  %v1576_v42 = vmax.f32 %v1448_v23, 0.0  ;;  %v1577_v7 = vmax.f32 %v1449_v25, 0.0  ;;  %v4681_v62 = vld [vmem:[#allocation58_spill] sm:$0xff] }
 0x29b   : > { %1698 = vst.msk [vmem:[%s3455_s24 + $0x280] sm:$0xff] %vm299_vm0, %v1570_v28  ;;  %v1186_v0 = vmul.f32 %v3415_v33, %v4669_v10  ;;  %v1187_v24 = vmul.f32 %v3415_v33, %v4670_v38  ;;  %v1188_v1 = vmul.f32 %v3415_v33, %v4671_v47  ;;  %v1189_v61 = vmul.f32 %v3415_v33, %v4672_v41  ;;  %v4682_v22 = vld [vmem:[#allocation59_spill] sm:$0xff]  ;;  %v4683_v25 = vld [vmem:[#allocation60_spill] sm:$0xff] }
 0x29c   : > { %1699 = vst.msk [vmem:[%s3455_s24 + $0x288] sm:$0xff] %vm299_vm0, %v1571_v31  ;;  %v1190_v8 = vmul.f32 %v3415_v33, %v4673_v4  ;;  %v1191_v32 = vmul.f32 %v3415_v33, %v4674_v12  ;;  %v1192_v21 = vmul.f32 %v3415_v33, %v4675_v17  ;;  %v1193_v30 = vmul.f32 %v3415_v33, %v4676_v26  ;;  %v4684_v31 = vld [vmem:[#allocation61_spill] sm:$0xff] }
 0x29d   : > { %1700 = vst.msk [vmem:[%s3455_s24 + $0x290] sm:$0xff] %vm299_vm0, %v1572_v34  ;;  %v1318_v3 = vmul.f32 %v3413_v56, %v1186_v0  ;;  %v1319_v14 = vmul.f32 %v3413_v56, %v1187_v24  ;;  %v1320_v59 = vmul.f32 %v3413_v56, %v1188_v1  ;;  %v1321_v20 = vmul.f32 %v3413_v56, %v1189_v61 }
 0x29e   : > { %1701 = vst.msk [vmem:[%s3455_s24 + $0x298] sm:$0xff] %vm299_vm0, %v1573_v54  ;;  %v1322_v50 = vmul.f32 %v3413_v56, %v1190_v8  ;;  %v1323_v51 = vmul.f32 %v3413_v56, %v1191_v32  ;;  %v1324_v15 = vmul.f32 %v3413_v56, %v1192_v21  ;;  %v1325_v11 = vmul.f32 %v3413_v56, %v1193_v30 }
 0x29f   : > { %1702 = vst.msk [vmem:[%s3455_s24 + $0x2a0] sm:$0xff] %vm299_vm0, %v1574_v13  ;;  %v1450_v29 = vadd.f32 %v3422_v27, %v1318_v3  ;;  %v1451_v63 = vadd.f32 %v3422_v27, %v1319_v14  ;;  %v1452_v5 = vadd.f32 %v3422_v27, %v1320_v59  ;;  %v1453_v18 = vadd.f32 %v3422_v27, %v1321_v20  ;;  %v4685_v59 = vld [vmem:[#allocation62_spill] sm:$0xff]  ;;  %v4686_v20 = vld [vmem:[#allocation63_spill] sm:$0xff] }
 0x2a0   : > { %1703 = vst.msk [vmem:[%s3455_s24 + $0x2a8] sm:$0xff] %vm299_vm0, %v1575_v2  ;;  %v1454_v37 = vadd.f32 %v3422_v27, %v1322_v50  ;;  %v1455_v40 = vadd.f32 %v3422_v27, %v1323_v51  ;;  %v1456_v43 = vadd.f32 %v3422_v27, %v1324_v15  ;;  %v1457_v46 = vadd.f32 %v3422_v27, %v1325_v11  ;;  %v4687_v51 = vld [vmem:[#allocation64_spill] sm:$0xff]  ;;  %v4688_v11 = vld [vmem:[#allocation65_spill] sm:$0xff] }
 0x2a1   : > { %1704 = vst.msk [vmem:[%s3455_s24 + $0x2b0] sm:$0xff] %vm299_vm0, %v1576_v42  ;;  %v1578_v9 = vmax.f32 %v1450_v29, 0.0  ;;  %v1579_v49 = vmax.f32 %v1451_v63, 0.0  ;;  %v1580_v52 = vmax.f32 %v1452_v5, 0.0  ;;  %v1581_v55 = vmax.f32 %v1453_v18, 0.0  ;;  %v4689_v63 = vld [vmem:[#allocation66_spill] sm:$0xff] }
 0x2a2   : > { %1705 = vst.msk [vmem:[%s3455_s24 + $0x2b8] sm:$0xff] %vm299_vm0, %v1577_v7  ;;  %v1582_v58 = vmax.f32 %v1454_v37, 0.0  ;;  %v1583_v60 = vmax.f32 %v1455_v40, 0.0  ;;  %v1584_v45 = vmax.f32 %v1456_v43, 0.0  ;;  %v1585_v36 = vmax.f32 %v1457_v46, 0.0  ;;  %v4690_v18 = vld [vmem:[#allocation67_spill] sm:$0xff] }
 0x2a3   : > { %1706 = vst.msk [vmem:[%s3455_s24 + $0x2c0] sm:$0xff] %vm299_vm0, %v1578_v9  ;;  %v1194_v35 = vmul.f32 %v3415_v33, %v4677_v16  ;;  %v1195_v44 = vmul.f32 %v3415_v33, %v4678_v39  ;;  %v1196_v19 = vmul.f32 %v3415_v33, %v4679_v48  ;;  %v1197_v57 = vmul.f32 %v3415_v33, %v4680_v53  ;;  %v4691_v40 = vld [vmem:[#allocation68_spill] sm:$0xff]  ;;  %v4692_v46 = vld [vmem:[#allocation69_spill] sm:$0xff]  ;;  %v4079_v39 = vld [vmem:[%s4212_s2] ss:$0 sm:$0xff] }
 0x2a4   : > { %1707 = vst.msk [vmem:[%s3455_s24 + $0x2c8] sm:$0xff] %vm299_vm0, %v1579_v49  ;;  %v1198_v6 = vmul.f32 %v3415_v33, %v4681_v62  ;;  %v1199_v23 = vmul.f32 %v3415_v33, %v4682_v22  ;;  %v1200_v28 = vmul.f32 %v3415_v33, %v4683_v25  ;;  %v1201_v34 = vmul.f32 %v3415_v33, %v4684_v31  ;;  %v4062_v49 = vld [vmem:[%s4211_s1] ss:$0 sm:$0xff] }
 0x2a5   : > { %1708 = vst.msk [vmem:[%s3455_s24 + $0x2d0] sm:$0xff] %vm299_vm0, %v1580_v52  ;;  %v1326_v54 = vmul.f32 %v3413_v56, %v1194_v35  ;;  %v1327_v13 = vmul.f32 %v3413_v56, %v1195_v44  ;;  %v1328_v2 = vmul.f32 %v3413_v56, %v1196_v19  ;;  %v1329_v42 = vmul.f32 %v3413_v56, %v1197_v57 }
 0x2a6   : > { %1709 = vst.msk [vmem:[%s3455_s24 + $0x2d8] sm:$0xff] %vm299_vm0, %v1581_v55  ;;  %v1330_v7 = vmul.f32 %v3413_v56, %v1198_v6  ;;  %v1331_v10 = vmul.f32 %v3413_v56, %v1199_v23  ;;  %v1332_v0 = vmul.f32 %v3413_v56, %v1200_v28  ;;  %v1333_v38 = vmul.f32 %v3413_v56, %v1201_v34 }
 0x2a7   : > { %1710 = vst.msk [vmem:[%s3455_s24 + $0x2e0] sm:$0xff] %vm299_vm0, %v1582_v58  ;;  %v1458_v24 = vadd.f32 %v3422_v27, %v1326_v54  ;;  %v1459_v47 = vadd.f32 %v3422_v27, %v1327_v13  ;;  %v1460_v1 = vadd.f32 %v3422_v27, %v1328_v2  ;;  %v1461_v41 = vadd.f32 %v3422_v27, %v1329_v42  ;;  %v4693_v42 = vld [vmem:[#allocation70_spill] sm:$0xff] }
 0x2a8   : > { %1711 = vst.msk [vmem:[%s3455_s24 + $0x2e8] sm:$0xff] %vm299_vm0, %v1583_v60  ;;  %v1462_v61 = vadd.f32 %v3422_v27, %v1330_v7  ;;  %v1463_v4 = vadd.f32 %v3422_v27, %v1331_v10  ;;  %v1464_v56 = vadd.f32 %v3422_v27, %v1332_v0  ;;  %v1465_v8 = vadd.f32 %v3422_v27, %v1333_v38  ;;  %v4694_v10 = vld [vmem:[#allocation71_spill] sm:$0xff]  ;;  %v4695_v38 = vld [vmem:[#allocation72_spill] sm:$0xff] }
 0x2a9   : > { %1712 = vst.msk [vmem:[%s3455_s24 + $0x2f0] sm:$0xff] %vm299_vm0, %v1584_v45  ;;  %v1586_v12 = vmax.f32 %v1458_v24, 0.0  ;;  %v1587_v32 = vmax.f32 %v1459_v47, 0.0  ;;  %v1588_v17 = vmax.f32 %v1460_v1, 0.0  ;;  %v1589_v21 = vmax.f32 %v1461_v41, 0.0  ;;  %v4696_v47 = vld [vmem:[#allocation73_spill] sm:$0xff] }
 0x2aa   : > { %1713 = vst.msk [vmem:[%s3455_s24 + $0x2f8] sm:$0xff] %vm299_vm0, %v1585_v36  ;;  %v1590_v26 = vmax.f32 %v1462_v61, 0.0  ;;  %v1591_v30 = vmax.f32 %v1463_v4, 0.0  ;;  %v1592_v3 = vmax.f32 %v1464_v56, 0.0  ;;  %v1593_v14 = vmax.f32 %v1465_v8, 0.0  ;;  %v4697_v41 = vld [vmem:[#allocation74_spill] sm:$0xff] }
 0x2ab   : > { %1714 = vst.msk [vmem:[%s3455_s24 + $0x300] sm:$0xff] %vm299_vm0, %v1586_v12  ;;  %v1202_v27 = vmul.f32 %v3415_v33, %v4685_v59  ;;  %v1203_v50 = vmul.f32 %v3415_v33, %v4686_v20  ;;  %v1204_v15 = vmul.f32 %v3415_v33, %v4687_v51  ;;  %v1205_v29 = vmul.f32 %v3415_v33, %v4688_v11  ;;  %v4698_v4 = vld [vmem:[#allocation75_spill] sm:$0xff]  ;;  %v4699_v8 = vld [vmem:[#allocation76_spill] sm:$0xff] }
 0x2ac   : > { %1715 = vst.msk [vmem:[%s3455_s24 + $0x308] sm:$0xff] %vm299_vm0, %v1587_v32  ;;  %v1206_v5 = vmul.f32 %v3415_v33, %v4689_v63  ;;  %v1207_v37 = vmul.f32 %v3415_v33, %v4690_v18  ;;  %v1208_v43 = vmul.f32 %v3415_v33, %v4691_v40  ;;  %v1209_v9 = vmul.f32 %v3415_v33, %v4692_v46  ;;  %v4700_v32 = vld [vmem:[#allocation77_spill] sm:$0xff] }
 0x2ad   : > { %1716 = vst.msk [vmem:[%s3455_s24 + $0x310] sm:$0xff] %vm299_vm0, %v1588_v17  ;;  %v1334_v52 = vmul.f32 %v4062_v49, %v1202_v27  ;;  %v1335_v55 = vmul.f32 %v4062_v49, %v1203_v50  ;;  %v1336_v58 = vmul.f32 %v4062_v49, %v1204_v15  ;;  %v1337_v60 = vmul.f32 %v4062_v49, %v1205_v29 }
 0x2ae   : > { %1717 = vst.msk [vmem:[%s3455_s24 + $0x318] sm:$0xff] %vm299_vm0, %v1589_v21  ;;  %v1338_v45 = vmul.f32 %v4062_v49, %v1206_v5  ;;  %v1339_v36 = vmul.f32 %v4062_v49, %v1207_v37  ;;  %v1340_v16 = vmul.f32 %v4062_v49, %v1208_v43  ;;  %v1341_v35 = vmul.f32 %v4062_v49, %v1209_v9 }
 0x2af   : > { %1718 = vst.msk [vmem:[%s3455_s24 + $0x320] sm:$0xff] %vm299_vm0, %v1590_v26  ;;  %v1466_v44 = vadd.f32 %v4079_v39, %v1334_v52  ;;  %v1467_v48 = vadd.f32 %v4079_v39, %v1335_v55  ;;  %v1468_v19 = vadd.f32 %v4079_v39, %v1336_v58  ;;  %v1469_v53 = vadd.f32 %v4079_v39, %v1337_v60  ;;  %v4701_v60 = vld [vmem:[#allocation78_spill] sm:$0xff] }
 0x2b0   : > { %1719 = vst.msk [vmem:[%s3455_s24 + $0x328] sm:$0xff] %vm299_vm0, %v1591_v30  ;;  %v1470_v57 = vadd.f32 %v4079_v39, %v1338_v45  ;;  %v1471_v62 = vadd.f32 %v4079_v39, %v1339_v36  ;;  %v1472_v6 = vadd.f32 %v4079_v39, %v1340_v16  ;;  %v1473_v22 = vadd.f32 %v4079_v39, %v1341_v35  ;;  %v4702_v36 = vld [vmem:[#allocation79_spill] sm:$0xff]  ;;  %v4703_v35 = vld [vmem:[#allocation80_spill] sm:$0xff] }
 0x2b1   : > { %1720 = vst.msk [vmem:[%s3455_s24 + $0x330] sm:$0xff] %vm299_vm0, %v1592_v3  ;;  %v1594_v23 = vmax.f32 %v1466_v44, 0.0  ;;  %v1595_v25 = vmax.f32 %v1467_v48, 0.0  ;;  %v1596_v28 = vmax.f32 %v1468_v19, 0.0  ;;  %v1597_v31 = vmax.f32 %v1469_v53, 0.0  ;;  %v4704_v48 = vld [vmem:[#allocation83_spill] sm:$0xff] }
 0x2b2   : > { %1721 = vst.msk [vmem:[%s3455_s24 + $0x338] sm:$0xff] %vm299_vm0, %v1593_v14  ;;  %v1598_v34 = vmax.f32 %v1470_v57, 0.0  ;;  %v1599_v54 = vmax.f32 %v1471_v62, 0.0  ;;  %v1600_v13 = vmax.f32 %v1472_v6, 0.0  ;;  %v1601_v2 = vmax.f32 %v1473_v22, 0.0  ;;  %v4705_v53 = vld [vmem:[#allocation84_spill] sm:$0xff] }
 0x2b3   : > { %1722 = vst.msk [vmem:[%s3455_s24 + $0x340] sm:$0xff] %vm299_vm0, %v1594_v23  ;;  %v1210_v7 = vmul.f32 %v3415_v33, %v4693_v42  ;;  %v1211_v0 = vmul.f32 %v3415_v33, %v4694_v10  ;;  %v1212_v24 = vmul.f32 %v3415_v33, %v4695_v38  ;;  %v1213_v1 = vmul.f32 %v3415_v33, %v4696_v47  ;;  %v4706_v62 = vld [vmem:[#allocation85_spill] sm:$0xff]  ;;  %v4707_v22 = vld [vmem:[#allocation86_spill] sm:$0xff] }
 0x2b4   : > { %1723 = vst.msk [vmem:[%s3455_s24 + $0x348] sm:$0xff] %vm299_vm0, %v1595_v25  ;;  %v1214_v61 = vmul.f32 %v3415_v33, %v4697_v41  ;;  %v1215_v56 = vmul.f32 %v3415_v33, %v4698_v4  ;;  %v1216_v12 = vmul.f32 %v3415_v33, %v4699_v8  ;;  %v1217_v17 = vmul.f32 %v3415_v33, %v4700_v32  ;;  %v4708_v25 = vld [vmem:[#allocation87_spill] sm:$0xff] }
 0x2b5   : > { %1724 = vst.msk [vmem:[%s3455_s24 + $0x350] sm:$0xff] %vm299_vm0, %v1596_v28  ;;  %v1342_v21 = vmul.f32 %v4062_v49, %v1210_v7  ;;  %v1343_v26 = vmul.f32 %v4062_v49, %v1211_v0  ;;  %v1344_v30 = vmul.f32 %v4062_v49, %v1212_v24  ;;  %v1345_v3 = vmul.f32 %v4062_v49, %v1213_v1 }
 0x2b6   : > { %1725 = vst.msk [vmem:[%s3455_s24 + $0x358] sm:$0xff] %vm299_vm0, %v1597_v31  ;;  %v1346_v14 = vmul.f32 %v4062_v49, %v1214_v61  ;;  %v1347_v59 = vmul.f32 %v4062_v49, %v1215_v56  ;;  %v1348_v27 = vmul.f32 %v4062_v49, %v1216_v12  ;;  %v1349_v20 = vmul.f32 %v4062_v49, %v1217_v17 }
 0x2b7   : > { %1726 = vst.msk [vmem:[%s3455_s24 + $0x360] sm:$0xff] %vm299_vm0, %v1598_v34  ;;  %v1474_v50 = vadd.f32 %v4079_v39, %v1342_v21  ;;  %v1475_v51 = vadd.f32 %v4079_v39, %v1343_v26  ;;  %v1476_v15 = vadd.f32 %v4079_v39, %v1344_v30  ;;  %v1477_v11 = vadd.f32 %v4079_v39, %v1345_v3 }
 0x2b8   : > { %1727 = vst.msk [vmem:[%s3455_s24 + $0x368] sm:$0xff] %vm299_vm0, %v1599_v54  ;;  %v1478_v29 = vadd.f32 %v4079_v39, %v1346_v14  ;;  %v1479_v63 = vadd.f32 %v4079_v39, %v1347_v59  ;;  %v1480_v5 = vadd.f32 %v4079_v39, %v1348_v27  ;;  %v1481_v18 = vadd.f32 %v4079_v39, %v1349_v20 }
 0x2b9   : > { %1728 = vst.msk [vmem:[%s3455_s24 + $0x370] sm:$0xff] %vm299_vm0, %v1600_v13  ;;  %v1602_v37 = vmax.f32 %v1474_v50, 0.0  ;;  %v1603_v40 = vmax.f32 %v1475_v51, 0.0  ;;  %v1604_v43 = vmax.f32 %v1476_v15, 0.0  ;;  %v1605_v46 = vmax.f32 %v1477_v11, 0.0 }
 0x2ba   : > { %1729 = vst.msk [vmem:[%s3455_s24 + $0x378] sm:$0xff] %vm299_vm0, %v1601_v2  ;;  %v1606_v9 = vmax.f32 %v1478_v29, 0.0  ;;  %v1607_v52 = vmax.f32 %v1479_v63, 0.0  ;;  %v1608_v55 = vmax.f32 %v1480_v5, 0.0  ;;  %v1609_v58 = vmax.f32 %v1481_v18, 0.0 }
 0x2bb   : > { %1730 = vst.msk [vmem:[%s3455_s24 + $0x380] sm:$0xff] %vm299_vm0, %v1602_v37  ;;  %v1218_v45 = vmul.f32 %v3415_v33, %v4701_v60  ;;  %v1219_v16 = vmul.f32 %v3415_v33, %v4702_v36  ;;  %v1220_v44 = vmul.f32 %v3415_v33, %v4703_v35  ;;  %v1221_v19 = vmul.f32 %v3415_v33, %v4704_v48 }
 0x2bc   : > { %1731 = vst.msk [vmem:[%s3455_s24 + $0x388] sm:$0xff] %vm299_vm0, %v1603_v40  ;;  %v1222_v57 = vmul.f32 %v3415_v33, %v4705_v53  ;;  %v1223_v6 = vmul.f32 %v3415_v33, %v4706_v62  ;;  %v1224_v23 = vmul.f32 %v3415_v33, %v4707_v22  ;;  %v1225_v28 = vmul.f32 %v3415_v33, %v4708_v25 }
 0x2bd   : > { %1732 = vst.msk [vmem:[%s3455_s24 + $0x390] sm:$0xff] %vm299_vm0, %v1604_v43  ;;  %v1350_v31 = vmul.f32 %v4062_v49, %v1218_v45  ;;  %v1351_v34 = vmul.f32 %v4062_v49, %v1219_v16  ;;  %v1352_v54 = vmul.f32 %v4062_v49, %v1220_v44  ;;  %v1353_v13 = vmul.f32 %v4062_v49, %v1221_v19 }
 0x2be   : > { %1733 = vst.msk [vmem:[%s3455_s24 + $0x398] sm:$0xff] %vm299_vm0, %v1605_v46  ;;  %v1354_v2 = vmul.f32 %v4062_v49, %v1222_v57  ;;  %v1355_v42 = vmul.f32 %v4062_v49, %v1223_v6  ;;  %v1356_v33 = vmul.f32 %v4062_v49, %v1224_v23  ;;  %v1357_v7 = vmul.f32 %v4062_v49, %v1225_v28 }
 0x2bf   : > { %1734 = vst.msk [vmem:[%s3455_s24 + $0x3a0] sm:$0xff] %vm299_vm0, %v1606_v9  ;;  %v1482_v10 = vadd.f32 %v4079_v39, %v1350_v31  ;;  %v1483_v0 = vadd.f32 %v4079_v39, %v1351_v34  ;;  %v1484_v38 = vadd.f32 %v4079_v39, %v1352_v54  ;;  %v1485_v24 = vadd.f32 %v4079_v39, %v1353_v13 }
 0x2c0   : > { %1735 = vst.msk [vmem:[%s3455_s24 + $0x3a8] sm:$0xff] %vm299_vm0, %v1607_v52  ;;  %v1486_v47 = vadd.f32 %v4079_v39, %v1354_v2  ;;  %v1487_v49 = vadd.f32 %v4079_v39, %v1355_v42  ;;  %v1488_v4 = vadd.f32 %v4079_v39, %v1356_v33  ;;  %v1489_v8 = vadd.f32 %v4079_v39, %v1357_v7 }
 0x2c1   : > { %1736 = vst.msk [vmem:[%s3455_s24 + $0x3b0] sm:$0xff] %vm299_vm0, %v1608_v55  ;;  %v1610_v1 = vmax.f32 %v1482_v10, 0.0  ;;  %v1611_v41 = vmax.f32 %v1483_v0, 0.0  ;;  %v1612_v61 = vmax.f32 %v1484_v38, 0.0  ;;  %v1613_v56 = vmax.f32 %v1485_v24, 0.0 }
 0x2c2   : > { %1737 = vst.msk [vmem:[%s3455_s24 + $0x3b8] sm:$0xff] %vm299_vm0, %v1609_v58  ;;  %v1614_v12 = vmax.f32 %v1486_v47, 0.0  ;;  %v1615_v32 = vmax.f32 %v1487_v49, 0.0  ;;  %v1616_v17 = vmax.f32 %v1488_v4, 0.0  ;;  %v1617_v21 = vmax.f32 %v1489_v8, 0.0 }
 0x2c3   : > { %1738 = vst.msk [vmem:[%s3455_s24 + $0x3c0] sm:$0xff] %vm299_vm0, %v1610_v1 }
 0x2c4   : > { %1739 = vst.msk [vmem:[%s3455_s24 + $0x3c8] sm:$0xff] %vm299_vm0, %v1611_v41 }
 0x2c5   : > { %1740 = vst.msk [vmem:[%s3455_s24 + $0x3d0] sm:$0xff] %vm299_vm0, %v1612_v61 }
 0x2c6   : > { %1741 = vst.msk [vmem:[%s3455_s24 + $0x3d8] sm:$0xff] %vm299_vm0, %v1613_v56 }
 0x2c7   : > { %1742 = vst.msk [vmem:[%s3455_s24 + $0x3e0] sm:$0xff] %vm299_vm0, %v1614_v12 }
 0x2c8   : > { %1743 = vst.msk [vmem:[%s3455_s24 + $0x3e8] sm:$0xff] %vm299_vm0, %v1615_v32 }
 0x2c9   : > { %1744 = vst.msk [vmem:[%s3455_s24 + $0x3f0] sm:$0xff] %vm299_vm0, %v1616_v17 }
 0x2ca   : > { %1745 = vst.msk [vmem:[%s3455_s24 + $0x3f8] sm:$0xff] %vm299_vm0, %v1617_v21 }
 0x2cb PF: > { %s13_s12 = sadd.s32 1, %s1842_s12  }
 0x2cc   : > { %p10_p4 = scmp.ge.s32.totalorder %s13_s12, 4  }
 0x2ce   :  { %12 = sbr.rel (!%p10_p4) target bundleno = 1 (0x1), region = 62 }

// kernel: generator_fc_forward.53
= control target key start
LH: loop header
LB: loop body
LE: loop exit
PB: predicated region body
PF: predicated region fallthrough
CT: control target
= control target key end

     0   :  { %s1112_s12 = smov 0   ;;  %s1114_s13 = smov 0   ;;  %s1265_s0 = inlined_call_operand.vmem [shape: bf16[512,128], index: 0, kind: input, shape index: {}]   ;;  %s1266_s1 = inlined_call_operand.vmem [shape: bf16[128,128], index: 1, kind: input, shape index: {}]   ;;  %s1267_s2 = inlined_call_operand.vmem [shape: f32[1,128], index: 2, kind: input, shape index: {}]   ;;  %s1268_s3 = inlined_call_operand.vmem [shape: f32[512,128], index: 3, kind: output, shape index: {}]  }
   0x1   :  { %s1116_s14 = smov 0  }
   0x2 LB: > { %s32_s15 = sadd.s32 1, %s1086_s13  ;;  %p892_p0 = scmp.ge.s32.totalorder %s1090_s14, 1  ;;  %s1090_s14 = sphi %s1116_s14, %s13_s14   ;;  %s1086_s13 = sphi %s1114_s13, %s1270_s13   ;;  %s1082_s12 = sphi %s1112_s12, %s1269_s12  }
   0x3   : > { %p34_p1 = scmp.ge.s32.totalorder %s32_s15, 2  ;;  %p188_p2 = scmp.lt.s32.totalorder %s1090_s14, 3 }
   0x5   : > { %s1272_s15 = smov (%p34_p1, %s32_s15), 0  ;;  %p189_p3 = pnand %p892_p0, %p188_p2 }
   0x6   : > { %s893_s24 = sshll.u32 (!%p189_p3), %s1082_s12, 5 }
   0x7   : > { %192 = sbr.rel (%p189_p3) target bundleno = 237 (0xed), region = 32  ;;  %p230_p4 = scmp.lt.s32.totalorder (!%p189_p3), %s893_s24, 63 }
   0xc   : > { %v1018_v0 = vld [vmem:[%s1266_s1 + $0x38] sm:$0xff]  ;;  %v1017_v1 = vld [vmem:[%s1266_s1 + $0x30] sm:$0xff]  ;;  %v1016_v2 = vld [vmem:[%s1266_s1 + $0x28] sm:$0xff]  ;;  %s1274_s24 = smov (!%p230_p4, %s893_s24), 63 }
   0xd   : > { %519 = vmatpush.bf16.msra.mxu0 %v1018_v0  ;;  %1019 = vmatpush.bf16.msra.mxu1 %v1018_v0  ;;  %v1015_v3 = vld [vmem:[%s1266_s1 + $0x20] sm:$0xff]  ;;  %v1014_v4 = vld [vmem:[%s1266_s1 + $0x18] sm:$0xff]  ;;  %v1013_v5 = vld [vmem:[%s1266_s1 + $0x10] sm:$0xff]  ;;  %s894_s4 = sshll.u32 %s1274_s24, 2  ;;  %s896_s10 = sshll.u32 %s1274_s24, 3 }
   0xe   : > { %1020 = vmatpush.bf16.msra.mxu2 %v1018_v0  ;;  %1021 = vmatpush.bf16.msra.mxu3 %v1018_v0  ;;  %v1012_v6 = vld [vmem:[%s1266_s1 + $0x8] sm:$0xff]  ;;  %v1011_v7 = vld [vmem:[%s1266_s1] sm:$0xff]  ;;  %s1163_s9 = scalar_lea.vmem %s1265_s0, %s894_s4  ;;  %s1190_s18 = scalar_lea.vmem %s1268_s3, %s896_s10 }
   0xf   : > { %v995_v8 = vld [vmem:[%s1163_s9] sm:$0xff]  ;;  %v996_v12 = vld [vmem:[%s1163_s9 + $0x8] sm:$0xff]  ;;  %v997_v16 = vld [vmem:[%s1163_s9 + $0x10] sm:$0xff] }
  0x10   : > { %v999_v9 = vld [vmem:[%s1163_s9 + $0x20] sm:$0xff]  ;;  %v1000_v13 = vld [vmem:[%s1163_s9 + $0x28] sm:$0xff]  ;;  %v1001_v17 = vld [vmem:[%s1163_s9 + $0x30] sm:$0xff] }
  0x11   : > { %520 = vmatpush.bf16.msra.mxu0 %v1017_v1  ;;  %1022 = vmatpush.bf16.msra.mxu1 %v1017_v1  ;;  %v1003_v10 = vld [vmem:[%s1163_s9 + $0x40] sm:$0xff]  ;;  %v1004_v14 = vld [vmem:[%s1163_s9 + $0x48] sm:$0xff]  ;;  %v1005_v18 = vld [vmem:[%s1163_s9 + $0x50] sm:$0xff] }
  0x12   : > { %1023 = vmatpush.bf16.msra.mxu2 %v1017_v1  ;;  %1024 = vmatpush.bf16.msra.mxu3 %v1017_v1  ;;  %v1007_v11 = vld [vmem:[%s1163_s9 + $0x60] sm:$0xff]  ;;  %v1008_v15 = vld [vmem:[%s1163_s9 + $0x68] sm:$0xff]  ;;  %v1009_v19 = vld [vmem:[%s1163_s9 + $0x70] sm:$0xff] }
  0x13   : > { %v998_v20 = vld [vmem:[%s1163_s9 + $0x18] sm:$0xff]  ;;  %v1185_v24 = vld [vmem:[%s1267_s2] ss:$0 sm:$0xff] }
  0x14   : > { %v1002_v21 = vld [vmem:[%s1163_s9 + $0x38] sm:$0xff] }
  0x15   : > { %521 = vmatpush.bf16.msra.mxu0 %v1016_v2  ;;  %1025 = vmatpush.bf16.msra.mxu1 %v1016_v2  ;;  %v1006_v22 = vld [vmem:[%s1163_s9 + $0x58] sm:$0xff] }
  0x16   : > { %1026 = vmatpush.bf16.msra.mxu2 %v1016_v2  ;;  %1027 = vmatpush.bf16.msra.mxu3 %v1016_v2  ;;  %v1010_v23 = vld [vmem:[%s1163_s9 + $0x78] sm:$0xff] }
  0x19   : > { %522 = vmatpush.bf16.msra.mxu0 %v1015_v3  ;;  %1028 = vmatpush.bf16.msra.mxu1 %v1015_v3 }
  0x1a   : > { %1029 = vmatpush.bf16.msra.mxu2 %v1015_v3  ;;  %1030 = vmatpush.bf16.msra.mxu3 %v1015_v3 }
  0x1d   : > { %523 = vmatpush.bf16.msra.mxu0 %v1014_v4  ;;  %1031 = vmatpush.bf16.msra.mxu1 %v1014_v4 }
  0x1e   : > { %1032 = vmatpush.bf16.msra.mxu2 %v1014_v4  ;;  %1033 = vmatpush.bf16.msra.mxu3 %v1014_v4 }
  0x21   : > { %524 = vmatpush.bf16.msra.mxu0 %v1013_v5  ;;  %1034 = vmatpush.bf16.msra.mxu1 %v1013_v5 }
  0x22   : > { %1035 = vmatpush.bf16.msra.mxu2 %v1013_v5  ;;  %1036 = vmatpush.bf16.msra.mxu3 %v1013_v5 }
  0x25   : > { %525 = vmatpush.bf16.msra.mxu0 %v1012_v6  ;;  %1037 = vmatpush.bf16.msra.mxu1 %v1012_v6 }
  0x26   : > { %1038 = vmatpush.bf16.msra.mxu2 %v1012_v6  ;;  %1039 = vmatpush.bf16.msra.mxu3 %v1012_v6 }
  0x29   : > { %526 = vmatpush.bf16.msra.mxu0 %v1011_v7  ;;  %1040 = vmatpush.bf16.msra.mxu1 %v1011_v7 }
  0x2a   : > { %1041 = vmatpush.bf16.msra.mxu2 %v1011_v7  ;;  %1042 = vmatpush.bf16.msra.mxu3 %v1011_v7 }
  0x2c   : > { %527 = vmatmul.bf16.vlgmr.msra.gmra.mxu0 %v995_v8  ;;  %547 = vmatmul.bf16.vlgmr.msra.gmra.mxu1 %v999_v9 }
  0x2d   : > { %567 = vmatmul.bf16.vlgmr.msra.gmra.mxu2 %v1003_v10  ;;  %587 = vmatmul.bf16.vlgmr.msra.gmra.mxu3 %v1007_v11 }
  0x3c   : > { %532 = vmatmul.bf16.gmra.mxu0 %v996_v12  ;;  %552 = vmatmul.bf16.gmra.mxu1 %v1000_v13 }
  0x3d   : > { %572 = vmatmul.bf16.gmra.mxu2 %v1004_v14  ;;  %592 = vmatmul.bf16.gmra.mxu3 %v1008_v15 }
  0x4c   : > { %537 = vmatmul.bf16.gmra.mxu0 %v997_v16  ;;  %557 = vmatmul.bf16.gmra.mxu1 %v1001_v17 }
  0x4d   : > { %577 = vmatmul.bf16.gmra.mxu2 %v1005_v18  ;;  %597 = vmatmul.bf16.gmra.mxu3 %v1009_v19 }
  0x5c   : > { %542 = vmatmul.bf16.gmra.mxu0 %v998_v20  ;;  %562 = vmatmul.bf16.gmra.mxu1 %v1002_v21 }
  0x5d   : > { %582 = vmatmul.bf16.gmra.mxu2 %v1006_v22  ;;  %602 = vmatmul.bf16.gmra.mxu3 %v1010_v23 }
  0xa9   : > { %v528_v25 = vpop.f32.mrf.mxu0  ;;  %v548_v26 = vpop.f32.mrf.mxu1 }
  0xaa   : > { %v711_v27 = vadd.f32 %v1185_v24, %v528_v25  ;;  %v719_v28 = vadd.f32 %v1185_v24, %v548_v26 }
  0xac   : > { %743 = vst [vmem:[%s1190_s18] sm:$0xff] %v711_v27 }
  0xad   : > { %751 = vst [vmem:[%s1190_s18 + $0x40] sm:$0xff] %v719_v28 }
  0xb0   : > { %v568_v29 = vpop.f32.mrf.mxu2  ;;  %v588_v30 = vpop.f32.mrf.mxu3 }
  0xb1   : > { %v727_v31 = vadd.f32 %v1185_v24, %v568_v29  ;;  %v735_v32 = vadd.f32 %v1185_v24, %v588_v30  ;;  %v530_v33 = vpop.f32.mrf.mxu0  ;;  %v550_v34 = vpop.f32.mrf.mxu1 }
  0xb2   : > { %v712_v35 = vadd.f32 %v1185_v24, %v530_v33  ;;  %v720_v36 = vadd.f32 %v1185_v24, %v550_v34 }
  0xb3   : > { %759 = vst [vmem:[%s1190_s18 + $0x80] sm:$0xff] %v727_v31 }
  0xb4   : > { %767 = vst [vmem:[%s1190_s18 + $0xc0] sm:$0xff] %v735_v32 }
  0xb5   : > { %744 = vst [vmem:[%s1190_s18 + $0x8] sm:$0xff] %v712_v35 }
  0xb6   : > { %752 = vst [vmem:[%s1190_s18 + $0x48] sm:$0xff] %v720_v36 }
  0xb8   : > { %v570_v37 = vpop.f32.mrf.mxu2  ;;  %v590_v38 = vpop.f32.mrf.mxu3 }
  0xb9   : > { %v728_v39 = vadd.f32 %v1185_v24, %v570_v37  ;;  %v736_v40 = vadd.f32 %v1185_v24, %v590_v38  ;;  %v533_v41 = vpop.f32.mrf.mxu0  ;;  %v553_v42 = vpop.f32.mrf.mxu1 }
  0xba   : > { %v713_v43 = vadd.f32 %v1185_v24, %v533_v41  ;;  %v721_v44 = vadd.f32 %v1185_v24, %v553_v42 }
  0xbb   : > { %760 = vst [vmem:[%s1190_s18 + $0x88] sm:$0xff] %v728_v39 }
  0xbc   : > { %768 = vst [vmem:[%s1190_s18 + $0xc8] sm:$0xff] %v736_v40 }
  0xbd   : > { %745 = vst [vmem:[%s1190_s18 + $0x10] sm:$0xff] %v713_v43 }
  0xbe   : > { %753 = vst [vmem:[%s1190_s18 + $0x50] sm:$0xff] %v721_v44 }
  0xc0   : > { %v573_v45 = vpop.f32.mrf.mxu2  ;;  %v593_v46 = vpop.f32.mrf.mxu3 }
  0xc1   : > { %v729_v47 = vadd.f32 %v1185_v24, %v573_v45  ;;  %v737_v48 = vadd.f32 %v1185_v24, %v593_v46  ;;  %v535_v49 = vpop.f32.mrf.mxu0  ;;  %v555_v50 = vpop.f32.mrf.mxu1 }
  0xc2   : > { %v714_v51 = vadd.f32 %v1185_v24, %v535_v49  ;;  %v722_v52 = vadd.f32 %v1185_v24, %v555_v50 }
  0xc3   : > { %761 = vst [vmem:[%s1190_s18 + $0x90] sm:$0xff] %v729_v47 }
  0xc4   : > { %769 = vst [vmem:[%s1190_s18 + $0xd0] sm:$0xff] %v737_v48 }
  0xc5   : > { %746 = vst [vmem:[%s1190_s18 + $0x18] sm:$0xff] %v714_v51 }
  0xc6   : > { %754 = vst [vmem:[%s1190_s18 + $0x58] sm:$0xff] %v722_v52 }
  0xc8   : > { %v575_v53 = vpop.f32.mrf.mxu2  ;;  %v595_v54 = vpop.f32.mrf.mxu3 }
  0xc9   : > { %v730_v55 = vadd.f32 %v1185_v24, %v575_v53  ;;  %v738_v56 = vadd.f32 %v1185_v24, %v595_v54  ;;  %v538_v57 = vpop.f32.mrf.mxu0  ;;  %v558_v58 = vpop.f32.mrf.mxu1 }
  0xca   : > { %v715_v59 = vadd.f32 %v1185_v24, %v538_v57  ;;  %v723_v60 = vadd.f32 %v1185_v24, %v558_v58 }
  0xcb   : > { %762 = vst [vmem:[%s1190_s18 + $0x98] sm:$0xff] %v730_v55 }
  0xcc   : > { %770 = vst [vmem:[%s1190_s18 + $0xd8] sm:$0xff] %v738_v56 }
  0xcd   : > { %747 = vst [vmem:[%s1190_s18 + $0x20] sm:$0xff] %v715_v59 }
  0xce   : > { %755 = vst [vmem:[%s1190_s18 + $0x60] sm:$0xff] %v723_v60 }
  0xd0   : > { %v578_v61 = vpop.f32.mrf.mxu2  ;;  %v598_v62 = vpop.f32.mrf.mxu3 }
  0xd1   : > { %v731_v63 = vadd.f32 %v1185_v24, %v578_v61  ;;  %v739_v0 = vadd.f32 %v1185_v24, %v598_v62  ;;  %v540_v1 = vpop.f32.mrf.mxu0  ;;  %v560_v2 = vpop.f32.mrf.mxu1 }
  0xd2   : > { %v716_v3 = vadd.f32 %v1185_v24, %v540_v1  ;;  %v724_v4 = vadd.f32 %v1185_v24, %v560_v2 }
  0xd3   : > { %763 = vst [vmem:[%s1190_s18 + $0xa0] sm:$0xff] %v731_v63 }
  0xd4   : > { %771 = vst [vmem:[%s1190_s18 + $0xe0] sm:$0xff] %v739_v0 }
  0xd5   : > { %748 = vst [vmem:[%s1190_s18 + $0x28] sm:$0xff] %v716_v3 }
  0xd6   : > { %756 = vst [vmem:[%s1190_s18 + $0x68] sm:$0xff] %v724_v4 }
  0xd8   : > { %v580_v5 = vpop.f32.mrf.mxu2  ;;  %v600_v6 = vpop.f32.mrf.mxu3 }
  0xd9   : > { %v732_v7 = vadd.f32 %v1185_v24, %v580_v5  ;;  %v740_v8 = vadd.f32 %v1185_v24, %v600_v6  ;;  %v543_v9 = vpop.f32.mrf.mxu0  ;;  %v563_v10 = vpop.f32.mrf.mxu1 }
  0xda   : > { %v717_v11 = vadd.f32 %v1185_v24, %v543_v9  ;;  %v725_v12 = vadd.f32 %v1185_v24, %v563_v10 }
  0xdb   : > { %764 = vst [vmem:[%s1190_s18 + $0xa8] sm:$0xff] %v732_v7 }
  0xdc   : > { %772 = vst [vmem:[%s1190_s18 + $0xe8] sm:$0xff] %v740_v8 }
  0xdd   : > { %749 = vst [vmem:[%s1190_s18 + $0x30] sm:$0xff] %v717_v11 }
  0xde   : > { %757 = vst [vmem:[%s1190_s18 + $0x70] sm:$0xff] %v725_v12 }
  0xe0   : > { %v583_v13 = vpop.f32.mrf.mxu2  ;;  %v603_v14 = vpop.f32.mrf.mxu3 }
  0xe1   : > { %v733_v15 = vadd.f32 %v1185_v24, %v583_v13  ;;  %v741_v16 = vadd.f32 %v1185_v24, %v603_v14  ;;  %v545_v17 = vpop.f32.mrf.mxu0  ;;  %v565_v18 = vpop.f32.mrf.mxu1 }
  0xe2   : > { %v718_v19 = vadd.f32 %v1185_v24, %v545_v17  ;;  %v726_v20 = vadd.f32 %v1185_v24, %v565_v18 }
  0xe3   : > { %765 = vst [vmem:[%s1190_s18 + $0xb0] sm:$0xff] %v733_v15 }
  0xe4   : > { %773 = vst [vmem:[%s1190_s18 + $0xf0] sm:$0xff] %v741_v16 }
  0xe5   : > { %750 = vst [vmem:[%s1190_s18 + $0x38] sm:$0xff] %v718_v19 }
  0xe6   : > { %758 = vst [vmem:[%s1190_s18 + $0x78] sm:$0xff] %v726_v20 }
  0xe8   : > { %v585_v21 = vpop.f32.mrf.mxu2  ;;  %v605_v22 = vpop.f32.mrf.mxu3 }
  0xe9   : > { %v734_v23 = vadd.f32 %v1185_v24, %v585_v21  ;;  %v742_v25 = vadd.f32 %v1185_v24, %v605_v22 }
  0xeb   : > { %766 = vst [vmem:[%s1190_s18 + $0xb8] sm:$0xff] %v734_v23 }
  0xec   : > { %774 = vst [vmem:[%s1190_s18 + $0xf8] sm:$0xff] %v742_v25 }
  0xed PF: > { %s13_s14 = sadd.s32 1, %s1090_s14   ;;  %s1269_s12 = smov %s1086_s13 }
  0xee   : > { %p10_p5 = scmp.ge.s32.totalorder %s13_s14, 4   ;;  %s1270_s13 = smov %s1272_s15 }
  0xf0   :  { %12 = sbr.rel (!%p10_p5) target bundleno = 2 (0x2), region = 76 }

// kernel: generator_fc_forward.54
= control target key start
LH: loop header
LB: loop body
LE: loop exit
PB: predicated region body
PF: predicated region fallthrough
CT: control target
= control target key end

     0   :  { %s706_s12 = smov 0   ;;  %s1328_s0 = inlined_call_operand.vmem [shape: f32[2,256,16], index: 0, kind: input, shape index: {}]   ;;  %s1329_s1 = inlined_call_operand.vmem [shape: f32[1,16], index: 1, kind: input, shape index: {}]   ;;  %s1330_s2 = inlined_call_operand.vmem [shape: f32[1,16], index: 2, kind: input, shape index: {}]   ;;  %s1331_s3 = inlined_call_operand.vmem [shape: f32[2,256,16], index: 3, kind: output, shape index: {}]  }
   0x1 LB: > { %s649_s13 = sadd.s32 4294967295, %s683_s12   ;;  %p653_p0 = scmp.ge.s32.totalorder %s683_s12, 1  ;;  %s683_s12 = sphi %s706_s12, %s13_s12  }
   0x2   : > { %p137_p1 = scmp.lt.s32.totalorder %s683_s12, 3 }
   0x4   : > { %p138_p2 = pnand %p653_p0, %p137_p1 }
   0x5   : > { %p161_p3 = scmp.lt.s32.totalorder (!%p138_p2), %s649_s13, 1 }
   0x6   : > { %141 = sbr.rel (%p138_p2) target bundleno = 233 (0xe9), region = 32 }
   0xb   : > { %s1333_s13 = smov (!%p161_p3, %s649_s13), 1  ;;  %vm203_vm0 = vcmask 130048  }
   0xc   : > { %s660_s14 = sshll.u32 %s1333_s13, 8 }
   0xd   : > { %s722_s17 = scalar_lea.vmem %s1328_s0, %s660_s14  ;;  %s1159_s24 = scalar_lea.vmem %s1331_s3, %s660_s14 }
   0xe   : > { %v725_v0 = vld [vmem:[%s722_s17] sm:$0xff]  ;;  %v728_v1 = vld [vmem:[%s722_s17 + $0x8] sm:$0xff]  ;;  %v731_v2 = vld [vmem:[%s722_s17 + $0x10] sm:$0xff] }
   0xf   : > { %v734_v3 = vld [vmem:[%s722_s17 + $0x18] sm:$0xff]  ;;  %v204_v4 = vsel %vm203_vm0, %v725_v0, 0.0  ;;  %v205_v5 = vsel %vm203_vm0, %v728_v1, 0.0  ;;  %v207_v6 = vsel %vm203_vm0, %v731_v2, 0.0  ;;  %v743_v7 = vld [vmem:[%s722_s17 + $0x20] sm:$0xff]  ;;  %v748_v10 = vld [vmem:[%s722_s17 + $0x28] sm:$0xff] }
  0x10   : > { %v206_v8 = vadd.f32 %v205_v5, %v204_v4  ;;  %v209_v9 = vsel %vm203_vm0, %v734_v3, 0.0  ;;  %v211_v12 = vsel %vm203_vm0, %v743_v7, 0.0  ;;  %v753_v13 = vld [vmem:[%s722_s17 + $0x30] sm:$0xff]  ;;  %v213_v15 = vsel %vm203_vm0, %v748_v10, 0.0  ;;  %v758_v16 = vld [vmem:[%s722_s17 + $0x38] sm:$0xff]  ;;  %v763_v19 = vld [vmem:[%s722_s17 + $0x40] sm:$0xff] }
  0x11   : > { %v215_v18 = vsel %vm203_vm0, %v753_v13, 0.0  ;;  %v217_v21 = vsel %vm203_vm0, %v758_v16, 0.0  ;;  %v768_v22 = vld [vmem:[%s722_s17 + $0x48] sm:$0xff]  ;;  %v219_v24 = vsel %vm203_vm0, %v763_v19, 0.0  ;;  %v773_v25 = vld [vmem:[%s722_s17 + $0x50] sm:$0xff]  ;;  %v778_v28 = vld [vmem:[%s722_s17 + $0x58] sm:$0xff] }
  0x12   : > { %v208_v11 = vadd.f32 %v207_v6, %v206_v8  ;;  %v221_v27 = vsel %vm203_vm0, %v768_v22, 0.0  ;;  %v223_v30 = vsel %vm203_vm0, %v773_v25, 0.0  ;;  %v783_v31 = vld [vmem:[%s722_s17 + $0x60] sm:$0xff]  ;;  %v225_v33 = vsel %vm203_vm0, %v778_v28, 0.0  ;;  %v788_v34 = vld [vmem:[%s722_s17 + $0x68] sm:$0xff]  ;;  %v793_v37 = vld [vmem:[%s722_s17 + $0x70] sm:$0xff] }
  0x13   : > { %v227_v36 = vsel %vm203_vm0, %v783_v31, 0.0  ;;  %v229_v39 = vsel %vm203_vm0, %v788_v34, 0.0  ;;  %v798_v40 = vld [vmem:[%s722_s17 + $0x78] sm:$0xff]  ;;  %v231_v42 = vsel %vm203_vm0, %v793_v37, 0.0  ;;  %v803_v43 = vld [vmem:[%s722_s17 + $0x80] sm:$0xff]  ;;  %v808_v46 = vld [vmem:[%s722_s17 + $0x88] sm:$0xff] }
  0x14   : > { %v210_v14 = vadd.f32 %v209_v9, %v208_v11  ;;  %v233_v45 = vsel %vm203_vm0, %v798_v40, 0.0  ;;  %v235_v48 = vsel %vm203_vm0, %v803_v43, 0.0  ;;  %v813_v49 = vld [vmem:[%s722_s17 + $0x90] sm:$0xff]  ;;  %v237_v51 = vsel %vm203_vm0, %v808_v46, 0.0  ;;  %v818_v52 = vld [vmem:[%s722_s17 + $0x98] sm:$0xff]  ;;  %v823_v55 = vld [vmem:[%s722_s17 + $0xa0] sm:$0xff] }
  0x15   : > { %v239_v54 = vsel %vm203_vm0, %v813_v49, 0.0  ;;  %v241_v57 = vsel %vm203_vm0, %v818_v52, 0.0  ;;  %v828_v58 = vld [vmem:[%s722_s17 + $0xa8] sm:$0xff]  ;;  %v243_v60 = vsel %vm203_vm0, %v823_v55, 0.0  ;;  %v833_v61 = vld [vmem:[%s722_s17 + $0xb0] sm:$0xff]  ;;  %v838_v4 = vld [vmem:[%s722_s17 + $0xb8] sm:$0xff] }
  0x16   : > { %v212_v17 = vadd.f32 %v211_v12, %v210_v14  ;;  %v245_v63 = vsel %vm203_vm0, %v828_v58, 0.0  ;;  %v247_v6 = vsel %vm203_vm0, %v833_v61, 0.0  ;;  %v843_v8 = vld [vmem:[%s722_s17 + $0xc0] sm:$0xff]  ;;  %v249_v11 = vsel %vm203_vm0, %v838_v4, 0.0  ;;  %v848_v12 = vld [vmem:[%s722_s17 + $0xc8] sm:$0xff] }
  0x18   : > { %v214_v20 = vadd.f32 %v213_v15, %v212_v17  ;;  %v251_v15 = vsel %vm203_vm0, %v843_v8, 0.0  ;;  %v853_v17 = vld [vmem:[%s722_s17 + $0xd0] sm:$0xff] }
  0x1a   : > { %v216_v23 = vadd.f32 %v215_v18, %v214_v20  ;;  %v253_v20 = vsel %vm203_vm0, %v848_v12, 0.0 }
  0x1c   : > { %v218_v26 = vadd.f32 %v217_v21, %v216_v23  ;;  %v858_v21 = vld [vmem:[%s722_s17 + $0xd8] sm:$0xff] }
  0x1e   : > { %v220_v29 = vadd.f32 %v219_v24, %v218_v26  ;;  %v255_v24 = vsel %vm203_vm0, %v853_v17, 0.0  ;;  %v863_v26 = vld [vmem:[%s722_s17 + $0xe0] sm:$0xff] }
  0x20   : > { %v222_v32 = vadd.f32 %v221_v27, %v220_v29  ;;  %v257_v29 = vsel %vm203_vm0, %v858_v21, 0.0 }
  0x22   : > { %v224_v35 = vadd.f32 %v223_v30, %v222_v32  ;;  %v868_v30 = vld [vmem:[%s722_s17 + $0xe8] sm:$0xff] }
  0x24   : > { %v226_v38 = vadd.f32 %v225_v33, %v224_v35  ;;  %v259_v33 = vsel %vm203_vm0, %v863_v26, 0.0  ;;  %v873_v35 = vld [vmem:[%s722_s17 + $0xf0] sm:$0xff] }
  0x26   : > { %v228_v41 = vadd.f32 %v227_v36, %v226_v38  ;;  %v685_v38 = vmov 256.0  }
  0x27   : > { %673 = vrcp.f32 %v685_v38 }
  0x28   : > { %v230_v44 = vadd.f32 %v229_v39, %v228_v41  ;;  %v261_v39 = vsel %vm203_vm0, %v868_v30, 0.0  ;;  %v878_v41 = vld [vmem:[%s722_s17 + $0xf8] sm:$0xff] }
  0x2a   : > { %v232_v47 = vadd.f32 %v231_v42, %v230_v44  ;;  %v263_v44 = vsel %vm203_vm0, %v873_v35, 0.0 }
  0x2c   : > { %v234_v50 = vadd.f32 %v233_v45, %v232_v47  ;;  %v265_v47 = vsel %vm203_vm0, %v878_v41, 0.0 }
  0x2e   : > { %v236_v53 = vadd.f32 %v235_v48, %v234_v50  ;;  %v674_v48 = vpop.eup %673 }
  0x2f   : > { %vm278_vm1 = vweird.f32 %v674_v48 }
  0x30   : > { %v238_v56 = vadd.f32 %v237_v51, %v236_v53  ;;  %v274_v53 = vmul.f32 256.0, %v674_v48 }
  0x32   : > { %v240_v59 = vadd.f32 %v239_v54, %v238_v56 }
  0x34   : > { %v242_v62 = vadd.f32 %v241_v57, %v240_v59  ;;  %v275_v57 = vsub.f32 1.0, %v274_v53 }
  0x36   : > { %v244_v5 = vadd.f32 %v243_v60, %v242_v62  ;;  %v276_v62 = vmul.f32 %v674_v48, %v275_v57 }
  0x38   : > { %v246_v9 = vadd.f32 %v245_v63, %v244_v5  ;;  %v277_v5 = vadd.f32 %v674_v48, %v276_v62 }
  0x3a   : > { %v248_v14 = vadd.f32 %v247_v6, %v246_v9  ;;  %v884_v9 = vsel %vm278_vm1, %v674_v48, %v277_v5 }
  0x3c   : > { %v250_v18 = vadd.f32 %v249_v11, %v248_v14 }
  0x3e   : > { %v252_v23 = vadd.f32 %v251_v15, %v250_v18 }
  0x40   : > { %v254_v27 = vadd.f32 %v253_v20, %v252_v23 }
  0x42   : > { %v256_v32 = vadd.f32 %v255_v24, %v254_v27 }
  0x44   : > { %v258_v36 = vadd.f32 %v257_v29, %v256_v32 }
  0x46   : > { %v260_v42 = vadd.f32 %v259_v33, %v258_v36 }
  0x48   : > { %v262_v45 = vadd.f32 %v261_v39, %v260_v42 }
  0x4a   : > { %v264_v50 = vadd.f32 %v263_v44, %v262_v45 }
  0x4c   : > { %v266_v51 = vadd.f32 %v265_v47, %v264_v50 }
  0x4e   : > { %v267_v54 = vrot.slane %v266_v51, 4 }
  0x50   : > { %v268_v56 = vadd.f32 %v267_v54, %v266_v51 }
  0x52   : > { %v269_v59 = vrot.slane %v268_v56, 2 }
  0x54   : > { %v270_v60 = vadd.f32 %v269_v59, %v268_v56 }
  0x56   : > { %v271_v63 = vrot.slane %v270_v60, 1 }
  0x58   : > { %v272_v6 = vadd.f32 %v271_v63, %v270_v60 }
  0x5a   : > { %v887_v11 = vmul.f32 %v884_v9, %v272_v6 }
  0x5c   : > { %v891_v14 = vsub.f32 %v725_v0, %v887_v11  ;;  %v895_v15 = vsub.f32 %v728_v1, %v887_v11  ;;  %v899_v18 = vsub.f32 %v731_v2, %v887_v11  ;;  %v903_v20 = vsub.f32 %v734_v3, %v887_v11 }
  0x5d   : > { %v907_v23 = vsub.f32 %v743_v7, %v887_v11  ;;  %v917_v2 = vsub.f32 %v748_v10, %v887_v11  ;;  %v923_v7 = vsub.f32 %v753_v13, %v887_v11  ;;  %v932_v10 = vsub.f32 %v758_v16, %v887_v11 }
  0x5e   : > { %v313_v0 = vmul.f32 %v891_v14, %v891_v14  ;;  %v314_v24 = vmul.f32 %v895_v15, %v895_v15  ;;  %v315_v1 = vmul.f32 %v899_v18, %v899_v18  ;;  %v316_v3 = vmul.f32 %v903_v20, %v903_v20 }
  0x5f   : > { %v317_v27 = vmul.f32 %v907_v23, %v907_v23  ;;  %v318_v38 = vmul.f32 %v917_v2, %v917_v2  ;;  %v939_v42 = vsub.f32 %v763_v19, %v887_v11  ;;  %v319_v44 = vmul.f32 %v923_v7, %v923_v7 }
  0x60   : > { %v345_v29 = vsel %vm203_vm0, %v313_v0, 0.0  ;;  %v346_v32 = vsel %vm203_vm0, %v314_v24, 0.0  ;;  %v348_v33 = vsel %vm203_vm0, %v315_v1, 0.0  ;;  %v350_v13 = vsel %vm203_vm0, %v316_v3, 0.0 }
  0x61   : > { %v347_v36 = vadd.f32 %v346_v32, %v345_v29  ;;  %v352_v45 = vsel %vm203_vm0, %v317_v27, 0.0  ;;  %v946_v16 = vsub.f32 %v768_v22, %v887_v11  ;;  %v320_v48 = vmul.f32 %v932_v10, %v932_v10 }
  0x62   : > { %v354_v50 = vsel %vm203_vm0, %v318_v38, 0.0  ;;  %v953_v19 = vsub.f32 %v773_v25, %v887_v11  ;;  %v321_v53 = vmul.f32 %v939_v42, %v939_v42  ;;  %v356_v54 = vsel %vm203_vm0, %v319_v44, 0.0 }
  0x63   : > { %v349_v39 = vadd.f32 %v348_v33, %v347_v36  ;;  %v960_v22 = vsub.f32 %v778_v28, %v887_v11  ;;  %v322_v57 = vmul.f32 %v946_v16, %v946_v16  ;;  %v358_v59 = vsel %vm203_vm0, %v320_v48, 0.0 }
  0x64   : > { %v967_v25 = vsub.f32 %v783_v31, %v887_v11  ;;  %v323_v62 = vmul.f32 %v953_v19, %v953_v19  ;;  %v360_v63 = vsel %vm203_vm0, %v321_v53, 0.0  ;;  %v974_v28 = vsub.f32 %v788_v34, %v887_v11 }
  0x65   : > { %v351_v47 = vadd.f32 %v350_v13, %v349_v39  ;;  %v324_v6 = vmul.f32 %v960_v22, %v960_v22  ;;  %v362_v0 = vsel %vm203_vm0, %v322_v57, 0.0  ;;  %v981_v31 = vsub.f32 %v793_v37, %v887_v11 }
  0x66   : > { %v325_v1 = vmul.f32 %v967_v25, %v967_v25  ;;  %v364_v3 = vsel %vm203_vm0, %v323_v62, 0.0  ;;  %v988_v34 = vsub.f32 %v798_v40, %v887_v11  ;;  %v326_v29 = vmul.f32 %v974_v28, %v974_v28 }
  0x67   : > { %v353_v51 = vadd.f32 %v352_v45, %v351_v47  ;;  %v366_v32 = vsel %vm203_vm0, %v324_v6, 0.0  ;;  %v995_v37 = vsub.f32 %v803_v43, %v887_v11  ;;  %v327_v36 = vmul.f32 %v981_v31, %v981_v31 }
  0x68   : > { %v368_v38 = vsel %vm203_vm0, %v325_v1, 0.0  ;;  %v1002_v40 = vsub.f32 %v808_v46, %v887_v11  ;;  %v328_v39 = vmul.f32 %v988_v34, %v988_v34  ;;  %v370_v44 = vsel %vm203_vm0, %v326_v29, 0.0 }
  0x69   : > { %v355_v56 = vadd.f32 %v354_v50, %v353_v51  ;;  %v1009_v43 = vsub.f32 %v813_v49, %v887_v11  ;;  %v329_v47 = vmul.f32 %v995_v37, %v995_v37  ;;  %v372_v48 = vsel %vm203_vm0, %v327_v36, 0.0 }
  0x6a   : > { %v1016_v46 = vsub.f32 %v818_v52, %v887_v11  ;;  %v330_v51 = vmul.f32 %v1002_v40, %v1002_v40  ;;  %v374_v53 = vsel %vm203_vm0, %v328_v39, 0.0  ;;  %v1023_v49 = vsub.f32 %v823_v55, %v887_v11 }
  0x6b   : > { %v357_v60 = vadd.f32 %v356_v54, %v355_v56  ;;  %v331_v56 = vmul.f32 %v1009_v43, %v1009_v43  ;;  %v376_v57 = vsel %vm203_vm0, %v329_v47, 0.0  ;;  %v1030_v52 = vsub.f32 %v828_v58, %v887_v11 }
  0x6c   : > { %v378_v62 = vsel %vm203_vm0, %v330_v51, 0.0  ;;  %v1037_v55 = vsub.f32 %v833_v61, %v887_v11  ;;  %v1044_v58 = vsub.f32 %v838_v4, %v887_v11  ;;  %v1051_v61 = vsub.f32 %v843_v8, %v887_v11 }
  0x6d   : > { %v359_v5 = vadd.f32 %v358_v59, %v357_v60  ;;  %v332_v60 = vmul.f32 %v1016_v46, %v1016_v46  ;;  %v380_v6 = vsel %vm203_vm0, %v331_v56, 0.0  ;;  %v1058_v4 = vsub.f32 %v848_v12, %v887_v11 }
  0x6e   : > { %v1065_v8 = vsub.f32 %v853_v17, %v887_v11  ;;  %v1072_v12 = vsub.f32 %v858_v21, %v887_v11  ;;  %v1079_v17 = vsub.f32 %v863_v26, %v887_v11  ;;  %v1086_v21 = vsub.f32 %v868_v30, %v887_v11 }
  0x6f   : > { %v361_v24 = vadd.f32 %v360_v63, %v359_v5  ;;  %v333_v5 = vmul.f32 %v1023_v49, %v1023_v49  ;;  %v382_v1 = vsel %vm203_vm0, %v332_v60, 0.0  ;;  %v1093_v26 = vsub.f32 %v873_v35, %v887_v11 }
  0x70   : > { %v1100_v30 = vsub.f32 %v878_v41, %v887_v11 }
  0x71   : > { %v363_v27 = vadd.f32 %v362_v0, %v361_v24  ;;  %v334_v24 = vmul.f32 %v1030_v52, %v1030_v52  ;;  %v384_v29 = vsel %vm203_vm0, %v333_v5, 0.0  ;;  %v343_v35 = vmul.f32 %v1093_v26, %v1093_v26 }
  0x73   : > { %v365_v33 = vadd.f32 %v364_v3, %v363_v27  ;;  %v335_v27 = vmul.f32 %v1037_v55, %v1037_v55  ;;  %v386_v36 = vsel %vm203_vm0, %v334_v24, 0.0  ;;  %v404_v41 = vsel %vm203_vm0, %v343_v35, 0.0 }
  0x75   : > { %v367_v13 = vadd.f32 %v366_v32, %v365_v33  ;;  %v336_v33 = vmul.f32 %v1044_v58, %v1044_v58  ;;  %v388_v39 = vsel %vm203_vm0, %v335_v27, 0.0 }
  0x77   : > { %v369_v45 = vadd.f32 %v368_v38, %v367_v13  ;;  %v337_v13 = vmul.f32 %v1051_v61, %v1051_v61  ;;  %v390_v47 = vsel %vm203_vm0, %v336_v33, 0.0 }
  0x79   : > { %v371_v50 = vadd.f32 %v370_v44, %v369_v45  ;;  %v338_v45 = vmul.f32 %v1058_v4, %v1058_v4  ;;  %v392_v51 = vsel %vm203_vm0, %v337_v13, 0.0 }
  0x7b   : > { %v373_v54 = vadd.f32 %v372_v48, %v371_v50  ;;  %v339_v50 = vmul.f32 %v1065_v8, %v1065_v8  ;;  %v394_v56 = vsel %vm203_vm0, %v338_v45, 0.0 }
  0x7d   : > { %v375_v59 = vadd.f32 %v374_v53, %v373_v54  ;;  %v340_v54 = vmul.f32 %v1072_v12, %v1072_v12  ;;  %v396_v60 = vsel %vm203_vm0, %v339_v50, 0.0 }
  0x7f   : > { %v377_v63 = vadd.f32 %v376_v57, %v375_v59  ;;  %v341_v59 = vmul.f32 %v1079_v17, %v1079_v17  ;;  %v398_v5 = vsel %vm203_vm0, %v340_v54, 0.0 }
  0x81   : > { %v379_v0 = vadd.f32 %v378_v62, %v377_v63  ;;  %v342_v63 = vmul.f32 %v1086_v21, %v1086_v21 }
  0x83   : > { %v381_v3 = vadd.f32 %v380_v6, %v379_v0  ;;  %v400_v0 = vsel %vm203_vm0, %v341_v59, 0.0  ;;  %v1117_v59 = vld [vmem:[%s1329_s1] ss:$0 sm:$0xff] }
  0x85   : > { %v383_v32 = vadd.f32 %v382_v1, %v381_v3  ;;  %v344_v1 = vmul.f32 %v1100_v30, %v1100_v30  ;;  %v402_v3 = vsel %vm203_vm0, %v342_v63, 0.0 }
  0x87   : > { %v385_v38 = vadd.f32 %v384_v29, %v383_v32  ;;  %v406_v29 = vsel %vm203_vm0, %v344_v1, 0.0 }
  0x89   : > { %v387_v44 = vadd.f32 %v386_v36, %v385_v38 }
  0x8b   : > { %v389_v48 = vadd.f32 %v388_v39, %v387_v44 }
  0x8d   : > { %v391_v53 = vadd.f32 %v390_v47, %v389_v48 }
  0x8f   : > { %v393_v57 = vadd.f32 %v392_v51, %v391_v53 }
  0x91   : > { %v395_v62 = vadd.f32 %v394_v56, %v393_v57 }
  0x93   : > { %v397_v6 = vadd.f32 %v396_v60, %v395_v62  ;;  %v1126_v62 = vld [vmem:[%s1330_s2] ss:$0 sm:$0xff] }
  0x95   : > { %v399_v24 = vadd.f32 %v398_v5, %v397_v6 }
  0x97   : > { %v401_v27 = vadd.f32 %v400_v0, %v399_v24 }
  0x99   : > { %v403_v11 = vadd.f32 %v402_v3, %v401_v27 }
  0x9b   : > { %v405_v32 = vadd.f32 %v404_v41, %v403_v11 }
  0x9d   : > { %v407_v33 = vadd.f32 %v406_v29, %v405_v32 }
  0x9f   : > { %v408_v36 = vrot.slane %v407_v33, 4 }
  0xa1   : > { %v409_v38 = vadd.f32 %v408_v36, %v407_v33 }
  0xa3   : > { %v410_v13 = vrot.slane %v409_v38, 2 }
  0xa5   : > { %v411_v39 = vadd.f32 %v410_v13, %v409_v38 }
  0xa7   : > { %v412_v44 = vrot.slane %v411_v39, 1 }
  0xa9   : > { %v413_v45 = vadd.f32 %v412_v44, %v411_v39 }
  0xab   : > { %v414_v47 = vmul.f32 %v413_v45, %v884_v9 }
  0xad   : > { %v415_v48 = vadd.f32 1e-05, %v414_v47 }
  0xaf   : > { %675 = vrsqrt.f32 %v415_v48  ;;  %vm422_vm2 = vweird.f32 %v415_v48 }
  0xb5   : > { %v676_v50 = vpop.eup %675 }
  0xb6   : > { %v417_v51 = vmul.f32 %v676_v50, %v415_v48  ;;  %vm423_vm3 = vweird.f32 %v676_v50 }
  0xb7   : > { %vm424_vm4 = vmor %vm422_vm2, %vm423_vm3 }
  0xb8   : > { %v418_v53 = vmul.f32 %v676_v50, %v417_v51 }
  0xba   : > { %v419_v54 = vmul.f32 0.5, %v418_v53 }
  0xbc   : > { %v420_v56 = vsub.f32 1.5, %v419_v54 }
  0xbe   : > { %v421_v57 = vmul.f32 %v676_v50, %v420_v56 }
  0xc0   : > { %v1119_v60 = vsel %vm424_vm4, %v676_v50, %v421_v57 }
  0xc1   : > { %v426_v9 = vmul.f32 %v1119_v60, %v891_v14  ;;  %v427_v63 = vmul.f32 %v1119_v60, %v895_v15  ;;  %v428_v5 = vmul.f32 %v1119_v60, %v899_v18  ;;  %v429_v6 = vmul.f32 %v1119_v60, %v903_v20 }
  0xc2   : > { %v430_v35 = vmul.f32 %v1119_v60, %v907_v23  ;;  %v431_v14 = vmul.f32 %v1119_v60, %v917_v2  ;;  %v432_v0 = vmul.f32 %v1119_v60, %v923_v7  ;;  %v433_v24 = vmul.f32 %v1119_v60, %v932_v10 }
  0xc3   : > { %v462_v15 = vmul.f32 %v1117_v59, %v426_v9  ;;  %v463_v18 = vmul.f32 %v1117_v59, %v427_v63  ;;  %v464_v1 = vmul.f32 %v1117_v59, %v428_v5  ;;  %v465_v20 = vmul.f32 %v1117_v59, %v429_v6 }
  0xc4   : > { %v466_v23 = vmul.f32 %v1117_v59, %v430_v35  ;;  %v467_v3 = vmul.f32 %v1117_v59, %v431_v14  ;;  %v468_v2 = vmul.f32 %v1117_v59, %v432_v0  ;;  %v469_v27 = vmul.f32 %v1117_v59, %v433_v24 }
  0xc5   : > { %v498_v7 = vadd.f32 %v1126_v62, %v462_v15  ;;  %v499_v10 = vadd.f32 %v1126_v62, %v463_v18  ;;  %v500_v41 = vadd.f32 %v1126_v62, %v464_v1  ;;  %v501_v11 = vadd.f32 %v1126_v62, %v465_v20 }
  0xc6   : > { %v502_v29 = vadd.f32 %v1126_v62, %v466_v23  ;;  %v503_v32 = vadd.f32 %v1126_v62, %v467_v3  ;;  %v504_v33 = vadd.f32 %v1126_v62, %v468_v2  ;;  %v505_v36 = vadd.f32 %v1126_v62, %v469_v27 }
  0xc7   : > { %v530_v38 = vmax.f32 %v498_v7, 0.0  ;;  %v531_v13 = vmax.f32 %v499_v10, 0.0  ;;  %v532_v39 = vmax.f32 %v500_v41, 0.0  ;;  %v533_v44 = vmax.f32 %v501_v11, 0.0 }
  0xc8   : > { %v534_v45 = vmax.f32 %v502_v29, 0.0  ;;  %v535_v47 = vmax.f32 %v503_v32, 0.0  ;;  %v536_v48 = vmax.f32 %v504_v33, 0.0  ;;  %v537_v50 = vmax.f32 %v505_v36, 0.0 }
  0xc9   : > { %562 = vst.msk [vmem:[%s1159_s24] sm:$0xff] %vm203_vm0, %v530_v38  ;;  %v434_v51 = vmul.f32 %v1119_v60, %v939_v42  ;;  %v435_v53 = vmul.f32 %v1119_v60, %v946_v16  ;;  %v436_v54 = vmul.f32 %v1119_v60, %v953_v19  ;;  %v437_v56 = vmul.f32 %v1119_v60, %v960_v22 }
  0xca   : > { %563 = vst.msk [vmem:[%s1159_s24 + $0x8] sm:$0xff] %vm203_vm0, %v531_v13  ;;  %v438_v57 = vmul.f32 %v1119_v60, %v967_v25  ;;  %v439_v9 = vmul.f32 %v1119_v60, %v974_v28  ;;  %v440_v42 = vmul.f32 %v1119_v60, %v981_v31  ;;  %v441_v16 = vmul.f32 %v1119_v60, %v988_v34 }
  0xcb   : > { %564 = vst.msk [vmem:[%s1159_s24 + $0x10] sm:$0xff] %vm203_vm0, %v532_v39  ;;  %v470_v19 = vmul.f32 %v1117_v59, %v434_v51  ;;  %v471_v22 = vmul.f32 %v1117_v59, %v435_v53  ;;  %v472_v63 = vmul.f32 %v1117_v59, %v436_v54  ;;  %v473_v25 = vmul.f32 %v1117_v59, %v437_v56 }
  0xcc   : > { %565 = vst.msk [vmem:[%s1159_s24 + $0x18] sm:$0xff] %vm203_vm0, %v533_v44  ;;  %v474_v28 = vmul.f32 %v1117_v59, %v438_v57  ;;  %v475_v31 = vmul.f32 %v1117_v59, %v439_v9  ;;  %v476_v34 = vmul.f32 %v1117_v59, %v440_v42  ;;  %v477_v5 = vmul.f32 %v1117_v59, %v441_v16 }
  0xcd   : > { %566 = vst.msk [vmem:[%s1159_s24 + $0x20] sm:$0xff] %vm203_vm0, %v534_v45  ;;  %v506_v6 = vadd.f32 %v1126_v62, %v470_v19  ;;  %v507_v35 = vadd.f32 %v1126_v62, %v471_v22  ;;  %v508_v14 = vadd.f32 %v1126_v62, %v472_v63  ;;  %v509_v0 = vadd.f32 %v1126_v62, %v473_v25 }
  0xce   : > { %567 = vst.msk [vmem:[%s1159_s24 + $0x28] sm:$0xff] %vm203_vm0, %v535_v47  ;;  %v510_v24 = vadd.f32 %v1126_v62, %v474_v28  ;;  %v511_v15 = vadd.f32 %v1126_v62, %v475_v31  ;;  %v512_v18 = vadd.f32 %v1126_v62, %v476_v34  ;;  %v513_v1 = vadd.f32 %v1126_v62, %v477_v5 }
  0xcf   : > { %568 = vst.msk [vmem:[%s1159_s24 + $0x30] sm:$0xff] %vm203_vm0, %v536_v48  ;;  %v538_v20 = vmax.f32 %v506_v6, 0.0  ;;  %v539_v23 = vmax.f32 %v507_v35, 0.0  ;;  %v540_v3 = vmax.f32 %v508_v14, 0.0  ;;  %v541_v2 = vmax.f32 %v509_v0, 0.0 }
  0xd0   : > { %569 = vst.msk [vmem:[%s1159_s24 + $0x38] sm:$0xff] %vm203_vm0, %v537_v50  ;;  %v542_v27 = vmax.f32 %v510_v24, 0.0  ;;  %v543_v7 = vmax.f32 %v511_v15, 0.0  ;;  %v544_v10 = vmax.f32 %v512_v18, 0.0  ;;  %v545_v41 = vmax.f32 %v513_v1, 0.0 }
  0xd1   : > { %570 = vst.msk [vmem:[%s1159_s24 + $0x40] sm:$0xff] %vm203_vm0, %v538_v20  ;;  %v442_v11 = vmul.f32 %v1119_v60, %v995_v37  ;;  %v443_v29 = vmul.f32 %v1119_v60, %v1002_v40  ;;  %v444_v32 = vmul.f32 %v1119_v60, %v1009_v43  ;;  %v445_v33 = vmul.f32 %v1119_v60, %v1016_v46 }
  0xd2   : > { %571 = vst.msk [vmem:[%s1159_s24 + $0x48] sm:$0xff] %vm203_vm0, %v539_v23  ;;  %v446_v36 = vmul.f32 %v1119_v60, %v1023_v49  ;;  %v447_v38 = vmul.f32 %v1119_v60, %v1030_v52  ;;  %v448_v37 = vmul.f32 %v1119_v60, %v1037_v55  ;;  %v449_v40 = vmul.f32 %v1119_v60, %v1044_v58 }
  0xd3   : > { %572 = vst.msk [vmem:[%s1159_s24 + $0x50] sm:$0xff] %vm203_vm0, %v540_v3  ;;  %v478_v43 = vmul.f32 %v1117_v59, %v442_v11  ;;  %v479_v46 = vmul.f32 %v1117_v59, %v443_v29  ;;  %v480_v13 = vmul.f32 %v1117_v59, %v444_v32  ;;  %v481_v49 = vmul.f32 %v1117_v59, %v445_v33 }
  0xd4   : > { %573 = vst.msk [vmem:[%s1159_s24 + $0x58] sm:$0xff] %vm203_vm0, %v541_v2  ;;  %v482_v52 = vmul.f32 %v1117_v59, %v446_v36  ;;  %v483_v55 = vmul.f32 %v1117_v59, %v447_v38  ;;  %v484_v58 = vmul.f32 %v1117_v59, %v448_v37  ;;  %v485_v39 = vmul.f32 %v1117_v59, %v449_v40 }
  0xd5   : > { %574 = vst.msk [vmem:[%s1159_s24 + $0x60] sm:$0xff] %vm203_vm0, %v542_v27  ;;  %v514_v44 = vadd.f32 %v1126_v62, %v478_v43  ;;  %v515_v45 = vadd.f32 %v1126_v62, %v479_v46  ;;  %v516_v47 = vadd.f32 %v1126_v62, %v480_v13  ;;  %v517_v48 = vadd.f32 %v1126_v62, %v481_v49 }
  0xd6   : > { %575 = vst.msk [vmem:[%s1159_s24 + $0x68] sm:$0xff] %vm203_vm0, %v543_v7  ;;  %v518_v50 = vadd.f32 %v1126_v62, %v482_v52  ;;  %v519_v51 = vadd.f32 %v1126_v62, %v483_v55  ;;  %v520_v53 = vadd.f32 %v1126_v62, %v484_v58  ;;  %v521_v54 = vadd.f32 %v1126_v62, %v485_v39 }
  0xd7   : > { %576 = vst.msk [vmem:[%s1159_s24 + $0x70] sm:$0xff] %vm203_vm0, %v544_v10  ;;  %v546_v56 = vmax.f32 %v514_v44, 0.0  ;;  %v547_v57 = vmax.f32 %v515_v45, 0.0  ;;  %v548_v9 = vmax.f32 %v516_v47, 0.0  ;;  %v549_v42 = vmax.f32 %v517_v48, 0.0 }
  0xd8   : > { %577 = vst.msk [vmem:[%s1159_s24 + $0x78] sm:$0xff] %vm203_vm0, %v545_v41  ;;  %v550_v16 = vmax.f32 %v518_v50, 0.0  ;;  %v551_v19 = vmax.f32 %v519_v51, 0.0  ;;  %v552_v22 = vmax.f32 %v520_v53, 0.0  ;;  %v553_v63 = vmax.f32 %v521_v54, 0.0 }
  0xd9   : > { %578 = vst.msk [vmem:[%s1159_s24 + $0x80] sm:$0xff] %vm203_vm0, %v546_v56  ;;  %v450_v25 = vmul.f32 %v1119_v60, %v1051_v61  ;;  %v451_v28 = vmul.f32 %v1119_v60, %v1058_v4  ;;  %v452_v31 = vmul.f32 %v1119_v60, %v1065_v8  ;;  %v453_v34 = vmul.f32 %v1119_v60, %v1072_v12 }
  0xda   : > { %579 = vst.msk [vmem:[%s1159_s24 + $0x88] sm:$0xff] %vm203_vm0, %v547_v57  ;;  %v454_v5 = vmul.f32 %v1119_v60, %v1079_v17  ;;  %v455_v6 = vmul.f32 %v1119_v60, %v1086_v21  ;;  %v456_v61 = vmul.f32 %v1119_v60, %v1093_v26  ;;  %v457_v4 = vmul.f32 %v1119_v60, %v1100_v30 }
  0xdb   : > { %580 = vst.msk [vmem:[%s1159_s24 + $0x90] sm:$0xff] %vm203_vm0, %v548_v9  ;;  %v486_v8 = vmul.f32 %v1117_v59, %v450_v25  ;;  %v487_v12 = vmul.f32 %v1117_v59, %v451_v28  ;;  %v488_v35 = vmul.f32 %v1117_v59, %v452_v31  ;;  %v489_v17 = vmul.f32 %v1117_v59, %v453_v34 }
  0xdc   : > { %581 = vst.msk [vmem:[%s1159_s24 + $0x98] sm:$0xff] %vm203_vm0, %v549_v42  ;;  %v490_v21 = vmul.f32 %v1117_v59, %v454_v5  ;;  %v491_v26 = vmul.f32 %v1117_v59, %v455_v6  ;;  %v492_v30 = vmul.f32 %v1117_v59, %v456_v61  ;;  %v493_v60 = vmul.f32 %v1117_v59, %v457_v4 }
  0xdd   : > { %582 = vst.msk [vmem:[%s1159_s24 + $0xa0] sm:$0xff] %vm203_vm0, %v550_v16  ;;  %v522_v14 = vadd.f32 %v1126_v62, %v486_v8  ;;  %v523_v0 = vadd.f32 %v1126_v62, %v487_v12  ;;  %v524_v24 = vadd.f32 %v1126_v62, %v488_v35  ;;  %v525_v15 = vadd.f32 %v1126_v62, %v489_v17 }
  0xde   : > { %583 = vst.msk [vmem:[%s1159_s24 + $0xa8] sm:$0xff] %vm203_vm0, %v551_v19  ;;  %v526_v18 = vadd.f32 %v1126_v62, %v490_v21  ;;  %v527_v59 = vadd.f32 %v1126_v62, %v491_v26  ;;  %v528_v3 = vadd.f32 %v1126_v62, %v492_v30  ;;  %v529_v27 = vadd.f32 %v1126_v62, %v493_v60 }
  0xdf   : > { %584 = vst.msk [vmem:[%s1159_s24 + $0xb0] sm:$0xff] %vm203_vm0, %v552_v22  ;;  %v554_v1 = vmax.f32 %v522_v14, 0.0  ;;  %v555_v20 = vmax.f32 %v523_v0, 0.0  ;;  %v556_v23 = vmax.f32 %v524_v24, 0.0  ;;  %v557_v2 = vmax.f32 %v525_v15, 0.0 }
  0xe0   : > { %585 = vst.msk [vmem:[%s1159_s24 + $0xb8] sm:$0xff] %vm203_vm0, %v553_v63  ;;  %v558_v7 = vmax.f32 %v526_v18, 0.0  ;;  %v559_v10 = vmax.f32 %v527_v59, 0.0  ;;  %v560_v41 = vmax.f32 %v528_v3, 0.0  ;;  %v561_v11 = vmax.f32 %v529_v27, 0.0 }
  0xe1   : > { %586 = vst.msk [vmem:[%s1159_s24 + $0xc0] sm:$0xff] %vm203_vm0, %v554_v1 }
  0xe2   : > { %587 = vst.msk [vmem:[%s1159_s24 + $0xc8] sm:$0xff] %vm203_vm0, %v555_v20 }
  0xe3   : > { %588 = vst.msk [vmem:[%s1159_s24 + $0xd0] sm:$0xff] %vm203_vm0, %v556_v23 }
  0xe4   : > { %589 = vst.msk [vmem:[%s1159_s24 + $0xd8] sm:$0xff] %vm203_vm0, %v557_v2 }
  0xe5   : > { %590 = vst.msk [vmem:[%s1159_s24 + $0xe0] sm:$0xff] %vm203_vm0, %v558_v7 }
  0xe6   : > { %591 = vst.msk [vmem:[%s1159_s24 + $0xe8] sm:$0xff] %vm203_vm0, %v559_v10 }
  0xe7   : > { %592 = vst.msk [vmem:[%s1159_s24 + $0xf0] sm:$0xff] %vm203_vm0, %v560_v41 }
  0xe8   : > { %593 = vst.msk [vmem:[%s1159_s24 + $0xf8] sm:$0xff] %vm203_vm0, %v561_v11 }
  0xe9 PF: > { %s13_s12 = sadd.s32 1, %s683_s12  }
  0xea   : > { %p10_p4 = scmp.ge.s32.totalorder %s13_s12, 4  }
  0xec   :  { %12 = sbr.rel (!%p10_p4) target bundleno = 1 (0x1), region = 62 }

// kernel: generator_fc_forward.55
= control target key start
LH: loop header
LB: loop body
LE: loop exit
PB: predicated region body
PF: predicated region fallthrough
CT: control target
= control target key end

     0   :  { %s873_s1 = inlined_call_operand.vmem [shape: bf16[256,128], index: 1, kind: input, shape index: {}]   ;;  %s874_s0 = inlined_call_operand.vmem [shape: bf16[128,256], index: 0, kind: input, shape index: {}]   ;;  %s875_s2 = inlined_call_operand.vmem [shape: f32[1,128], index: 2, kind: input, shape index: {}]   ;;  %s876_s3 = inlined_call_operand.vmem [shape: f32[128,128], index: 3, kind: output, shape index: {}]  }
   0x1   :  { %v614_v0 = vld [vmem:[%s873_s1 + $0x38] sm:$0xff]  ;;  %v613_v2 = vld [vmem:[%s873_s1 + $0x30] sm:$0xff]  ;;  %v612_v4 = vld [vmem:[%s873_s1 + $0x28] sm:$0xff] }
   0x2   :  { %v622_v1 = vld [vmem:[%s873_s1 + $0x78] sm:$0xff]  ;;  %274 = vmatpush.bf16.msra.mxu0 %v614_v0  ;;  %623 = vmatpush.bf16.msra.mxu2 %v614_v0  ;;  %v621_v3 = vld [vmem:[%s873_s1 + $0x70] sm:$0xff]  ;;  %v620_v5 = vld [vmem:[%s873_s1 + $0x68] sm:$0xff] }
   0x3   :  { %323 = vmatpush.bf16.msra.mxu1 %v622_v1  ;;  %631 = vmatpush.bf16.msra.mxu3 %v622_v1  ;;  %v611_v6 = vld [vmem:[%s873_s1 + $0x20] sm:$0xff]  ;;  %v610_v8 = vld [vmem:[%s873_s1 + $0x18] sm:$0xff]  ;;  %v609_v10 = vld [vmem:[%s873_s1 + $0x10] sm:$0xff] }
   0x4   :  { %v619_v7 = vld [vmem:[%s873_s1 + $0x60] sm:$0xff]  ;;  %v618_v9 = vld [vmem:[%s873_s1 + $0x58] sm:$0xff]  ;;  %v617_v11 = vld [vmem:[%s873_s1 + $0x50] sm:$0xff] }
   0x5   :  { %v608_v12 = vld [vmem:[%s873_s1 + $0x8] sm:$0xff]  ;;  %v607_v14 = vld [vmem:[%s873_s1] sm:$0xff]  ;;  %v473_v28 = vld [vmem:[%s874_s0 + $0x10] sm:$0xf] }
   0x6   :  { %275 = vmatpush.bf16.msra.mxu0 %v613_v2  ;;  %624 = vmatpush.bf16.msra.mxu2 %v613_v2  ;;  %v616_v13 = vld [vmem:[%s873_s1 + $0x48] sm:$0xff]  ;;  %v615_v15 = vld [vmem:[%s873_s1 + $0x40] sm:$0xff]  ;;  %v594_v29 = vld [vmem:[%s874_s0 + $0x14] sm:$0xf0] }
   0x7   :  { %324 = vmatpush.bf16.msra.mxu1 %v621_v3  ;;  %632 = vmatpush.bf16.msra.mxu3 %v621_v3  ;;  %v465_v16 = vld [vmem:[%s874_s0] sm:$0xf]  ;;  %v592_v17 = vld [vmem:[%s874_s0 + $0x4] sm:$0xf0]  ;;  %v591_v20 = vld [vmem:[%s874_s0 + $0x4] sm:$0xf]  ;;  %v474_v36 = vor.u32 %v594_v29, %v473_v28 }
   0x8   :  { %v497_v18 = vld [vmem:[%s874_s0 + $0x40] sm:$0xf]  ;;  %v600_v19 = vld [vmem:[%s874_s0 + $0x44] sm:$0xf0]  ;;  %v467_v21 = vld [vmem:[%s874_s0 + $0x8] sm:$0xf0]  ;;  %v466_v24 = vor.u32 %v592_v17, %v465_v16 }
   0x9   :  { %v599_v22 = vld [vmem:[%s874_s0 + $0x44] sm:$0xf]  ;;  %v499_v23 = vld [vmem:[%s874_s0 + $0x48] sm:$0xf0]  ;;  %v498_v25 = vor.u32 %v600_v19, %v497_v18  ;;  %v470_v26 = vor.u32 %v591_v20, %v467_v21  ;;  %v505_v30 = vld [vmem:[%s874_s0 + $0x50] sm:$0xf] }
   0xa   :  { %276 = vmatpush.bf16.msra.mxu0 %v612_v4  ;;  %625 = vmatpush.bf16.msra.mxu2 %v612_v4  ;;  %v502_v27 = vor.u32 %v599_v22, %v499_v23  ;;  %v602_v31 = vld [vmem:[%s874_s0 + $0x54] sm:$0xf0]  ;;  %v593_v32 = vld [vmem:[%s874_s0 + $0x14] sm:$0xf]  ;;  %v475_v33 = vld [vmem:[%s874_s0 + $0x18] sm:$0xf0] }
   0xb   :  { %325 = vmatpush.bf16.msra.mxu1 %v620_v5  ;;  %633 = vmatpush.bf16.msra.mxu3 %v620_v5  ;;  %v601_v34 = vld [vmem:[%s874_s0 + $0x54] sm:$0xf]  ;;  %v507_v35 = vld [vmem:[%s874_s0 + $0x58] sm:$0xf0]  ;;  %v506_v37 = vor.u32 %v602_v31, %v505_v30  ;;  %v478_v38 = vor.u32 %v593_v32, %v475_v33  ;;  %v481_v40 = vld [vmem:[%s874_s0 + $0x20] sm:$0xf] }
   0xc   :  { %v510_v39 = vor.u32 %v601_v34, %v507_v35  ;;  %v596_v41 = vld [vmem:[%s874_s0 + $0x24] sm:$0xf0]  ;;  %v513_v42 = vld [vmem:[%s874_s0 + $0x60] sm:$0xf]  ;;  %v595_v44 = vld [vmem:[%s874_s0 + $0x24] sm:$0xf] }
   0xd   :  { %v604_v43 = vld [vmem:[%s874_s0 + $0x64] sm:$0xf0]  ;;  %v483_v45 = vld [vmem:[%s874_s0 + $0x28] sm:$0xf0]  ;;  %v603_v46 = vld [vmem:[%s874_s0 + $0x64] sm:$0xf]  ;;  %v482_v48 = vor.u32 %v596_v41, %v481_v40 }
   0xe   :  { %277 = vmatpush.bf16.msra.mxu0 %v611_v6  ;;  %626 = vmatpush.bf16.msra.mxu2 %v611_v6  ;;  %v515_v47 = vld [vmem:[%s874_s0 + $0x68] sm:$0xf0]  ;;  %v514_v49 = vor.u32 %v604_v43, %v513_v42  ;;  %v486_v50 = vor.u32 %v595_v44, %v483_v45  ;;  %v489_v52 = vld [vmem:[%s874_s0 + $0x30] sm:$0xf]  ;;  %v598_v53 = vld [vmem:[%s874_s0 + $0x34] sm:$0xf0] }
   0xf   :  { %326 = vmatpush.bf16.msra.mxu1 %v619_v7  ;;  %634 = vmatpush.bf16.msra.mxu3 %v619_v7  ;;  %v518_v51 = vor.u32 %v603_v46, %v515_v47  ;;  %v521_v54 = vld [vmem:[%s874_s0 + $0x70] sm:$0xf]  ;;  %v606_v55 = vld [vmem:[%s874_s0 + $0x74] sm:$0xf0]  ;;  %v597_v56 = vld [vmem:[%s874_s0 + $0x34] sm:$0xf]  ;;  %v490_v60 = vor.u32 %v598_v53, %v489_v52 }
  0x10   :  { %v491_v57 = vld [vmem:[%s874_s0 + $0x38] sm:$0xf0]  ;;  %v605_v58 = vld [vmem:[%s874_s0 + $0x74] sm:$0xf]  ;;  %v522_v61 = vor.u32 %v606_v55, %v521_v54  ;;  %v807_v1 = vld [vmem:[%s875_s2] ss:$0 sm:$0xff] }
  0x11   :  { %v523_v59 = vld [vmem:[%s874_s0 + $0x78] sm:$0xf0]  ;;  %v494_v62 = vor.u32 %v597_v56, %v491_v57 }
  0x12   :  { %278 = vmatpush.bf16.msra.mxu0 %v610_v8  ;;  %627 = vmatpush.bf16.msra.mxu2 %v610_v8  ;;  %v526_v63 = vor.u32 %v605_v58, %v523_v59 }
  0x13   :  { %327 = vmatpush.bf16.msra.mxu1 %v618_v9  ;;  %635 = vmatpush.bf16.msra.mxu3 %v618_v9 }
  0x16   :  { %279 = vmatpush.bf16.msra.mxu0 %v609_v10  ;;  %628 = vmatpush.bf16.msra.mxu2 %v609_v10 }
  0x17   :  { %328 = vmatpush.bf16.msra.mxu1 %v617_v11  ;;  %636 = vmatpush.bf16.msra.mxu3 %v617_v11 }
  0x1a   :  { %280 = vmatpush.bf16.msra.mxu0 %v608_v12  ;;  %629 = vmatpush.bf16.msra.mxu2 %v608_v12 }
  0x1b   :  { %329 = vmatpush.bf16.msra.mxu1 %v616_v13  ;;  %637 = vmatpush.bf16.msra.mxu3 %v616_v13 }
  0x1e   :  { %281 = vmatpush.bf16.msra.mxu0 %v607_v14  ;;  %630 = vmatpush.bf16.msra.mxu2 %v607_v14 }
  0x1f   :  { %330 = vmatpush.bf16.msra.mxu1 %v615_v15  ;;  %638 = vmatpush.bf16.msra.mxu3 %v615_v15 }
  0x21   :  { %282 = vmatmul.bf16.vlgmr.msra.gmra.mxu0 %v466_v24  ;;  %302 = vmatmul.bf16.vlgmr.msra.gmra.mxu2 %v498_v25 }
  0x22   :  { %331 = vmatmul.bf16.vlgmr.msra.gmra.mxu1 %v470_v26  ;;  %351 = vmatmul.bf16.vlgmr.msra.gmra.mxu3 %v502_v27 }
  0x31   :  { %287 = vmatmul.bf16.gmra.mxu0 %v474_v36  ;;  %307 = vmatmul.bf16.gmra.mxu2 %v506_v37 }
  0x32   :  { %336 = vmatmul.bf16.gmra.mxu1 %v478_v38  ;;  %356 = vmatmul.bf16.gmra.mxu3 %v510_v39 }
  0x41   :  { %292 = vmatmul.bf16.gmra.mxu0 %v482_v48  ;;  %312 = vmatmul.bf16.gmra.mxu2 %v514_v49 }
  0x42   :  { %341 = vmatmul.bf16.gmra.mxu1 %v486_v50  ;;  %361 = vmatmul.bf16.gmra.mxu3 %v518_v51 }
  0x51   :  { %297 = vmatmul.bf16.gmra.mxu0 %v490_v60  ;;  %317 = vmatmul.bf16.gmra.mxu2 %v522_v61 }
  0x52   :  { %346 = vmatmul.bf16.gmra.mxu1 %v494_v62  ;;  %366 = vmatmul.bf16.gmra.mxu3 %v526_v63 }
  0x9e   :  { %v283_v0 = vpop.f32.mrf.mxu0 }
  0x9f   :  { %v332_v2 = vpop.f32.mrf.mxu1 }
  0xa0   :  { %v333_v3 = vadd.f32 %v332_v2, %v283_v0 }
  0xa2   :  { %v427_v4 = vadd.f32 %v807_v1, %v333_v3 }
  0xa4   :  { %443 = vst [vmem:[%s876_s3] sm:$0xff] %v427_v4  ;;  %v303_v5 = vpop.f32.mrf.mxu2 }
  0xa5   :  { %v352_v6 = vpop.f32.mrf.mxu3 }
  0xa6   :  { %v353_v7 = vadd.f32 %v352_v6, %v303_v5  ;;  %v285_v8 = vpop.f32.mrf.mxu0 }
  0xa7   :  { %v334_v9 = vpop.f32.mrf.mxu1 }
  0xa8   :  { %v435_v10 = vadd.f32 %v807_v1, %v353_v7  ;;  %v335_v11 = vadd.f32 %v334_v9, %v285_v8 }
  0xaa   :  { %451 = vst [vmem:[%s876_s3 + $0x40] sm:$0xff] %v435_v10  ;;  %v428_v12 = vadd.f32 %v807_v1, %v335_v11 }
  0xac   :  { %444 = vst [vmem:[%s876_s3 + $0x8] sm:$0xff] %v428_v12  ;;  %v305_v13 = vpop.f32.mrf.mxu2 }
  0xad   :  { %v354_v14 = vpop.f32.mrf.mxu3 }
  0xae   :  { %v355_v15 = vadd.f32 %v354_v14, %v305_v13  ;;  %v288_v16 = vpop.f32.mrf.mxu0 }
  0xaf   :  { %v337_v17 = vpop.f32.mrf.mxu1 }
  0xb0   :  { %v436_v18 = vadd.f32 %v807_v1, %v355_v15  ;;  %v338_v19 = vadd.f32 %v337_v17, %v288_v16 }
  0xb2   :  { %452 = vst [vmem:[%s876_s3 + $0x48] sm:$0xff] %v436_v18  ;;  %v429_v20 = vadd.f32 %v807_v1, %v338_v19 }
  0xb4   :  { %445 = vst [vmem:[%s876_s3 + $0x10] sm:$0xff] %v429_v20  ;;  %v308_v21 = vpop.f32.mrf.mxu2 }
  0xb5   :  { %v357_v22 = vpop.f32.mrf.mxu3 }
  0xb6   :  { %v358_v23 = vadd.f32 %v357_v22, %v308_v21  ;;  %v290_v24 = vpop.f32.mrf.mxu0 }
  0xb7   :  { %v339_v25 = vpop.f32.mrf.mxu1 }
  0xb8   :  { %v437_v26 = vadd.f32 %v807_v1, %v358_v23  ;;  %v340_v27 = vadd.f32 %v339_v25, %v290_v24 }
  0xba   :  { %453 = vst [vmem:[%s876_s3 + $0x50] sm:$0xff] %v437_v26  ;;  %v430_v28 = vadd.f32 %v807_v1, %v340_v27 }
  0xbc   :  { %446 = vst [vmem:[%s876_s3 + $0x18] sm:$0xff] %v430_v28  ;;  %v310_v29 = vpop.f32.mrf.mxu2 }
  0xbd   :  { %v359_v30 = vpop.f32.mrf.mxu3 }
  0xbe   :  { %v360_v31 = vadd.f32 %v359_v30, %v310_v29  ;;  %v293_v32 = vpop.f32.mrf.mxu0 }
  0xbf   :  { %v342_v33 = vpop.f32.mrf.mxu1 }
  0xc0   :  { %v438_v34 = vadd.f32 %v807_v1, %v360_v31  ;;  %v343_v35 = vadd.f32 %v342_v33, %v293_v32 }
  0xc2   :  { %454 = vst [vmem:[%s876_s3 + $0x58] sm:$0xff] %v438_v34  ;;  %v431_v36 = vadd.f32 %v807_v1, %v343_v35 }
  0xc4   :  { %447 = vst [vmem:[%s876_s3 + $0x20] sm:$0xff] %v431_v36  ;;  %v313_v37 = vpop.f32.mrf.mxu2 }
  0xc5   :  { %v362_v38 = vpop.f32.mrf.mxu3 }
  0xc6   :  { %v363_v39 = vadd.f32 %v362_v38, %v313_v37  ;;  %v295_v40 = vpop.f32.mrf.mxu0 }
  0xc7   :  { %v344_v41 = vpop.f32.mrf.mxu1 }
  0xc8   :  { %v439_v42 = vadd.f32 %v807_v1, %v363_v39  ;;  %v345_v43 = vadd.f32 %v344_v41, %v295_v40 }
  0xca   :  { %455 = vst [vmem:[%s876_s3 + $0x60] sm:$0xff] %v439_v42  ;;  %v432_v44 = vadd.f32 %v807_v1, %v345_v43 }
  0xcc   :  { %448 = vst [vmem:[%s876_s3 + $0x28] sm:$0xff] %v432_v44  ;;  %v315_v45 = vpop.f32.mrf.mxu2 }
  0xcd   :  { %v364_v46 = vpop.f32.mrf.mxu3 }
  0xce   :  { %v365_v47 = vadd.f32 %v364_v46, %v315_v45  ;;  %v298_v48 = vpop.f32.mrf.mxu0 }
  0xcf   :  { %v347_v49 = vpop.f32.mrf.mxu1 }
  0xd0   :  { %v440_v50 = vadd.f32 %v807_v1, %v365_v47  ;;  %v348_v51 = vadd.f32 %v347_v49, %v298_v48 }
  0xd2   :  { %456 = vst [vmem:[%s876_s3 + $0x68] sm:$0xff] %v440_v50  ;;  %v433_v52 = vadd.f32 %v807_v1, %v348_v51 }
  0xd4   :  { %449 = vst [vmem:[%s876_s3 + $0x30] sm:$0xff] %v433_v52  ;;  %v318_v53 = vpop.f32.mrf.mxu2 }
  0xd5   :  { %v367_v54 = vpop.f32.mrf.mxu3 }
  0xd6   :  { %v368_v55 = vadd.f32 %v367_v54, %v318_v53  ;;  %v300_v56 = vpop.f32.mrf.mxu0 }
  0xd7   :  { %v349_v57 = vpop.f32.mrf.mxu1 }
  0xd8   :  { %v441_v58 = vadd.f32 %v807_v1, %v368_v55  ;;  %v350_v59 = vadd.f32 %v349_v57, %v300_v56 }
  0xda   :  { %457 = vst [vmem:[%s876_s3 + $0x70] sm:$0xff] %v441_v58  ;;  %v434_v60 = vadd.f32 %v807_v1, %v350_v59 }
  0xdc   :  { %450 = vst [vmem:[%s876_s3 + $0x38] sm:$0xff] %v434_v60  ;;  %v320_v61 = vpop.f32.mrf.mxu2 }
  0xdd   :  { %v369_v62 = vpop.f32.mrf.mxu3 }
  0xde   :  { %v370_v63 = vadd.f32 %v369_v62, %v320_v61 }
  0xe0   :  { %v442_v0 = vadd.f32 %v807_v1, %v370_v63 }
  0xe2   :  { %458 = vst [vmem:[%s876_s3 + $0x78] sm:$0xff] %v442_v0 }

// kernel: generator_fc_forward.56
= control target key start
LH: loop header
LB: loop body
LE: loop exit
PB: predicated region body
PF: predicated region fallthrough
CT: control target
= control target key end

     0   :  { %s418_s12 = smov 0   ;;  %s472_s0 = inlined_call_operand.vmem [shape: f32[2,64,32], index: 0, kind: input, shape index: {}]   ;;  %s473_s1 = inlined_call_operand.vmem [shape: f32[1,32], index: 1, kind: input, shape index: {}]   ;;  %s474_s2 = inlined_call_operand.vmem [shape: f32[1,32], index: 2, kind: input, shape index: {}]   ;;  %s475_s3 = inlined_call_operand.vmem [shape: f32[2,64,32], index: 3, kind: output, shape index: {}]  }
   0x1 LB: > { %s361_s13 = sadd.s32 4294967295, %s395_s12   ;;  %p365_p0 = scmp.ge.s32.totalorder %s395_s12, 1  ;;  %s395_s12 = sphi %s418_s12, %s13_s12  }
   0x2   : > { %p137_p1 = scmp.lt.s32.totalorder %s395_s12, 3 }
   0x4   : > { %p138_p2 = pnand %p365_p0, %p137_p1 }
   0x5   : > { %p161_p3 = scmp.lt.s32.totalorder (!%p138_p2), %s361_s13, 1 }
   0x6   : > { %141 = sbr.rel (%p138_p2) target bundleno = 113 (0x71), region = 32 }
   0xb   : > { %s477_s13 = smov (!%p161_p3, %s361_s13), 1  ;;  %vm179_vm0 = vcmask 261120   ;;  %v397_v3 = vmov 64.0  }
   0xc   : > { %s372_s14 = sshll.u32 %s477_s13, 6  ;;  %385 = vrcp.f32 %v397_v3 }
   0xd   : > { %s165_s17 = scalar_lea.vmem %s472_s0, %s372_s14  ;;  %s170_s24 = scalar_lea.vmem %s475_s3, %s372_s14 }
   0xe   : > { %v171_v0 = vld [vmem:[%s165_s17] sm:$0xff]  ;;  %v172_v1 = vld [vmem:[%s165_s17 + $0x8] sm:$0xff]  ;;  %v173_v2 = vld [vmem:[%s165_s17 + $0x10] sm:$0xff] }
   0xf   : > { %v174_v4 = vld [vmem:[%s165_s17 + $0x18] sm:$0xff]  ;;  %v180_v5 = vsel %vm179_vm0, %v171_v0, 0.0  ;;  %v181_v6 = vsel %vm179_vm0, %v172_v1, 0.0  ;;  %v183_v7 = vsel %vm179_vm0, %v173_v2, 0.0  ;;  %v175_v8 = vld [vmem:[%s165_s17 + $0x20] sm:$0xff]  ;;  %v176_v11 = vld [vmem:[%s165_s17 + $0x28] sm:$0xff] }
  0x10   : > { %v182_v9 = vadd.f32 %v181_v6, %v180_v5  ;;  %v185_v10 = vsel %vm179_vm0, %v174_v4, 0.0  ;;  %v187_v13 = vsel %vm179_vm0, %v175_v8, 0.0  ;;  %v177_v15 = vld [vmem:[%s165_s17 + $0x30] sm:$0xff]  ;;  %v189_v17 = vsel %vm179_vm0, %v176_v11, 0.0  ;;  %v178_v18 = vld [vmem:[%s165_s17 + $0x38] sm:$0xff] }
  0x11   : > { %v191_v20 = vsel %vm179_vm0, %v177_v15, 0.0  ;;  %v193_v23 = vsel %vm179_vm0, %v178_v18, 0.0 }
  0x12   : > { %v184_v12 = vadd.f32 %v183_v7, %v182_v9  ;;  %v386_v14 = vpop.eup %385 }
  0x13   : > { %v202_v21 = vmul.f32 64.0, %v386_v14  ;;  %vm206_vm1 = vweird.f32 %v386_v14 }
  0x14   : > { %v186_v16 = vadd.f32 %v185_v10, %v184_v12 }
  0x15   : > { %v203_v25 = vsub.f32 1.0, %v202_v21  ;;  %v384_v21 = vld [vmem:[%s474_s2] ss:$0 sm:$0xff] }
  0x16   : > { %v188_v19 = vadd.f32 %v187_v13, %v186_v16 }
  0x17   : > { %v204_v28 = vmul.f32 %v386_v14, %v203_v25 }
  0x18   : > { %v190_v22 = vadd.f32 %v189_v17, %v188_v19 }
  0x19   : > { %v205_v31 = vadd.f32 %v386_v14, %v204_v28 }
  0x1a   : > { %v192_v24 = vadd.f32 %v191_v20, %v190_v22 }
  0x1b   : > { %v207_v34 = vsel %vm206_vm1, %v386_v14, %v205_v31 }
  0x1c   : > { %v194_v26 = vadd.f32 %v193_v23, %v192_v24 }
  0x1e   : > { %v195_v27 = vrot.slane %v194_v26, 4 }
  0x20   : > { %v196_v29 = vadd.f32 %v195_v27, %v194_v26 }
  0x22   : > { %v197_v30 = vrot.slane %v196_v29, 2 }
  0x24   : > { %v198_v32 = vadd.f32 %v197_v30, %v196_v29 }
  0x26   : > { %v199_v33 = vrot.slane %v198_v32, 1 }
  0x28   : > { %v200_v35 = vadd.f32 %v199_v33, %v198_v32 }
  0x2a   : > { %v208_v36 = vmul.f32 %v207_v34, %v200_v35 }
  0x2c   : > { %v209_v37 = vsub.f32 %v171_v0, %v208_v36  ;;  %v210_v38 = vsub.f32 %v172_v1, %v208_v36  ;;  %v211_v39 = vsub.f32 %v173_v2, %v208_v36  ;;  %v212_v40 = vsub.f32 %v174_v4, %v208_v36 }
  0x2d   : > { %v213_v41 = vsub.f32 %v175_v8, %v208_v36  ;;  %v214_v42 = vsub.f32 %v176_v11, %v208_v36  ;;  %v215_v47 = vsub.f32 %v177_v15, %v208_v36  ;;  %v216_v53 = vsub.f32 %v178_v18, %v208_v36  ;;  %v383_v18 = vld [vmem:[%s473_s1] ss:$0 sm:$0xff] }
  0x2e   : > { %v217_v43 = vmul.f32 %v209_v37, %v209_v37  ;;  %v218_v44 = vmul.f32 %v210_v38, %v210_v38  ;;  %v219_v45 = vmul.f32 %v211_v39, %v211_v39  ;;  %v220_v46 = vmul.f32 %v212_v40, %v212_v40 }
  0x2f   : > { %v221_v48 = vmul.f32 %v213_v41, %v213_v41  ;;  %v222_v54 = vmul.f32 %v214_v42, %v214_v42  ;;  %v223_v57 = vmul.f32 %v215_v47, %v215_v47  ;;  %v224_v60 = vmul.f32 %v216_v53, %v216_v53 }
  0x30   : > { %v225_v49 = vsel %vm179_vm0, %v217_v43, 0.0  ;;  %v226_v50 = vsel %vm179_vm0, %v218_v44, 0.0  ;;  %v228_v51 = vsel %vm179_vm0, %v219_v45, 0.0  ;;  %v230_v55 = vsel %vm179_vm0, %v220_v46, 0.0 }
  0x31   : > { %v227_v52 = vadd.f32 %v226_v50, %v225_v49  ;;  %v232_v58 = vsel %vm179_vm0, %v221_v48, 0.0  ;;  %v234_v61 = vsel %vm179_vm0, %v222_v54, 0.0  ;;  %v236_v63 = vsel %vm179_vm0, %v223_v57, 0.0 }
  0x32   : > { %v238_v1 = vsel %vm179_vm0, %v224_v60, 0.0 }
  0x33   : > { %v229_v56 = vadd.f32 %v228_v51, %v227_v52 }
  0x35   : > { %v231_v59 = vadd.f32 %v230_v55, %v229_v56 }
  0x37   : > { %v233_v62 = vadd.f32 %v232_v58, %v231_v59 }
  0x39   : > { %v235_v0 = vadd.f32 %v234_v61, %v233_v62 }
  0x3b   : > { %v237_v2 = vadd.f32 %v236_v63, %v235_v0 }
  0x3d   : > { %v239_v3 = vadd.f32 %v238_v1, %v237_v2 }
  0x3f   : > { %v240_v4 = vrot.slane %v239_v3, 4 }
  0x41   : > { %v241_v5 = vadd.f32 %v240_v4, %v239_v3 }
  0x43   : > { %v242_v6 = vrot.slane %v241_v5, 2 }
  0x45   : > { %v243_v7 = vadd.f32 %v242_v6, %v241_v5 }
  0x47   : > { %v244_v8 = vrot.slane %v243_v7, 1 }
  0x49   : > { %v245_v9 = vadd.f32 %v244_v8, %v243_v7 }
  0x4b   : > { %v246_v10 = vmul.f32 %v245_v9, %v207_v34 }
  0x4d   : > { %v247_v11 = vadd.f32 1e-05, %v246_v10 }
  0x4f   : > { %387 = vrsqrt.f32 %v247_v11  ;;  %vm254_vm2 = vweird.f32 %v247_v11 }
  0x55   : > { %v388_v12 = vpop.eup %387 }
  0x56   : > { %v249_v13 = vmul.f32 %v388_v12, %v247_v11  ;;  %vm255_vm3 = vweird.f32 %v388_v12 }
  0x57   : > { %vm256_vm4 = vmor %vm254_vm2, %vm255_vm3 }
  0x58   : > { %v250_v14 = vmul.f32 %v388_v12, %v249_v13 }
  0x5a   : > { %v251_v15 = vmul.f32 0.5, %v250_v14 }
  0x5c   : > { %v252_v16 = vsub.f32 1.5, %v251_v15 }
  0x5e   : > { %v253_v17 = vmul.f32 %v388_v12, %v252_v16 }
  0x60   : > { %v257_v19 = vsel %vm256_vm4, %v388_v12, %v253_v17 }
  0x61   : > { %v258_v20 = vmul.f32 %v257_v19, %v209_v37  ;;  %v259_v22 = vmul.f32 %v257_v19, %v210_v38  ;;  %v260_v23 = vmul.f32 %v257_v19, %v211_v39  ;;  %v261_v24 = vmul.f32 %v257_v19, %v212_v40 }
  0x62   : > { %v262_v25 = vmul.f32 %v257_v19, %v213_v41  ;;  %v263_v26 = vmul.f32 %v257_v19, %v214_v42  ;;  %v264_v27 = vmul.f32 %v257_v19, %v215_v47  ;;  %v265_v28 = vmul.f32 %v257_v19, %v216_v53 }
  0x63   : > { %v270_v29 = vmul.f32 %v383_v18, %v258_v20  ;;  %v271_v30 = vmul.f32 %v383_v18, %v259_v22  ;;  %v272_v31 = vmul.f32 %v383_v18, %v260_v23  ;;  %v273_v32 = vmul.f32 %v383_v18, %v261_v24 }
  0x64   : > { %v274_v33 = vmul.f32 %v383_v18, %v262_v25  ;;  %v275_v34 = vmul.f32 %v383_v18, %v263_v26  ;;  %v276_v35 = vmul.f32 %v383_v18, %v264_v27  ;;  %v277_v36 = vmul.f32 %v383_v18, %v265_v28 }
  0x65   : > { %v282_v37 = vadd.f32 %v384_v21, %v270_v29  ;;  %v283_v43 = vadd.f32 %v384_v21, %v271_v30  ;;  %v284_v44 = vadd.f32 %v384_v21, %v272_v31  ;;  %v285_v45 = vadd.f32 %v384_v21, %v273_v32 }
  0x66   : > { %v286_v38 = vadd.f32 %v384_v21, %v274_v33  ;;  %v287_v39 = vadd.f32 %v384_v21, %v275_v34  ;;  %v288_v46 = vadd.f32 %v384_v21, %v276_v35  ;;  %v289_v48 = vadd.f32 %v384_v21, %v277_v36 }
  0x67   : > { %v290_v40 = vmax.f32 %v282_v37, 0.0  ;;  %v291_v41 = vmax.f32 %v283_v43, 0.0  ;;  %v292_v42 = vmax.f32 %v284_v44, 0.0  ;;  %v293_v47 = vmax.f32 %v285_v45, 0.0 }
  0x68   : > { %v294_v49 = vmax.f32 %v286_v38, 0.0  ;;  %v295_v50 = vmax.f32 %v287_v39, 0.0  ;;  %v296_v51 = vmax.f32 %v288_v46, 0.0  ;;  %v297_v52 = vmax.f32 %v289_v48, 0.0 }
  0x69   : > { %298 = vst.msk [vmem:[%s170_s24] sm:$0xff] %vm179_vm0, %v290_v40 }
  0x6a   : > { %299 = vst.msk [vmem:[%s170_s24 + $0x8] sm:$0xff] %vm179_vm0, %v291_v41 }
  0x6b   : > { %300 = vst.msk [vmem:[%s170_s24 + $0x10] sm:$0xff] %vm179_vm0, %v292_v42 }
  0x6c   : > { %301 = vst.msk [vmem:[%s170_s24 + $0x18] sm:$0xff] %vm179_vm0, %v293_v47 }
  0x6d   : > { %302 = vst.msk [vmem:[%s170_s24 + $0x20] sm:$0xff] %vm179_vm0, %v294_v49 }
  0x6e   : > { %303 = vst.msk [vmem:[%s170_s24 + $0x28] sm:$0xff] %vm179_vm0, %v295_v50 }
  0x6f   : > { %304 = vst.msk [vmem:[%s170_s24 + $0x30] sm:$0xff] %vm179_vm0, %v296_v51 }
  0x70   : > { %305 = vst.msk [vmem:[%s170_s24 + $0x38] sm:$0xff] %vm179_vm0, %v297_v52 }
  0x71 PF: > { %s13_s12 = sadd.s32 1, %s395_s12  }
  0x72   : > { %p10_p4 = scmp.ge.s32.totalorder %s13_s12, 4  }
  0x74   :  { %12 = sbr.rel (!%p10_p4) target bundleno = 1 (0x1), region = 62 }

// kernel: generator_fc_forward.58
= control target key start
LH: loop header
LB: loop body
LE: loop exit
PB: predicated region body
PF: predicated region fallthrough
CT: control target
= control target key end

     0   :  { %s346_s12 = smov 0   ;;  %s382_s0 = inlined_call_operand.vmem [shape: f32[2,16,32], index: 0, kind: input, shape index: {}]   ;;  %s383_s1 = inlined_call_operand.vmem [shape: f32[1,32], index: 1, kind: input, shape index: {}]   ;;  %s384_s2 = inlined_call_operand.vmem [shape: f32[1,32], index: 2, kind: input, shape index: {}]   ;;  %s385_s3 = inlined_call_operand.vmem [shape: f32[2,16,32], index: 3, kind: output, shape index: {}]  }
   0x1 LB: > { %s289_s13 = sadd.s32 4294967295, %s323_s12   ;;  %p293_p0 = scmp.ge.s32.totalorder %s323_s12, 1  ;;  %s323_s12 = sphi %s346_s12, %s13_s12  }
   0x2   : > { %p137_p1 = scmp.lt.s32.totalorder %s323_s12, 3 }
   0x4   : > { %p138_p2 = pnand %p293_p0, %p137_p1 }
   0x5   : > { %p161_p3 = scmp.lt.s32.totalorder (!%p138_p2), %s289_s13, 1 }
   0x6   : > { %141 = sbr.rel (%p138_p2) target bundleno = 83 (0x53), region = 32 }
   0xb   : > { %v325_v0 = vmov 16.0   ;;  %s387_s13 = smov (!%p161_p3, %s289_s13), 1  ;;  %vm173_vm0 = vcmask 261120   ;;  %v311_v40 = vld [vmem:[%s383_s1] ss:$0 sm:$0xff] }
   0xc   : > { %313 = vrcp.f32 %v325_v0  ;;  %s300_s14 = sshll.u32 %s387_s13, 4  ;;  %v312_v44 = vld [vmem:[%s384_s2] ss:$0 sm:$0xff] }
   0xd   : > { %s165_s17 = scalar_lea.vmem %s382_s0, %s300_s14  ;;  %s170_s24 = scalar_lea.vmem %s385_s3, %s300_s14 }
   0xe   : > { %v171_v1 = vld [vmem:[%s165_s17] sm:$0xff]  ;;  %v172_v2 = vld [vmem:[%s165_s17 + $0x8] sm:$0xff] }
   0xf   : > { %v174_v4 = vsel %vm173_vm0, %v171_v1, 0.0  ;;  %v175_v5 = vsel %vm173_vm0, %v172_v2, 0.0 }
  0x10   : > { %v176_v6 = vadd.f32 %v175_v5, %v174_v4 }
  0x12   : > { %v314_v3 = vpop.eup %313  ;;  %v177_v8 = vrot.slane %v176_v6, 4 }
  0x13   : > { %v184_v7 = vmul.f32 16.0, %v314_v3  ;;  %vm188_vm1 = vweird.f32 %v314_v3 }
  0x14   : > { %v178_v10 = vadd.f32 %v177_v8, %v176_v6 }
  0x15   : > { %v185_v9 = vsub.f32 1.0, %v184_v7 }
  0x16   : > { %v179_v12 = vrot.slane %v178_v10, 2 }
  0x17   : > { %v186_v11 = vmul.f32 %v314_v3, %v185_v9 }
  0x18   : > { %v180_v14 = vadd.f32 %v179_v12, %v178_v10 }
  0x19   : > { %v187_v13 = vadd.f32 %v314_v3, %v186_v11 }
  0x1a   : > { %v181_v15 = vrot.slane %v180_v14, 1 }
  0x1b   : > { %v189_v16 = vsel %vm188_vm1, %v314_v3, %v187_v13 }
  0x1c   : > { %v182_v17 = vadd.f32 %v181_v15, %v180_v14 }
  0x1e   : > { %v190_v18 = vmul.f32 %v189_v16, %v182_v17 }
  0x20   : > { %v191_v19 = vsub.f32 %v171_v1, %v190_v18  ;;  %v192_v20 = vsub.f32 %v172_v2, %v190_v18 }
  0x22   : > { %v193_v21 = vmul.f32 %v191_v19, %v191_v19  ;;  %v194_v22 = vmul.f32 %v192_v20, %v192_v20 }
  0x24   : > { %v195_v23 = vsel %vm173_vm0, %v193_v21, 0.0  ;;  %v196_v24 = vsel %vm173_vm0, %v194_v22, 0.0 }
  0x25   : > { %v197_v25 = vadd.f32 %v196_v24, %v195_v23 }
  0x27   : > { %v198_v26 = vrot.slane %v197_v25, 4 }
  0x29   : > { %v199_v27 = vadd.f32 %v198_v26, %v197_v25 }
  0x2b   : > { %v200_v28 = vrot.slane %v199_v27, 2 }
  0x2d   : > { %v201_v29 = vadd.f32 %v200_v28, %v199_v27 }
  0x2f   : > { %v202_v30 = vrot.slane %v201_v29, 1 }
  0x31   : > { %v203_v31 = vadd.f32 %v202_v30, %v201_v29 }
  0x33   : > { %v204_v32 = vmul.f32 %v203_v31, %v189_v16 }
  0x35   : > { %v205_v33 = vadd.f32 1e-05, %v204_v32 }
  0x37   : > { %315 = vrsqrt.f32 %v205_v33  ;;  %vm212_vm2 = vweird.f32 %v205_v33 }
  0x3d   : > { %v316_v34 = vpop.eup %315 }
  0x3e   : > { %v207_v35 = vmul.f32 %v316_v34, %v205_v33  ;;  %vm213_vm3 = vweird.f32 %v316_v34 }
  0x3f   : > { %vm214_vm4 = vmor %vm212_vm2, %vm213_vm3 }
  0x40   : > { %v208_v36 = vmul.f32 %v316_v34, %v207_v35 }
  0x42   : > { %v209_v37 = vmul.f32 0.5, %v208_v36 }
  0x44   : > { %v210_v38 = vsub.f32 1.5, %v209_v37 }
  0x46   : > { %v211_v39 = vmul.f32 %v316_v34, %v210_v38 }
  0x48   : > { %v215_v41 = vsel %vm214_vm4, %v316_v34, %v211_v39 }
  0x49   : > { %v216_v42 = vmul.f32 %v215_v41, %v191_v19  ;;  %v217_v43 = vmul.f32 %v215_v41, %v192_v20 }
  0x4b   : > { %v222_v45 = vmul.f32 %v311_v40, %v216_v42  ;;  %v223_v46 = vmul.f32 %v311_v40, %v217_v43 }
  0x4d   : > { %v228_v47 = vadd.f32 %v312_v44, %v222_v45  ;;  %v229_v48 = vadd.f32 %v312_v44, %v223_v46 }
  0x4f   : > { %v230_v49 = vmax.f32 %v228_v47, 0.0  ;;  %v231_v50 = vmax.f32 %v229_v48, 0.0 }
  0x51   : > { %232 = vst.msk [vmem:[%s170_s24] sm:$0xff] %vm173_vm0, %v230_v49 }
  0x52   : > { %233 = vst.msk [vmem:[%s170_s24 + $0x8] sm:$0xff] %vm173_vm0, %v231_v50 }
  0x53 PF: > { %s13_s12 = sadd.s32 1, %s323_s12  }
  0x54   : > { %p10_p4 = scmp.ge.s32.totalorder %s13_s12, 4  }
  0x56   :  { %12 = sbr.rel (!%p10_p4) target bundleno = 1 (0x1), region = 62 }

// kernel: generator_fc_forward.57
= control target key start
LH: loop header
LB: loop body
LE: loop exit
PB: predicated region body
PF: predicated region fallthrough
CT: control target
= control target key end

     0   :  { %s817_s1 = inlined_call_operand.vmem [shape: bf16[512,128], index: 1, kind: input, shape index: {}]   ;;  %s818_s0 = inlined_call_operand.vmem [shape: bf16[32,512], index: 0, kind: input, shape index: {}]   ;;  %s819_s2 = inlined_call_operand.vmem [shape: f32[1,128], index: 2, kind: input, shape index: {}]   ;;  %s820_s3 = inlined_call_operand.vmem [shape: f32[32,128], index: 3, kind: output, shape index: {}]  }
   0x1   :  { %v612_v0 = vld [vmem:[%s817_s1 + $0x38] sm:$0xff]  ;;  %v611_v4 = vld [vmem:[%s817_s1 + $0x30] sm:$0xff]  ;;  %v610_v8 = vld [vmem:[%s817_s1 + $0x28] sm:$0xff] }
   0x2   :  { %v620_v1 = vld [vmem:[%s817_s1 + $0x78] sm:$0xff]  ;;  %330 = vmatpush.bf16.msra.mxu0 %v612_v0  ;;  %v619_v5 = vld [vmem:[%s817_s1 + $0x70] sm:$0xff]  ;;  %v618_v9 = vld [vmem:[%s817_s1 + $0x68] sm:$0xff] }
   0x3   :  { %v628_v2 = vld [vmem:[%s817_s1 + $0xb8] sm:$0xff]  ;;  %349 = vmatpush.bf16.msra.mxu1 %v620_v1  ;;  %v627_v6 = vld [vmem:[%s817_s1 + $0xb0] sm:$0xff]  ;;  %v626_v10 = vld [vmem:[%s817_s1 + $0xa8] sm:$0xff] }
   0x4   :  { %v636_v3 = vld [vmem:[%s817_s1 + $0xf8] sm:$0xff]  ;;  %368 = vmatpush.bf16.msra.mxu2 %v628_v2  ;;  %v635_v7 = vld [vmem:[%s817_s1 + $0xf0] sm:$0xff]  ;;  %v634_v11 = vld [vmem:[%s817_s1 + $0xe8] sm:$0xff] }
   0x5   :  { %387 = vmatpush.bf16.msra.mxu3 %v636_v3  ;;  %v609_v12 = vld [vmem:[%s817_s1 + $0x20] sm:$0xff]  ;;  %v608_v16 = vld [vmem:[%s817_s1 + $0x18] sm:$0xff]  ;;  %v607_v20 = vld [vmem:[%s817_s1 + $0x10] sm:$0xff] }
   0x6   :  { %331 = vmatpush.bf16.msra.mxu0 %v611_v4  ;;  %v617_v13 = vld [vmem:[%s817_s1 + $0x60] sm:$0xff]  ;;  %v616_v17 = vld [vmem:[%s817_s1 + $0x58] sm:$0xff]  ;;  %v615_v21 = vld [vmem:[%s817_s1 + $0x50] sm:$0xff] }
   0x7   :  { %350 = vmatpush.bf16.msra.mxu1 %v619_v5  ;;  %v625_v14 = vld [vmem:[%s817_s1 + $0xa0] sm:$0xff]  ;;  %v624_v18 = vld [vmem:[%s817_s1 + $0x98] sm:$0xff]  ;;  %v623_v22 = vld [vmem:[%s817_s1 + $0x90] sm:$0xff] }
   0x8   :  { %369 = vmatpush.bf16.msra.mxu2 %v627_v6  ;;  %v633_v15 = vld [vmem:[%s817_s1 + $0xe0] sm:$0xff]  ;;  %v632_v19 = vld [vmem:[%s817_s1 + $0xd8] sm:$0xff]  ;;  %v631_v23 = vld [vmem:[%s817_s1 + $0xd0] sm:$0xff] }
   0x9   :  { %388 = vmatpush.bf16.msra.mxu3 %v635_v7  ;;  %v606_v24 = vld [vmem:[%s817_s1 + $0x8] sm:$0xff]  ;;  %v605_v28 = vld [vmem:[%s817_s1] sm:$0xff]  ;;  %v599_v33 = vld [vmem:[%s818_s0 + $0xc] sm:$0xf0] }
   0xa   :  { %332 = vmatpush.bf16.msra.mxu0 %v610_v8  ;;  %v614_v25 = vld [vmem:[%s817_s1 + $0x48] sm:$0xff]  ;;  %v613_v29 = vld [vmem:[%s817_s1 + $0x40] sm:$0xff]  ;;  %v441_v35 = vld [vmem:[%s818_s0 + $0x10] sm:$0xf0] }
   0xb   :  { %351 = vmatpush.bf16.msra.mxu1 %v618_v9  ;;  %v622_v26 = vld [vmem:[%s817_s1 + $0x88] sm:$0xff]  ;;  %v621_v30 = vld [vmem:[%s817_s1 + $0x80] sm:$0xff]  ;;  %v600_v37 = vld [vmem:[%s818_s0 + $0x14] sm:$0xf0] }
   0xc   :  { %370 = vmatpush.bf16.msra.mxu2 %v626_v10  ;;  %v630_v27 = vld [vmem:[%s817_s1 + $0xc8] sm:$0xff]  ;;  %v629_v31 = vld [vmem:[%s817_s1 + $0xc0] sm:$0xff]  ;;  %v449_v39 = vld [vmem:[%s818_s0 + $0x18] sm:$0xf0] }
   0xd   :  { %389 = vmatpush.bf16.msra.mxu3 %v634_v11  ;;  %v439_v32 = vld [vmem:[%s818_s0] sm:$0xf]  ;;  %v597_v34 = vld [vmem:[%s818_s0 + $0x4] sm:$0xf]  ;;  %v447_v36 = vld [vmem:[%s818_s0 + $0x8] sm:$0xf] }
   0xe   :  { %333 = vmatpush.bf16.msra.mxu0 %v609_v12  ;;  %v598_v38 = vld [vmem:[%s818_s0 + $0xc] sm:$0xf]  ;;  %v440_v40 = vor.u32 %v599_v33, %v439_v32  ;;  %v444_v41 = vor.u32 %v597_v34, %v441_v35  ;;  %v448_v42 = vor.u32 %v600_v37, %v447_v36  ;;  %v455_v44 = vld [vmem:[%s818_s0 + $0x20] sm:$0xf]  ;;  %v603_v45 = vld [vmem:[%s818_s0 + $0x2c] sm:$0xf0] }
   0xf   :  { %352 = vmatpush.bf16.msra.mxu1 %v617_v13  ;;  %v452_v43 = vor.u32 %v598_v38, %v449_v39  ;;  %v601_v46 = vld [vmem:[%s818_s0 + $0x24] sm:$0xf]  ;;  %v457_v47 = vld [vmem:[%s818_s0 + $0x30] sm:$0xf0]  ;;  %v463_v48 = vld [vmem:[%s818_s0 + $0x28] sm:$0xf]  ;;  %v456_v52 = vor.u32 %v603_v45, %v455_v44 }
  0x10   :  { %371 = vmatpush.bf16.msra.mxu2 %v625_v14  ;;  %v604_v49 = vld [vmem:[%s818_s0 + $0x34] sm:$0xf0]  ;;  %v602_v50 = vld [vmem:[%s818_s0 + $0x2c] sm:$0xf]  ;;  %v465_v51 = vld [vmem:[%s818_s0 + $0x38] sm:$0xf0]  ;;  %v460_v53 = vor.u32 %v601_v46, %v457_v47 }
  0x11   :  { %390 = vmatpush.bf16.msra.mxu3 %v633_v15  ;;  %v464_v54 = vor.u32 %v604_v49, %v463_v48  ;;  %v468_v55 = vor.u32 %v602_v50, %v465_v51  ;;  %v637_v62 = vld [vmem:[%s819_s2] ss:$0 sm:$0xff] }
  0x12   :  { %334 = vmatpush.bf16.msra.mxu0 %v608_v16 }
  0x13   :  { %353 = vmatpush.bf16.msra.mxu1 %v616_v17 }
  0x14   :  { %372 = vmatpush.bf16.msra.mxu2 %v624_v18 }
  0x15   :  { %391 = vmatpush.bf16.msra.mxu3 %v632_v19 }
  0x16   :  { %335 = vmatpush.bf16.msra.mxu0 %v607_v20 }
  0x17   :  { %354 = vmatpush.bf16.msra.mxu1 %v615_v21 }
  0x18   :  { %373 = vmatpush.bf16.msra.mxu2 %v623_v22 }
  0x19   :  { %392 = vmatpush.bf16.msra.mxu3 %v631_v23 }
  0x1a   :  { %336 = vmatpush.bf16.msra.mxu0 %v606_v24 }
  0x1b   :  { %355 = vmatpush.bf16.msra.mxu1 %v614_v25 }
  0x1c   :  { %374 = vmatpush.bf16.msra.mxu2 %v622_v26 }
  0x1d   :  { %393 = vmatpush.bf16.msra.mxu3 %v630_v27 }
  0x1e   :  { %337 = vmatpush.bf16.msra.mxu0 %v605_v28 }
  0x1f   :  { %356 = vmatpush.bf16.msra.mxu1 %v613_v29 }
  0x20   :  { %375 = vmatpush.bf16.msra.mxu2 %v621_v30 }
  0x21   :  { %394 = vmatpush.bf16.msra.mxu3 %v629_v31  ;;  %338 = vmatmul.bf16.vlgmr.msra.gmra.mxu0 %v440_v40 }
  0x22   :  { %357 = vmatmul.bf16.vlgmr.msra.gmra.mxu1 %v444_v41 }
  0x23   :  { %376 = vmatmul.bf16.vlgmr.msra.gmra.mxu2 %v448_v42 }
  0x24   :  { %395 = vmatmul.bf16.vlgmr.msra.gmra.mxu3 %v452_v43 }
  0x31   :  { %343 = vmatmul.bf16.gmra.mxu0 %v456_v52 }
  0x32   :  { %362 = vmatmul.bf16.gmra.mxu1 %v460_v53 }
  0x33   :  { %381 = vmatmul.bf16.gmra.mxu2 %v464_v54 }
  0x34   :  { %400 = vmatmul.bf16.gmra.mxu3 %v468_v55 }
  0x9e   :  { %v339_v56 = vpop.f32.mrf.mxu0 }
  0x9f   :  { %v358_v57 = vpop.f32.mrf.mxu1 }
  0xa0   :  { %v359_v58 = vadd.f32 %v358_v57, %v339_v56 }
  0xa6   :  { %v377_v59 = vpop.f32.mrf.mxu2  ;;  %v341_v63 = vpop.f32.mrf.mxu0 }
  0xa7   :  { %v396_v60 = vpop.f32.mrf.mxu3  ;;  %v378_v61 = vadd.f32 %v377_v59, %v359_v58  ;;  %v360_v0 = vpop.f32.mrf.mxu1 }
  0xa8   :  { %v361_v3 = vadd.f32 %v360_v0, %v341_v63 }
  0xa9   :  { %v397_v1 = vadd.f32 %v396_v60, %v378_v61 }
  0xab   :  { %v425_v2 = vadd.f32 %v637_v62, %v397_v1 }
  0xad   :  { %429 = vst [vmem:[%s820_s3] sm:$0xff] %v425_v2 }
  0xae   :  { %v379_v4 = vpop.f32.mrf.mxu2  ;;  %v344_v7 = vpop.f32.mrf.mxu0 }
  0xaf   :  { %v398_v5 = vpop.f32.mrf.mxu3  ;;  %v380_v6 = vadd.f32 %v379_v4, %v361_v3  ;;  %v363_v8 = vpop.f32.mrf.mxu1 }
  0xb0   :  { %v364_v11 = vadd.f32 %v363_v8, %v344_v7 }
  0xb1   :  { %v399_v9 = vadd.f32 %v398_v5, %v380_v6 }
  0xb3   :  { %v426_v10 = vadd.f32 %v637_v62, %v399_v9 }
  0xb5   :  { %430 = vst [vmem:[%s820_s3 + $0x8] sm:$0xff] %v426_v10 }
  0xb6   :  { %v382_v12 = vpop.f32.mrf.mxu2  ;;  %v346_v16 = vpop.f32.mrf.mxu0 }
  0xb7   :  { %v401_v13 = vpop.f32.mrf.mxu3  ;;  %v383_v14 = vadd.f32 %v382_v12, %v364_v11  ;;  %v365_v17 = vpop.f32.mrf.mxu1 }
  0xb8   :  { %v366_v19 = vadd.f32 %v365_v17, %v346_v16 }
  0xb9   :  { %v402_v15 = vadd.f32 %v401_v13, %v383_v14 }
  0xbb   :  { %v427_v18 = vadd.f32 %v637_v62, %v402_v15 }
  0xbd   :  { %431 = vst [vmem:[%s820_s3 + $0x10] sm:$0xff] %v427_v18 }
  0xbe   :  { %v384_v20 = vpop.f32.mrf.mxu2 }
  0xbf   :  { %v385_v21 = vadd.f32 %v384_v20, %v366_v19  ;;  %v403_v22 = vpop.f32.mrf.mxu3 }
  0xc1   :  { %v404_v23 = vadd.f32 %v403_v22, %v385_v21 }
  0xc3   :  { %v428_v24 = vadd.f32 %v637_v62, %v404_v23 }
  0xc5   :  { %432 = vst [vmem:[%s820_s3 + $0x18] sm:$0xff] %v428_v24 }

// kernel: generator_fc_forward.59
= control target key start
LH: loop header
LB: loop body
LE: loop exit
PB: predicated region body
PF: predicated region fallthrough
CT: control target
= control target key end

     0   :  { %s649_s1 = inlined_call_operand.vmem [shape: bf16[512,128], index: 1, kind: input, shape index: {}]   ;;  %s650_s0 = inlined_call_operand.vmem [shape: bf16[8,512], index: 0, kind: input, shape index: {}]   ;;  %s651_s2 = inlined_call_operand.vmem [shape: f32[1,128], index: 2, kind: input, shape index: {}]   ;;  %s652_s3 = inlined_call_operand.vmem [shape: f32[8,128], index: 3, kind: output, shape index: {}]  }
   0x1   :  { %v495_v0 = vld [vmem:[%s649_s1 + $0x38] sm:$0xff]  ;;  %v494_v4 = vld [vmem:[%s649_s1 + $0x30] sm:$0xff]  ;;  %v493_v8 = vld [vmem:[%s649_s1 + $0x28] sm:$0xff] }
   0x2   :  { %v503_v1 = vld [vmem:[%s649_s1 + $0x78] sm:$0xff]  ;;  %292 = vmatpush.bf16.msra.mxu0 %v495_v0  ;;  %v502_v5 = vld [vmem:[%s649_s1 + $0x70] sm:$0xff]  ;;  %v501_v9 = vld [vmem:[%s649_s1 + $0x68] sm:$0xff] }
   0x3   :  { %v511_v2 = vld [vmem:[%s649_s1 + $0xb8] sm:$0xff]  ;;  %305 = vmatpush.bf16.msra.mxu1 %v503_v1  ;;  %v510_v6 = vld [vmem:[%s649_s1 + $0xb0] sm:$0xff]  ;;  %v509_v10 = vld [vmem:[%s649_s1 + $0xa8] sm:$0xff] }
   0x4   :  { %v519_v3 = vld [vmem:[%s649_s1 + $0xf8] sm:$0xff]  ;;  %318 = vmatpush.bf16.msra.mxu2 %v511_v2  ;;  %v518_v7 = vld [vmem:[%s649_s1 + $0xf0] sm:$0xff]  ;;  %v517_v11 = vld [vmem:[%s649_s1 + $0xe8] sm:$0xff] }
   0x5   :  { %331 = vmatpush.bf16.msra.mxu3 %v519_v3  ;;  %v492_v12 = vld [vmem:[%s649_s1 + $0x20] sm:$0xff]  ;;  %v491_v16 = vld [vmem:[%s649_s1 + $0x18] sm:$0xff]  ;;  %v490_v20 = vld [vmem:[%s649_s1 + $0x10] sm:$0xff] }
   0x6   :  { %293 = vmatpush.bf16.msra.mxu0 %v494_v4  ;;  %v500_v13 = vld [vmem:[%s649_s1 + $0x60] sm:$0xff]  ;;  %v499_v17 = vld [vmem:[%s649_s1 + $0x58] sm:$0xff]  ;;  %v498_v21 = vld [vmem:[%s649_s1 + $0x50] sm:$0xff] }
   0x7   :  { %306 = vmatpush.bf16.msra.mxu1 %v502_v5  ;;  %v508_v14 = vld [vmem:[%s649_s1 + $0xa0] sm:$0xff]  ;;  %v507_v18 = vld [vmem:[%s649_s1 + $0x98] sm:$0xff]  ;;  %v506_v22 = vld [vmem:[%s649_s1 + $0x90] sm:$0xff] }
   0x8   :  { %319 = vmatpush.bf16.msra.mxu2 %v510_v6  ;;  %v516_v15 = vld [vmem:[%s649_s1 + $0xe0] sm:$0xff]  ;;  %v515_v19 = vld [vmem:[%s649_s1 + $0xd8] sm:$0xff]  ;;  %v514_v23 = vld [vmem:[%s649_s1 + $0xd0] sm:$0xff] }
   0x9   :  { %332 = vmatpush.bf16.msra.mxu3 %v518_v7  ;;  %v489_v24 = vld [vmem:[%s649_s1 + $0x8] sm:$0xff]  ;;  %v20_v26 = vld [vmem:[%s650_s0] sm:$0xff] }
   0xa   :  { %294 = vmatpush.bf16.msra.mxu0 %v493_v8  ;;  %v497_v25 = vld [vmem:[%s649_s1 + $0x48] sm:$0xff]  ;;  %v88_v30 = vunpack.c.l.b16 %v20_v26  ;;  %v89_v31 = vunpack.c.h.b16 %v20_v26  ;;  %v488_v32 = vld [vmem:[%s649_s1] sm:$0xff] }
   0xb   :  { %307 = vmatpush.bf16.msra.mxu1 %v501_v9  ;;  %v505_v27 = vld [vmem:[%s649_s1 + $0x88] sm:$0xff]  ;;  %v496_v33 = vld [vmem:[%s649_s1 + $0x40] sm:$0xff] }
   0xc   :  { %320 = vmatpush.bf16.msra.mxu2 %v509_v10  ;;  %v513_v28 = vld [vmem:[%s649_s1 + $0xc8] sm:$0xff]  ;;  %v504_v36 = vld [vmem:[%s649_s1 + $0x80] sm:$0xff]  ;;  %v92_v38 = vpack.c.b16 %v88_v30, %v88_v30  ;;  %v93_v39 = vpack.c.b16 %v89_v31, %v89_v31 }
   0xd   :  { %333 = vmatpush.bf16.msra.mxu3 %v517_v11  ;;  %v21_v29 = vld [vmem:[%s650_s0 + $0x8] sm:$0xff]  ;;  %v512_v37 = vld [vmem:[%s649_s1 + $0xc0] sm:$0xff] }
   0xe   :  { %295 = vmatpush.bf16.msra.mxu0 %v492_v12  ;;  %v90_v34 = vunpack.c.l.b16 %v21_v29  ;;  %v91_v35 = vunpack.c.h.b16 %v21_v29  ;;  %v520_v48 = vld [vmem:[%s651_s2] ss:$0 sm:$0xff] }
   0xf   :  { %308 = vmatpush.bf16.msra.mxu1 %v500_v13 }
  0x10   :  { %321 = vmatpush.bf16.msra.mxu2 %v508_v14  ;;  %v94_v40 = vpack.c.b16 %v90_v34, %v90_v34  ;;  %v95_v41 = vpack.c.b16 %v91_v35, %v91_v35 }
  0x11   :  { %334 = vmatpush.bf16.msra.mxu3 %v516_v15 }
  0x12   :  { %296 = vmatpush.bf16.msra.mxu0 %v491_v16 }
  0x13   :  { %309 = vmatpush.bf16.msra.mxu1 %v499_v17 }
  0x14   :  { %322 = vmatpush.bf16.msra.mxu2 %v507_v18 }
  0x15   :  { %335 = vmatpush.bf16.msra.mxu3 %v515_v19 }
  0x16   :  { %297 = vmatpush.bf16.msra.mxu0 %v490_v20 }
  0x17   :  { %310 = vmatpush.bf16.msra.mxu1 %v498_v21 }
  0x18   :  { %323 = vmatpush.bf16.msra.mxu2 %v506_v22 }
  0x19   :  { %336 = vmatpush.bf16.msra.mxu3 %v514_v23 }
  0x1a   :  { %298 = vmatpush.bf16.msra.mxu0 %v489_v24 }
  0x1b   :  { %311 = vmatpush.bf16.msra.mxu1 %v497_v25 }
  0x1c   :  { %324 = vmatpush.bf16.msra.mxu2 %v505_v27 }
  0x1d   :  { %337 = vmatpush.bf16.msra.mxu3 %v513_v28 }
  0x1e   :  { %299 = vmatpush.bf16.msra.mxu0 %v488_v32 }
  0x1f   :  { %312 = vmatpush.bf16.msra.mxu1 %v496_v33 }
  0x20   :  { %325 = vmatpush.bf16.msra.mxu2 %v504_v36 }
  0x21   :  { %338 = vmatpush.bf16.msra.mxu3 %v512_v37  ;;  %300 = vmatmul.bf16.vlgmr.msra.gmra.mxu0 %v92_v38 }
  0x22   :  { %313 = vmatmul.bf16.vlgmr.msra.gmra.mxu1 %v93_v39 }
  0x23   :  { %326 = vmatmul.bf16.vlgmr.msra.gmra.mxu2 %v94_v40 }
  0x24   :  { %339 = vmatmul.bf16.vlgmr.msra.gmra.mxu3 %v95_v41 }
  0x9e   :  { %v301_v42 = vpop.f32.mrf.mxu0 }
  0x9f   :  { %v314_v43 = vpop.f32.mrf.mxu1 }
  0xa0   :  { %v315_v44 = vadd.f32 %v314_v43, %v301_v42 }
  0xa6   :  { %v327_v45 = vpop.f32.mrf.mxu2  ;;  %v303_v49 = vpop.f32.mrf.mxu0 }
  0xa7   :  { %v340_v46 = vpop.f32.mrf.mxu3  ;;  %v328_v47 = vadd.f32 %v327_v45, %v315_v44  ;;  %v316_v50 = vpop.f32.mrf.mxu1 }
  0xa9   :  { %v341_v51 = vadd.f32 %v340_v46, %v328_v47 }
  0xab   :  { %v354_v52 = vadd.f32 %v520_v48, %v341_v51 }
  0xad   :  { %355 = vst [vmem:[%s652_s3] sm:$0xff] %v354_v52 }
  0xae   :  { %v329_v53 = vpop.f32.mrf.mxu2 }
  0xaf   :  { %v342_v54 = vpop.f32.mrf.mxu3 }

// kernel: generator_fc_forward.60
= control target key start
LH: loop header
LB: loop body
LE: loop exit
PB: predicated region body
PF: predicated region fallthrough
CT: control target
= control target key end

     0   :  { %s323_s12 = smov 0   ;;  %s356_s0 = inlined_call_operand.vmem [shape: f32[2,4,32], index: 0, kind: input, shape index: {}]   ;;  %s357_s1 = inlined_call_operand.vmem [shape: f32[1,32], index: 1, kind: input, shape index: {}]   ;;  %s358_s2 = inlined_call_operand.vmem [shape: f32[1,32], index: 2, kind: input, shape index: {}]   ;;  %s359_s3 = inlined_call_operand.vmem [shape: f32[2,4,32], index: 3, kind: output, shape index: {}]  }
   0x1 LB: > { %s270_s13 = sadd.s32 4294967295, %s300_s12   ;;  %p274_p0 = scmp.ge.s32.totalorder %s300_s12, 1  ;;  %s300_s12 = sphi %s323_s12, %s13_s12  }
   0x2   : > { %p136_p1 = scmp.lt.s32.totalorder %s300_s12, 3 }
   0x4   : > { %p137_p2 = pnand %p274_p0, %p136_p1 }
   0x5   : > { %p158_p3 = scmp.lt.s32.totalorder (!%p137_p2), %s270_s13, 1 }
   0x6   : > { %140 = sbr.rel (%p137_p2) target bundleno = 78 (0x4e), region = 32 }
   0xb   : > { %v302_v0 = vmov 4.0   ;;  %s361_s13 = smov (!%p158_p3, %s270_s13), 1  ;;  %vm167_vm0 = vcmask 257024   ;;  %v288_v33 = vld [vmem:[%s357_s1] ss:$0 sm:$0xff] }
   0xc   : > { %290 = vrcp.f32 %v302_v0  ;;  %s275_s14 = sshll.u32 %s361_s13, 2  ;;  %v289_v36 = vld [vmem:[%s358_s2] ss:$0 sm:$0xff] }
   0xd   : > { %s161_s17 = scalar_lea.vmem %s356_s0, %s275_s14  ;;  %s165_s24 = scalar_lea.vmem %s359_s3, %s275_s14 }
   0xe   : > { %v166_v1 = vld [vmem:[%s161_s17] sm:$0xf] }
   0xf   : > { %v168_v3 = vsel %vm167_vm0, %v166_v1, 0.0 }
  0x10   : > { %v169_v4 = vrot.slane %v168_v3, 4 }
  0x12   : > { %v291_v2 = vpop.eup %290  ;;  %v170_v6 = vadd.f32 %v169_v4, %v168_v3 }
  0x13   : > { %v176_v5 = vmul.f32 4.0, %v291_v2  ;;  %vm180_vm1 = vweird.f32 %v291_v2 }
  0x14   : > { %v171_v8 = vrot.slane %v170_v6, 2 }
  0x15   : > { %v177_v7 = vsub.f32 1.0, %v176_v5 }
  0x16   : > { %v172_v10 = vadd.f32 %v171_v8, %v170_v6 }
  0x17   : > { %v178_v9 = vmul.f32 %v291_v2, %v177_v7 }
  0x18   : > { %v173_v12 = vrot.slane %v172_v10, 1 }
  0x19   : > { %v179_v11 = vadd.f32 %v291_v2, %v178_v9 }
  0x1a   : > { %v174_v14 = vadd.f32 %v173_v12, %v172_v10 }
  0x1b   : > { %v181_v13 = vsel %vm180_vm1, %v291_v2, %v179_v11 }
  0x1c   : > { %v182_v15 = vmul.f32 %v181_v13, %v174_v14 }
  0x1e   : > { %v183_v16 = vsub.f32 %v166_v1, %v182_v15 }
  0x20   : > { %v184_v17 = vmul.f32 %v183_v16, %v183_v16 }
  0x22   : > { %v185_v18 = vsel %vm167_vm0, %v184_v17, 0.0 }
  0x23   : > { %v186_v19 = vrot.slane %v185_v18, 4 }
  0x25   : > { %v187_v20 = vadd.f32 %v186_v19, %v185_v18 }
  0x27   : > { %v188_v21 = vrot.slane %v187_v20, 2 }
  0x29   : > { %v189_v22 = vadd.f32 %v188_v21, %v187_v20 }
  0x2b   : > { %v190_v23 = vrot.slane %v189_v22, 1 }
  0x2d   : > { %v191_v24 = vadd.f32 %v190_v23, %v189_v22 }
  0x2f   : > { %v192_v25 = vmul.f32 %v191_v24, %v181_v13 }
  0x31   : > { %v193_v26 = vadd.f32 1e-05, %v192_v25 }
  0x33   : > { %292 = vrsqrt.f32 %v193_v26  ;;  %vm200_vm2 = vweird.f32 %v193_v26 }
  0x39   : > { %v293_v27 = vpop.eup %292 }
  0x3a   : > { %v195_v28 = vmul.f32 %v293_v27, %v193_v26  ;;  %vm201_vm3 = vweird.f32 %v293_v27 }
  0x3b   : > { %vm202_vm4 = vmor %vm200_vm2, %vm201_vm3 }
  0x3c   : > { %v196_v29 = vmul.f32 %v293_v27, %v195_v28 }
  0x3e   : > { %v197_v30 = vmul.f32 0.5, %v196_v29 }
  0x40   : > { %v198_v31 = vsub.f32 1.5, %v197_v30 }
  0x42   : > { %v199_v32 = vmul.f32 %v293_v27, %v198_v31 }
  0x44   : > { %v203_v34 = vsel %vm202_vm4, %v293_v27, %v199_v32 }
  0x45   : > { %v204_v35 = vmul.f32 %v203_v34, %v183_v16 }
  0x47   : > { %v209_v37 = vmul.f32 %v288_v33, %v204_v35 }
  0x49   : > { %v214_v38 = vadd.f32 %v289_v36, %v209_v37 }
  0x4b   : > { %v215_v39 = vmax.f32 %v214_v38, 0.0 }
  0x4d   : > { %216 = vst.msk [vmem:[%s165_s24] sm:$0xf] %vm167_vm0, %v215_v39 }
  0x4e PF: > { %s13_s12 = sadd.s32 1, %s300_s12  }
  0x4f   : > { %p10_p4 = scmp.ge.s32.totalorder %s13_s12, 4  }
  0x51   :  { %12 = sbr.rel (!%p10_p4) target bundleno = 1 (0x1), region = 62 }

// kernel: generator_fc_forward.61
= control target key start
LH: loop header
LB: loop body
LE: loop exit
PB: predicated region body
PF: predicated region fallthrough
CT: control target
= control target key end

     0   :  { %s505_s1 = inlined_call_operand.vmem [shape: bf16[384,128], index: 1, kind: input, shape index: {}]   ;;  %s506_s0 = inlined_call_operand.vmem [shape: bf16[8,384], index: 0, kind: input, shape index: {}]   ;;  %s507_s2 = inlined_call_operand.vmem [shape: f32[1,128], index: 2, kind: input, shape index: {}]   ;;  %s508_s3 = inlined_call_operand.vmem [shape: f32[8,128], index: 3, kind: output, shape index: {}]  }
   0x1   :  { %v383_v0 = vld [vmem:[%s505_s1 + $0x38] sm:$0xff]  ;;  %v382_v3 = vld [vmem:[%s505_s1 + $0x30] sm:$0xff]  ;;  %v381_v6 = vld [vmem:[%s505_s1 + $0x28] sm:$0xff] }
   0x2   :  { %v391_v1 = vld [vmem:[%s505_s1 + $0x78] sm:$0xff]  ;;  %225 = vmatpush.bf16.msra.mxu0 %v383_v0  ;;  %v390_v4 = vld [vmem:[%s505_s1 + $0x70] sm:$0xff]  ;;  %v389_v7 = vld [vmem:[%s505_s1 + $0x68] sm:$0xff] }
   0x3   :  { %v399_v2 = vld [vmem:[%s505_s1 + $0xb8] sm:$0xff]  ;;  %238 = vmatpush.bf16.msra.mxu1 %v391_v1  ;;  %v398_v5 = vld [vmem:[%s505_s1 + $0xb0] sm:$0xff]  ;;  %v397_v8 = vld [vmem:[%s505_s1 + $0xa8] sm:$0xff] }
   0x4   :  { %251 = vmatpush.bf16.msra.mxu2 %v399_v2  ;;  %v380_v9 = vld [vmem:[%s505_s1 + $0x20] sm:$0xff]  ;;  %v379_v12 = vld [vmem:[%s505_s1 + $0x18] sm:$0xff]  ;;  %v378_v15 = vld [vmem:[%s505_s1 + $0x10] sm:$0xff] }
   0x5   :  { %v388_v10 = vld [vmem:[%s505_s1 + $0x60] sm:$0xff]  ;;  %v387_v13 = vld [vmem:[%s505_s1 + $0x58] sm:$0xff]  ;;  %v386_v16 = vld [vmem:[%s505_s1 + $0x50] sm:$0xff] }
   0x6   :  { %226 = vmatpush.bf16.msra.mxu0 %v382_v3  ;;  %v396_v11 = vld [vmem:[%s505_s1 + $0xa0] sm:$0xff]  ;;  %v395_v14 = vld [vmem:[%s505_s1 + $0x98] sm:$0xff]  ;;  %v394_v17 = vld [vmem:[%s505_s1 + $0x90] sm:$0xff] }
   0x7   :  { %239 = vmatpush.bf16.msra.mxu1 %v390_v4  ;;  %v377_v18 = vld [vmem:[%s505_s1 + $0x8] sm:$0xff]  ;;  %v20_v20 = vld [vmem:[%s506_s0] sm:$0xff] }
   0x8   :  { %252 = vmatpush.bf16.msra.mxu2 %v398_v5  ;;  %v385_v19 = vld [vmem:[%s505_s1 + $0x48] sm:$0xff]  ;;  %v72_v23 = vunpack.c.l.b16 %v20_v20  ;;  %v73_v24 = vunpack.c.h.b16 %v20_v20  ;;  %v376_v25 = vld [vmem:[%s505_s1] sm:$0xff] }
   0x9   :  { %v393_v21 = vld [vmem:[%s505_s1 + $0x88] sm:$0xff]  ;;  %v384_v26 = vld [vmem:[%s505_s1 + $0x40] sm:$0xff] }
   0xa   :  { %227 = vmatpush.bf16.msra.mxu0 %v381_v6  ;;  %v21_v22 = vld [vmem:[%s506_s0 + $0x8] sm:$0xf]  ;;  %v392_v28 = vld [vmem:[%s505_s1 + $0x80] sm:$0xff]  ;;  %v75_v29 = vpack.c.b16 %v72_v23, %v72_v23  ;;  %v76_v30 = vpack.c.b16 %v73_v24, %v73_v24 }
   0xb   :  { %240 = vmatpush.bf16.msra.mxu1 %v389_v7  ;;  %v74_v27 = vunpack.c.l.b16 %v21_v22  ;;  %v400_v35 = vld [vmem:[%s507_s2] ss:$0 sm:$0xff] }
   0xc   :  { %253 = vmatpush.bf16.msra.mxu2 %v397_v8 }
   0xd   :  { %v77_v31 = vpack.c.b16 %v74_v27, %v74_v27 }
   0xe   :  { %228 = vmatpush.bf16.msra.mxu0 %v380_v9 }
   0xf   :  { %241 = vmatpush.bf16.msra.mxu1 %v388_v10 }
  0x10   :  { %254 = vmatpush.bf16.msra.mxu2 %v396_v11 }
  0x12   :  { %229 = vmatpush.bf16.msra.mxu0 %v379_v12 }
  0x13   :  { %242 = vmatpush.bf16.msra.mxu1 %v387_v13 }
  0x14   :  { %255 = vmatpush.bf16.msra.mxu2 %v395_v14 }
  0x16   :  { %230 = vmatpush.bf16.msra.mxu0 %v378_v15 }
  0x17   :  { %243 = vmatpush.bf16.msra.mxu1 %v386_v16 }
  0x18   :  { %256 = vmatpush.bf16.msra.mxu2 %v394_v17 }
  0x1a   :  { %231 = vmatpush.bf16.msra.mxu0 %v377_v18 }
  0x1b   :  { %244 = vmatpush.bf16.msra.mxu1 %v385_v19 }
  0x1c   :  { %257 = vmatpush.bf16.msra.mxu2 %v393_v21 }
  0x1e   :  { %232 = vmatpush.bf16.msra.mxu0 %v376_v25 }
  0x1f   :  { %245 = vmatpush.bf16.msra.mxu1 %v384_v26 }
  0x20   :  { %258 = vmatpush.bf16.msra.mxu2 %v392_v28 }
  0x21   :  { %233 = vmatmul.bf16.vlgmr.msra.gmra.mxu0 %v75_v29 }
  0x22   :  { %246 = vmatmul.bf16.vlgmr.msra.gmra.mxu1 %v76_v30 }
  0x23   :  { %259 = vmatmul.bf16.vlgmr.msra.gmra.mxu2 %v77_v31 }
  0x9e   :  { %v234_v32 = vpop.f32.mrf.mxu0 }
  0x9f   :  { %v247_v33 = vpop.f32.mrf.mxu1 }
  0xa0   :  { %v248_v34 = vadd.f32 %v247_v33, %v234_v32 }
  0xa6   :  { %v260_v36 = vpop.f32.mrf.mxu2  ;;  %v236_v38 = vpop.f32.mrf.mxu0 }
  0xa7   :  { %v261_v37 = vadd.f32 %v260_v36, %v248_v34  ;;  %v249_v39 = vpop.f32.mrf.mxu1 }
  0xa9   :  { %v274_v40 = vadd.f32 %v400_v35, %v261_v37 }
  0xab   :  { %275 = vst [vmem:[%s508_s3] sm:$0xff] %v274_v40 }
  0xae   :  { %v262_v41 = vpop.f32.mrf.mxu2 }

// kernel: generator_fc_forward.64
= control target key start
LH: loop header
LB: loop body
LE: loop exit
PB: predicated region body
PF: predicated region fallthrough
CT: control target
= control target key end

     0   :  { %s386_s15 = smov 0   ;;  %s420_s0 = inlined_call_operand.vmem [shape: f32[2,4,32], index: 0, kind: input, shape index: {}]   ;;  %s421_s1 = inlined_call_operand.vmem [shape: f32[1,32], index: 1, kind: input, shape index: {}]   ;;  %s422_s2 = inlined_call_operand.vmem [shape: f32[1,32], index: 2, kind: input, shape index: {}]   ;;  %s423_s3 = inlined_call_operand.vmem [shape: f32[2,4,32], index: 3, kind: input, shape index: {}]   ;;  %s424_s4 = inlined_call_operand.vmem [shape: f32[2,4,32], index: 4, kind: output, shape index: {}]  }
   0x1 LB: > { %s327_s16 = sadd.s32 4294967295, %s358_s15   ;;  %p331_p0 = scmp.ge.s32.totalorder %s358_s15, 1  ;;  %s358_s15 = sphi %s386_s15, %s14_s15  }
   0x2   : > { %p170_p1 = scmp.lt.s32.totalorder %s358_s15, 3 }
   0x4   : > { %p171_p2 = pnand %p331_p0, %p170_p1 }
   0x5   : > { %p198_p3 = scmp.lt.s32.totalorder (!%p171_p2), %s327_s16, 1 }
   0x6   : > { %174 = sbr.rel (%p171_p2) target bundleno = 78 (0x4e), region = 36 }
   0xb   : > { %v360_v0 = vmov 4.0   ;;  %s426_s16 = smov (!%p198_p3, %s327_s16), 1  ;;  %vm211_vm0 = vcmask 257024   ;;  %v346_v33 = vld [vmem:[%s421_s1] ss:$0 sm:$0xff] }
   0xc   : > { %348 = vrcp.f32 %v360_v0  ;;  %s394_s17 = sshll.u32 %s426_s16, 2  ;;  %v347_v36 = vld [vmem:[%s422_s2] ss:$0 sm:$0xff] }
   0xd   : > { %s201_s20 = scalar_lea.vmem %s420_s0, %s394_s17  ;;  %s205_s25 = scalar_lea.vmem %s423_s3, %s394_s17 }
   0xe   : > { %v210_v1 = vld [vmem:[%s201_s20] sm:$0xf]  ;;  %s209_s30 = scalar_lea.vmem %s424_s4, %s394_s17 }
   0xf   : > { %v212_v3 = vsel %vm211_vm0, %v210_v1, 0.0  ;;  %v259_v38 = vld [vmem:[%s205_s25] sm:$0xf] }
  0x10   : > { %v213_v4 = vrot.slane %v212_v3, 4 }
  0x12   : > { %v349_v2 = vpop.eup %348  ;;  %v214_v6 = vadd.f32 %v213_v4, %v212_v3 }
  0x13   : > { %v220_v5 = vmul.f32 4.0, %v349_v2  ;;  %vm224_vm1 = vweird.f32 %v349_v2 }
  0x14   : > { %v215_v8 = vrot.slane %v214_v6, 2 }
  0x15   : > { %v221_v7 = vsub.f32 1.0, %v220_v5 }
  0x16   : > { %v216_v10 = vadd.f32 %v215_v8, %v214_v6 }
  0x17   : > { %v222_v9 = vmul.f32 %v349_v2, %v221_v7 }
  0x18   : > { %v217_v12 = vrot.slane %v216_v10, 1 }
  0x19   : > { %v223_v11 = vadd.f32 %v349_v2, %v222_v9 }
  0x1a   : > { %v218_v14 = vadd.f32 %v217_v12, %v216_v10 }
  0x1b   : > { %v225_v13 = vsel %vm224_vm1, %v349_v2, %v223_v11 }
  0x1c   : > { %v226_v15 = vmul.f32 %v225_v13, %v218_v14 }
  0x1e   : > { %v227_v16 = vsub.f32 %v210_v1, %v226_v15 }
  0x20   : > { %v228_v17 = vmul.f32 %v227_v16, %v227_v16 }
  0x22   : > { %v229_v18 = vsel %vm211_vm0, %v228_v17, 0.0 }
  0x23   : > { %v230_v19 = vrot.slane %v229_v18, 4 }
  0x25   : > { %v231_v20 = vadd.f32 %v230_v19, %v229_v18 }
  0x27   : > { %v232_v21 = vrot.slane %v231_v20, 2 }
  0x29   : > { %v233_v22 = vadd.f32 %v232_v21, %v231_v20 }
  0x2b   : > { %v234_v23 = vrot.slane %v233_v22, 1 }
  0x2d   : > { %v235_v24 = vadd.f32 %v234_v23, %v233_v22 }
  0x2f   : > { %v236_v25 = vmul.f32 %v235_v24, %v225_v13 }
  0x31   : > { %v237_v26 = vadd.f32 1e-05, %v236_v25 }
  0x33   : > { %350 = vrsqrt.f32 %v237_v26  ;;  %vm244_vm2 = vweird.f32 %v237_v26 }
  0x39   : > { %v351_v27 = vpop.eup %350 }
  0x3a   : > { %v239_v28 = vmul.f32 %v351_v27, %v237_v26  ;;  %vm245_vm3 = vweird.f32 %v351_v27 }
  0x3b   : > { %vm246_vm4 = vmor %vm244_vm2, %vm245_vm3 }
  0x3c   : > { %v240_v29 = vmul.f32 %v351_v27, %v239_v28 }
  0x3e   : > { %v241_v30 = vmul.f32 0.5, %v240_v29 }
  0x40   : > { %v242_v31 = vsub.f32 1.5, %v241_v30 }
  0x42   : > { %v243_v32 = vmul.f32 %v351_v27, %v242_v31 }
  0x44   : > { %v247_v34 = vsel %vm246_vm4, %v351_v27, %v243_v32 }
  0x45   : > { %v248_v35 = vmul.f32 %v247_v34, %v227_v16 }
  0x47   : > { %v253_v37 = vmul.f32 %v346_v33, %v248_v35 }
  0x49   : > { %v258_v39 = vadd.f32 %v347_v36, %v253_v37 }
  0x4b   : > { %v260_v40 = vadd.f32 %v259_v38, %v258_v39 }
  0x4d   : > { %261 = vst.msk [vmem:[%s209_s30] sm:$0xf] %vm211_vm0, %v260_v40 }
  0x4e PF: > { %s14_s15 = sadd.s32 1, %s358_s15  }
  0x4f   : > { %p11_p4 = scmp.ge.s32.totalorder %s14_s15, 4  }
  0x51   :  { %13 = sbr.rel (!%p11_p4) target bundleno = 1 (0x1), region = 69 }

// kernel: generator_fc_forward.69
= control target key start
LH: loop header
LB: loop body
LE: loop exit
PB: predicated region body
PF: predicated region fallthrough
CT: control target
= control target key end

     0   :  { %s209_s1 = inlined_call_operand.vmem [shape: bf16[128,128], index: 1, kind: input, shape index: {}]   ;;  %s210_s2 = inlined_call_operand.vmem [shape: f32[1,128], index: 2, kind: input, shape index: {}]   ;;  %s211_s0 = inlined_call_operand.vmem [shape: bf16[8,128], index: 0, kind: input, shape index: {}]   ;;  %s212_s3 = inlined_call_operand.vmem [shape: f32[8,128], index: 3, kind: output, shape index: {}]  }
   0x1   :  { %v154_v0 = vld [vmem:[%s209_s1 + $0x38] sm:$0xff]  ;;  %v153_v1 = vld [vmem:[%s209_s1 + $0x30] sm:$0xff]  ;;  %v152_v2 = vld [vmem:[%s209_s1 + $0x28] sm:$0xff] }
   0x2   :  { %85 = vmatpush.bf16.msra.mxu0 %v154_v0  ;;  %v151_v3 = vld [vmem:[%s209_s1 + $0x20] sm:$0xff]  ;;  %v150_v4 = vld [vmem:[%s209_s1 + $0x18] sm:$0xff]  ;;  %v149_v5 = vld [vmem:[%s209_s1 + $0x10] sm:$0xff] }
   0x3   :  { %v148_v6 = vld [vmem:[%s209_s1 + $0x8] sm:$0xff]  ;;  %v147_v7 = vld [vmem:[%s209_s1] sm:$0xff] }
   0x4   :  { %v20_v8 = vld [vmem:[%s211_s0] sm:$0xf] }
   0x5   :  { %v155_v9 = vld [vmem:[%s210_s2] ss:$0 sm:$0xff] }
   0x6   :  { %86 = vmatpush.bf16.msra.mxu0 %v153_v1 }
   0xa   :  { %87 = vmatpush.bf16.msra.mxu0 %v152_v2 }
   0xe   :  { %88 = vmatpush.bf16.msra.mxu0 %v151_v3 }
  0x12   :  { %89 = vmatpush.bf16.msra.mxu0 %v150_v4 }
  0x16   :  { %90 = vmatpush.bf16.msra.mxu0 %v149_v5 }
  0x1a   :  { %91 = vmatpush.bf16.msra.mxu0 %v148_v6 }
  0x1e   :  { %92 = vmatpush.bf16.msra.mxu0 %v147_v7 }
  0x21   :  { %93 = vmatmul.bf16.vlgmr.msra.gmra.mxu0 %v20_v8 }
  0x9e   :  { %v94_v10 = vpop.f32.mrf.mxu0 }
  0x9f   :  { %v108_v11 = vadd.f32 %v155_v9, %v94_v10 }
  0xa1   :  { %v109_v12 = vmax.f32 %v108_v11, 0.0 }
  0xa3   :  { %110 = vst [vmem:[%s212_s3] sm:$0xff] %v109_v12 }
  0xa6   :  { %v96_v13 = vpop.f32.mrf.mxu0 }

// kernel: generator_fc_forward.70
= control target key start
LH: loop header
LB: loop body
LE: loop exit
PB: predicated region body
PF: predicated region fallthrough
CT: control target
= control target key end

     0   :  { %s208_s1 = inlined_call_operand.vmem [shape: bf16[128,128], index: 1, kind: input, shape index: {}]   ;;  %s209_s2 = inlined_call_operand.vmem [shape: f32[1,128], index: 2, kind: input, shape index: {}]   ;;  %s210_s0 = inlined_call_operand.vmem [shape: bf16[8,128], index: 0, kind: input, shape index: {}]   ;;  %s211_s3 = inlined_call_operand.vmem [shape: f32[8,128], index: 3, kind: output, shape index: {}]  }
   0x1   :  { %v153_v0 = vld [vmem:[%s208_s1 + $0x38] sm:$0xff]  ;;  %v152_v1 = vld [vmem:[%s208_s1 + $0x30] sm:$0xff]  ;;  %v151_v2 = vld [vmem:[%s208_s1 + $0x28] sm:$0xff] }
   0x2   :  { %85 = vmatpush.bf16.msra.mxu0 %v153_v0  ;;  %v150_v3 = vld [vmem:[%s208_s1 + $0x20] sm:$0xff]  ;;  %v149_v4 = vld [vmem:[%s208_s1 + $0x18] sm:$0xff]  ;;  %v148_v5 = vld [vmem:[%s208_s1 + $0x10] sm:$0xff] }
   0x3   :  { %v147_v6 = vld [vmem:[%s208_s1 + $0x8] sm:$0xff]  ;;  %v146_v7 = vld [vmem:[%s208_s1] sm:$0xff] }
   0x4   :  { %v20_v8 = vld [vmem:[%s210_s0] sm:$0xf] }
   0x5   :  { %v154_v9 = vld [vmem:[%s209_s2] ss:$0 sm:$0xff] }
   0x6   :  { %86 = vmatpush.bf16.msra.mxu0 %v152_v1 }
   0xa   :  { %87 = vmatpush.bf16.msra.mxu0 %v151_v2 }
   0xe   :  { %88 = vmatpush.bf16.msra.mxu0 %v150_v3 }
  0x12   :  { %89 = vmatpush.bf16.msra.mxu0 %v149_v4 }
  0x16   :  { %90 = vmatpush.bf16.msra.mxu0 %v148_v5 }
  0x1a   :  { %91 = vmatpush.bf16.msra.mxu0 %v147_v6 }
  0x1e   :  { %92 = vmatpush.bf16.msra.mxu0 %v146_v7 }
  0x21   :  { %93 = vmatmul.bf16.vlgmr.msra.gmra.mxu0 %v20_v8 }
  0x9e   :  { %v94_v10 = vpop.f32.mrf.mxu0 }
  0x9f   :  { %v108_v11 = vadd.f32 %v154_v9, %v94_v10 }
  0xa1   :  { %109 = vst [vmem:[%s211_s3] sm:$0xff] %v108_v11 }
  0xa6   :  { %v96_v12 = vpop.f32.mrf.mxu0 }

// kernel: generator_fc_forward.86
= control target key start
LH: loop header
LB: loop body
LE: loop exit
PB: predicated region body
PF: predicated region fallthrough
CT: control target
= control target key end

     0   :  { %s280_s1 = inlined_call_operand.vmem [shape: bf16[128,128], index: 1, kind: input, shape index: {}]   ;;  %s281_s2 = inlined_call_operand.vmem [shape: f32[1,128], index: 2, kind: input, shape index: {}]   ;;  %s282_s0 = inlined_call_operand.vmem [shape: bf16[32,128], index: 0, kind: input, shape index: {}]   ;;  %s283_s3 = inlined_call_operand.vmem [shape: f32[32,128], index: 3, kind: output, shape index: {}]  }
   0x1   :  { %v205_v0 = vld [vmem:[%s280_s1 + $0x38] sm:$0xff]  ;;  %v204_v1 = vld [vmem:[%s280_s1 + $0x30] sm:$0xff]  ;;  %v203_v2 = vld [vmem:[%s280_s1 + $0x28] sm:$0xff] }
   0x2   :  { %106 = vmatpush.bf16.msra.mxu0 %v205_v0  ;;  %206 = vmatpush.bf16.msra.mxu1 %v205_v0  ;;  %v202_v3 = vld [vmem:[%s280_s1 + $0x20] sm:$0xff]  ;;  %v201_v4 = vld [vmem:[%s280_s1 + $0x18] sm:$0xff]  ;;  %v200_v5 = vld [vmem:[%s280_s1 + $0x10] sm:$0xff] }
   0x3   :  { %v199_v6 = vld [vmem:[%s280_s1 + $0x8] sm:$0xff]  ;;  %v198_v7 = vld [vmem:[%s280_s1] sm:$0xff] }
   0x4   :  { %v196_v8 = vld [vmem:[%s282_s0] sm:$0xff]  ;;  %v197_v9 = vld [vmem:[%s282_s0 + $0x8] sm:$0xff] }
   0x5   :  { %v214_v10 = vld [vmem:[%s281_s2] ss:$0 sm:$0xff] }
   0x6   :  { %107 = vmatpush.bf16.msra.mxu0 %v204_v1  ;;  %207 = vmatpush.bf16.msra.mxu1 %v204_v1 }
   0xa   :  { %108 = vmatpush.bf16.msra.mxu0 %v203_v2  ;;  %208 = vmatpush.bf16.msra.mxu1 %v203_v2 }
   0xe   :  { %109 = vmatpush.bf16.msra.mxu0 %v202_v3  ;;  %209 = vmatpush.bf16.msra.mxu1 %v202_v3 }
  0x12   :  { %110 = vmatpush.bf16.msra.mxu0 %v201_v4  ;;  %210 = vmatpush.bf16.msra.mxu1 %v201_v4 }
  0x16   :  { %111 = vmatpush.bf16.msra.mxu0 %v200_v5  ;;  %211 = vmatpush.bf16.msra.mxu1 %v200_v5 }
  0x1a   :  { %112 = vmatpush.bf16.msra.mxu0 %v199_v6  ;;  %212 = vmatpush.bf16.msra.mxu1 %v199_v6 }
  0x1e   :  { %113 = vmatpush.bf16.msra.mxu0 %v198_v7  ;;  %213 = vmatpush.bf16.msra.mxu1 %v198_v7 }
  0x21   :  { %114 = vmatmul.bf16.vlgmr.msra.gmra.mxu0 %v196_v8  ;;  %119 = vmatmul.bf16.vlgmr.msra.gmra.mxu1 %v197_v9 }
  0x9e   :  { %v115_v11 = vpop.f32.mrf.mxu0  ;;  %v120_v12 = vpop.f32.mrf.mxu1 }
  0x9f   :  { %v144_v13 = vadd.f32 %v214_v10, %v115_v11  ;;  %v146_v14 = vadd.f32 %v214_v10, %v120_v12 }
  0xa1   :  { %148 = vst [vmem:[%s283_s3] sm:$0xff] %v144_v13 }
  0xa2   :  { %150 = vst [vmem:[%s283_s3 + $0x10] sm:$0xff] %v146_v14 }
  0xa6   :  { %v117_v15 = vpop.f32.mrf.mxu0  ;;  %v122_v16 = vpop.f32.mrf.mxu1 }
  0xa7   :  { %v145_v17 = vadd.f32 %v214_v10, %v117_v15  ;;  %v147_v18 = vadd.f32 %v214_v10, %v122_v16 }
  0xa9   :  { %149 = vst [vmem:[%s283_s3 + $0x8] sm:$0xff] %v145_v17 }
  0xaa   :  { %151 = vst [vmem:[%s283_s3 + $0x18] sm:$0xff] %v147_v18 }

// kernel: generator_fc_forward.91
= control target key start
LH: loop header
LB: loop body
LE: loop exit
PB: predicated region body
PF: predicated region fallthrough
CT: control target
= control target key end

     0   :  { %s542_s1 = inlined_call_operand.vmem [shape: bf16[128,128], index: 1, kind: input, shape index: {}]   ;;  %s543_s2 = inlined_call_operand.vmem [shape: f32[1,128], index: 2, kind: input, shape index: {}]   ;;  %s544_s0 = inlined_call_operand.vmem [shape: bf16[128,128], index: 0, kind: input, shape index: {}]   ;;  %s545_s3 = inlined_call_operand.vmem [shape: f32[128,128], index: 3, kind: output, shape index: {}]  }
   0x1   :  { %v397_v0 = vld [vmem:[%s542_s1 + $0x38] sm:$0xff]  ;;  %v396_v1 = vld [vmem:[%s542_s1 + $0x30] sm:$0xff]  ;;  %v395_v2 = vld [vmem:[%s542_s1 + $0x28] sm:$0xff] }
   0x2   :  { %178 = vmatpush.bf16.msra.mxu0 %v397_v0  ;;  %398 = vmatpush.bf16.msra.mxu1 %v397_v0  ;;  %v394_v3 = vld [vmem:[%s542_s1 + $0x20] sm:$0xff]  ;;  %v393_v4 = vld [vmem:[%s542_s1 + $0x18] sm:$0xff]  ;;  %v392_v5 = vld [vmem:[%s542_s1 + $0x10] sm:$0xff] }
   0x3   :  { %399 = vmatpush.bf16.msra.mxu2 %v397_v0  ;;  %400 = vmatpush.bf16.msra.mxu3 %v397_v0  ;;  %v391_v6 = vld [vmem:[%s542_s1 + $0x8] sm:$0xff]  ;;  %v390_v7 = vld [vmem:[%s542_s1] sm:$0xff]  ;;  %v384_v9 = vld [vmem:[%s544_s0 + $0x10] sm:$0xff] }
   0x4   :  { %v382_v8 = vld [vmem:[%s544_s0] sm:$0xff]  ;;  %v388_v11 = vld [vmem:[%s544_s0 + $0x30] sm:$0xff]  ;;  %v383_v12 = vld [vmem:[%s544_s0 + $0x8] sm:$0xff] }
   0x5   :  { %v386_v10 = vld [vmem:[%s544_s0 + $0x20] sm:$0xff]  ;;  %v385_v13 = vld [vmem:[%s544_s0 + $0x18] sm:$0xff]  ;;  %v387_v14 = vld [vmem:[%s544_s0 + $0x28] sm:$0xff] }
   0x6   :  { %179 = vmatpush.bf16.msra.mxu0 %v396_v1  ;;  %401 = vmatpush.bf16.msra.mxu1 %v396_v1  ;;  %v389_v15 = vld [vmem:[%s544_s0 + $0x38] sm:$0xff]  ;;  %v422_v16 = vld [vmem:[%s543_s2] ss:$0 sm:$0xff] }
   0x7   :  { %402 = vmatpush.bf16.msra.mxu2 %v396_v1  ;;  %403 = vmatpush.bf16.msra.mxu3 %v396_v1 }
   0xa   :  { %180 = vmatpush.bf16.msra.mxu0 %v395_v2  ;;  %404 = vmatpush.bf16.msra.mxu1 %v395_v2 }
   0xb   :  { %405 = vmatpush.bf16.msra.mxu2 %v395_v2  ;;  %406 = vmatpush.bf16.msra.mxu3 %v395_v2 }
   0xe   :  { %181 = vmatpush.bf16.msra.mxu0 %v394_v3  ;;  %407 = vmatpush.bf16.msra.mxu1 %v394_v3 }
   0xf   :  { %408 = vmatpush.bf16.msra.mxu2 %v394_v3  ;;  %409 = vmatpush.bf16.msra.mxu3 %v394_v3 }
  0x12   :  { %182 = vmatpush.bf16.msra.mxu0 %v393_v4  ;;  %410 = vmatpush.bf16.msra.mxu1 %v393_v4 }
  0x13   :  { %411 = vmatpush.bf16.msra.mxu2 %v393_v4  ;;  %412 = vmatpush.bf16.msra.mxu3 %v393_v4 }
  0x16   :  { %183 = vmatpush.bf16.msra.mxu0 %v392_v5  ;;  %413 = vmatpush.bf16.msra.mxu1 %v392_v5 }
  0x17   :  { %414 = vmatpush.bf16.msra.mxu2 %v392_v5  ;;  %415 = vmatpush.bf16.msra.mxu3 %v392_v5 }
  0x1a   :  { %184 = vmatpush.bf16.msra.mxu0 %v391_v6  ;;  %416 = vmatpush.bf16.msra.mxu1 %v391_v6 }
  0x1b   :  { %417 = vmatpush.bf16.msra.mxu2 %v391_v6  ;;  %418 = vmatpush.bf16.msra.mxu3 %v391_v6 }
  0x1e   :  { %185 = vmatpush.bf16.msra.mxu0 %v390_v7  ;;  %419 = vmatpush.bf16.msra.mxu1 %v390_v7 }
  0x1f   :  { %420 = vmatpush.bf16.msra.mxu2 %v390_v7  ;;  %421 = vmatpush.bf16.msra.mxu3 %v390_v7 }
  0x21   :  { %186 = vmatmul.bf16.vlgmr.msra.gmra.mxu0 %v382_v8  ;;  %196 = vmatmul.bf16.vlgmr.msra.gmra.mxu1 %v384_v9 }
  0x22   :  { %206 = vmatmul.bf16.vlgmr.msra.gmra.mxu2 %v386_v10  ;;  %216 = vmatmul.bf16.vlgmr.msra.gmra.mxu3 %v388_v11 }
  0x31   :  { %191 = vmatmul.bf16.gmra.mxu0 %v383_v12  ;;  %201 = vmatmul.bf16.gmra.mxu1 %v385_v13 }
  0x32   :  { %211 = vmatmul.bf16.gmra.mxu2 %v387_v14  ;;  %221 = vmatmul.bf16.gmra.mxu3 %v389_v15 }
  0x9e   :  { %v187_v17 = vpop.f32.mrf.mxu0  ;;  %v197_v18 = vpop.f32.mrf.mxu1 }
  0x9f   :  { %v282_v19 = vadd.f32 %v422_v16, %v187_v17  ;;  %v286_v20 = vadd.f32 %v422_v16, %v197_v18 }
  0xa1   :  { %298 = vst [vmem:[%s545_s3] sm:$0xff] %v282_v19 }
  0xa2   :  { %302 = vst [vmem:[%s545_s3 + $0x20] sm:$0xff] %v286_v20 }
  0xa5   :  { %v207_v21 = vpop.f32.mrf.mxu2  ;;  %v217_v22 = vpop.f32.mrf.mxu3 }
  0xa6   :  { %v290_v23 = vadd.f32 %v422_v16, %v207_v21  ;;  %v294_v24 = vadd.f32 %v422_v16, %v217_v22  ;;  %v189_v25 = vpop.f32.mrf.mxu0  ;;  %v199_v26 = vpop.f32.mrf.mxu1 }
  0xa7   :  { %v283_v27 = vadd.f32 %v422_v16, %v189_v25  ;;  %v287_v28 = vadd.f32 %v422_v16, %v199_v26 }
  0xa8   :  { %306 = vst [vmem:[%s545_s3 + $0x40] sm:$0xff] %v290_v23 }
  0xa9   :  { %310 = vst [vmem:[%s545_s3 + $0x60] sm:$0xff] %v294_v24 }
  0xaa   :  { %299 = vst [vmem:[%s545_s3 + $0x8] sm:$0xff] %v283_v27 }
  0xab   :  { %303 = vst [vmem:[%s545_s3 + $0x28] sm:$0xff] %v287_v28 }
  0xad   :  { %v209_v29 = vpop.f32.mrf.mxu2  ;;  %v219_v30 = vpop.f32.mrf.mxu3 }
  0xae   :  { %v291_v31 = vadd.f32 %v422_v16, %v209_v29  ;;  %v295_v32 = vadd.f32 %v422_v16, %v219_v30  ;;  %v192_v33 = vpop.f32.mrf.mxu0  ;;  %v202_v34 = vpop.f32.mrf.mxu1 }
  0xaf   :  { %v284_v35 = vadd.f32 %v422_v16, %v192_v33  ;;  %v288_v36 = vadd.f32 %v422_v16, %v202_v34 }
  0xb0   :  { %307 = vst [vmem:[%s545_s3 + $0x48] sm:$0xff] %v291_v31 }
  0xb1   :  { %311 = vst [vmem:[%s545_s3 + $0x68] sm:$0xff] %v295_v32 }
  0xb2   :  { %300 = vst [vmem:[%s545_s3 + $0x10] sm:$0xff] %v284_v35 }
  0xb3   :  { %304 = vst [vmem:[%s545_s3 + $0x30] sm:$0xff] %v288_v36 }
  0xb5   :  { %v212_v37 = vpop.f32.mrf.mxu2  ;;  %v222_v38 = vpop.f32.mrf.mxu3 }
  0xb6   :  { %v292_v39 = vadd.f32 %v422_v16, %v212_v37  ;;  %v296_v40 = vadd.f32 %v422_v16, %v222_v38  ;;  %v194_v41 = vpop.f32.mrf.mxu0  ;;  %v204_v42 = vpop.f32.mrf.mxu1 }
  0xb7   :  { %v285_v43 = vadd.f32 %v422_v16, %v194_v41  ;;  %v289_v44 = vadd.f32 %v422_v16, %v204_v42 }
  0xb8   :  { %308 = vst [vmem:[%s545_s3 + $0x50] sm:$0xff] %v292_v39 }
  0xb9   :  { %312 = vst [vmem:[%s545_s3 + $0x70] sm:$0xff] %v296_v40 }
  0xba   :  { %301 = vst [vmem:[%s545_s3 + $0x18] sm:$0xff] %v285_v43 }
  0xbb   :  { %305 = vst [vmem:[%s545_s3 + $0x38] sm:$0xff] %v289_v44 }
  0xbd   :  { %v214_v45 = vpop.f32.mrf.mxu2  ;;  %v224_v46 = vpop.f32.mrf.mxu3 }
  0xbe   :  { %v293_v47 = vadd.f32 %v422_v16, %v214_v45  ;;  %v297_v48 = vadd.f32 %v422_v16, %v224_v46 }
  0xc0   :  { %309 = vst [vmem:[%s545_s3 + $0x58] sm:$0xff] %v293_v47 }
  0xc1   :  { %313 = vst [vmem:[%s545_s3 + $0x78] sm:$0xff] %v297_v48 }

// kernel: generator_fc_forward.101
= control target key start
LH: loop header
LB: loop body
LE: loop exit
PB: predicated region body
PF: predicated region fallthrough
CT: control target
= control target key end

     0   :  { %s2272_s12 = smov 0   ;;  %s2274_s13 = smov 0   ;;  %s2609_s0 = inlined_call_operand.vmem [shape: bf16[2048,512], index: 0, kind: input, shape index: {}]   ;;  %s2610_s1 = inlined_call_operand.vmem [shape: bf16[512,128], index: 1, kind: input, shape index: {}]   ;;  %s2611_s2 = inlined_call_operand.vmem [shape: f32[1,128], index: 2, kind: input, shape index: {}]   ;;  %s2612_s3 = inlined_call_operand.vmem [shape: f32[2048,128], index: 3, kind: output, shape index: {}]  }
   0x1   :  { %s2276_s14 = smov 0  }
   0x2 LB: > { %s32_s15 = sadd.s32 1, %s2246_s13  ;;  %p1650_p0 = scmp.ge.s32.totalorder %s2250_s14, 1  ;;  %s2250_s14 = sphi %s2276_s14, %s13_s14   ;;  %s2246_s13 = sphi %s2274_s13, %s2614_s13   ;;  %s2242_s12 = sphi %s2272_s12, %s2613_s12  }
   0x3   : > { %p34_p1 = scmp.ge.s32.totalorder %s32_s15, 8  ;;  %p191_p2 = scmp.lt.s32.totalorder %s2250_s14, 9 }
   0x5   : > { %s2616_s15 = smov (%p34_p1, %s32_s15), 0  ;;  %p192_p3 = pnand %p1650_p0, %p191_p2 }
   0x6   : > { %s1651_s17 = sshll.u32 (!%p192_p3), %s2242_s12, 5 }
   0x7   : > { %195 = sbr.rel (%p192_p3) target bundleno = 440 (0x1b8), region = 32  ;;  %p236_p4 = scmp.lt.s32.totalorder (!%p192_p3), %s1651_s17, 255 }
   0xc   : > { %v2114_v0 = vld [vmem:[%s2610_s1 + $0x38] sm:$0xff]  ;;  %v2113_v4 = vld [vmem:[%s2610_s1 + $0x30] sm:$0xff]  ;;  %v2112_v8 = vld [vmem:[%s2610_s1 + $0x28] sm:$0xff]  ;;  %s2618_s17 = smov (!%p236_p4, %s1651_s17), 255 }
   0xd   : > { %v2122_v1 = vld [vmem:[%s2610_s1 + $0x78] sm:$0xff]  ;;  %975 = vmatpush.bf16.msra.mxu0 %v2114_v0  ;;  %v2121_v5 = vld [vmem:[%s2610_s1 + $0x70] sm:$0xff]  ;;  %v2120_v9 = vld [vmem:[%s2610_s1 + $0x68] sm:$0xff]  ;;  %s2042_s19 = sshll.u32 %s2618_s17, 4  ;;  %s1655_s18 = sshll.u32 %s2618_s17, 3 }
   0xe   : > { %v2130_v2 = vld [vmem:[%s2610_s1 + $0xb8] sm:$0xff]  ;;  %1064 = vmatpush.bf16.msra.mxu1 %v2122_v1  ;;  %v2129_v6 = vld [vmem:[%s2610_s1 + $0xb0] sm:$0xff]  ;;  %v2128_v10 = vld [vmem:[%s2610_s1 + $0xa8] sm:$0xff]  ;;  %s2377_s12 = scalar_lea.vmem %s2609_s0, %s2042_s19  ;;  %s2487_s21 = scalar_lea.vmem %s2612_s3, %s1655_s18 }
   0xf   : > { %v2138_v3 = vld [vmem:[%s2610_s1 + $0xf8] sm:$0xff]  ;;  %1153 = vmatpush.bf16.msra.mxu2 %v2130_v2  ;;  %v2137_v7 = vld [vmem:[%s2610_s1 + $0xf0] sm:$0xff]  ;;  %v2136_v11 = vld [vmem:[%s2610_s1 + $0xe8] sm:$0xff] }
  0x10   : > { %1242 = vmatpush.bf16.msra.mxu3 %v2138_v3  ;;  %v2111_v12 = vld [vmem:[%s2610_s1 + $0x20] sm:$0xff]  ;;  %v2110_v16 = vld [vmem:[%s2610_s1 + $0x18] sm:$0xff]  ;;  %v2109_v20 = vld [vmem:[%s2610_s1 + $0x10] sm:$0xff] }
  0x11   : > { %976 = vmatpush.bf16.msra.mxu0 %v2113_v4  ;;  %v2119_v13 = vld [vmem:[%s2610_s1 + $0x60] sm:$0xff]  ;;  %v2118_v17 = vld [vmem:[%s2610_s1 + $0x58] sm:$0xff]  ;;  %v2117_v21 = vld [vmem:[%s2610_s1 + $0x50] sm:$0xff] }
  0x12   : > { %1065 = vmatpush.bf16.msra.mxu1 %v2121_v5  ;;  %v2127_v14 = vld [vmem:[%s2610_s1 + $0xa0] sm:$0xff]  ;;  %v2126_v18 = vld [vmem:[%s2610_s1 + $0x98] sm:$0xff]  ;;  %v2125_v22 = vld [vmem:[%s2610_s1 + $0x90] sm:$0xff] }
  0x13   : > { %1154 = vmatpush.bf16.msra.mxu2 %v2129_v6  ;;  %v2135_v15 = vld [vmem:[%s2610_s1 + $0xe0] sm:$0xff]  ;;  %v2134_v19 = vld [vmem:[%s2610_s1 + $0xd8] sm:$0xff]  ;;  %v2133_v23 = vld [vmem:[%s2610_s1 + $0xd0] sm:$0xff] }
  0x14   : > { %1243 = vmatpush.bf16.msra.mxu3 %v2137_v7  ;;  %v2108_v24 = vld [vmem:[%s2610_s1 + $0x8] sm:$0xff]  ;;  %v2107_v28 = vld [vmem:[%s2610_s1] sm:$0xff]  ;;  %v2045_v33 = vld [vmem:[%s2377_s12 + $0xc] sm:$0xf0] }
  0x15   : > { %977 = vmatpush.bf16.msra.mxu0 %v2112_v8  ;;  %v2116_v25 = vld [vmem:[%s2610_s1 + $0x48] sm:$0xff]  ;;  %v2115_v29 = vld [vmem:[%s2610_s1 + $0x40] sm:$0xff]  ;;  %v1660_v35 = vld [vmem:[%s2377_s12 + $0x10] sm:$0xf0] }
  0x16   : > { %1066 = vmatpush.bf16.msra.mxu1 %v2120_v9  ;;  %v2124_v26 = vld [vmem:[%s2610_s1 + $0x88] sm:$0xff]  ;;  %v2123_v30 = vld [vmem:[%s2610_s1 + $0x80] sm:$0xff]  ;;  %v2046_v37 = vld [vmem:[%s2377_s12 + $0x14] sm:$0xf0] }
  0x17   : > { %1155 = vmatpush.bf16.msra.mxu2 %v2128_v10  ;;  %v2132_v27 = vld [vmem:[%s2610_s1 + $0xc8] sm:$0xff]  ;;  %v2131_v31 = vld [vmem:[%s2610_s1 + $0xc0] sm:$0xff]  ;;  %v1668_v39 = vld [vmem:[%s2377_s12 + $0x18] sm:$0xf0] }
  0x18   : > { %1244 = vmatpush.bf16.msra.mxu3 %v2136_v11  ;;  %v1658_v32 = vld [vmem:[%s2377_s12] sm:$0xf]  ;;  %v2043_v34 = vld [vmem:[%s2377_s12 + $0x4] sm:$0xf]  ;;  %v1666_v36 = vld [vmem:[%s2377_s12 + $0x8] sm:$0xf] }
  0x19   : > { %978 = vmatpush.bf16.msra.mxu0 %v2111_v12  ;;  %v2044_v38 = vld [vmem:[%s2377_s12 + $0xc] sm:$0xf]  ;;  %v1659_v40 = vor.u32 %v2045_v33, %v1658_v32  ;;  %v1663_v41 = vor.u32 %v2043_v34, %v1660_v35  ;;  %v1667_v42 = vor.u32 %v2046_v37, %v1666_v36  ;;  %v1674_v44 = vld [vmem:[%s2377_s12 + $0x20] sm:$0xf]  ;;  %v2049_v45 = vld [vmem:[%s2377_s12 + $0x2c] sm:$0xf0] }
  0x1a   : > { %1067 = vmatpush.bf16.msra.mxu1 %v2119_v13  ;;  %v1671_v43 = vor.u32 %v2044_v38, %v1668_v39  ;;  %v2047_v46 = vld [vmem:[%s2377_s12 + $0x24] sm:$0xf]  ;;  %v1676_v47 = vld [vmem:[%s2377_s12 + $0x30] sm:$0xf0]  ;;  %v1682_v48 = vld [vmem:[%s2377_s12 + $0x28] sm:$0xf]  ;;  %v1675_v52 = vor.u32 %v2049_v45, %v1674_v44 }
  0x1b   : > { %1156 = vmatpush.bf16.msra.mxu2 %v2127_v14  ;;  %v2050_v49 = vld [vmem:[%s2377_s12 + $0x34] sm:$0xf0]  ;;  %v2048_v50 = vld [vmem:[%s2377_s12 + $0x2c] sm:$0xf]  ;;  %v1684_v51 = vld [vmem:[%s2377_s12 + $0x38] sm:$0xf0]  ;;  %v1679_v53 = vor.u32 %v2047_v46, %v1676_v47 }
  0x1c   : > { %1245 = vmatpush.bf16.msra.mxu3 %v2135_v15  ;;  %v1683_v54 = vor.u32 %v2050_v49, %v1682_v48  ;;  %v1687_v55 = vor.u32 %v2048_v50, %v1684_v51  ;;  %v1690_v56 = vld [vmem:[%s2377_s12 + $0x40] sm:$0xf]  ;;  %v2053_v57 = vld [vmem:[%s2377_s12 + $0x4c] sm:$0xf0]  ;;  %v2051_v58 = vld [vmem:[%s2377_s12 + $0x44] sm:$0xf] }
  0x1d   : > { %979 = vmatpush.bf16.msra.mxu0 %v2110_v16  ;;  %v1692_v59 = vld [vmem:[%s2377_s12 + $0x50] sm:$0xf0]  ;;  %v1698_v60 = vld [vmem:[%s2377_s12 + $0x48] sm:$0xf]  ;;  %v2054_v61 = vld [vmem:[%s2377_s12 + $0x54] sm:$0xf0]  ;;  %v1691_v0 = vor.u32 %v2053_v57, %v1690_v56 }
  0x1e   : > { %1068 = vmatpush.bf16.msra.mxu1 %v2118_v17  ;;  %v2052_v62 = vld [vmem:[%s2377_s12 + $0x4c] sm:$0xf]  ;;  %v1700_v63 = vld [vmem:[%s2377_s12 + $0x58] sm:$0xf0]  ;;  %v1695_v1 = vor.u32 %v2051_v58, %v1692_v59  ;;  %v1699_v2 = vor.u32 %v2054_v61, %v1698_v60  ;;  %v1706_v4 = vld [vmem:[%s2377_s12 + $0x60] sm:$0xf] }
  0x1f   : > { %1157 = vmatpush.bf16.msra.mxu2 %v2126_v18  ;;  %v1703_v3 = vor.u32 %v2052_v62, %v1700_v63  ;;  %v2057_v5 = vld [vmem:[%s2377_s12 + $0x6c] sm:$0xf0]  ;;  %v2055_v6 = vld [vmem:[%s2377_s12 + $0x64] sm:$0xf]  ;;  %v1708_v7 = vld [vmem:[%s2377_s12 + $0x70] sm:$0xf0] }
  0x20   : > { %1246 = vmatpush.bf16.msra.mxu3 %v2134_v19  ;;  %v1714_v8 = vld [vmem:[%s2377_s12 + $0x68] sm:$0xf]  ;;  %v2058_v9 = vld [vmem:[%s2377_s12 + $0x74] sm:$0xf0]  ;;  %v2056_v10 = vld [vmem:[%s2377_s12 + $0x6c] sm:$0xf]  ;;  %v1707_v12 = vor.u32 %v2057_v5, %v1706_v4  ;;  %v1711_v13 = vor.u32 %v2055_v6, %v1708_v7 }
  0x21   : > { %980 = vmatpush.bf16.msra.mxu0 %v2109_v20  ;;  %v1716_v11 = vld [vmem:[%s2377_s12 + $0x78] sm:$0xf0]  ;;  %v1715_v14 = vor.u32 %v2058_v9, %v1714_v8  ;;  %v1722_v16 = vld [vmem:[%s2377_s12 + $0x80] sm:$0xf]  ;;  %v2061_v17 = vld [vmem:[%s2377_s12 + $0x8c] sm:$0xf0] }
  0x22   : > { %1069 = vmatpush.bf16.msra.mxu1 %v2117_v21  ;;  %v1719_v15 = vor.u32 %v2056_v10, %v1716_v11  ;;  %v2059_v18 = vld [vmem:[%s2377_s12 + $0x84] sm:$0xf]  ;;  %v1724_v19 = vld [vmem:[%s2377_s12 + $0x90] sm:$0xf0]  ;;  %v1730_v20 = vld [vmem:[%s2377_s12 + $0x88] sm:$0xf] }
  0x23   : > { %1158 = vmatpush.bf16.msra.mxu2 %v2125_v22  ;;  %v2062_v21 = vld [vmem:[%s2377_s12 + $0x94] sm:$0xf0]  ;;  %v2060_v22 = vld [vmem:[%s2377_s12 + $0x8c] sm:$0xf]  ;;  %v1746_v32 = vld [vmem:[%s2377_s12 + $0xa8] sm:$0xf] }
  0x24   : > { %1247 = vmatpush.bf16.msra.mxu3 %v2133_v23  ;;  %v1732_v23 = vld [vmem:[%s2377_s12 + $0x98] sm:$0xf0]  ;;  %v2066_v33 = vld [vmem:[%s2377_s12 + $0xb4] sm:$0xf0]  ;;  %v2064_v34 = vld [vmem:[%s2377_s12 + $0xac] sm:$0xf] }
  0x25   : > { %981 = vmatpush.bf16.msra.mxu0 %v2108_v24  ;;  %v1723_v24 = vor.u32 %v2061_v17, %v1722_v16  ;;  %v1748_v35 = vld [vmem:[%s2377_s12 + $0xb8] sm:$0xf0]  ;;  %v1747_v38 = vor.u32 %v2066_v33, %v1746_v32  ;;  %v1762_v44 = vld [vmem:[%s2377_s12 + $0xc8] sm:$0xf]  ;;  %v2070_v45 = vld [vmem:[%s2377_s12 + $0xd4] sm:$0xf0] }
  0x26   : > { %1070 = vmatpush.bf16.msra.mxu1 %v2116_v25  ;;  %v1727_v25 = vor.u32 %v2059_v18, %v1724_v19  ;;  %v1751_v39 = vor.u32 %v2064_v34, %v1748_v35  ;;  %v2068_v46 = vld [vmem:[%s2377_s12 + $0xcc] sm:$0xf]  ;;  %v1764_v47 = vld [vmem:[%s2377_s12 + $0xd8] sm:$0xf0]  ;;  %v1763_v50 = vor.u32 %v2070_v45, %v1762_v44  ;;  %v1778_v56 = vld [vmem:[%s2377_s12 + $0xe8] sm:$0xf] }
  0x27   : > { %1159 = vmatpush.bf16.msra.mxu2 %v2124_v26  ;;  %v1731_v26 = vor.u32 %v2062_v21, %v1730_v20  ;;  %v1767_v51 = vor.u32 %v2068_v46, %v1764_v47  ;;  %v2074_v57 = vld [vmem:[%s2377_s12 + $0xf4] sm:$0xf0]  ;;  %v2072_v58 = vld [vmem:[%s2377_s12 + $0xec] sm:$0xf]  ;;  %v1780_v59 = vld [vmem:[%s2377_s12 + $0xf8] sm:$0xf0] }
  0x28   : > { %1248 = vmatpush.bf16.msra.mxu3 %v2132_v27  ;;  %v1735_v27 = vor.u32 %v2060_v22, %v1732_v23  ;;  %v1779_v62 = vor.u32 %v2074_v57, %v1778_v56  ;;  %v1783_v63 = vor.u32 %v2072_v58, %v1780_v59  ;;  %v1794_v4 = vld [vmem:[%s2377_s12 + $0x108] sm:$0xf]  ;;  %v2078_v5 = vld [vmem:[%s2377_s12 + $0x114] sm:$0xf0]  ;;  %v2076_v6 = vld [vmem:[%s2377_s12 + $0x10c] sm:$0xf] }
  0x29   : > { %982 = vmatpush.bf16.msra.mxu0 %v2107_v28  ;;  %v1738_v28 = vld [vmem:[%s2377_s12 + $0xa0] sm:$0xf]  ;;  %v1796_v7 = vld [vmem:[%s2377_s12 + $0x118] sm:$0xf0]  ;;  %v2081_v23 = vld [vmem:[%s2377_s12 + $0x12c] sm:$0xf0] }
  0x2a   : > { %1071 = vmatpush.bf16.msra.mxu1 %v2115_v29  ;;  %v2065_v29 = vld [vmem:[%s2377_s12 + $0xac] sm:$0xf0]  ;;  %v2472_v18 = vld [vmem:[%s2611_s2] ss:$0 sm:$0xff]  ;;  %v1820_v56 = vld [vmem:[%s2377_s12 + $0x150] sm:$0xf0] }
  0x2b   : > { %1160 = vmatpush.bf16.msra.mxu2 %v2123_v30  ;;  %v2063_v30 = vld [vmem:[%s2377_s12 + $0xa4] sm:$0xf]  ;;  %v1739_v36 = vor.u32 %v2065_v29, %v1738_v28  ;;  %v1802_v22 = vld [vmem:[%s2377_s12 + $0x120] sm:$0xf]  ;;  %v2082_v28 = vld [vmem:[%s2377_s12 + $0x134] sm:$0xf0] }
  0x2c   : > { %1249 = vmatpush.bf16.msra.mxu3 %v2131_v31  ;;  %983 = vmatmul.bf16.vlgmr.msra.gmra.mxu0 %v1659_v40  ;;  %v1740_v31 = vld [vmem:[%s2377_s12 + $0xb0] sm:$0xf0]  ;;  %v1754_v40 = vld [vmem:[%s2377_s12 + $0xc0] sm:$0xf]  ;;  %v2080_v29 = vld [vmem:[%s2377_s12 + $0x12c] sm:$0xf]  ;;  %v1803_v34 = vor.u32 %v2081_v23, %v1802_v22 }
  0x2d   : > { %1072 = vmatmul.bf16.vlgmr.msra.gmra.mxu1 %v1663_v41  ;;  %v1743_v37 = vor.u32 %v2063_v30, %v1740_v31  ;;  %v2069_v41 = vld [vmem:[%s2377_s12 + $0xcc] sm:$0xf0]  ;;  %v1812_v30 = vld [vmem:[%s2377_s12 + $0x138] sm:$0xf0]  ;;  %v1826_v57 = vld [vmem:[%s2377_s12 + $0x148] sm:$0xf] }
  0x2e   : > { %1161 = vmatmul.bf16.vlgmr.msra.gmra.mxu2 %v1667_v42  ;;  %v2067_v42 = vld [vmem:[%s2377_s12 + $0xc4] sm:$0xf]  ;;  %v1755_v48 = vor.u32 %v2069_v41, %v1754_v40  ;;  %v1815_v40 = vor.u32 %v2080_v29, %v1812_v30  ;;  %v2086_v58 = vld [vmem:[%s2377_s12 + $0x154] sm:$0xf0]  ;;  %v2084_v59 = vld [vmem:[%s2377_s12 + $0x14c] sm:$0xf] }
  0x2f   : > { %1250 = vmatmul.bf16.vlgmr.msra.gmra.mxu3 %v1671_v43  ;;  %v1756_v43 = vld [vmem:[%s2377_s12 + $0xd0] sm:$0xf0] }
  0x30   : > { %v1759_v49 = vor.u32 %v2067_v42, %v1756_v43  ;;  %v1836_v23 = vld [vmem:[%s2377_s12 + $0x170] sm:$0xf0] }
  0x3c   : > { %988 = vmatmul.bf16.gmra.mxu0 %v1675_v52  ;;  %v1770_v52 = vld [vmem:[%s2377_s12 + $0xe0] sm:$0xf] }
  0x3d   : > { %1077 = vmatmul.bf16.gmra.mxu1 %v1679_v53  ;;  %v2073_v53 = vld [vmem:[%s2377_s12 + $0xec] sm:$0xf0] }
  0x3e   : > { %1166 = vmatmul.bf16.gmra.mxu2 %v1683_v54  ;;  %v2071_v54 = vld [vmem:[%s2377_s12 + $0xe4] sm:$0xf]  ;;  %v1771_v60 = vor.u32 %v2073_v53, %v1770_v52  ;;  %v2085_v52 = vld [vmem:[%s2377_s12 + $0x14c] sm:$0xf0] }
  0x3f   : > { %1255 = vmatmul.bf16.gmra.mxu3 %v1687_v55  ;;  %v1772_v55 = vld [vmem:[%s2377_s12 + $0xf0] sm:$0xf0]  ;;  %v2083_v53 = vld [vmem:[%s2377_s12 + $0x144] sm:$0xf] }
  0x40   : > { %v1775_v61 = vor.u32 %v2071_v54, %v1772_v55 }
  0x4c   : > { %993 = vmatmul.bf16.gmra.mxu0 %v1691_v0  ;;  %v1786_v0 = vld [vmem:[%s2377_s12 + $0x100] sm:$0xf] }
  0x4d   : > { %1082 = vmatmul.bf16.gmra.mxu1 %v1695_v1  ;;  %v2077_v1 = vld [vmem:[%s2377_s12 + $0x10c] sm:$0xf0] }
  0x4e   : > { %1171 = vmatmul.bf16.gmra.mxu2 %v1699_v2  ;;  %v2075_v2 = vld [vmem:[%s2377_s12 + $0x104] sm:$0xf]  ;;  %v1787_v8 = vor.u32 %v2077_v1, %v1786_v0  ;;  %v1823_v1 = vor.u32 %v2083_v53, %v1820_v56  ;;  %v1852_v53 = vld [vmem:[%s2377_s12 + $0x190] sm:$0xf0]  ;;  %v2092_v56 = vld [vmem:[%s2377_s12 + $0x18c] sm:$0xf] }
  0x4f   : > { %1260 = vmatmul.bf16.gmra.mxu3 %v1703_v3  ;;  %v1788_v3 = vld [vmem:[%s2377_s12 + $0x110] sm:$0xf0] }
  0x50   : > { %v1791_v9 = vor.u32 %v2075_v2, %v1788_v3 }
  0x5c   : > { %998 = vmatmul.bf16.gmra.mxu0 %v1707_v12  ;;  %v1795_v12 = vor.u32 %v2078_v5, %v1794_v4  ;;  %v1827_v5 = vor.u32 %v2086_v58, %v1826_v57  ;;  %v1860_v57 = vld [vmem:[%s2377_s12 + $0x198] sm:$0xf0] }
  0x5d   : > { %1087 = vmatmul.bf16.gmra.mxu1 %v1711_v13  ;;  %v1799_v13 = vor.u32 %v2076_v6, %v1796_v7 }
  0x5e   : > { %1176 = vmatmul.bf16.gmra.mxu2 %v1715_v14 }
  0x5f   : > { %1265 = vmatmul.bf16.gmra.mxu3 %v1719_v15 }
  0x6c   : > { %1003 = vmatmul.bf16.gmra.mxu0 %v1723_v24 }
  0x6d   : > { %1092 = vmatmul.bf16.gmra.mxu1 %v1727_v25  ;;  %v2079_v25 = vld [vmem:[%s2377_s12 + $0x124] sm:$0xf] }
  0x6e   : > { %1181 = vmatmul.bf16.gmra.mxu2 %v1731_v26  ;;  %v1804_v26 = vld [vmem:[%s2377_s12 + $0x130] sm:$0xf0] }
  0x6f   : > { %1270 = vmatmul.bf16.gmra.mxu3 %v1735_v27  ;;  %v1810_v27 = vld [vmem:[%s2377_s12 + $0x128] sm:$0xf]  ;;  %v1807_v35 = vor.u32 %v2079_v25, %v1804_v26  ;;  %v2090_v25 = vld [vmem:[%s2377_s12 + $0x174] sm:$0xf0]  ;;  %v2088_v26 = vld [vmem:[%s2377_s12 + $0x16c] sm:$0xf] }
  0x7c   : > { %1008 = vmatmul.bf16.gmra.mxu0 %v1739_v36 }
  0x7d   : > { %1097 = vmatmul.bf16.gmra.mxu1 %v1743_v37 }
  0x7e   : > { %1186 = vmatmul.bf16.gmra.mxu2 %v1747_v38 }
  0x7f   : > { %1275 = vmatmul.bf16.gmra.mxu3 %v1751_v39  ;;  %v1811_v39 = vor.u32 %v2082_v28, %v1810_v27  ;;  %v1844_v27 = vld [vmem:[%s2377_s12 + $0x178] sm:$0xf0] }
  0x8c   : > { %1013 = vmatmul.bf16.gmra.mxu0 %v1755_v48 }
  0x8d   : > { %1102 = vmatmul.bf16.gmra.mxu1 %v1759_v49 }
  0x8e   : > { %1191 = vmatmul.bf16.gmra.mxu2 %v1763_v50 }
  0x8f   : > { %1280 = vmatmul.bf16.gmra.mxu3 %v1767_v51  ;;  %v1818_v51 = vld [vmem:[%s2377_s12 + $0x140] sm:$0xf] }
  0x90   : > { %v1819_v0 = vor.u32 %v2085_v52, %v1818_v51 }
  0x9c   : > { %1018 = vmatmul.bf16.gmra.mxu0 %v1771_v60  ;;  %v1828_v60 = vld [vmem:[%s2377_s12 + $0x158] sm:$0xf0] }
  0x9d   : > { %1107 = vmatmul.bf16.gmra.mxu1 %v1775_v61  ;;  %v1831_v6 = vor.u32 %v2084_v59, %v1828_v60 }
  0x9e   : > { %1196 = vmatmul.bf16.gmra.mxu2 %v1779_v62 }
  0x9f   : > { %1285 = vmatmul.bf16.gmra.mxu3 %v1783_v63 }
  0xa9   : > { %v984_v10 = vpop.f32.mrf.mxu0 }
  0xaa   : > { %v1073_v11 = vpop.f32.mrf.mxu1 }
  0xab   : > { %v1074_v14 = vadd.f32 %v1073_v11, %v984_v10 }
  0xac   : > { %1023 = vmatmul.bf16.gmra.mxu0 %v1787_v8 }
  0xad   : > { %1112 = vmatmul.bf16.gmra.mxu1 %v1791_v9 }
  0xae   : > { %1201 = vmatmul.bf16.gmra.mxu2 %v1795_v12 }
  0xaf   : > { %1290 = vmatmul.bf16.gmra.mxu3 %v1799_v13 }
  0xb1   : > { %v1162_v15 = vpop.f32.mrf.mxu2  ;;  %v986_v19 = vpop.f32.mrf.mxu0 }
  0xb2   : > { %v1251_v16 = vpop.f32.mrf.mxu3  ;;  %v1163_v17 = vadd.f32 %v1162_v15, %v1074_v14  ;;  %v1075_v20 = vpop.f32.mrf.mxu1 }
  0xb3   : > { %v1076_v31 = vadd.f32 %v1075_v20, %v986_v19  ;;  %v2089_v19 = vld [vmem:[%s2377_s12 + $0x16c] sm:$0xf0]  ;;  %v2087_v20 = vld [vmem:[%s2377_s12 + $0x164] sm:$0xf] }
  0xb4   : > { %v1252_v21 = vadd.f32 %v1251_v16, %v1163_v17  ;;  %v1834_v17 = vld [vmem:[%s2377_s12 + $0x160] sm:$0xf] }
  0xb6   : > { %v1434_v24 = vadd.f32 %v2472_v18, %v1252_v21 }
  0xb8   : > { %2164 = vtanh.f32 %v1434_v24  ;;  %v1842_v24 = vld [vmem:[%s2377_s12 + $0x168] sm:$0xf] }
  0xb9   : > { %v1164_v32 = vpop.f32.mrf.mxu2  ;;  %v989_v37 = vpop.f32.mrf.mxu0 }
  0xba   : > { %v1253_v33 = vpop.f32.mrf.mxu3  ;;  %v1165_v36 = vadd.f32 %v1164_v32, %v1076_v31  ;;  %v1078_v38 = vpop.f32.mrf.mxu1  ;;  %v1835_v31 = vor.u32 %v2089_v19, %v1834_v17  ;;  %v1839_v32 = vor.u32 %v2087_v20, %v1836_v23  ;;  %v1868_v20 = vld [vmem:[%s2377_s12 + $0x1b0] sm:$0xf0]  ;;  %v2096_v23 = vld [vmem:[%s2377_s12 + $0x1ac] sm:$0xf] }
  0xbb   : > { %v1079_v44 = vadd.f32 %v1078_v38, %v989_v37  ;;  %v1847_v37 = vor.u32 %v2088_v26, %v1844_v27 }
  0xbc   : > { %v1254_v41 = vadd.f32 %v1253_v33, %v1165_v36  ;;  %1028 = vmatmul.bf16.gmra.mxu0 %v1803_v34  ;;  %v1843_v36 = vor.u32 %v2090_v25, %v1842_v24  ;;  %v1876_v24 = vld [vmem:[%s2377_s12 + $0x1b8] sm:$0xf0] }
  0xbd   : > { %1117 = vmatmul.bf16.gmra.mxu1 %v1807_v35 }
  0xbe   : > { %v2165_v42 = vpop.eup %2164  ;;  %v1435_v43 = vadd.f32 %v2472_v18, %v1254_v41  ;;  %1206 = vmatmul.bf16.gmra.mxu2 %v1811_v39 }
  0xbf   : > { %1295 = vmatmul.bf16.gmra.mxu3 %v1815_v40  ;;  %1498 = vst [vmem:[%s2487_s21] sm:$0xff] %v2165_v42 }
  0xc0   : > { %2166 = vtanh.f32 %v1435_v43 }
  0xc1   : > { %v1167_v45 = vpop.f32.mrf.mxu2  ;;  %v991_v48 = vpop.f32.mrf.mxu0 }
  0xc2   : > { %v1256_v46 = vpop.f32.mrf.mxu3  ;;  %v1168_v47 = vadd.f32 %v1167_v45, %v1079_v44  ;;  %v1080_v49 = vpop.f32.mrf.mxu1 }
  0xc3   : > { %v1081_v61 = vadd.f32 %v1080_v49, %v991_v48  ;;  %v1850_v48 = vld [vmem:[%s2377_s12 + $0x180] sm:$0xf]  ;;  %v2093_v49 = vld [vmem:[%s2377_s12 + $0x18c] sm:$0xf0] }
  0xc4   : > { %v1257_v50 = vadd.f32 %v1256_v46, %v1168_v47 }
  0xc6   : > { %v2167_v54 = vpop.eup %2166  ;;  %v1436_v55 = vadd.f32 %v2472_v18, %v1257_v50  ;;  %v2091_v50 = vld [vmem:[%s2377_s12 + $0x184] sm:$0xf] }
  0xc7   : > { %1499 = vst [vmem:[%s2487_s21 + $0x8] sm:$0xff] %v2167_v54  ;;  %v1858_v54 = vld [vmem:[%s2377_s12 + $0x188] sm:$0xf] }
  0xc8   : > { %2168 = vtanh.f32 %v1436_v55  ;;  %v2094_v55 = vld [vmem:[%s2377_s12 + $0x194] sm:$0xf0] }
  0xc9   : > { %v1169_v62 = vpop.f32.mrf.mxu2  ;;  %v994_v3 = vpop.f32.mrf.mxu0 }
  0xca   : > { %v1258_v63 = vpop.f32.mrf.mxu3  ;;  %v1170_v2 = vadd.f32 %v1169_v62, %v1081_v61  ;;  %v1083_v4 = vpop.f32.mrf.mxu1  ;;  %v1851_v61 = vor.u32 %v2093_v49, %v1850_v48  ;;  %v1855_v62 = vor.u32 %v2091_v50, %v1852_v53  ;;  %v1884_v50 = vld [vmem:[%s2377_s12 + $0x1d0] sm:$0xf0]  ;;  %v2100_v53 = vld [vmem:[%s2377_s12 + $0x1cc] sm:$0xf] }
  0xcb   : > { %v1084_v10 = vadd.f32 %v1083_v4, %v994_v3  ;;  %v1863_v3 = vor.u32 %v2092_v56, %v1860_v57 }
  0xcc   : > { %v1259_v7 = vadd.f32 %v1258_v63, %v1170_v2  ;;  %1033 = vmatmul.bf16.gmra.mxu0 %v1819_v0  ;;  %v1859_v2 = vor.u32 %v2094_v55, %v1858_v54  ;;  %v1892_v54 = vld [vmem:[%s2377_s12 + $0x1d8] sm:$0xf0] }
  0xcd   : > { %1122 = vmatmul.bf16.gmra.mxu1 %v1823_v1 }
  0xce   : > { %v2169_v8 = vpop.eup %2168  ;;  %v1437_v9 = vadd.f32 %v2472_v18, %v1259_v7  ;;  %1211 = vmatmul.bf16.gmra.mxu2 %v1827_v5 }
  0xcf   : > { %1300 = vmatmul.bf16.gmra.mxu3 %v1831_v6  ;;  %1500 = vst [vmem:[%s2487_s21 + $0x10] sm:$0xff] %v2169_v8 }
  0xd0   : > { %2170 = vtanh.f32 %v1437_v9 }
  0xd1   : > { %v1172_v11 = vpop.f32.mrf.mxu2  ;;  %v996_v14 = vpop.f32.mrf.mxu0 }
  0xd2   : > { %v1261_v12 = vpop.f32.mrf.mxu3  ;;  %v1173_v13 = vadd.f32 %v1172_v11, %v1084_v10  ;;  %v1085_v15 = vpop.f32.mrf.mxu1 }
  0xd3   : > { %v1086_v28 = vadd.f32 %v1085_v15, %v996_v14  ;;  %v1866_v14 = vld [vmem:[%s2377_s12 + $0x1a0] sm:$0xf]  ;;  %v2097_v15 = vld [vmem:[%s2377_s12 + $0x1ac] sm:$0xf0] }
  0xd4   : > { %v1262_v16 = vadd.f32 %v1261_v12, %v1173_v13 }
  0xd6   : > { %v2171_v21 = vpop.eup %2170  ;;  %v1438_v22 = vadd.f32 %v2472_v18, %v1262_v16  ;;  %v2095_v16 = vld [vmem:[%s2377_s12 + $0x1a4] sm:$0xf] }
  0xd7   : > { %1501 = vst [vmem:[%s2487_s21 + $0x18] sm:$0xff] %v2171_v21  ;;  %v1874_v21 = vld [vmem:[%s2377_s12 + $0x1a8] sm:$0xf] }
  0xd8   : > { %2172 = vtanh.f32 %v1438_v22  ;;  %v2098_v22 = vld [vmem:[%s2377_s12 + $0x1b4] sm:$0xf0] }
  0xd9   : > { %v1174_v29 = vpop.f32.mrf.mxu2  ;;  %v999_v34 = vpop.f32.mrf.mxu0 }
  0xda   : > { %v1263_v30 = vpop.f32.mrf.mxu3  ;;  %v1175_v33 = vadd.f32 %v1174_v29, %v1086_v28  ;;  %v1088_v35 = vpop.f32.mrf.mxu1  ;;  %v1867_v28 = vor.u32 %v2097_v15, %v1866_v14  ;;  %v1871_v29 = vor.u32 %v2095_v16, %v1868_v20  ;;  %v1900_v16 = vld [vmem:[%s2377_s12 + $0x1f0] sm:$0xf0]  ;;  %v2104_v20 = vld [vmem:[%s2377_s12 + $0x1ec] sm:$0xf] }
  0xdb   : > { %v1089_v41 = vadd.f32 %v1088_v35, %v999_v34  ;;  %v1879_v34 = vor.u32 %v2096_v23, %v1876_v24 }
  0xdc   : > { %v1264_v38 = vadd.f32 %v1263_v30, %v1175_v33  ;;  %1038 = vmatmul.bf16.gmra.mxu0 %v1835_v31  ;;  %v1875_v33 = vor.u32 %v2098_v22, %v1874_v21  ;;  %v1908_v21 = vld [vmem:[%s2377_s12 + $0x1f8] sm:$0xf0] }
  0xdd   : > { %1127 = vmatmul.bf16.gmra.mxu1 %v1839_v32 }
  0xde   : > { %v2173_v39 = vpop.eup %2172  ;;  %v1439_v40 = vadd.f32 %v2472_v18, %v1264_v38  ;;  %1216 = vmatmul.bf16.gmra.mxu2 %v1843_v36 }
  0xdf   : > { %1305 = vmatmul.bf16.gmra.mxu3 %v1847_v37  ;;  %1502 = vst [vmem:[%s2487_s21 + $0x20] sm:$0xff] %v2173_v39 }
  0xe0   : > { %2174 = vtanh.f32 %v1439_v40 }
  0xe1   : > { %v1177_v42 = vpop.f32.mrf.mxu2  ;;  %v1001_v45 = vpop.f32.mrf.mxu0 }
  0xe2   : > { %v1266_v43 = vpop.f32.mrf.mxu3  ;;  %v1178_v44 = vadd.f32 %v1177_v42, %v1089_v41  ;;  %v1090_v46 = vpop.f32.mrf.mxu1 }
  0xe3   : > { %v1091_v58 = vadd.f32 %v1090_v46, %v1001_v45  ;;  %v1882_v45 = vld [vmem:[%s2377_s12 + $0x1c0] sm:$0xf]  ;;  %v2101_v46 = vld [vmem:[%s2377_s12 + $0x1cc] sm:$0xf0] }
  0xe4   : > { %v1267_v47 = vadd.f32 %v1266_v43, %v1178_v44 }
  0xe6   : > { %v2175_v51 = vpop.eup %2174  ;;  %v1440_v52 = vadd.f32 %v2472_v18, %v1267_v47  ;;  %v2099_v47 = vld [vmem:[%s2377_s12 + $0x1c4] sm:$0xf] }
  0xe7   : > { %1503 = vst [vmem:[%s2487_s21 + $0x28] sm:$0xff] %v2175_v51  ;;  %v1890_v51 = vld [vmem:[%s2377_s12 + $0x1c8] sm:$0xf] }
  0xe8   : > { %2176 = vtanh.f32 %v1440_v52  ;;  %v2102_v52 = vld [vmem:[%s2377_s12 + $0x1d4] sm:$0xf0] }
  0xe9   : > { %v1179_v59 = vpop.f32.mrf.mxu2  ;;  %v1004_v0 = vpop.f32.mrf.mxu0 }
  0xea   : > { %v1268_v60 = vpop.f32.mrf.mxu3  ;;  %v1180_v63 = vadd.f32 %v1179_v59, %v1091_v58  ;;  %v1093_v1 = vpop.f32.mrf.mxu1  ;;  %v1883_v58 = vor.u32 %v2101_v46, %v1882_v45  ;;  %v1887_v59 = vor.u32 %v2099_v47, %v1884_v50 }
  0xeb   : > { %v1094_v7 = vadd.f32 %v1093_v1, %v1004_v0  ;;  %v1895_v0 = vor.u32 %v2100_v53, %v1892_v54 }
  0xec   : > { %v1269_v4 = vadd.f32 %v1268_v60, %v1180_v63  ;;  %1043 = vmatmul.bf16.gmra.mxu0 %v1851_v61  ;;  %v1891_v63 = vor.u32 %v2102_v52, %v1890_v51 }
  0xed   : > { %1132 = vmatmul.bf16.gmra.mxu1 %v1855_v62 }
  0xee   : > { %v2177_v5 = vpop.eup %2176  ;;  %v1441_v6 = vadd.f32 %v2472_v18, %v1269_v4  ;;  %1221 = vmatmul.bf16.gmra.mxu2 %v1859_v2 }
  0xef   : > { %1310 = vmatmul.bf16.gmra.mxu3 %v1863_v3  ;;  %1504 = vst [vmem:[%s2487_s21 + $0x30] sm:$0xff] %v2177_v5 }
  0xf0   : > { %2178 = vtanh.f32 %v1441_v6 }
  0xf1   : > { %v1182_v8 = vpop.f32.mrf.mxu2  ;;  %v1006_v11 = vpop.f32.mrf.mxu0 }
  0xf2   : > { %v1271_v9 = vpop.f32.mrf.mxu3  ;;  %v1183_v10 = vadd.f32 %v1182_v8, %v1094_v7  ;;  %v1095_v12 = vpop.f32.mrf.mxu1 }
  0xf3   : > { %v1096_v25 = vadd.f32 %v1095_v12, %v1006_v11  ;;  %v1898_v11 = vld [vmem:[%s2377_s12 + $0x1e0] sm:$0xf]  ;;  %v2105_v12 = vld [vmem:[%s2377_s12 + $0x1ec] sm:$0xf0] }
  0xf4   : > { %v1272_v13 = vadd.f32 %v1271_v9, %v1183_v10 }
  0xf6   : > { %v2179_v17 = vpop.eup %2178  ;;  %v1442_v19 = vadd.f32 %v2472_v18, %v1272_v13  ;;  %v2103_v13 = vld [vmem:[%s2377_s12 + $0x1e4] sm:$0xf] }
  0xf7   : > { %1505 = vst [vmem:[%s2487_s21 + $0x38] sm:$0xff] %v2179_v17  ;;  %v1906_v17 = vld [vmem:[%s2377_s12 + $0x1e8] sm:$0xf] }
  0xf8   : > { %2180 = vtanh.f32 %v1442_v19  ;;  %v2106_v19 = vld [vmem:[%s2377_s12 + $0x1f4] sm:$0xf0] }
  0xf9   : > { %v1184_v26 = vpop.f32.mrf.mxu2  ;;  %v1009_v31 = vpop.f32.mrf.mxu0 }
  0xfa   : > { %v1273_v27 = vpop.f32.mrf.mxu3  ;;  %v1185_v30 = vadd.f32 %v1184_v26, %v1096_v25  ;;  %v1098_v32 = vpop.f32.mrf.mxu1  ;;  %v1899_v25 = vor.u32 %v2105_v12, %v1898_v11  ;;  %v1903_v26 = vor.u32 %v2103_v13, %v1900_v16 }
  0xfb   : > { %v1099_v38 = vadd.f32 %v1098_v32, %v1009_v31  ;;  %v1911_v31 = vor.u32 %v2104_v20, %v1908_v21 }
  0xfc   : > { %v1274_v35 = vadd.f32 %v1273_v27, %v1185_v30  ;;  %1048 = vmatmul.bf16.gmra.mxu0 %v1867_v28  ;;  %v1907_v30 = vor.u32 %v2106_v19, %v1906_v17 }
  0xfd   : > { %1137 = vmatmul.bf16.gmra.mxu1 %v1871_v29 }
  0xfe   : > { %v2181_v36 = vpop.eup %2180  ;;  %v1443_v37 = vadd.f32 %v2472_v18, %v1274_v35  ;;  %1226 = vmatmul.bf16.gmra.mxu2 %v1875_v33 }
  0xff   : > { %1315 = vmatmul.bf16.gmra.mxu3 %v1879_v34  ;;  %1506 = vst [vmem:[%s2487_s21 + $0x40] sm:$0xff] %v2181_v36 }
 0x100   : > { %2182 = vtanh.f32 %v1443_v37 }
 0x101   : > { %v1187_v39 = vpop.f32.mrf.mxu2  ;;  %v1011_v42 = vpop.f32.mrf.mxu0 }
 0x102   : > { %v1276_v40 = vpop.f32.mrf.mxu3  ;;  %v1188_v41 = vadd.f32 %v1187_v39, %v1099_v38  ;;  %v1100_v43 = vpop.f32.mrf.mxu1 }
 0x103   : > { %v1101_v55 = vadd.f32 %v1100_v43, %v1011_v42 }
 0x104   : > { %v1277_v44 = vadd.f32 %v1276_v40, %v1188_v41 }
 0x106   : > { %v2183_v48 = vpop.eup %2182  ;;  %v1444_v49 = vadd.f32 %v2472_v18, %v1277_v44 }
 0x107   : > { %1507 = vst [vmem:[%s2487_s21 + $0x48] sm:$0xff] %v2183_v48 }
 0x108   : > { %2184 = vtanh.f32 %v1444_v49 }
 0x109   : > { %v1189_v56 = vpop.f32.mrf.mxu2  ;;  %v1014_v61 = vpop.f32.mrf.mxu0 }
 0x10a   : > { %v1278_v57 = vpop.f32.mrf.mxu3  ;;  %v1190_v60 = vadd.f32 %v1189_v56, %v1101_v55  ;;  %v1103_v62 = vpop.f32.mrf.mxu1 }
 0x10b   : > { %v1104_v4 = vadd.f32 %v1103_v62, %v1014_v61 }
 0x10c   : > { %v1279_v1 = vadd.f32 %v1278_v57, %v1190_v60  ;;  %1053 = vmatmul.bf16.gmra.mxu0 %v1883_v58 }
 0x10d   : > { %1142 = vmatmul.bf16.gmra.mxu1 %v1887_v59 }
 0x10e   : > { %v2185_v2 = vpop.eup %2184  ;;  %v1445_v3 = vadd.f32 %v2472_v18, %v1279_v1  ;;  %1231 = vmatmul.bf16.gmra.mxu2 %v1891_v63 }
 0x10f   : > { %1320 = vmatmul.bf16.gmra.mxu3 %v1895_v0  ;;  %1508 = vst [vmem:[%s2487_s21 + $0x50] sm:$0xff] %v2185_v2 }
 0x110   : > { %2186 = vtanh.f32 %v1445_v3 }
 0x111   : > { %v1192_v5 = vpop.f32.mrf.mxu2  ;;  %v1016_v8 = vpop.f32.mrf.mxu0 }
 0x112   : > { %v1281_v6 = vpop.f32.mrf.mxu3  ;;  %v1193_v7 = vadd.f32 %v1192_v5, %v1104_v4  ;;  %v1105_v9 = vpop.f32.mrf.mxu1 }
 0x113   : > { %v1106_v22 = vadd.f32 %v1105_v9, %v1016_v8 }
 0x114   : > { %v1282_v10 = vadd.f32 %v1281_v6, %v1193_v7 }
 0x116   : > { %v2187_v14 = vpop.eup %2186  ;;  %v1446_v15 = vadd.f32 %v2472_v18, %v1282_v10 }
 0x117   : > { %1509 = vst [vmem:[%s2487_s21 + $0x58] sm:$0xff] %v2187_v14 }
 0x118   : > { %2188 = vtanh.f32 %v1446_v15 }
 0x119   : > { %v1194_v23 = vpop.f32.mrf.mxu2  ;;  %v1019_v28 = vpop.f32.mrf.mxu0 }
 0x11a   : > { %v1283_v24 = vpop.f32.mrf.mxu3  ;;  %v1195_v27 = vadd.f32 %v1194_v23, %v1106_v22  ;;  %v1108_v29 = vpop.f32.mrf.mxu1 }
 0x11b   : > { %v1109_v35 = vadd.f32 %v1108_v29, %v1019_v28 }
 0x11c   : > { %v1284_v32 = vadd.f32 %v1283_v24, %v1195_v27  ;;  %1058 = vmatmul.bf16.gmra.mxu0 %v1899_v25 }
 0x11d   : > { %1147 = vmatmul.bf16.gmra.mxu1 %v1903_v26 }
 0x11e   : > { %v2189_v33 = vpop.eup %2188  ;;  %v1447_v34 = vadd.f32 %v2472_v18, %v1284_v32  ;;  %1236 = vmatmul.bf16.gmra.mxu2 %v1907_v30 }
 0x11f   : > { %1325 = vmatmul.bf16.gmra.mxu3 %v1911_v31  ;;  %1510 = vst [vmem:[%s2487_s21 + $0x60] sm:$0xff] %v2189_v33 }
 0x120   : > { %2190 = vtanh.f32 %v1447_v34 }
 0x121   : > { %v1197_v36 = vpop.f32.mrf.mxu2  ;;  %v1021_v39 = vpop.f32.mrf.mxu0 }
 0x122   : > { %v1286_v37 = vpop.f32.mrf.mxu3  ;;  %v1198_v38 = vadd.f32 %v1197_v36, %v1109_v35  ;;  %v1110_v40 = vpop.f32.mrf.mxu1 }
 0x123   : > { %v1111_v44 = vadd.f32 %v1110_v40, %v1021_v39 }
 0x124   : > { %v1287_v41 = vadd.f32 %v1286_v37, %v1198_v38 }
 0x126   : > { %v2191_v42 = vpop.eup %2190  ;;  %v1448_v43 = vadd.f32 %v2472_v18, %v1287_v41 }
 0x127   : > { %1511 = vst [vmem:[%s2487_s21 + $0x68] sm:$0xff] %v2191_v42 }
 0x128   : > { %2192 = vtanh.f32 %v1448_v43 }
 0x129   : > { %v1199_v45 = vpop.f32.mrf.mxu2  ;;  %v1024_v48 = vpop.f32.mrf.mxu0 }
 0x12a   : > { %v1288_v46 = vpop.f32.mrf.mxu3  ;;  %v1200_v47 = vadd.f32 %v1199_v45, %v1111_v44  ;;  %v1113_v49 = vpop.f32.mrf.mxu1 }
 0x12b   : > { %v1114_v53 = vadd.f32 %v1113_v49, %v1024_v48 }
 0x12c   : > { %v1289_v50 = vadd.f32 %v1288_v46, %v1200_v47 }
 0x12e   : > { %v2193_v51 = vpop.eup %2192  ;;  %v1449_v52 = vadd.f32 %v2472_v18, %v1289_v50 }
 0x12f   : > { %1512 = vst [vmem:[%s2487_s21 + $0x70] sm:$0xff] %v2193_v51 }
 0x130   : > { %2194 = vtanh.f32 %v1449_v52 }
 0x131   : > { %v1202_v54 = vpop.f32.mrf.mxu2  ;;  %v1026_v57 = vpop.f32.mrf.mxu0 }
 0x132   : > { %v1291_v55 = vpop.f32.mrf.mxu3  ;;  %v1203_v56 = vadd.f32 %v1202_v54, %v1114_v53  ;;  %v1115_v58 = vpop.f32.mrf.mxu1 }
 0x133   : > { %v1116_v62 = vadd.f32 %v1115_v58, %v1026_v57 }
 0x134   : > { %v1292_v59 = vadd.f32 %v1291_v55, %v1203_v56 }
 0x136   : > { %v2195_v60 = vpop.eup %2194  ;;  %v1450_v61 = vadd.f32 %v2472_v18, %v1292_v59 }
 0x137   : > { %1513 = vst [vmem:[%s2487_s21 + $0x78] sm:$0xff] %v2195_v60 }
 0x138   : > { %2196 = vtanh.f32 %v1450_v61 }
 0x139   : > { %v1204_v63 = vpop.f32.mrf.mxu2  ;;  %v1029_v2 = vpop.f32.mrf.mxu0 }
 0x13a   : > { %v1293_v0 = vpop.f32.mrf.mxu3  ;;  %v1205_v1 = vadd.f32 %v1204_v63, %v1116_v62  ;;  %v1118_v3 = vpop.f32.mrf.mxu1 }
 0x13b   : > { %v1119_v7 = vadd.f32 %v1118_v3, %v1029_v2 }
 0x13c   : > { %v1294_v4 = vadd.f32 %v1293_v0, %v1205_v1 }
 0x13e   : > { %v2197_v5 = vpop.eup %2196  ;;  %v1451_v6 = vadd.f32 %v2472_v18, %v1294_v4 }
 0x13f   : > { %1514 = vst [vmem:[%s2487_s21 + $0x80] sm:$0xff] %v2197_v5 }
 0x140   : > { %2198 = vtanh.f32 %v1451_v6 }
 0x141   : > { %v1207_v8 = vpop.f32.mrf.mxu2  ;;  %v1031_v11 = vpop.f32.mrf.mxu0 }
 0x142   : > { %v1296_v9 = vpop.f32.mrf.mxu3  ;;  %v1208_v10 = vadd.f32 %v1207_v8, %v1119_v7  ;;  %v1120_v12 = vpop.f32.mrf.mxu1 }
 0x143   : > { %v1121_v16 = vadd.f32 %v1120_v12, %v1031_v11 }
 0x144   : > { %v1297_v13 = vadd.f32 %v1296_v9, %v1208_v10 }
 0x146   : > { %v2199_v14 = vpop.eup %2198  ;;  %v1452_v15 = vadd.f32 %v2472_v18, %v1297_v13 }
 0x147   : > { %1515 = vst [vmem:[%s2487_s21 + $0x88] sm:$0xff] %v2199_v14 }
 0x148   : > { %2200 = vtanh.f32 %v1452_v15 }
 0x149   : > { %v1209_v17 = vpop.f32.mrf.mxu2  ;;  %v1034_v21 = vpop.f32.mrf.mxu0 }
 0x14a   : > { %v1298_v19 = vpop.f32.mrf.mxu3  ;;  %v1210_v20 = vadd.f32 %v1209_v17, %v1121_v16  ;;  %v1123_v22 = vpop.f32.mrf.mxu1 }
 0x14b   : > { %v1124_v26 = vadd.f32 %v1123_v22, %v1034_v21 }
 0x14c   : > { %v1299_v23 = vadd.f32 %v1298_v19, %v1210_v20 }
 0x14e   : > { %v2201_v24 = vpop.eup %2200  ;;  %v1453_v25 = vadd.f32 %v2472_v18, %v1299_v23 }
 0x14f   : > { %1516 = vst [vmem:[%s2487_s21 + $0x90] sm:$0xff] %v2201_v24 }
 0x150   : > { %2202 = vtanh.f32 %v1453_v25 }
 0x151   : > { %v1212_v27 = vpop.f32.mrf.mxu2  ;;  %v1036_v30 = vpop.f32.mrf.mxu0 }
 0x152   : > { %v1301_v28 = vpop.f32.mrf.mxu3  ;;  %v1213_v29 = vadd.f32 %v1212_v27, %v1124_v26  ;;  %v1125_v31 = vpop.f32.mrf.mxu1 }
 0x153   : > { %v1126_v35 = vadd.f32 %v1125_v31, %v1036_v30 }
 0x154   : > { %v1302_v32 = vadd.f32 %v1301_v28, %v1213_v29 }
 0x156   : > { %v2203_v33 = vpop.eup %2202  ;;  %v1454_v34 = vadd.f32 %v2472_v18, %v1302_v32 }
 0x157   : > { %1517 = vst [vmem:[%s2487_s21 + $0x98] sm:$0xff] %v2203_v33 }
 0x158   : > { %2204 = vtanh.f32 %v1454_v34 }
 0x159   : > { %v1214_v36 = vpop.f32.mrf.mxu2  ;;  %v1039_v39 = vpop.f32.mrf.mxu0 }
 0x15a   : > { %v1303_v37 = vpop.f32.mrf.mxu3  ;;  %v1215_v38 = vadd.f32 %v1214_v36, %v1126_v35  ;;  %v1128_v40 = vpop.f32.mrf.mxu1 }
 0x15b   : > { %v1129_v44 = vadd.f32 %v1128_v40, %v1039_v39 }
 0x15c   : > { %v1304_v41 = vadd.f32 %v1303_v37, %v1215_v38 }
 0x15e   : > { %v2205_v42 = vpop.eup %2204  ;;  %v1455_v43 = vadd.f32 %v2472_v18, %v1304_v41 }
 0x15f   : > { %1518 = vst [vmem:[%s2487_s21 + $0xa0] sm:$0xff] %v2205_v42 }
 0x160   : > { %2206 = vtanh.f32 %v1455_v43 }
 0x161   : > { %v1217_v45 = vpop.f32.mrf.mxu2  ;;  %v1041_v48 = vpop.f32.mrf.mxu0 }
 0x162   : > { %v1306_v46 = vpop.f32.mrf.mxu3  ;;  %v1218_v47 = vadd.f32 %v1217_v45, %v1129_v44  ;;  %v1130_v49 = vpop.f32.mrf.mxu1 }
 0x163   : > { %v1131_v53 = vadd.f32 %v1130_v49, %v1041_v48 }
 0x164   : > { %v1307_v50 = vadd.f32 %v1306_v46, %v1218_v47 }
 0x166   : > { %v2207_v51 = vpop.eup %2206  ;;  %v1456_v52 = vadd.f32 %v2472_v18, %v1307_v50 }
 0x167   : > { %1519 = vst [vmem:[%s2487_s21 + $0xa8] sm:$0xff] %v2207_v51 }
 0x168   : > { %2208 = vtanh.f32 %v1456_v52 }
 0x169   : > { %v1219_v54 = vpop.f32.mrf.mxu2  ;;  %v1044_v57 = vpop.f32.mrf.mxu0 }
 0x16a   : > { %v1308_v55 = vpop.f32.mrf.mxu3  ;;  %v1220_v56 = vadd.f32 %v1219_v54, %v1131_v53  ;;  %v1133_v58 = vpop.f32.mrf.mxu1 }
 0x16b   : > { %v1134_v62 = vadd.f32 %v1133_v58, %v1044_v57 }
 0x16c   : > { %v1309_v59 = vadd.f32 %v1308_v55, %v1220_v56 }
 0x16e   : > { %v2209_v60 = vpop.eup %2208  ;;  %v1457_v61 = vadd.f32 %v2472_v18, %v1309_v59 }
 0x16f   : > { %1520 = vst [vmem:[%s2487_s21 + $0xb0] sm:$0xff] %v2209_v60 }
 0x170   : > { %2210 = vtanh.f32 %v1457_v61 }
 0x171   : > { %v1222_v63 = vpop.f32.mrf.mxu2  ;;  %v1046_v2 = vpop.f32.mrf.mxu0 }
 0x172   : > { %v1311_v0 = vpop.f32.mrf.mxu3  ;;  %v1223_v1 = vadd.f32 %v1222_v63, %v1134_v62  ;;  %v1135_v3 = vpop.f32.mrf.mxu1 }
 0x173   : > { %v1136_v7 = vadd.f32 %v1135_v3, %v1046_v2 }
 0x174   : > { %v1312_v4 = vadd.f32 %v1311_v0, %v1223_v1 }
 0x176   : > { %v2211_v5 = vpop.eup %2210  ;;  %v1458_v6 = vadd.f32 %v2472_v18, %v1312_v4 }
 0x177   : > { %1521 = vst [vmem:[%s2487_s21 + $0xb8] sm:$0xff] %v2211_v5 }
 0x178   : > { %2212 = vtanh.f32 %v1458_v6 }
 0x179   : > { %v1224_v8 = vpop.f32.mrf.mxu2  ;;  %v1049_v11 = vpop.f32.mrf.mxu0 }
 0x17a   : > { %v1313_v9 = vpop.f32.mrf.mxu3  ;;  %v1225_v10 = vadd.f32 %v1224_v8, %v1136_v7  ;;  %v1138_v12 = vpop.f32.mrf.mxu1 }
 0x17b   : > { %v1139_v16 = vadd.f32 %v1138_v12, %v1049_v11 }
 0x17c   : > { %v1314_v13 = vadd.f32 %v1313_v9, %v1225_v10 }
 0x17e   : > { %v2213_v14 = vpop.eup %2212  ;;  %v1459_v15 = vadd.f32 %v2472_v18, %v1314_v13 }
 0x17f   : > { %1522 = vst [vmem:[%s2487_s21 + $0xc0] sm:$0xff] %v2213_v14 }
 0x180   : > { %2214 = vtanh.f32 %v1459_v15 }
 0x181   : > { %v1227_v17 = vpop.f32.mrf.mxu2  ;;  %v1051_v21 = vpop.f32.mrf.mxu0 }
 0x182   : > { %v1316_v19 = vpop.f32.mrf.mxu3  ;;  %v1228_v20 = vadd.f32 %v1227_v17, %v1139_v16  ;;  %v1140_v22 = vpop.f32.mrf.mxu1 }
 0x183   : > { %v1141_v26 = vadd.f32 %v1140_v22, %v1051_v21 }
 0x184   : > { %v1317_v23 = vadd.f32 %v1316_v19, %v1228_v20 }
 0x186   : > { %v2215_v24 = vpop.eup %2214  ;;  %v1460_v25 = vadd.f32 %v2472_v18, %v1317_v23 }
 0x187   : > { %1523 = vst [vmem:[%s2487_s21 + $0xc8] sm:$0xff] %v2215_v24 }
 0x188   : > { %2216 = vtanh.f32 %v1460_v25 }
 0x189   : > { %v1229_v27 = vpop.f32.mrf.mxu2  ;;  %v1054_v30 = vpop.f32.mrf.mxu0 }
 0x18a   : > { %v1318_v28 = vpop.f32.mrf.mxu3  ;;  %v1230_v29 = vadd.f32 %v1229_v27, %v1141_v26  ;;  %v1143_v31 = vpop.f32.mrf.mxu1 }
 0x18b   : > { %v1144_v35 = vadd.f32 %v1143_v31, %v1054_v30 }
 0x18c   : > { %v1319_v32 = vadd.f32 %v1318_v28, %v1230_v29 }
 0x18e   : > { %v2217_v33 = vpop.eup %2216  ;;  %v1461_v34 = vadd.f32 %v2472_v18, %v1319_v32 }
 0x18f   : > { %1524 = vst [vmem:[%s2487_s21 + $0xd0] sm:$0xff] %v2217_v33 }
 0x190   : > { %2218 = vtanh.f32 %v1461_v34 }
 0x191   : > { %v1232_v36 = vpop.f32.mrf.mxu2  ;;  %v1056_v39 = vpop.f32.mrf.mxu0 }
 0x192   : > { %v1321_v37 = vpop.f32.mrf.mxu3  ;;  %v1233_v38 = vadd.f32 %v1232_v36, %v1144_v35  ;;  %v1145_v40 = vpop.f32.mrf.mxu1 }
 0x193   : > { %v1146_v44 = vadd.f32 %v1145_v40, %v1056_v39 }
 0x194   : > { %v1322_v41 = vadd.f32 %v1321_v37, %v1233_v38 }
 0x196   : > { %v2219_v42 = vpop.eup %2218  ;;  %v1462_v43 = vadd.f32 %v2472_v18, %v1322_v41 }
 0x197   : > { %1525 = vst [vmem:[%s2487_s21 + $0xd8] sm:$0xff] %v2219_v42 }
 0x198   : > { %2220 = vtanh.f32 %v1462_v43 }
 0x199   : > { %v1234_v45 = vpop.f32.mrf.mxu2  ;;  %v1059_v48 = vpop.f32.mrf.mxu0 }
 0x19a   : > { %v1323_v46 = vpop.f32.mrf.mxu3  ;;  %v1235_v47 = vadd.f32 %v1234_v45, %v1146_v44  ;;  %v1148_v49 = vpop.f32.mrf.mxu1 }
 0x19b   : > { %v1149_v53 = vadd.f32 %v1148_v49, %v1059_v48 }
 0x19c   : > { %v1324_v50 = vadd.f32 %v1323_v46, %v1235_v47 }
 0x19e   : > { %v2221_v51 = vpop.eup %2220  ;;  %v1463_v52 = vadd.f32 %v2472_v18, %v1324_v50 }
 0x19f   : > { %1526 = vst [vmem:[%s2487_s21 + $0xe0] sm:$0xff] %v2221_v51 }
 0x1a0   : > { %2222 = vtanh.f32 %v1463_v52 }
 0x1a1   : > { %v1237_v54 = vpop.f32.mrf.mxu2  ;;  %v1061_v58 = vpop.f32.mrf.mxu0 }
 0x1a2   : > { %v1326_v55 = vpop.f32.mrf.mxu3  ;;  %v1238_v56 = vadd.f32 %v1237_v54, %v1149_v53  ;;  %v1150_v59 = vpop.f32.mrf.mxu1 }
 0x1a3   : > { %v1151_v62 = vadd.f32 %v1150_v59, %v1061_v58 }
 0x1a4   : > { %v1327_v57 = vadd.f32 %v1326_v55, %v1238_v56 }
 0x1a6   : > { %v2223_v60 = vpop.eup %2222  ;;  %v1464_v61 = vadd.f32 %v2472_v18, %v1327_v57 }
 0x1a7   : > { %1527 = vst [vmem:[%s2487_s21 + $0xe8] sm:$0xff] %v2223_v60 }
 0x1a8   : > { %2224 = vtanh.f32 %v1464_v61 }
 0x1a9   : > { %v1239_v63 = vpop.f32.mrf.mxu2 }
 0x1aa   : > { %v1240_v0 = vadd.f32 %v1239_v63, %v1151_v62  ;;  %v1328_v1 = vpop.f32.mrf.mxu3 }
 0x1ac   : > { %v1329_v2 = vadd.f32 %v1328_v1, %v1240_v0 }
 0x1ae   : > { %v2225_v3 = vpop.eup %2224  ;;  %v1465_v4 = vadd.f32 %v2472_v18, %v1329_v2 }
 0x1af   : > { %1528 = vst [vmem:[%s2487_s21 + $0xf0] sm:$0xff] %v2225_v3 }
 0x1b0   : > { %2226 = vtanh.f32 %v1465_v4 }
 0x1b6   : > { %v2227_v5 = vpop.eup %2226 }
 0x1b7   : > { %1529 = vst [vmem:[%s2487_s21 + $0xf8] sm:$0xff] %v2227_v5 }
 0x1b8 PF: > { %s13_s14 = sadd.s32 1, %s2250_s14   ;;  %s2613_s12 = smov %s2246_s13 }
 0x1b9   : > { %p10_p5 = scmp.ge.s32.totalorder %s13_s14, 10   ;;  %s2614_s13 = smov %s2616_s15 }
 0x1bb   :  { %12 = sbr.rel (!%p10_p5) target bundleno = 2 (0x2), region = 76 }

</bundles_post_ra>
